<compile_context>
chip_gen: v5e
topology: v5e:2x2
jax: 0.10.0
libtpu: 0.0.40
codegen_flags: <defaults>
</compile_context>

<pallas_src>
import functools

import jax
import jax.numpy as jnp
import numpy as np
from jax import lax
from jax.experimental import pallas as pl
from jax.experimental.pallas import tpu as pltpu

# ---------------- configuration (small, forward-consistent shapes) ----------
N_FEATURES = 16
N_PHI_X = 32
N_PHI_Z = 32
N_LATENT = 8
N_PRIOR = 32
N_REC = 32
N_ENC = 32
N_DEC = 32
N_REC_LAYERS = 2   # kernel hard-codes the 2-layer GRU
T = 8
B = 4
BP = 8             # batch rows padded to one full sublane tile
LANES = 128

# ---------------- packed weight layout ---------------------------------------
# Main slab: weights stacked along the sublane (row) axis, 128 lanes wide.
R_PX1 = 0      # (16, 32)
R_PX2 = 16     # (32, 32)
R_PXF = 48     # (32, 128)  [W_ih0x (96) | W_enc1x (32)]
R_ENC2 = 80    # (32, 32)
R_ENCH = 112   # (32, 16)   [mu | sigma]
R_PRH = 144    # (32, 16)   [mu | sigma]
R_PZ1 = 176    # (8, 32)
R_PZ2 = 184    # (32, 32)
R_PZF = 216    # (32, 128)  [W_ih0z (96) | W_dec1z (32)]
R_DEC2 = 248   # (32, 32)
R_DECH = 280   # (32, 32)   [mu | sigma]
R_HH0 = 312    # (32, 96)
R_IH1 = 344    # (32, 96)
W_ROWS = 384   # padded row count (multiple of 8)

# h_last fused weight (separate (32, 256) array):
#   lanes [0:96) = W_hh1, [96:128) = W_enc1h, [128:160) = W_pr, [160:192) = W_dec1h
HF_LANES = 256

# Bias slab: one bias per row, lanes 0:n.
(B_PX1, B_PX2, B_ENC1, B_ENC2, B_ENCH, B_PR, B_PRH, B_PZ1, B_PZ2,
 B_DEC1, B_DEC2, B_DECH) = range(12)
B_ROWS = 16


# ---------------- elementwise helpers (shared by kernel and reference) -------
def _relu(v):
    return jnp.maximum(v, 0.0)


def _sigmoid(v):
    # stable, single-transcendental sigmoid: 0.5*(tanh(v/2)+1)
    return 0.5 * (jnp.tanh(0.5 * v) + 1.0)


def _softplus(v):
    # matches torch.nn.Softplus (threshold=20)
    return jnp.where(v > 20.0, v, jnp.log(1.0 + jnp.exp(jnp.minimum(v, 20.0))))


# ---------------- Pallas kernel ----------------------------------------------
def rvae_kernel(x_ref, eps_ref, w_ref, wh_ref, b_ref,
                out_ref, kld_o, nll_o, *, Tn, Bn, Fn, L):
    H = N_REC
    f32 = jnp.float32

    def mm(a, row, n):
        # y = a @ W, W sliced to the real (K, n) block of the slab (static slice).
        k = a.shape[-1]
        return jnp.dot(a, w_ref[row:row + k, 0:n], preferred_element_type=f32)

    def bias_b(row, n):
        # hoisted (BP, n) bias broadcast (JAX does not CSE broadcast_in_dim).
        return jnp.broadcast_to(b_ref[row:row + 1, 0:n], (BP, n))

    # ---- loop-invariant values: biases, lane masks, row mask, output padding --
    b_enc1 = bias_b(B_ENC1, N_ENC)
    b_enc2 = bias_b(B_ENC2, N_ENC)
    b_ench = bias_b(B_ENCH, 2 * L)
    b_pr = bias_b(B_PR, N_PRIOR)
    b_prh = bias_b(B_PRH, 2 * L)
    b_pz1 = bias_b(B_PZ1, N_PHI_Z)
    b_pz2 = bias_b(B_PZ2, N_PHI_Z)
    b_dec1 = bias_b(B_DEC1, N_DEC)
    b_dec2 = bias_b(B_DEC2, N_DEC)
    b_dech = bias_b(B_DECH, 2 * Fn)

    mask_enc_mu = lax.broadcasted_iota(jnp.int32, (BP, 2 * L), 1) < L
    mask_dec_mu = lax.broadcasted_iota(jnp.int32, (BP, 2 * Fn), 1) < Fn
    # real-batch row mask: padded rows are excluded from the loss reductions only.
    rowmask = (lax.broadcasted_iota(jnp.int32, (BP, 1), 0) < Bn).astype(f32)
    zpad = jnp.zeros((BP, LANES - 2 * L - 2 * Fn), f32)

    # ---- hoisted phi_x path (state-independent): all T*BP rows at once --------
    x_all = x_ref[...]                                           # (Tn*BP, Fn)
    p1 = _relu(mm(x_all, R_PX1, N_PHI_X) + b_ref[B_PX1:B_PX1 + 1, 0:N_PHI_X])
    phi_x_all = _relu(mm(p1, R_PX2, N_PHI_X)
                      + b_ref[B_PX2:B_PX2 + 1, 0:N_PHI_X])
    # phi_x fused consumers: [gi0x (3H) | enc1x (N_ENC)]
    pxf_all = mm(phi_x_all, R_PXF, LANES)                        # (Tn*BP, 128)

    # h_last fused weight hoisted (one (32,256) value, read once).
    w_hfused = wh_ref[...]

    # recurrent state / deferred loss accumulators (all at BP rows).
    h0 = jnp.zeros((BP, H), f32)
    h1 = jnp.zeros((BP, H), f32)
    kld_acc = jnp.zeros((BP, L), f32)
    nll_acc = jnp.zeros((BP, Fn), f32)

    def gru_cell(gi, gh, hprev):
        # PyTorch gate order [r, z, n], bias=False; sigmoid over [r|z] in one call.
        rz = _sigmoid(gi[:, 0:2 * H] + gh[:, 0:2 * H])
        r = rz[:, 0:H]
        zg = rz[:, H:2 * H]
        n = jnp.tanh(gi[:, 2 * H:3 * H] + r * gh[:, 2 * H:3 * H])
        return (1.0 - zg) * n + zg * hprev

    for t in range(Tn):                 # T is small & static: full unroll
        r0 = t * BP                     # sublane-tile aligned row offset
        x_t = x_ref[r0:r0 + BP, :]      # (BP, Fn)
        pxf = pxf_all[r0:r0 + BP, :]    # (BP, 128)
        ep = eps_ref[r0:r0 + BP, :]     # (BP, L)
        h_last = h1                     # h[-1] before this step's update

        # one fused matmul feeds every h[-1] consumer this step.
        hf = jnp.dot(h_last, w_hfused, preferred_element_type=f32)  # (BP, 256)
        gh1 = hf[:, 0:3 * H]
        h_enc1 = hf[:, 3 * H:3 * H + N_ENC]
        pr_pre = hf[:, 128:128 + N_PRIOR]
        h_dec1 = hf[:, 160:160 + N_DEC]

        # encoder
        enc1 = _relu(pxf[:, 3 * H:3 * H + N_ENC] + h_enc1 + b_enc1)
        enc2 = _relu(mm(enc1, R_ENC2, N_ENC) + b_enc2)
        ench = mm(enc2, R_ENCH, 2 * L) + b_ench          # [mu | sigma] logits
        enc_block = jnp.where(mask_enc_mu, _sigmoid(ench), _softplus(ench))
        enc_mu = enc_block[:, 0:L]
        enc_sig = enc_block[:, L:2 * L]

        # prior
        pr = _relu(pr_pre + b_pr)
        prh = mm(pr, R_PRH, 2 * L) + b_prh
        pr_mu = _sigmoid(prh[:, 0:L])
        pr_sig = _softplus(prh[:, L:2 * L])

        # reparameterized sample + phi_z (+ fused phi_z consumers)
        z = ep * enc_sig + enc_mu
        pz1 = _relu(mm(z, R_PZ1, N_PHI_Z) + b_pz1)
        phi_z = _relu(mm(pz1, R_PZ2, N_PHI_Z) + b_pz2)
        pzf = mm(phi_z, R_PZF, LANES)                    # [gi0z (3H) | dec1z]

        # decoder
        dec1 = _relu(pzf[:, 3 * H:3 * H + N_DEC] + h_dec1 + b_dec1)
        dec2 = _relu(mm(dec1, R_DEC2, N_DEC) + b_dec2)
        dech = mm(dec2, R_DECH, 2 * Fn) + b_dech         # [mu | sigma] logits
        dec_block = jnp.where(mask_dec_mu, _sigmoid(dech), _softplus(dech))
        v = dech[:, 0:Fn]                                # decoder mu logits

        # 2-layer GRU (bias=False); layer-0 input weight already applied in
        # pxf/pzf, so gi0 is a plain add.
        gi0 = pxf[:, 0:3 * H] + pzf[:, 0:3 * H]
        gh0 = mm(h0, R_HH0, 3 * H)
        h0 = gru_cell(gi0, gh0, h0)
        gi1 = mm(h0, R_IH1, 3 * H)
        h1 = gru_cell(gi1, gh1, h_last)

        # deferred losses: accumulate per-element terms, reduce once after loop.
        kld_acc = kld_acc + (2.0 * jnp.log(pr_sig / enc_sig)
                             + (enc_sig * enc_sig + (enc_mu - pr_mu) ** 2)
                             / (pr_sig * pr_sig) - 1.0)
        # Bernoulli NLL from logits: max(v,0) - x*v + log(1+exp(-|v|)).
        nll_acc = nll_acc + (jnp.maximum(v, 0.0) - x_t * v
                             + jnp.log(1.0 + jnp.exp(-jnp.abs(v))))

        # single lane-dense, unmasked (BP, 128) store per timestep.
        out_ref[r0:r0 + BP, :] = jnp.concatenate(
            [enc_block, dec_block, zpad], axis=-1)

    # final masked reductions (padded rows excluded here only).
    kld_o[...] = 0.5 * jnp.sum(rowmask * kld_acc, keepdims=True)
    nll_o[...] = jnp.sum(rowmask * nll_acc, keepdims=True)


# ---------------- host-side parameter packing --------------------------------
def pack_params(p):
    wslab = np.zeros((W_ROWS, LANES), np.float32)
    whf = np.zeros((N_REC, HF_LANES), np.float32)
    bslab = np.zeros((B_ROWS, LANES), np.float32)

    def put_w(row, w):
        w = np.asarray(w, np.float32)
        wslab[row:row + w.shape[0], 0:w.shape[1]] = w

    def put_b(row, b):
        b = np.asarray(b, np.float32).reshape(-1)
        bslab[row, 0:b.shape[0]] = b

    put_w(R_PX1, p["wpx1"]); put_b(B_PX1, p["bpx1"])
    put_w(R_PX2, p["wpx2"]); put_b(B_PX2, p["bpx2"])
    # phi_x fused consumers: [W_ih0x (96) | W_enc1x (32)]
    put_w(R_PXF, np.concatenate([np.asarray(p["wih0x"]),
                                 np.asarray(p["wenc1x"])], axis=1))
    put_b(B_ENC1, p["benc1"])
    put_w(R_ENC2, p["wenc2"]); put_b(B_ENC2, p["benc2"])
    put_w(R_ENCH, np.concatenate([np.asarray(p["wencmu"]),
                                  np.asarray(p["wencsig"])], axis=1))
    put_b(B_ENCH, np.concatenate([np.asarray(p["bencmu"]),
                                  np.asarray(p["bencsig"])], axis=1))
    put_b(B_PR, p["bpr"])
    put_w(R_PRH, np.concatenate([np.asarray(p["wprmu"]),
                                 np.asarray(p["wprsig"])], axis=1))
    put_b(B_PRH, np.concatenate([np.asarray(p["bprmu"]),
                                 np.asarray(p["bprsig"])], axis=1))
    put_w(R_PZ1, p["wpz1"]); put_b(B_PZ1, p["bpz1"])
    put_w(R_PZ2, p["wpz2"]); put_b(B_PZ2, p["bpz2"])
    # phi_z fused consumers: [W_ih0z (96) | W_dec1z (32)]
    put_w(R_PZF, np.concatenate([np.asarray(p["wih0z"]),
                                 np.asarray(p["wdec1z"])], axis=1))
    put_b(B_DEC1, p["bdec1"])
    put_w(R_DEC2, p["wdec2"]); put_b(B_DEC2, p["bdec2"])
    put_w(R_DECH, np.concatenate([np.asarray(p["wdecmu"]),
                                  np.asarray(p["wdecsig"])], axis=1))
    put_b(B_DECH, np.concatenate([np.asarray(p["bdecmu"]),
                                  np.asarray(p["bdecsig"])], axis=1))
    put_w(R_HH0, p["whh0"])
    put_w(R_IH1, p["wih1"])
    # h_last fused: [W_hh1 (96) | W_enc1h (32) | W_pr (32) | W_dec1h (32)]
    whf[:, 0:96] = np.asarray(p["whh1"], np.float32)
    whf[:, 96:128] = np.asarray(p["wenc1h"], np.float32)
    whf[:, 128:160] = np.asarray(p["wpr"], np.float32)
    whf[:, 160:192] = np.asarray(p["wdec1h"], np.float32)
    return jnp.asarray(wslab), jnp.asarray(whf), jnp.asarray(bslab)


# ---------------- wrapper -----------------------------------------------------
def rvae_pallas(x, eps, params):
    Tn, Bn, Fn = x.shape
    L = eps.shape[-1]

    wslab, whf, bslab = pack_params(params)

    # Pad the batch to BP rows per timestep (full sublane tile) and flatten time,
    # so every in-kernel row slice is tile-aligned.
    x_pad = jnp.zeros((Tn, BP, Fn), jnp.float32).at[:, :Bn, :].set(
        x.astype(jnp.float32)).reshape(Tn * BP, Fn)
    eps_pad = jnp.zeros((Tn, BP, L), jnp.float32).at[:, :Bn, :].set(
        eps.astype(jnp.float32)).reshape(Tn * BP, L)

    kernel = functools.partial(rvae_kernel, Tn=Tn, Bn=Bn, Fn=Fn, L=L)

    out_shape = (
        jax.ShapeDtypeStruct((Tn * BP, LANES), jnp.float32),  # packed outputs
        jax.ShapeDtypeStruct((1, 1), jnp.float32),            # kld_loss
        jax.ShapeDtypeStruct((1, 1), jnp.float32),            # nll_loss
    )
    in_specs = [
        pl.BlockSpec((Tn * BP, Fn), lambda i: (0, 0)),
        pl.BlockSpec((Tn * BP, L), lambda i: (0, 0)),
        pl.BlockSpec((W_ROWS, LANES), lambda i: (0, 0)),
        pl.BlockSpec((N_REC, HF_LANES), lambda i: (0, 0)),
        pl.BlockSpec((B_ROWS, LANES), lambda i: (0, 0)),
    ]
    out_specs = (
        pl.BlockSpec((Tn * BP, LANES), lambda i: (0, 0)),
        pl.BlockSpec((1, 1), lambda i: (0, 0)),
        pl.BlockSpec((1, 1), lambda i: (0, 0)),
    )

    out_slab, kld, nll = pl.pallas_call(
        kernel,
        out_shape=out_shape,
        grid=(1,),
        in_specs=in_specs,
        out_specs=out_specs,
        compiler_params=pltpu.CompilerParams(
            dimension_semantics=("arbitrary",)),
    )(x_pad, eps_pad, wslab, whf, bslab)

    slab = out_slab.reshape(Tn, BP, LANES)[:, :Bn, :]
    enc_mu = slab[..., 0:L]
    enc_sig = slab[..., L:2 * L]
    dec_mu = slab[..., 2 * L:2 * L + Fn]
    dec_sig = slab[..., 2 * L + Fn:2 * L + 2 * Fn]
    return (kld[0, 0], nll[0, 0], (enc_mu, enc_sig), (dec_mu, dec_sig))


# ---------------- deterministic parameter init --------------------------------
def init_params(key):
    keys = iter(jax.random.split(key, 64))

    def W(shape):
        return jax.random.normal(next(keys), shape, jnp.float32) * 0.1

    p = {}
    p["wpx1"] = W((N_FEATURES, N_PHI_X)); p["bpx1"] = W((1, N_PHI_X))
    p["wpx2"] = W((N_PHI_X, N_PHI_X));    p["bpx2"] = W((1, N_PHI_X))
    p["wpz1"] = W((N_LATENT, N_PHI_Z));   p["bpz1"] = W((1, N_PHI_Z))
    p["wpz2"] = W((N_PHI_Z, N_PHI_Z));    p["bpz2"] = W((1, N_PHI_Z))
    p["wenc1x"] = W((N_PHI_X, N_ENC)); p["wenc1h"] = W((N_REC, N_ENC))
    p["benc1"] = W((1, N_ENC))
    p["wenc2"] = W((N_ENC, N_ENC));    p["benc2"] = W((1, N_ENC))
    p["wencmu"] = W((N_ENC, N_LATENT));  p["bencmu"] = W((1, N_LATENT))
    p["wencsig"] = W((N_ENC, N_LATENT)); p["bencsig"] = W((1, N_LATENT))
    p["wpr"] = W((N_REC, N_PRIOR));      p["bpr"] = W((1, N_PRIOR))
    p["wprmu"] = W((N_PRIOR, N_LATENT));  p["bprmu"] = W((1, N_LATENT))
    p["wprsig"] = W((N_PRIOR, N_LATENT)); p["bprsig"] = W((1, N_LATENT))
    p["wdec1z"] = W((N_PHI_Z, N_DEC)); p["wdec1h"] = W((N_REC, N_DEC))
    p["bdec1"] = W((1, N_DEC))
    p["wdec2"] = W((N_DEC, N_DEC));    p["bdec2"] = W((1, N_DEC))
    p["wdecmu"] = W((N_DEC, N_FEATURES));  p["bdecmu"] = W((1, N_FEATURES))
    p["wdecsig"] = W((N_DEC, N_FEATURES)); p["bdecsig"] = W((1, N_FEATURES))
    # GRU (bias=False); layer-0 input weight split into phi_x / phi_z halves
    p["wih0x"] = W((N_PHI_X, 3 * N_REC))
    p["wih0z"] = W((N_PHI_Z, 3 * N_REC))
    p["whh0"] = W((N_REC, 3 * N_REC))
    p["wih1"] = W((N_REC, 3 * N_REC))
    p["whh1"] = W((N_REC, 3 * N_REC))
    return p


# ---------------- pure-JAX reference (for validation) --------------------------
def rvae_reference(x, eps, p):
    Tn, Bn, Fn = x.shape
    H = N_REC
    h0 = jnp.zeros((Bn, H), jnp.float32)
    h1 = jnp.zeros((Bn, H), jnp.float32)
    kld = jnp.float32(0.0)
    nll = jnp.float32(0.0)
    emus, esigs, dmus, dsigs = [], [], [], []
    for t in range(Tn):
        xt, ep = x[t], eps[t]
        phi_x = _relu(_relu(xt @ p["wpx1"] + p["bpx1"]) @ p["wpx2"] + p["bpx2"])
        enc = _relu(phi_x @ p["wenc1x"] + h1 @ p["wenc1h"] + p["benc1"])
        enc = _relu(enc @ p["wenc2"] + p["benc2"])
        enc_mu = _sigmoid(enc @ p["wencmu"] + p["bencmu"])
        enc_sig = _softplus(enc @ p["wencsig"] + p["bencsig"])
        pr = _relu(h1 @ p["wpr"] + p["bpr"])
        pr_mu = _sigmoid(pr @ p["wprmu"] + p["bprmu"])
        pr_sig = _softplus(pr @ p["wprsig"] + p["bprsig"])
        z = ep * enc_sig + enc_mu
        phi_z = _relu(_relu(z @ p["wpz1"] + p["bpz1"]) @ p["wpz2"] + p["bpz2"])
        dec = _relu(phi_z @ p["wdec1z"] + h1 @ p["wdec1h"] + p["bdec1"])
        dec = _relu(dec @ p["wdec2"] + p["bdec2"])
        dec_mu = _sigmoid(dec @ p["wdecmu"] + p["bdecmu"])
        dec_sig = _softplus(dec @ p["wdecsig"] + p["bdecsig"])

        def gru(gi, hprev, whh):
            gh = hprev @ whh
            r = _sigmoid(gi[:, :H] + gh[:, :H])
            zg = _sigmoid(gi[:, H:2 * H] + gh[:, H:2 * H])
            n = jnp.tanh(gi[:, 2 * H:] + r * gh[:, 2 * H:])
            return (1.0 - zg) * n + zg * hprev

        h1_prev = h1
        h0 = gru(phi_x @ p["wih0x"] + phi_z @ p["wih0z"], h0, p["whh0"])
        h1 = gru(h0 @ p["wih1"], h1_prev, p["whh1"])

        kld += 0.5 * jnp.sum(2.0 * jnp.log(pr_sig) - 2.0 * jnp.log(enc_sig)
                             + (enc_sig ** 2 + (enc_mu - pr_mu) ** 2) / pr_sig ** 2
                             - 1.0)
        nll += -jnp.sum(xt * jnp.log(dec_mu) + (1.0 - xt) * jnp.log(1.0 - dec_mu))
        emus.append(enc_mu); esigs.append(enc_sig)
        dmus.append(dec_mu); dsigs.append(dec_sig)
    return (kld, nll,
            (jnp.stack(emus), jnp.stack(esigs)),
            (jnp.stack(dmus), jnp.stack(dsigs)))


# ---------------- main ---------------------------------------------------------
if __name__ == "__main__":
    key = jax.random.PRNGKey(0)
    kx, ke, kp = jax.random.split(key, 3)
    x = jax.random.uniform(kx, (T, B, N_FEATURES), jnp.float32)   # (0,1) for Bernoulli NLL
    eps = jax.random.normal(ke, (T, B, N_LATENT), jnp.float32)    # reparameterization noise
    params = init_params(kp)

    kld, nll, (emu, esig), (dmu, dsig) = rvae_pallas(x, eps, params)
    jax.block_until_ready((kld, nll, emu, esig, dmu, dsig))

    rkld, rnll, (remu, resig), (rdmu, rdsig) = rvae_reference(x, eps, params)
    np.testing.assert_allclose(np.asarray(kld), np.asarray(rkld), rtol=5e-3, atol=5e-3)
    np.testing.assert_allclose(np.asarray(nll), np.asarray(rnll), rtol=5e-3, atol=5e-3)
    np.testing.assert_allclose(np.asarray(emu), np.asarray(remu), rtol=5e-3, atol=5e-3)
    np.testing.assert_allclose(np.asarray(esig), np.asarray(resig), rtol=5e-3, atol=5e-3)
    np.testing.assert_allclose(np.asarray(dmu), np.asarray(rdmu), rtol=5e-3, atol=5e-3)
    np.testing.assert_allclose(np.asarray(dsig), np.asarray(rdsig), rtol=5e-3, atol=5e-3)

    print("KERNEL_OK")
</pallas_src>

<mosaic_0001>
module attributes {stable_mosaic.version = 11 : i64} {
  func.func @rvae_kernel(%arg0: i32, %arg1: memref<64x16xf32, #tpu.memory_space<vmem>>, %arg2: memref<64x8xf32, #tpu.memory_space<vmem>>, %arg3: memref<384x128xf32, #tpu.memory_space<vmem>>, %arg4: memref<32x256xf32, #tpu.memory_space<vmem>>, %arg5: memref<16x128xf32, #tpu.memory_space<vmem>>, %arg6: memref<64x128xf32, #tpu.memory_space<vmem>>, %arg7: memref<1x1xf32, #tpu.memory_space<vmem>>, %arg8: memref<1x1xf32, #tpu.memory_space<vmem>>) attributes {dimension_semantics = [#tpu.dimension_semantics<arbitrary>], iteration_bounds = array<i64: 1>, scalar_prefetch = 0 : i64, scratch_operands = 0 : i64, tpu.core_type = #tpu.core_type<tc>, window_params = [{pipeline_mode = #tpu.pipeline_mode<synchronous>, transform_indices = @transform_0, window_bounds = array<i64: 64, 16>}, {pipeline_mode = #tpu.pipeline_mode<synchronous>, transform_indices = @transform_1, window_bounds = array<i64: 64, 8>}, {pipeline_mode = #tpu.pipeline_mode<synchronous>, transform_indices = @transform_2, window_bounds = array<i64: 384, 128>}, {pipeline_mode = #tpu.pipeline_mode<synchronous>, transform_indices = @transform_3, window_bounds = array<i64: 32, 256>}, {pipeline_mode = #tpu.pipeline_mode<synchronous>, transform_indices = @transform_4, window_bounds = array<i64: 16, 128>}, {pipeline_mode = #tpu.pipeline_mode<synchronous>, transform_indices = @transform_5, window_bounds = array<i64: 64, 128>}, {pipeline_mode = #tpu.pipeline_mode<synchronous>, transform_indices = @transform_6, window_bounds = array<i64: 1, 1>}, {pipeline_mode = #tpu.pipeline_mode<synchronous>, transform_indices = @transform_7, window_bounds = array<i64: 1, 1>}]} {
    %c2 = arith.constant 2 : index
    %c0 = arith.constant 0 : index
    %0 = vector.load %arg5[%c2, %c0] : memref<16x128xf32, #tpu.memory_space<vmem>>, vector<1x32xf32>
    %1 = vector.shape_cast %0 : vector<1x32xf32> to vector<1x32xf32>
    %2 = vector.broadcast %1 : vector<1x32xf32> to vector<8x32xf32>
    %c3 = arith.constant 3 : index
    %c0_0 = arith.constant 0 : index
    %3 = vector.load %arg5[%c3, %c0_0] : memref<16x128xf32, #tpu.memory_space<vmem>>, vector<1x32xf32>
    %4 = vector.shape_cast %3 : vector<1x32xf32> to vector<1x32xf32>
    %5 = vector.broadcast %4 : vector<1x32xf32> to vector<8x32xf32>
    %c4 = arith.constant 4 : index
    %c0_1 = arith.constant 0 : index
    %6 = vector.load %arg5[%c4, %c0_1] : memref<16x128xf32, #tpu.memory_space<vmem>>, vector<1x16xf32>
    %7 = vector.shape_cast %6 : vector<1x16xf32> to vector<1x16xf32>
    %8 = vector.broadcast %7 : vector<1x16xf32> to vector<8x16xf32>
    %c5 = arith.constant 5 : index
    %c0_2 = arith.constant 0 : index
    %9 = vector.load %arg5[%c5, %c0_2] : memref<16x128xf32, #tpu.memory_space<vmem>>, vector<1x32xf32>
    %10 = vector.shape_cast %9 : vector<1x32xf32> to vector<1x32xf32>
    %11 = vector.broadcast %10 : vector<1x32xf32> to vector<8x32xf32>
    %c6 = arith.constant 6 : index
    %c0_3 = arith.constant 0 : index
    %12 = vector.load %arg5[%c6, %c0_3] : memref<16x128xf32, #tpu.memory_space<vmem>>, vector<1x16xf32>
    %13 = vector.shape_cast %12 : vector<1x16xf32> to vector<1x16xf32>
    %14 = vector.broadcast %13 : vector<1x16xf32> to vector<8x16xf32>
    %c7 = arith.constant 7 : index
    %c0_4 = arith.constant 0 : index
    %15 = vector.load %arg5[%c7, %c0_4] : memref<16x128xf32, #tpu.memory_space<vmem>>, vector<1x32xf32>
    %16 = vector.shape_cast %15 : vector<1x32xf32> to vector<1x32xf32>
    %17 = vector.broadcast %16 : vector<1x32xf32> to vector<8x32xf32>
    %c8 = arith.constant 8 : index
    %c0_5 = arith.constant 0 : index
    %18 = vector.load %arg5[%c8, %c0_5] : memref<16x128xf32, #tpu.memory_space<vmem>>, vector<1x32xf32>
    %19 = vector.shape_cast %18 : vector<1x32xf32> to vector<1x32xf32>
    %20 = vector.broadcast %19 : vector<1x32xf32> to vector<8x32xf32>
    %c9 = arith.constant 9 : index
    %c0_6 = arith.constant 0 : index
    %21 = vector.load %arg5[%c9, %c0_6] : memref<16x128xf32, #tpu.memory_space<vmem>>, vector<1x32xf32>
    %22 = vector.shape_cast %21 : vector<1x32xf32> to vector<1x32xf32>
    %23 = vector.broadcast %22 : vector<1x32xf32> to vector<8x32xf32>
    %c10 = arith.constant 10 : index
    %c0_7 = arith.constant 0 : index
    %24 = vector.load %arg5[%c10, %c0_7] : memref<16x128xf32, #tpu.memory_space<vmem>>, vector<1x32xf32>
    %25 = vector.shape_cast %24 : vector<1x32xf32> to vector<1x32xf32>
    %26 = vector.broadcast %25 : vector<1x32xf32> to vector<8x32xf32>
    %c11 = arith.constant 11 : index
    %c0_8 = arith.constant 0 : index
    %27 = vector.load %arg5[%c11, %c0_8] : memref<16x128xf32, #tpu.memory_space<vmem>>, vector<1x32xf32>
    %28 = vector.shape_cast %27 : vector<1x32xf32> to vector<1x32xf32>
    %29 = vector.broadcast %28 : vector<1x32xf32> to vector<8x32xf32>
    %30 = tpu.iota {dimensions = array<i32: 1>} : vector<8x16xi32>
    %c8_i32 = arith.constant 8 : i32
    %31 = vector.broadcast %c8_i32 : i32 to vector<8x16xi32>
    %32 = arith.cmpi slt, %30, %31 : vector<8x16xi32>
    %33 = tpu.iota {dimensions = array<i32: 1>} : vector<8x32xi32>
    %c16_i32 = arith.constant 16 : i32
    %34 = vector.broadcast %c16_i32 : i32 to vector<8x32xi32>
    %35 = arith.cmpi slt, %33, %34 : vector<8x32xi32>
    %36 = tpu.iota {dimensions = array<i32: 0>} : vector<8x1xi32>
    %c4_i32 = arith.constant 4 : i32
    %37 = vector.broadcast %c4_i32 : i32 to vector<8x1xi32>
    %38 = arith.cmpi slt, %36, %37 : vector<8x1xi32>
    %39 = arith.extui %38 : vector<8x1xi1> to vector<8x1xi32>
    %40 = arith.sitofp %39 : vector<8x1xi32> to vector<8x1xf32>
    %cst = arith.constant 0.000000e+00 : f32
    %41 = vector.broadcast %cst : f32 to vector<8x80xf32>
    %c0_9 = arith.constant 0 : index
    %c0_10 = arith.constant 0 : index
    %42 = vector.load %arg1[%c0_9, %c0_10] : memref<64x16xf32, #tpu.memory_space<vmem>>, vector<64x16xf32>
    %c0_11 = arith.constant 0 : index
    %c0_12 = arith.constant 0 : index
    %43 = vector.load %arg3[%c0_11, %c0_12] : memref<384x128xf32, #tpu.memory_space<vmem>>, vector<16x32xf32>
    %cst_13 = arith.constant dense<0.000000e+00> : vector<64x32xf32>
    %44 = tpu.matmul %42, %43, %cst_13 {dimension_numbers = #tpu.dot_dimension_numbers<[1], [0], [0], [1], [0, 0, 1, 1], [], []>} : vector<64x16xf32>, vector<16x32xf32>, vector<64x32xf32> -> vector<64x32xf32>
    %c0_14 = arith.constant 0 : index
    %c0_15 = arith.constant 0 : index
    %45 = vector.load %arg5[%c0_14, %c0_15] : memref<16x128xf32, #tpu.memory_space<vmem>>, vector<1x32xf32>
    %46 = vector.broadcast %45 : vector<1x32xf32> to vector<64x32xf32>
    %47 = arith.addf %44, %46 : vector<64x32xf32>
    %cst_16 = arith.constant 0.000000e+00 : f32
    %48 = vector.broadcast %cst_16 : f32 to vector<64x32xf32>
    %49 = arith.maximumf %47, %48 : vector<64x32xf32>
    %c16 = arith.constant 16 : index
    %c0_17 = arith.constant 0 : index
    %50 = vector.load %arg3[%c16, %c0_17] : memref<384x128xf32, #tpu.memory_space<vmem>>, vector<32x32xf32>
    %cst_18 = arith.constant dense<0.000000e+00> : vector<64x32xf32>
    %51 = tpu.matmul %49, %50, %cst_18 {dimension_numbers = #tpu.dot_dimension_numbers<[1], [0], [0], [1], [0, 0, 1, 1], [], []>} : vector<64x32xf32>, vector<32x32xf32>, vector<64x32xf32> -> vector<64x32xf32>
    %c1 = arith.constant 1 : index
    %c0_19 = arith.constant 0 : index
    %52 = vector.load %arg5[%c1, %c0_19] : memref<16x128xf32, #tpu.memory_space<vmem>>, vector<1x32xf32>
    %53 = vector.broadcast %52 : vector<1x32xf32> to vector<64x32xf32>
    %54 = arith.addf %51, %53 : vector<64x32xf32>
    %cst_20 = arith.constant 0.000000e+00 : f32
    %55 = vector.broadcast %cst_20 : f32 to vector<64x32xf32>
    %56 = arith.maximumf %54, %55 : vector<64x32xf32>
    %c48 = arith.constant 48 : index
    %c0_21 = arith.constant 0 : index
    %57 = vector.load %arg3[%c48, %c0_21] : memref<384x128xf32, #tpu.memory_space<vmem>>, vector<32x128xf32>
    %cst_22 = arith.constant dense<0.000000e+00> : vector<64x128xf32>
    %58 = tpu.matmul %56, %57, %cst_22 {dimension_numbers = #tpu.dot_dimension_numbers<[1], [0], [0], [1], [0, 0, 1, 1], [], []>} : vector<64x32xf32>, vector<32x128xf32>, vector<64x128xf32> -> vector<64x128xf32>
    %c0_23 = arith.constant 0 : index
    %c0_24 = arith.constant 0 : index
    %59 = vector.load %arg4[%c0_23, %c0_24] : memref<32x256xf32, #tpu.memory_space<vmem>>, vector<32x256xf32>
    %cst_25 = arith.constant 0.000000e+00 : f32
    %60 = vector.broadcast %cst_25 : f32 to vector<8x32xf32>
    %cst_26 = arith.constant 0.000000e+00 : f32
    %61 = vector.broadcast %cst_26 : f32 to vector<8x32xf32>
    %cst_27 = arith.constant 0.000000e+00 : f32
    %62 = vector.broadcast %cst_27 : f32 to vector<8x8xf32>
    %cst_28 = arith.constant 0.000000e+00 : f32
    %63 = vector.broadcast %cst_28 : f32 to vector<8x16xf32>
    %c0_29 = arith.constant 0 : index
    %c0_30 = arith.constant 0 : index
    %64 = vector.load %arg1[%c0_29, %c0_30] : memref<64x16xf32, #tpu.memory_space<vmem>>, vector<8x16xf32>
    %65 = vector.extract_strided_slice %58 {offsets = [0, 0], sizes = [8, 128], strides = [1, 1]} : vector<64x128xf32> to vector<8x128xf32>
    %c0_31 = arith.constant 0 : index
    %c0_32 = arith.constant 0 : index
    %66 = vector.load %arg2[%c0_31, %c0_32] : memref<64x8xf32, #tpu.memory_space<vmem>>, vector<8x8xf32>
    %cst_33 = arith.constant dense<0.000000e+00> : vector<8x256xf32>
    %67 = tpu.matmul %61, %59, %cst_33 {dimension_numbers = #tpu.dot_dimension_numbers<[1], [0], [0], [1], [0, 0, 1, 1], [], []>} : vector<8x32xf32>, vector<32x256xf32>, vector<8x256xf32> -> vector<8x256xf32>
    %68 = vector.extract_strided_slice %67 {offsets = [0, 0], sizes = [8, 96], strides = [1, 1]} : vector<8x256xf32> to vector<8x96xf32>
    %69 = vector.extract_strided_slice %67 {offsets = [0, 96], sizes = [8, 32], strides = [1, 1]} : vector<8x256xf32> to vector<8x32xf32>
    %70 = vector.extract_strided_slice %67 {offsets = [0, 128], sizes = [8, 32], strides = [1, 1]} : vector<8x256xf32> to vector<8x32xf32>
    %71 = vector.extract_strided_slice %67 {offsets = [0, 160], sizes = [8, 32], strides = [1, 1]} : vector<8x256xf32> to vector<8x32xf32>
    %72 = vector.extract_strided_slice %65 {offsets = [0, 96], sizes = [8, 32], strides = [1, 1]} : vector<8x128xf32> to vector<8x32xf32>
    %73 = arith.addf %72, %69 : vector<8x32xf32>
    %74 = arith.addf %73, %2 : vector<8x32xf32>
    %cst_34 = arith.constant 0.000000e+00 : f32
    %75 = vector.broadcast %cst_34 : f32 to vector<8x32xf32>
    %76 = arith.maximumf %74, %75 : vector<8x32xf32>
    %c80 = arith.constant 80 : index
    %c0_35 = arith.constant 0 : index
    %77 = vector.load %arg3[%c80, %c0_35] : memref<384x128xf32, #tpu.memory_space<vmem>>, vector<32x32xf32>
    %cst_36 = arith.constant dense<0.000000e+00> : vector<8x32xf32>
    %78 = tpu.matmul %76, %77, %cst_36 {dimension_numbers = #tpu.dot_dimension_numbers<[1], [0], [0], [1], [0, 0, 1, 1], [], []>} : vector<8x32xf32>, vector<32x32xf32>, vector<8x32xf32> -> vector<8x32xf32>
    %79 = arith.addf %78, %5 : vector<8x32xf32>
    %cst_37 = arith.constant 0.000000e+00 : f32
    %80 = vector.broadcast %cst_37 : f32 to vector<8x32xf32>
    %81 = arith.maximumf %79, %80 : vector<8x32xf32>
    %c112 = arith.constant 112 : index
    %c0_38 = arith.constant 0 : index
    %82 = vector.load %arg3[%c112, %c0_38] : memref<384x128xf32, #tpu.memory_space<vmem>>, vector<32x16xf32>
    %cst_39 = arith.constant dense<0.000000e+00> : vector<8x16xf32>
    %83 = tpu.matmul %81, %82, %cst_39 {dimension_numbers = #tpu.dot_dimension_numbers<[1], [0], [0], [1], [0, 0, 1, 1], [], []>} : vector<8x32xf32>, vector<32x16xf32>, vector<8x16xf32> -> vector<8x16xf32>
    %84 = arith.addf %83, %8 : vector<8x16xf32>
    %cst_40 = arith.constant 5.000000e-01 : f32
    %85 = vector.broadcast %cst_40 : f32 to vector<8x16xf32>
    %86 = arith.mulf %85, %84 : vector<8x16xf32>
    %87 = math.tanh %86 : vector<8x16xf32>
    %cst_41 = arith.constant 1.000000e+00 : f32
    %88 = vector.broadcast %cst_41 : f32 to vector<8x16xf32>
    %89 = arith.addf %87, %88 : vector<8x16xf32>
    %cst_42 = arith.constant 5.000000e-01 : f32
    %90 = vector.broadcast %cst_42 : f32 to vector<8x16xf32>
    %91 = arith.mulf %90, %89 : vector<8x16xf32>
    %cst_43 = arith.constant 2.000000e+01 : f32
    %92 = vector.broadcast %cst_43 : f32 to vector<8x16xf32>
    %93 = arith.cmpf ogt, %84, %92 : vector<8x16xf32>
    %cst_44 = arith.constant 2.000000e+01 : f32
    %94 = vector.broadcast %cst_44 : f32 to vector<8x16xf32>
    %95 = arith.minimumf %84, %94 : vector<8x16xf32>
    %96 = math.exp %95 : vector<8x16xf32>
    %cst_45 = arith.constant 1.000000e+00 : f32
    %97 = vector.broadcast %cst_45 : f32 to vector<8x16xf32>
    %98 = arith.addf %97, %96 : vector<8x16xf32>
    %99 = math.log %98 : vector<8x16xf32>
    %100 = arith.select %93, %84, %99 : vector<8x16xi1>, vector<8x16xf32>
    %101 = arith.select %32, %91, %100 : vector<8x16xi1>, vector<8x16xf32>
    %102 = vector.extract_strided_slice %101 {offsets = [0, 0], sizes = [8, 8], strides = [1, 1]} : vector<8x16xf32> to vector<8x8xf32>
    %103 = vector.extract_strided_slice %101 {offsets = [0, 8], sizes = [8, 8], strides = [1, 1]} : vector<8x16xf32> to vector<8x8xf32>
    %104 = arith.addf %70, %11 : vector<8x32xf32>
    %cst_46 = arith.constant 0.000000e+00 : f32
    %105 = vector.broadcast %cst_46 : f32 to vector<8x32xf32>
    %106 = arith.maximumf %104, %105 : vector<8x32xf32>
    %c144 = arith.constant 144 : index
    %c0_47 = arith.constant 0 : index
    %107 = vector.load %arg3[%c144, %c0_47] : memref<384x128xf32, #tpu.memory_space<vmem>>, vector<32x16xf32>
    %cst_48 = arith.constant dense<0.000000e+00> : vector<8x16xf32>
    %108 = tpu.matmul %106, %107, %cst_48 {dimension_numbers = #tpu.dot_dimension_numbers<[1], [0], [0], [1], [0, 0, 1, 1], [], []>} : vector<8x32xf32>, vector<32x16xf32>, vector<8x16xf32> -> vector<8x16xf32>
    %109 = arith.addf %108, %14 : vector<8x16xf32>
    %110 = vector.extract_strided_slice %109 {offsets = [0, 0], sizes = [8, 8], strides = [1, 1]} : vector<8x16xf32> to vector<8x8xf32>
    %cst_49 = arith.constant 5.000000e-01 : f32
    %111 = vector.broadcast %cst_49 : f32 to vector<8x8xf32>
    %112 = arith.mulf %111, %110 : vector<8x8xf32>
    %113 = math.tanh %112 : vector<8x8xf32>
    %cst_50 = arith.constant 1.000000e+00 : f32
    %114 = vector.broadcast %cst_50 : f32 to vector<8x8xf32>
    %115 = arith.addf %113, %114 : vector<8x8xf32>
    %cst_51 = arith.constant 5.000000e-01 : f32
    %116 = vector.broadcast %cst_51 : f32 to vector<8x8xf32>
    %117 = arith.mulf %116, %115 : vector<8x8xf32>
    %118 = vector.extract_strided_slice %109 {offsets = [0, 8], sizes = [8, 8], strides = [1, 1]} : vector<8x16xf32> to vector<8x8xf32>
    %cst_52 = arith.constant 2.000000e+01 : f32
    %119 = vector.broadcast %cst_52 : f32 to vector<8x8xf32>
    %120 = arith.cmpf ogt, %118, %119 : vector<8x8xf32>
    %cst_53 = arith.constant 2.000000e+01 : f32
    %121 = vector.broadcast %cst_53 : f32 to vector<8x8xf32>
    %122 = arith.minimumf %118, %121 : vector<8x8xf32>
    %123 = math.exp %122 : vector<8x8xf32>
    %cst_54 = arith.constant 1.000000e+00 : f32
    %124 = vector.broadcast %cst_54 : f32 to vector<8x8xf32>
    %125 = arith.addf %124, %123 : vector<8x8xf32>
    %126 = math.log %125 : vector<8x8xf32>
    %127 = arith.select %120, %118, %126 : vector<8x8xi1>, vector<8x8xf32>
    %128 = arith.mulf %66, %103 : vector<8x8xf32>
    %129 = arith.addf %128, %102 : vector<8x8xf32>
    %c176 = arith.constant 176 : index
    %c0_55 = arith.constant 0 : index
    %130 = vector.load %arg3[%c176, %c0_55] : memref<384x128xf32, #tpu.memory_space<vmem>>, vector<8x32xf32>
    %cst_56 = arith.constant dense<0.000000e+00> : vector<8x32xf32>
    %131 = tpu.matmul %129, %130, %cst_56 {dimension_numbers = #tpu.dot_dimension_numbers<[1], [0], [0], [1], [0, 0, 1, 1], [], []>} : vector<8x8xf32>, vector<8x32xf32>, vector<8x32xf32> -> vector<8x32xf32>
    %132 = arith.addf %131, %17 : vector<8x32xf32>
    %cst_57 = arith.constant 0.000000e+00 : f32
    %133 = vector.broadcast %cst_57 : f32 to vector<8x32xf32>
    %134 = arith.maximumf %132, %133 : vector<8x32xf32>
    %c184 = arith.constant 184 : index
    %c0_58 = arith.constant 0 : index
    %135 = vector.load %arg3[%c184, %c0_58] : memref<384x128xf32, #tpu.memory_space<vmem>>, vector<32x32xf32>
    %cst_59 = arith.constant dense<0.000000e+00> : vector<8x32xf32>
    %136 = tpu.matmul %134, %135, %cst_59 {dimension_numbers = #tpu.dot_dimension_numbers<[1], [0], [0], [1], [0, 0, 1, 1], [], []>} : vector<8x32xf32>, vector<32x32xf32>, vector<8x32xf32> -> vector<8x32xf32>
    %137 = arith.addf %136, %20 : vector<8x32xf32>
    %cst_60 = arith.constant 0.000000e+00 : f32
    %138 = vector.broadcast %cst_60 : f32 to vector<8x32xf32>
    %139 = arith.maximumf %137, %138 : vector<8x32xf32>
    %c216 = arith.constant 216 : index
    %c0_61 = arith.constant 0 : index
    %140 = vector.load %arg3[%c216, %c0_61] : memref<384x128xf32, #tpu.memory_space<vmem>>, vector<32x128xf32>
    %cst_62 = arith.constant dense<0.000000e+00> : vector<8x128xf32>
    %141 = tpu.matmul %139, %140, %cst_62 {dimension_numbers = #tpu.dot_dimension_numbers<[1], [0], [0], [1], [0, 0, 1, 1], [], []>} : vector<8x32xf32>, vector<32x128xf32>, vector<8x128xf32> -> vector<8x128xf32>
    %142 = vector.extract_strided_slice %141 {offsets = [0, 96], sizes = [8, 32], strides = [1, 1]} : vector<8x128xf32> to vector<8x32xf32>
    %143 = arith.addf %142, %71 : vector<8x32xf32>
    %144 = arith.addf %143, %23 : vector<8x32xf32>
    %cst_63 = arith.constant 0.000000e+00 : f32
    %145 = vector.broadcast %cst_63 : f32 to vector<8x32xf32>
    %146 = arith.maximumf %144, %145 : vector<8x32xf32>
    %c248 = arith.constant 248 : index
    %c0_64 = arith.constant 0 : index
    %147 = vector.load %arg3[%c248, %c0_64] : memref<384x128xf32, #tpu.memory_space<vmem>>, vector<32x32xf32>
    %cst_65 = arith.constant dense<0.000000e+00> : vector<8x32xf32>
    %148 = tpu.matmul %146, %147, %cst_65 {dimension_numbers = #tpu.dot_dimension_numbers<[1], [0], [0], [1], [0, 0, 1, 1], [], []>} : vector<8x32xf32>, vector<32x32xf32>, vector<8x32xf32> -> vector<8x32xf32>
    %149 = arith.addf %148, %26 : vector<8x32xf32>
    %cst_66 = arith.constant 0.000000e+00 : f32
    %150 = vector.broadcast %cst_66 : f32 to vector<8x32xf32>
    %151 = arith.maximumf %149, %150 : vector<8x32xf32>
    %c280 = arith.constant 280 : index
    %c0_67 = arith.constant 0 : index
    %152 = vector.load %arg3[%c280, %c0_67] : memref<384x128xf32, #tpu.memory_space<vmem>>, vector<32x32xf32>
    %cst_68 = arith.constant dense<0.000000e+00> : vector<8x32xf32>
    %153 = tpu.matmul %151, %152, %cst_68 {dimension_numbers = #tpu.dot_dimension_numbers<[1], [0], [0], [1], [0, 0, 1, 1], [], []>} : vector<8x32xf32>, vector<32x32xf32>, vector<8x32xf32> -> vector<8x32xf32>
    %154 = arith.addf %153, %29 : vector<8x32xf32>
    %cst_69 = arith.constant 5.000000e-01 : f32
    %155 = vector.broadcast %cst_69 : f32 to vector<8x32xf32>
    %156 = arith.mulf %155, %154 : vector<8x32xf32>
    %157 = math.tanh %156 : vector<8x32xf32>
    %cst_70 = arith.constant 1.000000e+00 : f32
    %158 = vector.broadcast %cst_70 : f32 to vector<8x32xf32>
    %159 = arith.addf %157, %158 : vector<8x32xf32>
    %cst_71 = arith.constant 5.000000e-01 : f32
    %160 = vector.broadcast %cst_71 : f32 to vector<8x32xf32>
    %161 = arith.mulf %160, %159 : vector<8x32xf32>
    %cst_72 = arith.constant 2.000000e+01 : f32
    %162 = vector.broadcast %cst_72 : f32 to vector<8x32xf32>
    %163 = arith.cmpf ogt, %154, %162 : vector<8x32xf32>
    %cst_73 = arith.constant 2.000000e+01 : f32
    %164 = vector.broadcast %cst_73 : f32 to vector<8x32xf32>
    %165 = arith.minimumf %154, %164 : vector<8x32xf32>
    %166 = math.exp %165 : vector<8x32xf32>
    %cst_74 = arith.constant 1.000000e+00 : f32
    %167 = vector.broadcast %cst_74 : f32 to vector<8x32xf32>
    %168 = arith.addf %167, %166 : vector<8x32xf32>
    %169 = math.log %168 : vector<8x32xf32>
    %170 = arith.select %163, %154, %169 : vector<8x32xi1>, vector<8x32xf32>
    %171 = arith.select %35, %161, %170 : vector<8x32xi1>, vector<8x32xf32>
    %172 = vector.extract_strided_slice %154 {offsets = [0, 0], sizes = [8, 16], strides = [1, 1]} : vector<8x32xf32> to vector<8x16xf32>
    %173 = vector.extract_strided_slice %65 {offsets = [0, 0], sizes = [8, 96], strides = [1, 1]} : vector<8x128xf32> to vector<8x96xf32>
    %174 = vector.extract_strided_slice %141 {offsets = [0, 0], sizes = [8, 96], strides = [1, 1]} : vector<8x128xf32> to vector<8x96xf32>
    %175 = arith.addf %173, %174 : vector<8x96xf32>
    %c312 = arith.constant 312 : index
    %c0_75 = arith.constant 0 : index
    %176 = vector.load %arg3[%c312, %c0_75] : memref<384x128xf32, #tpu.memory_space<vmem>>, vector<32x96xf32>
    %cst_76 = arith.constant dense<0.000000e+00> : vector<8x96xf32>
    %177 = tpu.matmul %60, %176, %cst_76 {dimension_numbers = #tpu.dot_dimension_numbers<[1], [0], [0], [1], [0, 0, 1, 1], [], []>} : vector<8x32xf32>, vector<32x96xf32>, vector<8x96xf32> -> vector<8x96xf32>
    %178 = vector.extract_strided_slice %175 {offsets = [0, 0], sizes = [8, 64], strides = [1, 1]} : vector<8x96xf32> to vector<8x64xf32>
    %179 = vector.extract_strided_slice %177 {offsets = [0, 0], sizes = [8, 64], strides = [1, 1]} : vector<8x96xf32> to vector<8x64xf32>
    %180 = arith.addf %178, %179 : vector<8x64xf32>
    %cst_77 = arith.constant 5.000000e-01 : f32
    %181 = vector.broadcast %cst_77 : f32 to vector<8x64xf32>
    %182 = arith.mulf %181, %180 : vector<8x64xf32>
    %183 = math.tanh %182 : vector<8x64xf32>
    %cst_78 = arith.constant 1.000000e+00 : f32
    %184 = vector.broadcast %cst_78 : f32 to vector<8x64xf32>
    %185 = arith.addf %183, %184 : vector<8x64xf32>
    %cst_79 = arith.constant 5.000000e-01 : f32
    %186 = vector.broadcast %cst_79 : f32 to vector<8x64xf32>
    %187 = arith.mulf %186, %185 : vector<8x64xf32>
    %188 = vector.extract_strided_slice %187 {offsets = [0, 0], sizes = [8, 32], strides = [1, 1]} : vector<8x64xf32> to vector<8x32xf32>
    %189 = vector.extract_strided_slice %187 {offsets = [0, 32], sizes = [8, 32], strides = [1, 1]} : vector<8x64xf32> to vector<8x32xf32>
    %190 = vector.extract_strided_slice %175 {offsets = [0, 64], sizes = [8, 32], strides = [1, 1]} : vector<8x96xf32> to vector<8x32xf32>
    %191 = vector.extract_strided_slice %177 {offsets = [0, 64], sizes = [8, 32], strides = [1, 1]} : vector<8x96xf32> to vector<8x32xf32>
    %192 = arith.mulf %188, %191 : vector<8x32xf32>
    %193 = arith.addf %190, %192 : vector<8x32xf32>
    %194 = math.tanh %193 : vector<8x32xf32>
    %cst_80 = arith.constant 1.000000e+00 : f32
    %195 = vector.broadcast %cst_80 : f32 to vector<8x32xf32>
    %196 = arith.subf %195, %189 : vector<8x32xf32>
    %197 = arith.mulf %196, %194 : vector<8x32xf32>
    %198 = arith.mulf %189, %60 : vector<8x32xf32>
    %199 = arith.addf %197, %198 : vector<8x32xf32>
    %c344 = arith.constant 344 : index
    %c0_81 = arith.constant 0 : index
    %200 = vector.load %arg3[%c344, %c0_81] : memref<384x128xf32, #tpu.memory_space<vmem>>, vector<32x96xf32>
    %cst_82 = arith.constant dense<0.000000e+00> : vector<8x96xf32>
    %201 = tpu.matmul %199, %200, %cst_82 {dimension_numbers = #tpu.dot_dimension_numbers<[1], [0], [0], [1], [0, 0, 1, 1], [], []>} : vector<8x32xf32>, vector<32x96xf32>, vector<8x96xf32> -> vector<8x96xf32>
    %202 = vector.extract_strided_slice %201 {offsets = [0, 0], sizes = [8, 64], strides = [1, 1]} : vector<8x96xf32> to vector<8x64xf32>
    %203 = vector.extract_strided_slice %68 {offsets = [0, 0], sizes = [8, 64], strides = [1, 1]} : vector<8x96xf32> to vector<8x64xf32>
    %204 = arith.addf %202, %203 : vector<8x64xf32>
    %cst_83 = arith.constant 5.000000e-01 : f32
    %205 = vector.broadcast %cst_83 : f32 to vector<8x64xf32>
    %206 = arith.mulf %205, %204 : vector<8x64xf32>
    %207 = math.tanh %206 : vector<8x64xf32>
    %cst_84 = arith.constant 1.000000e+00 : f32
    %208 = vector.broadcast %cst_84 : f32 to vector<8x64xf32>
    %209 = arith.addf %207, %208 : vector<8x64xf32>
    %cst_85 = arith.constant 5.000000e-01 : f32
    %210 = vector.broadcast %cst_85 : f32 to vector<8x64xf32>
    %211 = arith.mulf %210, %209 : vector<8x64xf32>
    %212 = vector.extract_strided_slice %211 {offsets = [0, 0], sizes = [8, 32], strides = [1, 1]} : vector<8x64xf32> to vector<8x32xf32>
    %213 = vector.extract_strided_slice %211 {offsets = [0, 32], sizes = [8, 32], strides = [1, 1]} : vector<8x64xf32> to vector<8x32xf32>
    %214 = vector.extract_strided_slice %201 {offsets = [0, 64], sizes = [8, 32], strides = [1, 1]} : vector<8x96xf32> to vector<8x32xf32>
    %215 = vector.extract_strided_slice %68 {offsets = [0, 64], sizes = [8, 32], strides = [1, 1]} : vector<8x96xf32> to vector<8x32xf32>
    %216 = arith.mulf %212, %215 : vector<8x32xf32>
    %217 = arith.addf %214, %216 : vector<8x32xf32>
    %218 = math.tanh %217 : vector<8x32xf32>
    %cst_86 = arith.constant 1.000000e+00 : f32
    %219 = vector.broadcast %cst_86 : f32 to vector<8x32xf32>
    %220 = arith.subf %219, %213 : vector<8x32xf32>
    %221 = arith.mulf %220, %218 : vector<8x32xf32>
    %222 = arith.mulf %213, %61 : vector<8x32xf32>
    %223 = arith.addf %221, %222 : vector<8x32xf32>
    %224 = arith.divf %127, %103 : vector<8x8xf32>
    %225 = math.log %224 : vector<8x8xf32>
    %cst_87 = arith.constant 2.000000e+00 : f32
    %226 = vector.broadcast %cst_87 : f32 to vector<8x8xf32>
    %227 = arith.mulf %226, %225 : vector<8x8xf32>
    %228 = arith.mulf %103, %103 : vector<8x8xf32>
    %229 = arith.subf %102, %117 : vector<8x8xf32>
    %230 = arith.mulf %229, %229 : vector<8x8xf32>
    %231 = arith.addf %228, %230 : vector<8x8xf32>
    %232 = arith.mulf %127, %127 : vector<8x8xf32>
    %233 = arith.divf %231, %232 : vector<8x8xf32>
    %234 = arith.addf %227, %233 : vector<8x8xf32>
    %cst_88 = arith.constant 1.000000e+00 : f32
    %235 = vector.broadcast %cst_88 : f32 to vector<8x8xf32>
    %236 = arith.subf %234, %235 : vector<8x8xf32>
    %237 = arith.addf %62, %236 : vector<8x8xf32>
    %cst_89 = arith.constant 0.000000e+00 : f32
    %238 = vector.broadcast %cst_89 : f32 to vector<8x16xf32>
    %239 = arith.maximumf %172, %238 : vector<8x16xf32>
    %240 = arith.mulf %64, %172 : vector<8x16xf32>
    %241 = arith.subf %239, %240 : vector<8x16xf32>
    %242 = math.absf %172 : vector<8x16xf32>
    %cst_90 = arith.constant 0.000000e+00 : f32
    %243 = vector.broadcast %cst_90 : f32 to vector<8x16xf32>
    %244 = arith.subf %243, %242 : vector<8x16xf32>
    %245 = math.exp %244 : vector<8x16xf32>
    %cst_91 = arith.constant 1.000000e+00 : f32
    %246 = vector.broadcast %cst_91 : f32 to vector<8x16xf32>
    %247 = arith.addf %246, %245 : vector<8x16xf32>
    %248 = math.log %247 : vector<8x16xf32>
    %249 = arith.addf %241, %248 : vector<8x16xf32>
    %250 = arith.addf %63, %249 : vector<8x16xf32>
    %251 = tpu.concatenate %101, %171, %41 in 1 : vector<8x16xf32>, vector<8x32xf32>, vector<8x80xf32> -> vector<8x128xf32>
    %c0_92 = arith.constant 0 : index
    %c0_93 = arith.constant 0 : index
    %252 = vector.load %arg6[%c0_92, %c0_93] : memref<64x128xf32, #tpu.memory_space<vmem>>, vector<8x128xf32>
    tpu.vector_store %arg6[%c0_92, %c0_93], %251 {strides = array<i32>} : memref<64x128xf32, #tpu.memory_space<vmem>>, vector<8x128xf32>,
    %c8_94 = arith.constant 8 : index
    %c0_95 = arith.constant 0 : index
    %253 = vector.load %arg1[%c8_94, %c0_95] : memref<64x16xf32, #tpu.memory_space<vmem>>, vector<8x16xf32>
    %254 = vector.extract_strided_slice %58 {offsets = [8, 0], sizes = [8, 128], strides = [1, 1]} : vector<64x128xf32> to vector<8x128xf32>
    %c8_96 = arith.constant 8 : index
    %c0_97 = arith.constant 0 : index
    %255 = vector.load %arg2[%c8_96, %c0_97] : memref<64x8xf32, #tpu.memory_space<vmem>>, vector<8x8xf32>
    %cst_98 = arith.constant dense<0.000000e+00> : vector<8x256xf32>
    %256 = tpu.matmul %223, %59, %cst_98 {dimension_numbers = #tpu.dot_dimension_numbers<[1], [0], [0], [1], [0, 0, 1, 1], [], []>} : vector<8x32xf32>, vector<32x256xf32>, vector<8x256xf32> -> vector<8x256xf32>
    %257 = vector.extract_strided_slice %256 {offsets = [0, 0], sizes = [8, 96], strides = [1, 1]} : vector<8x256xf32> to vector<8x96xf32>
    %258 = vector.extract_strided_slice %256 {offsets = [0, 96], sizes = [8, 32], strides = [1, 1]} : vector<8x256xf32> to vector<8x32xf32>
    %259 = vector.extract_strided_slice %256 {offsets = [0, 128], sizes = [8, 32], strides = [1, 1]} : vector<8x256xf32> to vector<8x32xf32>
    %260 = vector.extract_strided_slice %256 {offsets = [0, 160], sizes = [8, 32], strides = [1, 1]} : vector<8x256xf32> to vector<8x32xf32>
    %261 = vector.extract_strided_slice %254 {offsets = [0, 96], sizes = [8, 32], strides = [1, 1]} : vector<8x128xf32> to vector<8x32xf32>
    %262 = arith.addf %261, %258 : vector<8x32xf32>
    %263 = arith.addf %262, %2 : vector<8x32xf32>
    %cst_99 = arith.constant 0.000000e+00 : f32
    %264 = vector.broadcast %cst_99 : f32 to vector<8x32xf32>
    %265 = arith.maximumf %263, %264 : vector<8x32xf32>
    %c80_100 = arith.constant 80 : index
    %c0_101 = arith.constant 0 : index
    %266 = vector.load %arg3[%c80_100, %c0_101] : memref<384x128xf32, #tpu.memory_space<vmem>>, vector<32x32xf32>
    %cst_102 = arith.constant dense<0.000000e+00> : vector<8x32xf32>
    %267 = tpu.matmul %265, %266, %cst_102 {dimension_numbers = #tpu.dot_dimension_numbers<[1], [0], [0], [1], [0, 0, 1, 1], [], []>} : vector<8x32xf32>, vector<32x32xf32>, vector<8x32xf32> -> vector<8x32xf32>
    %268 = arith.addf %267, %5 : vector<8x32xf32>
    %cst_103 = arith.constant 0.000000e+00 : f32
    %269 = vector.broadcast %cst_103 : f32 to vector<8x32xf32>
    %270 = arith.maximumf %268, %269 : vector<8x32xf32>
    %c112_104 = arith.constant 112 : index
    %c0_105 = arith.constant 0 : index
    %271 = vector.load %arg3[%c112_104, %c0_105] : memref<384x128xf32, #tpu.memory_space<vmem>>, vector<32x16xf32>
    %cst_106 = arith.constant dense<0.000000e+00> : vector<8x16xf32>
    %272 = tpu.matmul %270, %271, %cst_106 {dimension_numbers = #tpu.dot_dimension_numbers<[1], [0], [0], [1], [0, 0, 1, 1], [], []>} : vector<8x32xf32>, vector<32x16xf32>, vector<8x16xf32> -> vector<8x16xf32>
    %273 = arith.addf %272, %8 : vector<8x16xf32>
    %cst_107 = arith.constant 5.000000e-01 : f32
    %274 = vector.broadcast %cst_107 : f32 to vector<8x16xf32>
    %275 = arith.mulf %274, %273 : vector<8x16xf32>
    %276 = math.tanh %275 : vector<8x16xf32>
    %cst_108 = arith.constant 1.000000e+00 : f32
    %277 = vector.broadcast %cst_108 : f32 to vector<8x16xf32>
    %278 = arith.addf %276, %277 : vector<8x16xf32>
    %cst_109 = arith.constant 5.000000e-01 : f32
    %279 = vector.broadcast %cst_109 : f32 to vector<8x16xf32>
    %280 = arith.mulf %279, %278 : vector<8x16xf32>
    %cst_110 = arith.constant 2.000000e+01 : f32
    %281 = vector.broadcast %cst_110 : f32 to vector<8x16xf32>
    %282 = arith.cmpf ogt, %273, %281 : vector<8x16xf32>
    %cst_111 = arith.constant 2.000000e+01 : f32
    %283 = vector.broadcast %cst_111 : f32 to vector<8x16xf32>
    %284 = arith.minimumf %273, %283 : vector<8x16xf32>
    %285 = math.exp %284 : vector<8x16xf32>
    %cst_112 = arith.constant 1.000000e+00 : f32
    %286 = vector.broadcast %cst_112 : f32 to vector<8x16xf32>
    %287 = arith.addf %286, %285 : vector<8x16xf32>
    %288 = math.log %287 : vector<8x16xf32>
    %289 = arith.select %282, %273, %288 : vector<8x16xi1>, vector<8x16xf32>
    %290 = arith.select %32, %280, %289 : vector<8x16xi1>, vector<8x16xf32>
    %291 = vector.extract_strided_slice %290 {offsets = [0, 0], sizes = [8, 8], strides = [1, 1]} : vector<8x16xf32> to vector<8x8xf32>
    %292 = vector.extract_strided_slice %290 {offsets = [0, 8], sizes = [8, 8], strides = [1, 1]} : vector<8x16xf32> to vector<8x8xf32>
    %293 = arith.addf %259, %11 : vector<8x32xf32>
    %cst_113 = arith.constant 0.000000e+00 : f32
    %294 = vector.broadcast %cst_113 : f32 to vector<8x32xf32>
    %295 = arith.maximumf %293, %294 : vector<8x32xf32>
    %c144_114 = arith.constant 144 : index
    %c0_115 = arith.constant 0 : index
    %296 = vector.load %arg3[%c144_114, %c0_115] : memref<384x128xf32, #tpu.memory_space<vmem>>, vector<32x16xf32>
    %cst_116 = arith.constant dense<0.000000e+00> : vector<8x16xf32>
    %297 = tpu.matmul %295, %296, %cst_116 {dimension_numbers = #tpu.dot_dimension_numbers<[1], [0], [0], [1], [0, 0, 1, 1], [], []>} : vector<8x32xf32>, vector<32x16xf32>, vector<8x16xf32> -> vector<8x16xf32>
    %298 = arith.addf %297, %14 : vector<8x16xf32>
    %299 = vector.extract_strided_slice %298 {offsets = [0, 0], sizes = [8, 8], strides = [1, 1]} : vector<8x16xf32> to vector<8x8xf32>
    %cst_117 = arith.constant 5.000000e-01 : f32
    %300 = vector.broadcast %cst_117 : f32 to vector<8x8xf32>
    %301 = arith.mulf %300, %299 : vector<8x8xf32>
    %302 = math.tanh %301 : vector<8x8xf32>
    %cst_118 = arith.constant 1.000000e+00 : f32
    %303 = vector.broadcast %cst_118 : f32 to vector<8x8xf32>
    %304 = arith.addf %302, %303 : vector<8x8xf32>
    %cst_119 = arith.constant 5.000000e-01 : f32
    %305 = vector.broadcast %cst_119 : f32 to vector<8x8xf32>
    %306 = arith.mulf %305, %304 : vector<8x8xf32>
    %307 = vector.extract_strided_slice %298 {offsets = [0, 8], sizes = [8, 8], strides = [1, 1]} : vector<8x16xf32> to vector<8x8xf32>
    %cst_120 = arith.constant 2.000000e+01 : f32
    %308 = vector.broadcast %cst_120 : f32 to vector<8x8xf32>
    %309 = arith.cmpf ogt, %307, %308 : vector<8x8xf32>
    %cst_121 = arith.constant 2.000000e+01 : f32
    %310 = vector.broadcast %cst_121 : f32 to vector<8x8xf32>
    %311 = arith.minimumf %307, %310 : vector<8x8xf32>
    %312 = math.exp %311 : vector<8x8xf32>
    %cst_122 = arith.constant 1.000000e+00 : f32
    %313 = vector.broadcast %cst_122 : f32 to vector<8x8xf32>
    %314 = arith.addf %313, %312 : vector<8x8xf32>
    %315 = math.log %314 : vector<8x8xf32>
    %316 = arith.select %309, %307, %315 : vector<8x8xi1>, vector<8x8xf32>
    %317 = arith.mulf %255, %292 : vector<8x8xf32>
    %318 = arith.addf %317, %291 : vector<8x8xf32>
    %c176_123 = arith.constant 176 : index
    %c0_124 = arith.constant 0 : index
    %319 = vector.load %arg3[%c176_123, %c0_124] : memref<384x128xf32, #tpu.memory_space<vmem>>, vector<8x32xf32>
    %cst_125 = arith.constant dense<0.000000e+00> : vector<8x32xf32>
    %320 = tpu.matmul %318, %319, %cst_125 {dimension_numbers = #tpu.dot_dimension_numbers<[1], [0], [0], [1], [0, 0, 1, 1], [], []>} : vector<8x8xf32>, vector<8x32xf32>, vector<8x32xf32> -> vector<8x32xf32>
    %321 = arith.addf %320, %17 : vector<8x32xf32>
    %cst_126 = arith.constant 0.000000e+00 : f32
    %322 = vector.broadcast %cst_126 : f32 to vector<8x32xf32>
    %323 = arith.maximumf %321, %322 : vector<8x32xf32>
    %c184_127 = arith.constant 184 : index
    %c0_128 = arith.constant 0 : index
    %324 = vector.load %arg3[%c184_127, %c0_128] : memref<384x128xf32, #tpu.memory_space<vmem>>, vector<32x32xf32>
    %cst_129 = arith.constant dense<0.000000e+00> : vector<8x32xf32>
    %325 = tpu.matmul %323, %324, %cst_129 {dimension_numbers = #tpu.dot_dimension_numbers<[1], [0], [0], [1], [0, 0, 1, 1], [], []>} : vector<8x32xf32>, vector<32x32xf32>, vector<8x32xf32> -> vector<8x32xf32>
    %326 = arith.addf %325, %20 : vector<8x32xf32>
    %cst_130 = arith.constant 0.000000e+00 : f32
    %327 = vector.broadcast %cst_130 : f32 to vector<8x32xf32>
    %328 = arith.maximumf %326, %327 : vector<8x32xf32>
    %c216_131 = arith.constant 216 : index
    %c0_132 = arith.constant 0 : index
    %329 = vector.load %arg3[%c216_131, %c0_132] : memref<384x128xf32, #tpu.memory_space<vmem>>, vector<32x128xf32>
    %cst_133 = arith.constant dense<0.000000e+00> : vector<8x128xf32>
    %330 = tpu.matmul %328, %329, %cst_133 {dimension_numbers = #tpu.dot_dimension_numbers<[1], [0], [0], [1], [0, 0, 1, 1], [], []>} : vector<8x32xf32>, vector<32x128xf32>, vector<8x128xf32> -> vector<8x128xf32>
    %331 = vector.extract_strided_slice %330 {offsets = [0, 96], sizes = [8, 32], strides = [1, 1]} : vector<8x128xf32> to vector<8x32xf32>
    %332 = arith.addf %331, %260 : vector<8x32xf32>
    %333 = arith.addf %332, %23 : vector<8x32xf32>
    %cst_134 = arith.constant 0.000000e+00 : f32
    %334 = vector.broadcast %cst_134 : f32 to vector<8x32xf32>
    %335 = arith.maximumf %333, %334 : vector<8x32xf32>
    %c248_135 = arith.constant 248 : index
    %c0_136 = arith.constant 0 : index
    %336 = vector.load %arg3[%c248_135, %c0_136] : memref<384x128xf32, #tpu.memory_space<vmem>>, vector<32x32xf32>
    %cst_137 = arith.constant dense<0.000000e+00> : vector<8x32xf32>
    %337 = tpu.matmul %335, %336, %cst_137 {dimension_numbers = #tpu.dot_dimension_numbers<[1], [0], [0], [1], [0, 0, 1, 1], [], []>} : vector<8x32xf32>, vector<32x32xf32>, vector<8x32xf32> -> vector<8x32xf32>
    %338 = arith.addf %337, %26 : vector<8x32xf32>
    %cst_138 = arith.constant 0.000000e+00 : f32
    %339 = vector.broadcast %cst_138 : f32 to vector<8x32xf32>
    %340 = arith.maximumf %338, %339 : vector<8x32xf32>
    %c280_139 = arith.constant 280 : index
    %c0_140 = arith.constant 0 : index
    %341 = vector.load %arg3[%c280_139, %c0_140] : memref<384x128xf32, #tpu.memory_space<vmem>>, vector<32x32xf32>
    %cst_141 = arith.constant dense<0.000000e+00> : vector<8x32xf32>
    %342 = tpu.matmul %340, %341, %cst_141 {dimension_numbers = #tpu.dot_dimension_numbers<[1], [0], [0], [1], [0, 0, 1, 1], [], []>} : vector<8x32xf32>, vector<32x32xf32>, vector<8x32xf32> -> vector<8x32xf32>
    %343 = arith.addf %342, %29 : vector<8x32xf32>
    %cst_142 = arith.constant 5.000000e-01 : f32
    %344 = vector.broadcast %cst_142 : f32 to vector<8x32xf32>
    %345 = arith.mulf %344, %343 : vector<8x32xf32>
    %346 = math.tanh %345 : vector<8x32xf32>
    %cst_143 = arith.constant 1.000000e+00 : f32
    %347 = vector.broadcast %cst_143 : f32 to vector<8x32xf32>
    %348 = arith.addf %346, %347 : vector<8x32xf32>
    %cst_144 = arith.constant 5.000000e-01 : f32
    %349 = vector.broadcast %cst_144 : f32 to vector<8x32xf32>
    %350 = arith.mulf %349, %348 : vector<8x32xf32>
    %cst_145 = arith.constant 2.000000e+01 : f32
    %351 = vector.broadcast %cst_145 : f32 to vector<8x32xf32>
    %352 = arith.cmpf ogt, %343, %351 : vector<8x32xf32>
    %cst_146 = arith.constant 2.000000e+01 : f32
    %353 = vector.broadcast %cst_146 : f32 to vector<8x32xf32>
    %354 = arith.minimumf %343, %353 : vector<8x32xf32>
    %355 = math.exp %354 : vector<8x32xf32>
    %cst_147 = arith.constant 1.000000e+00 : f32
    %356 = vector.broadcast %cst_147 : f32 to vector<8x32xf32>
    %357 = arith.addf %356, %355 : vector<8x32xf32>
    %358 = math.log %357 : vector<8x32xf32>
    %359 = arith.select %352, %343, %358 : vector<8x32xi1>, vector<8x32xf32>
    %360 = arith.select %35, %350, %359 : vector<8x32xi1>, vector<8x32xf32>
    %361 = vector.extract_strided_slice %343 {offsets = [0, 0], sizes = [8, 16], strides = [1, 1]} : vector<8x32xf32> to vector<8x16xf32>
    %362 = vector.extract_strided_slice %254 {offsets = [0, 0], sizes = [8, 96], strides = [1, 1]} : vector<8x128xf32> to vector<8x96xf32>
    %363 = vector.extract_strided_slice %330 {offsets = [0, 0], sizes = [8, 96], strides = [1, 1]} : vector<8x128xf32> to vector<8x96xf32>
    %364 = arith.addf %362, %363 : vector<8x96xf32>
    %c312_148 = arith.constant 312 : index
    %c0_149 = arith.constant 0 : index
    %365 = vector.load %arg3[%c312_148, %c0_149] : memref<384x128xf32, #tpu.memory_space<vmem>>, vector<32x96xf32>
    %cst_150 = arith.constant dense<0.000000e+00> : vector<8x96xf32>
    %366 = tpu.matmul %199, %365, %cst_150 {dimension_numbers = #tpu.dot_dimension_numbers<[1], [0], [0], [1], [0, 0, 1, 1], [], []>} : vector<8x32xf32>, vector<32x96xf32>, vector<8x96xf32> -> vector<8x96xf32>
    %367 = vector.extract_strided_slice %364 {offsets = [0, 0], sizes = [8, 64], strides = [1, 1]} : vector<8x96xf32> to vector<8x64xf32>
    %368 = vector.extract_strided_slice %366 {offsets = [0, 0], sizes = [8, 64], strides = [1, 1]} : vector<8x96xf32> to vector<8x64xf32>
    %369 = arith.addf %367, %368 : vector<8x64xf32>
    %cst_151 = arith.constant 5.000000e-01 : f32
    %370 = vector.broadcast %cst_151 : f32 to vector<8x64xf32>
    %371 = arith.mulf %370, %369 : vector<8x64xf32>
    %372 = math.tanh %371 : vector<8x64xf32>
    %cst_152 = arith.constant 1.000000e+00 : f32
    %373 = vector.broadcast %cst_152 : f32 to vector<8x64xf32>
    %374 = arith.addf %372, %373 : vector<8x64xf32>
    %cst_153 = arith.constant 5.000000e-01 : f32
    %375 = vector.broadcast %cst_153 : f32 to vector<8x64xf32>
    %376 = arith.mulf %375, %374 : vector<8x64xf32>
    %377 = vector.extract_strided_slice %376 {offsets = [0, 0], sizes = [8, 32], strides = [1, 1]} : vector<8x64xf32> to vector<8x32xf32>
    %378 = vector.extract_strided_slice %376 {offsets = [0, 32], sizes = [8, 32], strides = [1, 1]} : vector<8x64xf32> to vector<8x32xf32>
    %379 = vector.extract_strided_slice %364 {offsets = [0, 64], sizes = [8, 32], strides = [1, 1]} : vector<8x96xf32> to vector<8x32xf32>
    %380 = vector.extract_strided_slice %366 {offsets = [0, 64], sizes = [8, 32], strides = [1, 1]} : vector<8x96xf32> to vector<8x32xf32>
    %381 = arith.mulf %377, %380 : vector<8x32xf32>
    %382 = arith.addf %379, %381 : vector<8x32xf32>
    %383 = math.tanh %382 : vector<8x32xf32>
    %cst_154 = arith.constant 1.000000e+00 : f32
    %384 = vector.broadcast %cst_154 : f32 to vector<8x32xf32>
    %385 = arith.subf %384, %378 : vector<8x32xf32>
    %386 = arith.mulf %385, %383 : vector<8x32xf32>
    %387 = arith.mulf %378, %199 : vector<8x32xf32>
    %388 = arith.addf %386, %387 : vector<8x32xf32>
    %c344_155 = arith.constant 344 : index
    %c0_156 = arith.constant 0 : index
    %389 = vector.load %arg3[%c344_155, %c0_156] : memref<384x128xf32, #tpu.memory_space<vmem>>, vector<32x96xf32>
    %cst_157 = arith.constant dense<0.000000e+00> : vector<8x96xf32>
    %390 = tpu.matmul %388, %389, %cst_157 {dimension_numbers = #tpu.dot_dimension_numbers<[1], [0], [0], [1], [0, 0, 1, 1], [], []>} : vector<8x32xf32>, vector<32x96xf32>, vector<8x96xf32> -> vector<8x96xf32>
    %391 = vector.extract_strided_slice %390 {offsets = [0, 0], sizes = [8, 64], strides = [1, 1]} : vector<8x96xf32> to vector<8x64xf32>
    %392 = vector.extract_strided_slice %257 {offsets = [0, 0], sizes = [8, 64], strides = [1, 1]} : vector<8x96xf32> to vector<8x64xf32>
    %393 = arith.addf %391, %392 : vector<8x64xf32>
    %cst_158 = arith.constant 5.000000e-01 : f32
    %394 = vector.broadcast %cst_158 : f32 to vector<8x64xf32>
    %395 = arith.mulf %394, %393 : vector<8x64xf32>
    %396 = math.tanh %395 : vector<8x64xf32>
    %cst_159 = arith.constant 1.000000e+00 : f32
    %397 = vector.broadcast %cst_159 : f32 to vector<8x64xf32>
    %398 = arith.addf %396, %397 : vector<8x64xf32>
    %cst_160 = arith.constant 5.000000e-01 : f32
    %399 = vector.broadcast %cst_160 : f32 to vector<8x64xf32>
    %400 = arith.mulf %399, %398 : vector<8x64xf32>
    %401 = vector.extract_strided_slice %400 {offsets = [0, 0], sizes = [8, 32], strides = [1, 1]} : vector<8x64xf32> to vector<8x32xf32>
    %402 = vector.extract_strided_slice %400 {offsets = [0, 32], sizes = [8, 32], strides = [1, 1]} : vector<8x64xf32> to vector<8x32xf32>
    %403 = vector.extract_strided_slice %390 {offsets = [0, 64], sizes = [8, 32], strides = [1, 1]} : vector<8x96xf32> to vector<8x32xf32>
    %404 = vector.extract_strided_slice %257 {offsets = [0, 64], sizes = [8, 32], strides = [1, 1]} : vector<8x96xf32> to vector<8x32xf32>
    %405 = arith.mulf %401, %404 : vector<8x32xf32>
    %406 = arith.addf %403, %405 : vector<8x32xf32>
    %407 = math.tanh %406 : vector<8x32xf32>
    %cst_161 = arith.constant 1.000000e+00 : f32
    %408 = vector.broadcast %cst_161 : f32 to vector<8x32xf32>
    %409 = arith.subf %408, %402 : vector<8x32xf32>
    %410 = arith.mulf %409, %407 : vector<8x32xf32>
    %411 = arith.mulf %402, %223 : vector<8x32xf32>
    %412 = arith.addf %410, %411 : vector<8x32xf32>
    %413 = arith.divf %316, %292 : vector<8x8xf32>
    %414 = math.log %413 : vector<8x8xf32>
    %cst_162 = arith.constant 2.000000e+00 : f32
    %415 = vector.broadcast %cst_162 : f32 to vector<8x8xf32>
    %416 = arith.mulf %415, %414 : vector<8x8xf32>
    %417 = arith.mulf %292, %292 : vector<8x8xf32>
    %418 = arith.subf %291, %306 : vector<8x8xf32>
    %419 = arith.mulf %418, %418 : vector<8x8xf32>
    %420 = arith.addf %417, %419 : vector<8x8xf32>
    %421 = arith.mulf %316, %316 : vector<8x8xf32>
    %422 = arith.divf %420, %421 : vector<8x8xf32>
    %423 = arith.addf %416, %422 : vector<8x8xf32>
    %cst_163 = arith.constant 1.000000e+00 : f32
    %424 = vector.broadcast %cst_163 : f32 to vector<8x8xf32>
    %425 = arith.subf %423, %424 : vector<8x8xf32>
    %426 = arith.addf %237, %425 : vector<8x8xf32>
    %cst_164 = arith.constant 0.000000e+00 : f32
    %427 = vector.broadcast %cst_164 : f32 to vector<8x16xf32>
    %428 = arith.maximumf %361, %427 : vector<8x16xf32>
    %429 = arith.mulf %253, %361 : vector<8x16xf32>
    %430 = arith.subf %428, %429 : vector<8x16xf32>
    %431 = math.absf %361 : vector<8x16xf32>
    %cst_165 = arith.constant 0.000000e+00 : f32
    %432 = vector.broadcast %cst_165 : f32 to vector<8x16xf32>
    %433 = arith.subf %432, %431 : vector<8x16xf32>
    %434 = math.exp %433 : vector<8x16xf32>
    %cst_166 = arith.constant 1.000000e+00 : f32
    %435 = vector.broadcast %cst_166 : f32 to vector<8x16xf32>
    %436 = arith.addf %435, %434 : vector<8x16xf32>
    %437 = math.log %436 : vector<8x16xf32>
    %438 = arith.addf %430, %437 : vector<8x16xf32>
    %439 = arith.addf %250, %438 : vector<8x16xf32>
    %440 = tpu.concatenate %290, %360, %41 in 1 : vector<8x16xf32>, vector<8x32xf32>, vector<8x80xf32> -> vector<8x128xf32>
    %c8_167 = arith.constant 8 : index
    %c0_168 = arith.constant 0 : index
    %441 = vector.load %arg6[%c8_167, %c0_168] : memref<64x128xf32, #tpu.memory_space<vmem>>, vector<8x128xf32>
    tpu.vector_store %arg6[%c8_167, %c0_168], %440 {strides = array<i32>} : memref<64x128xf32, #tpu.memory_space<vmem>>, vector<8x128xf32>,
    %c16_169 = arith.constant 16 : index
    %c0_170 = arith.constant 0 : index
    %442 = vector.load %arg1[%c16_169, %c0_170] : memref<64x16xf32, #tpu.memory_space<vmem>>, vector<8x16xf32>
    %443 = vector.extract_strided_slice %58 {offsets = [16, 0], sizes = [8, 128], strides = [1, 1]} : vector<64x128xf32> to vector<8x128xf32>
    %c16_171 = arith.constant 16 : index
    %c0_172 = arith.constant 0 : index
    %444 = vector.load %arg2[%c16_171, %c0_172] : memref<64x8xf32, #tpu.memory_space<vmem>>, vector<8x8xf32>
    %cst_173 = arith.constant dense<0.000000e+00> : vector<8x256xf32>
    %445 = tpu.matmul %412, %59, %cst_173 {dimension_numbers = #tpu.dot_dimension_numbers<[1], [0], [0], [1], [0, 0, 1, 1], [], []>} : vector<8x32xf32>, vector<32x256xf32>, vector<8x256xf32> -> vector<8x256xf32>
    %446 = vector.extract_strided_slice %445 {offsets = [0, 0], sizes = [8, 96], strides = [1, 1]} : vector<8x256xf32> to vector<8x96xf32>
    %447 = vector.extract_strided_slice %445 {offsets = [0, 96], sizes = [8, 32], strides = [1, 1]} : vector<8x256xf32> to vector<8x32xf32>
    %448 = vector.extract_strided_slice %445 {offsets = [0, 128], sizes = [8, 32], strides = [1, 1]} : vector<8x256xf32> to vector<8x32xf32>
    %449 = vector.extract_strided_slice %445 {offsets = [0, 160], sizes = [8, 32], strides = [1, 1]} : vector<8x256xf32> to vector<8x32xf32>
    %450 = vector.extract_strided_slice %443 {offsets = [0, 96], sizes = [8, 32], strides = [1, 1]} : vector<8x128xf32> to vector<8x32xf32>
    %451 = arith.addf %450, %447 : vector<8x32xf32>
    %452 = arith.addf %451, %2 : vector<8x32xf32>
    %cst_174 = arith.constant 0.000000e+00 : f32
    %453 = vector.broadcast %cst_174 : f32 to vector<8x32xf32>
    %454 = arith.maximumf %452, %453 : vector<8x32xf32>
    %c80_175 = arith.constant 80 : index
    %c0_176 = arith.constant 0 : index
    %455 = vector.load %arg3[%c80_175, %c0_176] : memref<384x128xf32, #tpu.memory_space<vmem>>, vector<32x32xf32>
    %cst_177 = arith.constant dense<0.000000e+00> : vector<8x32xf32>
    %456 = tpu.matmul %454, %455, %cst_177 {dimension_numbers = #tpu.dot_dimension_numbers<[1], [0], [0], [1], [0, 0, 1, 1], [], []>} : vector<8x32xf32>, vector<32x32xf32>, vector<8x32xf32> -> vector<8x32xf32>
    %457 = arith.addf %456, %5 : vector<8x32xf32>
    %cst_178 = arith.constant 0.000000e+00 : f32
    %458 = vector.broadcast %cst_178 : f32 to vector<8x32xf32>
    %459 = arith.maximumf %457, %458 : vector<8x32xf32>
    %c112_179 = arith.constant 112 : index
    %c0_180 = arith.constant 0 : index
    %460 = vector.load %arg3[%c112_179, %c0_180] : memref<384x128xf32, #tpu.memory_space<vmem>>, vector<32x16xf32>
    %cst_181 = arith.constant dense<0.000000e+00> : vector<8x16xf32>
    %461 = tpu.matmul %459, %460, %cst_181 {dimension_numbers = #tpu.dot_dimension_numbers<[1], [0], [0], [1], [0, 0, 1, 1], [], []>} : vector<8x32xf32>, vector<32x16xf32>, vector<8x16xf32> -> vector<8x16xf32>
    %462 = arith.addf %461, %8 : vector<8x16xf32>
    %cst_182 = arith.constant 5.000000e-01 : f32
    %463 = vector.broadcast %cst_182 : f32 to vector<8x16xf32>
    %464 = arith.mulf %463, %462 : vector<8x16xf32>
    %465 = math.tanh %464 : vector<8x16xf32>
    %cst_183 = arith.constant 1.000000e+00 : f32
    %466 = vector.broadcast %cst_183 : f32 to vector<8x16xf32>
    %467 = arith.addf %465, %466 : vector<8x16xf32>
    %cst_184 = arith.constant 5.000000e-01 : f32
    %468 = vector.broadcast %cst_184 : f32 to vector<8x16xf32>
    %469 = arith.mulf %468, %467 : vector<8x16xf32>
    %cst_185 = arith.constant 2.000000e+01 : f32
    %470 = vector.broadcast %cst_185 : f32 to vector<8x16xf32>
    %471 = arith.cmpf ogt, %462, %470 : vector<8x16xf32>
    %cst_186 = arith.constant 2.000000e+01 : f32
    %472 = vector.broadcast %cst_186 : f32 to vector<8x16xf32>
    %473 = arith.minimumf %462, %472 : vector<8x16xf32>
    %474 = math.exp %473 : vector<8x16xf32>
    %cst_187 = arith.constant 1.000000e+00 : f32
    %475 = vector.broadcast %cst_187 : f32 to vector<8x16xf32>
    %476 = arith.addf %475, %474 : vector<8x16xf32>
    %477 = math.log %476 : vector<8x16xf32>
    %478 = arith.select %471, %462, %477 : vector<8x16xi1>, vector<8x16xf32>
    %479 = arith.select %32, %469, %478 : vector<8x16xi1>, vector<8x16xf32>
    %480 = vector.extract_strided_slice %479 {offsets = [0, 0], sizes = [8, 8], strides = [1, 1]} : vector<8x16xf32> to vector<8x8xf32>
    %481 = vector.extract_strided_slice %479 {offsets = [0, 8], sizes = [8, 8], strides = [1, 1]} : vector<8x16xf32> to vector<8x8xf32>
    %482 = arith.addf %448, %11 : vector<8x32xf32>
    %cst_188 = arith.constant 0.000000e+00 : f32
    %483 = vector.broadcast %cst_188 : f32 to vector<8x32xf32>
    %484 = arith.maximumf %482, %483 : vector<8x32xf32>
    %c144_189 = arith.constant 144 : index
    %c0_190 = arith.constant 0 : index
    %485 = vector.load %arg3[%c144_189, %c0_190] : memref<384x128xf32, #tpu.memory_space<vmem>>, vector<32x16xf32>
    %cst_191 = arith.constant dense<0.000000e+00> : vector<8x16xf32>
    %486 = tpu.matmul %484, %485, %cst_191 {dimension_numbers = #tpu.dot_dimension_numbers<[1], [0], [0], [1], [0, 0, 1, 1], [], []>} : vector<8x32xf32>, vector<32x16xf32>, vector<8x16xf32> -> vector<8x16xf32>
    %487 = arith.addf %486, %14 : vector<8x16xf32>
    %488 = vector.extract_strided_slice %487 {offsets = [0, 0], sizes = [8, 8], strides = [1, 1]} : vector<8x16xf32> to vector<8x8xf32>
    %cst_192 = arith.constant 5.000000e-01 : f32
    %489 = vector.broadcast %cst_192 : f32 to vector<8x8xf32>
    %490 = arith.mulf %489, %488 : vector<8x8xf32>
    %491 = math.tanh %490 : vector<8x8xf32>
    %cst_193 = arith.constant 1.000000e+00 : f32
    %492 = vector.broadcast %cst_193 : f32 to vector<8x8xf32>
    %493 = arith.addf %491, %492 : vector<8x8xf32>
    %cst_194 = arith.constant 5.000000e-01 : f32
    %494 = vector.broadcast %cst_194 : f32 to vector<8x8xf32>
    %495 = arith.mulf %494, %493 : vector<8x8xf32>
    %496 = vector.extract_strided_slice %487 {offsets = [0, 8], sizes = [8, 8], strides = [1, 1]} : vector<8x16xf32> to vector<8x8xf32>
    %cst_195 = arith.constant 2.000000e+01 : f32
    %497 = vector.broadcast %cst_195 : f32 to vector<8x8xf32>
    %498 = arith.cmpf ogt, %496, %497 : vector<8x8xf32>
    %cst_196 = arith.constant 2.000000e+01 : f32
    %499 = vector.broadcast %cst_196 : f32 to vector<8x8xf32>
    %500 = arith.minimumf %496, %499 : vector<8x8xf32>
    %501 = math.exp %500 : vector<8x8xf32>
    %cst_197 = arith.constant 1.000000e+00 : f32
    %502 = vector.broadcast %cst_197 : f32 to vector<8x8xf32>
    %503 = arith.addf %502, %501 : vector<8x8xf32>
    %504 = math.log %503 : vector<8x8xf32>
    %505 = arith.select %498, %496, %504 : vector<8x8xi1>, vector<8x8xf32>
    %506 = arith.mulf %444, %481 : vector<8x8xf32>
    %507 = arith.addf %506, %480 : vector<8x8xf32>
    %c176_198 = arith.constant 176 : index
    %c0_199 = arith.constant 0 : index
    %508 = vector.load %arg3[%c176_198, %c0_199] : memref<384x128xf32, #tpu.memory_space<vmem>>, vector<8x32xf32>
    %cst_200 = arith.constant dense<0.000000e+00> : vector<8x32xf32>
    %509 = tpu.matmul %507, %508, %cst_200 {dimension_numbers = #tpu.dot_dimension_numbers<[1], [0], [0], [1], [0, 0, 1, 1], [], []>} : vector<8x8xf32>, vector<8x32xf32>, vector<8x32xf32> -> vector<8x32xf32>
    %510 = arith.addf %509, %17 : vector<8x32xf32>
    %cst_201 = arith.constant 0.000000e+00 : f32
    %511 = vector.broadcast %cst_201 : f32 to vector<8x32xf32>
    %512 = arith.maximumf %510, %511 : vector<8x32xf32>
    %c184_202 = arith.constant 184 : index
    %c0_203 = arith.constant 0 : index
    %513 = vector.load %arg3[%c184_202, %c0_203] : memref<384x128xf32, #tpu.memory_space<vmem>>, vector<32x32xf32>
    %cst_204 = arith.constant dense<0.000000e+00> : vector<8x32xf32>
    %514 = tpu.matmul %512, %513, %cst_204 {dimension_numbers = #tpu.dot_dimension_numbers<[1], [0], [0], [1], [0, 0, 1, 1], [], []>} : vector<8x32xf32>, vector<32x32xf32>, vector<8x32xf32> -> vector<8x32xf32>
    %515 = arith.addf %514, %20 : vector<8x32xf32>
    %cst_205 = arith.constant 0.000000e+00 : f32
    %516 = vector.broadcast %cst_205 : f32 to vector<8x32xf32>
    %517 = arith.maximumf %515, %516 : vector<8x32xf32>
    %c216_206 = arith.constant 216 : index
    %c0_207 = arith.constant 0 : index
    %518 = vector.load %arg3[%c216_206, %c0_207] : memref<384x128xf32, #tpu.memory_space<vmem>>, vector<32x128xf32>
    %cst_208 = arith.constant dense<0.000000e+00> : vector<8x128xf32>
    %519 = tpu.matmul %517, %518, %cst_208 {dimension_numbers = #tpu.dot_dimension_numbers<[1], [0], [0], [1], [0, 0, 1, 1], [], []>} : vector<8x32xf32>, vector<32x128xf32>, vector<8x128xf32> -> vector<8x128xf32>
    %520 = vector.extract_strided_slice %519 {offsets = [0, 96], sizes = [8, 32], strides = [1, 1]} : vector<8x128xf32> to vector<8x32xf32>
    %521 = arith.addf %520, %449 : vector<8x32xf32>
    %522 = arith.addf %521, %23 : vector<8x32xf32>
    %cst_209 = arith.constant 0.000000e+00 : f32
    %523 = vector.broadcast %cst_209 : f32 to vector<8x32xf32>
    %524 = arith.maximumf %522, %523 : vector<8x32xf32>
    %c248_210 = arith.constant 248 : index
    %c0_211 = arith.constant 0 : index
    %525 = vector.load %arg3[%c248_210, %c0_211] : memref<384x128xf32, #tpu.memory_space<vmem>>, vector<32x32xf32>
    %cst_212 = arith.constant dense<0.000000e+00> : vector<8x32xf32>
    %526 = tpu.matmul %524, %525, %cst_212 {dimension_numbers = #tpu.dot_dimension_numbers<[1], [0], [0], [1], [0, 0, 1, 1], [], []>} : vector<8x32xf32>, vector<32x32xf32>, vector<8x32xf32> -> vector<8x32xf32>
    %527 = arith.addf %526, %26 : vector<8x32xf32>
    %cst_213 = arith.constant 0.000000e+00 : f32
    %528 = vector.broadcast %cst_213 : f32 to vector<8x32xf32>
    %529 = arith.maximumf %527, %528 : vector<8x32xf32>
    %c280_214 = arith.constant 280 : index
    %c0_215 = arith.constant 0 : index
    %530 = vector.load %arg3[%c280_214, %c0_215] : memref<384x128xf32, #tpu.memory_space<vmem>>, vector<32x32xf32>
    %cst_216 = arith.constant dense<0.000000e+00> : vector<8x32xf32>
    %531 = tpu.matmul %529, %530, %cst_216 {dimension_numbers = #tpu.dot_dimension_numbers<[1], [0], [0], [1], [0, 0, 1, 1], [], []>} : vector<8x32xf32>, vector<32x32xf32>, vector<8x32xf32> -> vector<8x32xf32>
    %532 = arith.addf %531, %29 : vector<8x32xf32>
    %cst_217 = arith.constant 5.000000e-01 : f32
    %533 = vector.broadcast %cst_217 : f32 to vector<8x32xf32>
    %534 = arith.mulf %533, %532 : vector<8x32xf32>
    %535 = math.tanh %534 : vector<8x32xf32>
    %cst_218 = arith.constant 1.000000e+00 : f32
    %536 = vector.broadcast %cst_218 : f32 to vector<8x32xf32>
    %537 = arith.addf %535, %536 : vector<8x32xf32>
    %cst_219 = arith.constant 5.000000e-01 : f32
    %538 = vector.broadcast %cst_219 : f32 to vector<8x32xf32>
    %539 = arith.mulf %538, %537 : vector<8x32xf32>
    %cst_220 = arith.constant 2.000000e+01 : f32
    %540 = vector.broadcast %cst_220 : f32 to vector<8x32xf32>
    %541 = arith.cmpf ogt, %532, %540 : vector<8x32xf32>
    %cst_221 = arith.constant 2.000000e+01 : f32
    %542 = vector.broadcast %cst_221 : f32 to vector<8x32xf32>
    %543 = arith.minimumf %532, %542 : vector<8x32xf32>
    %544 = math.exp %543 : vector<8x32xf32>
    %cst_222 = arith.constant 1.000000e+00 : f32
    %545 = vector.broadcast %cst_222 : f32 to vector<8x32xf32>
    %546 = arith.addf %545, %544 : vector<8x32xf32>
    %547 = math.log %546 : vector<8x32xf32>
    %548 = arith.select %541, %532, %547 : vector<8x32xi1>, vector<8x32xf32>
    %549 = arith.select %35, %539, %548 : vector<8x32xi1>, vector<8x32xf32>
    %550 = vector.extract_strided_slice %532 {offsets = [0, 0], sizes = [8, 16], strides = [1, 1]} : vector<8x32xf32> to vector<8x16xf32>
    %551 = vector.extract_strided_slice %443 {offsets = [0, 0], sizes = [8, 96], strides = [1, 1]} : vector<8x128xf32> to vector<8x96xf32>
    %552 = vector.extract_strided_slice %519 {offsets = [0, 0], sizes = [8, 96], strides = [1, 1]} : vector<8x128xf32> to vector<8x96xf32>
    %553 = arith.addf %551, %552 : vector<8x96xf32>
    %c312_223 = arith.constant 312 : index
    %c0_224 = arith.constant 0 : index
    %554 = vector.load %arg3[%c312_223, %c0_224] : memref<384x128xf32, #tpu.memory_space<vmem>>, vector<32x96xf32>
    %cst_225 = arith.constant dense<0.000000e+00> : vector<8x96xf32>
    %555 = tpu.matmul %388, %554, %cst_225 {dimension_numbers = #tpu.dot_dimension_numbers<[1], [0], [0], [1], [0, 0, 1, 1], [], []>} : vector<8x32xf32>, vector<32x96xf32>, vector<8x96xf32> -> vector<8x96xf32>
    %556 = vector.extract_strided_slice %553 {offsets = [0, 0], sizes = [8, 64], strides = [1, 1]} : vector<8x96xf32> to vector<8x64xf32>
    %557 = vector.extract_strided_slice %555 {offsets = [0, 0], sizes = [8, 64], strides = [1, 1]} : vector<8x96xf32> to vector<8x64xf32>
    %558 = arith.addf %556, %557 : vector<8x64xf32>
    %cst_226 = arith.constant 5.000000e-01 : f32
    %559 = vector.broadcast %cst_226 : f32 to vector<8x64xf32>
    %560 = arith.mulf %559, %558 : vector<8x64xf32>
    %561 = math.tanh %560 : vector<8x64xf32>
    %cst_227 = arith.constant 1.000000e+00 : f32
    %562 = vector.broadcast %cst_227 : f32 to vector<8x64xf32>
    %563 = arith.addf %561, %562 : vector<8x64xf32>
    %cst_228 = arith.constant 5.000000e-01 : f32
    %564 = vector.broadcast %cst_228 : f32 to vector<8x64xf32>
    %565 = arith.mulf %564, %563 : vector<8x64xf32>
    %566 = vector.extract_strided_slice %565 {offsets = [0, 0], sizes = [8, 32], strides = [1, 1]} : vector<8x64xf32> to vector<8x32xf32>
    %567 = vector.extract_strided_slice %565 {offsets = [0, 32], sizes = [8, 32], strides = [1, 1]} : vector<8x64xf32> to vector<8x32xf32>
    %568 = vector.extract_strided_slice %553 {offsets = [0, 64], sizes = [8, 32], strides = [1, 1]} : vector<8x96xf32> to vector<8x32xf32>
    %569 = vector.extract_strided_slice %555 {offsets = [0, 64], sizes = [8, 32], strides = [1, 1]} : vector<8x96xf32> to vector<8x32xf32>
    %570 = arith.mulf %566, %569 : vector<8x32xf32>
    %571 = arith.addf %568, %570 : vector<8x32xf32>
    %572 = math.tanh %571 : vector<8x32xf32>
    %cst_229 = arith.constant 1.000000e+00 : f32
    %573 = vector.broadcast %cst_229 : f32 to vector<8x32xf32>
    %574 = arith.subf %573, %567 : vector<8x32xf32>
    %575 = arith.mulf %574, %572 : vector<8x32xf32>
    %576 = arith.mulf %567, %388 : vector<8x32xf32>
    %577 = arith.addf %575, %576 : vector<8x32xf32>
    %c344_230 = arith.constant 344 : index
    %c0_231 = arith.constant 0 : index
    %578 = vector.load %arg3[%c344_230, %c0_231] : memref<384x128xf32, #tpu.memory_space<vmem>>, vector<32x96xf32>
    %cst_232 = arith.constant dense<0.000000e+00> : vector<8x96xf32>
    %579 = tpu.matmul %577, %578, %cst_232 {dimension_numbers = #tpu.dot_dimension_numbers<[1], [0], [0], [1], [0, 0, 1, 1], [], []>} : vector<8x32xf32>, vector<32x96xf32>, vector<8x96xf32> -> vector<8x96xf32>
    %580 = vector.extract_strided_slice %579 {offsets = [0, 0], sizes = [8, 64], strides = [1, 1]} : vector<8x96xf32> to vector<8x64xf32>
    %581 = vector.extract_strided_slice %446 {offsets = [0, 0], sizes = [8, 64], strides = [1, 1]} : vector<8x96xf32> to vector<8x64xf32>
    %582 = arith.addf %580, %581 : vector<8x64xf32>
    %cst_233 = arith.constant 5.000000e-01 : f32
    %583 = vector.broadcast %cst_233 : f32 to vector<8x64xf32>
    %584 = arith.mulf %583, %582 : vector<8x64xf32>
    %585 = math.tanh %584 : vector<8x64xf32>
    %cst_234 = arith.constant 1.000000e+00 : f32
    %586 = vector.broadcast %cst_234 : f32 to vector<8x64xf32>
    %587 = arith.addf %585, %586 : vector<8x64xf32>
    %cst_235 = arith.constant 5.000000e-01 : f32
    %588 = vector.broadcast %cst_235 : f32 to vector<8x64xf32>
    %589 = arith.mulf %588, %587 : vector<8x64xf32>
    %590 = vector.extract_strided_slice %589 {offsets = [0, 0], sizes = [8, 32], strides = [1, 1]} : vector<8x64xf32> to vector<8x32xf32>
    %591 = vector.extract_strided_slice %589 {offsets = [0, 32], sizes = [8, 32], strides = [1, 1]} : vector<8x64xf32> to vector<8x32xf32>
    %592 = vector.extract_strided_slice %579 {offsets = [0, 64], sizes = [8, 32], strides = [1, 1]} : vector<8x96xf32> to vector<8x32xf32>
    %593 = vector.extract_strided_slice %446 {offsets = [0, 64], sizes = [8, 32], strides = [1, 1]} : vector<8x96xf32> to vector<8x32xf32>
    %594 = arith.mulf %590, %593 : vector<8x32xf32>
    %595 = arith.addf %592, %594 : vector<8x32xf32>
    %596 = math.tanh %595 : vector<8x32xf32>
    %cst_236 = arith.constant 1.000000e+00 : f32
    %597 = vector.broadcast %cst_236 : f32 to vector<8x32xf32>
    %598 = arith.subf %597, %591 : vector<8x32xf32>
    %599 = arith.mulf %598, %596 : vector<8x32xf32>
    %600 = arith.mulf %591, %412 : vector<8x32xf32>
    %601 = arith.addf %599, %600 : vector<8x32xf32>
    %602 = arith.divf %505, %481 : vector<8x8xf32>
    %603 = math.log %602 : vector<8x8xf32>
    %cst_237 = arith.constant 2.000000e+00 : f32
    %604 = vector.broadcast %cst_237 : f32 to vector<8x8xf32>
    %605 = arith.mulf %604, %603 : vector<8x8xf32>
    %606 = arith.mulf %481, %481 : vector<8x8xf32>
    %607 = arith.subf %480, %495 : vector<8x8xf32>
    %608 = arith.mulf %607, %607 : vector<8x8xf32>
    %609 = arith.addf %606, %608 : vector<8x8xf32>
    %610 = arith.mulf %505, %505 : vector<8x8xf32>
    %611 = arith.divf %609, %610 : vector<8x8xf32>
    %612 = arith.addf %605, %611 : vector<8x8xf32>
    %cst_238 = arith.constant 1.000000e+00 : f32
    %613 = vector.broadcast %cst_238 : f32 to vector<8x8xf32>
    %614 = arith.subf %612, %613 : vector<8x8xf32>
    %615 = arith.addf %426, %614 : vector<8x8xf32>
    %cst_239 = arith.constant 0.000000e+00 : f32
    %616 = vector.broadcast %cst_239 : f32 to vector<8x16xf32>
    %617 = arith.maximumf %550, %616 : vector<8x16xf32>
    %618 = arith.mulf %442, %550 : vector<8x16xf32>
    %619 = arith.subf %617, %618 : vector<8x16xf32>
    %620 = math.absf %550 : vector<8x16xf32>
    %cst_240 = arith.constant 0.000000e+00 : f32
    %621 = vector.broadcast %cst_240 : f32 to vector<8x16xf32>
    %622 = arith.subf %621, %620 : vector<8x16xf32>
    %623 = math.exp %622 : vector<8x16xf32>
    %cst_241 = arith.constant 1.000000e+00 : f32
    %624 = vector.broadcast %cst_241 : f32 to vector<8x16xf32>
    %625 = arith.addf %624, %623 : vector<8x16xf32>
    %626 = math.log %625 : vector<8x16xf32>
    %627 = arith.addf %619, %626 : vector<8x16xf32>
    %628 = arith.addf %439, %627 : vector<8x16xf32>
    %629 = tpu.concatenate %479, %549, %41 in 1 : vector<8x16xf32>, vector<8x32xf32>, vector<8x80xf32> -> vector<8x128xf32>
    %c16_242 = arith.constant 16 : index
    %c0_243 = arith.constant 0 : index
    %630 = vector.load %arg6[%c16_242, %c0_243] : memref<64x128xf32, #tpu.memory_space<vmem>>, vector<8x128xf32>
    tpu.vector_store %arg6[%c16_242, %c0_243], %629 {strides = array<i32>} : memref<64x128xf32, #tpu.memory_space<vmem>>, vector<8x128xf32>,
    %c24 = arith.constant 24 : index
    %c0_244 = arith.constant 0 : index
    %631 = vector.load %arg1[%c24, %c0_244] : memref<64x16xf32, #tpu.memory_space<vmem>>, vector<8x16xf32>
    %632 = vector.extract_strided_slice %58 {offsets = [24, 0], sizes = [8, 128], strides = [1, 1]} : vector<64x128xf32> to vector<8x128xf32>
    %c24_245 = arith.constant 24 : index
    %c0_246 = arith.constant 0 : index
    %633 = vector.load %arg2[%c24_245, %c0_246] : memref<64x8xf32, #tpu.memory_space<vmem>>, vector<8x8xf32>
    %cst_247 = arith.constant dense<0.000000e+00> : vector<8x256xf32>
    %634 = tpu.matmul %601, %59, %cst_247 {dimension_numbers = #tpu.dot_dimension_numbers<[1], [0], [0], [1], [0, 0, 1, 1], [], []>} : vector<8x32xf32>, vector<32x256xf32>, vector<8x256xf32> -> vector<8x256xf32>
    %635 = vector.extract_strided_slice %634 {offsets = [0, 0], sizes = [8, 96], strides = [1, 1]} : vector<8x256xf32> to vector<8x96xf32>
    %636 = vector.extract_strided_slice %634 {offsets = [0, 96], sizes = [8, 32], strides = [1, 1]} : vector<8x256xf32> to vector<8x32xf32>
    %637 = vector.extract_strided_slice %634 {offsets = [0, 128], sizes = [8, 32], strides = [1, 1]} : vector<8x256xf32> to vector<8x32xf32>
    %638 = vector.extract_strided_slice %634 {offsets = [0, 160], sizes = [8, 32], strides = [1, 1]} : vector<8x256xf32> to vector<8x32xf32>
    %639 = vector.extract_strided_slice %632 {offsets = [0, 96], sizes = [8, 32], strides = [1, 1]} : vector<8x128xf32> to vector<8x32xf32>
    %640 = arith.addf %639, %636 : vector<8x32xf32>
    %641 = arith.addf %640, %2 : vector<8x32xf32>
    %cst_248 = arith.constant 0.000000e+00 : f32
    %642 = vector.broadcast %cst_248 : f32 to vector<8x32xf32>
    %643 = arith.maximumf %641, %642 : vector<8x32xf32>
    %c80_249 = arith.constant 80 : index
    %c0_250 = arith.constant 0 : index
    %644 = vector.load %arg3[%c80_249, %c0_250] : memref<384x128xf32, #tpu.memory_space<vmem>>, vector<32x32xf32>
    %cst_251 = arith.constant dense<0.000000e+00> : vector<8x32xf32>
    %645 = tpu.matmul %643, %644, %cst_251 {dimension_numbers = #tpu.dot_dimension_numbers<[1], [0], [0], [1], [0, 0, 1, 1], [], []>} : vector<8x32xf32>, vector<32x32xf32>, vector<8x32xf32> -> vector<8x32xf32>
    %646 = arith.addf %645, %5 : vector<8x32xf32>
    %cst_252 = arith.constant 0.000000e+00 : f32
    %647 = vector.broadcast %cst_252 : f32 to vector<8x32xf32>
    %648 = arith.maximumf %646, %647 : vector<8x32xf32>
    %c112_253 = arith.constant 112 : index
    %c0_254 = arith.constant 0 : index
    %649 = vector.load %arg3[%c112_253, %c0_254] : memref<384x128xf32, #tpu.memory_space<vmem>>, vector<32x16xf32>
    %cst_255 = arith.constant dense<0.000000e+00> : vector<8x16xf32>
    %650 = tpu.matmul %648, %649, %cst_255 {dimension_numbers = #tpu.dot_dimension_numbers<[1], [0], [0], [1], [0, 0, 1, 1], [], []>} : vector<8x32xf32>, vector<32x16xf32>, vector<8x16xf32> -> vector<8x16xf32>
    %651 = arith.addf %650, %8 : vector<8x16xf32>
    %cst_256 = arith.constant 5.000000e-01 : f32
    %652 = vector.broadcast %cst_256 : f32 to vector<8x16xf32>
    %653 = arith.mulf %652, %651 : vector<8x16xf32>
    %654 = math.tanh %653 : vector<8x16xf32>
    %cst_257 = arith.constant 1.000000e+00 : f32
    %655 = vector.broadcast %cst_257 : f32 to vector<8x16xf32>
    %656 = arith.addf %654, %655 : vector<8x16xf32>
    %cst_258 = arith.constant 5.000000e-01 : f32
    %657 = vector.broadcast %cst_258 : f32 to vector<8x16xf32>
    %658 = arith.mulf %657, %656 : vector<8x16xf32>
    %cst_259 = arith.constant 2.000000e+01 : f32
    %659 = vector.broadcast %cst_259 : f32 to vector<8x16xf32>
    %660 = arith.cmpf ogt, %651, %659 : vector<8x16xf32>
    %cst_260 = arith.constant 2.000000e+01 : f32
    %661 = vector.broadcast %cst_260 : f32 to vector<8x16xf32>
    %662 = arith.minimumf %651, %661 : vector<8x16xf32>
    %663 = math.exp %662 : vector<8x16xf32>
    %cst_261 = arith.constant 1.000000e+00 : f32
    %664 = vector.broadcast %cst_261 : f32 to vector<8x16xf32>
    %665 = arith.addf %664, %663 : vector<8x16xf32>
    %666 = math.log %665 : vector<8x16xf32>
    %667 = arith.select %660, %651, %666 : vector<8x16xi1>, vector<8x16xf32>
    %668 = arith.select %32, %658, %667 : vector<8x16xi1>, vector<8x16xf32>
    %669 = vector.extract_strided_slice %668 {offsets = [0, 0], sizes = [8, 8], strides = [1, 1]} : vector<8x16xf32> to vector<8x8xf32>
    %670 = vector.extract_strided_slice %668 {offsets = [0, 8], sizes = [8, 8], strides = [1, 1]} : vector<8x16xf32> to vector<8x8xf32>
    %671 = arith.addf %637, %11 : vector<8x32xf32>
    %cst_262 = arith.constant 0.000000e+00 : f32
    %672 = vector.broadcast %cst_262 : f32 to vector<8x32xf32>
    %673 = arith.maximumf %671, %672 : vector<8x32xf32>
    %c144_263 = arith.constant 144 : index
    %c0_264 = arith.constant 0 : index
    %674 = vector.load %arg3[%c144_263, %c0_264] : memref<384x128xf32, #tpu.memory_space<vmem>>, vector<32x16xf32>
    %cst_265 = arith.constant dense<0.000000e+00> : vector<8x16xf32>
    %675 = tpu.matmul %673, %674, %cst_265 {dimension_numbers = #tpu.dot_dimension_numbers<[1], [0], [0], [1], [0, 0, 1, 1], [], []>} : vector<8x32xf32>, vector<32x16xf32>, vector<8x16xf32> -> vector<8x16xf32>
    %676 = arith.addf %675, %14 : vector<8x16xf32>
    %677 = vector.extract_strided_slice %676 {offsets = [0, 0], sizes = [8, 8], strides = [1, 1]} : vector<8x16xf32> to vector<8x8xf32>
    %cst_266 = arith.constant 5.000000e-01 : f32
    %678 = vector.broadcast %cst_266 : f32 to vector<8x8xf32>
    %679 = arith.mulf %678, %677 : vector<8x8xf32>
    %680 = math.tanh %679 : vector<8x8xf32>
    %cst_267 = arith.constant 1.000000e+00 : f32
    %681 = vector.broadcast %cst_267 : f32 to vector<8x8xf32>
    %682 = arith.addf %680, %681 : vector<8x8xf32>
    %cst_268 = arith.constant 5.000000e-01 : f32
    %683 = vector.broadcast %cst_268 : f32 to vector<8x8xf32>
    %684 = arith.mulf %683, %682 : vector<8x8xf32>
    %685 = vector.extract_strided_slice %676 {offsets = [0, 8], sizes = [8, 8], strides = [1, 1]} : vector<8x16xf32> to vector<8x8xf32>
    %cst_269 = arith.constant 2.000000e+01 : f32
    %686 = vector.broadcast %cst_269 : f32 to vector<8x8xf32>
    %687 = arith.cmpf ogt, %685, %686 : vector<8x8xf32>
    %cst_270 = arith.constant 2.000000e+01 : f32
    %688 = vector.broadcast %cst_270 : f32 to vector<8x8xf32>
    %689 = arith.minimumf %685, %688 : vector<8x8xf32>
    %690 = math.exp %689 : vector<8x8xf32>
    %cst_271 = arith.constant 1.000000e+00 : f32
    %691 = vector.broadcast %cst_271 : f32 to vector<8x8xf32>
    %692 = arith.addf %691, %690 : vector<8x8xf32>
    %693 = math.log %692 : vector<8x8xf32>
    %694 = arith.select %687, %685, %693 : vector<8x8xi1>, vector<8x8xf32>
    %695 = arith.mulf %633, %670 : vector<8x8xf32>
    %696 = arith.addf %695, %669 : vector<8x8xf32>
    %c176_272 = arith.constant 176 : index
    %c0_273 = arith.constant 0 : index
    %697 = vector.load %arg3[%c176_272, %c0_273] : memref<384x128xf32, #tpu.memory_space<vmem>>, vector<8x32xf32>
    %cst_274 = arith.constant dense<0.000000e+00> : vector<8x32xf32>
    %698 = tpu.matmul %696, %697, %cst_274 {dimension_numbers = #tpu.dot_dimension_numbers<[1], [0], [0], [1], [0, 0, 1, 1], [], []>} : vector<8x8xf32>, vector<8x32xf32>, vector<8x32xf32> -> vector<8x32xf32>
    %699 = arith.addf %698, %17 : vector<8x32xf32>
    %cst_275 = arith.constant 0.000000e+00 : f32
    %700 = vector.broadcast %cst_275 : f32 to vector<8x32xf32>
    %701 = arith.maximumf %699, %700 : vector<8x32xf32>
    %c184_276 = arith.constant 184 : index
    %c0_277 = arith.constant 0 : index
    %702 = vector.load %arg3[%c184_276, %c0_277] : memref<384x128xf32, #tpu.memory_space<vmem>>, vector<32x32xf32>
    %cst_278 = arith.constant dense<0.000000e+00> : vector<8x32xf32>
    %703 = tpu.matmul %701, %702, %cst_278 {dimension_numbers = #tpu.dot_dimension_numbers<[1], [0], [0], [1], [0, 0, 1, 1], [], []>} : vector<8x32xf32>, vector<32x32xf32>, vector<8x32xf32> -> vector<8x32xf32>
    %704 = arith.addf %703, %20 : vector<8x32xf32>
    %cst_279 = arith.constant 0.000000e+00 : f32
    %705 = vector.broadcast %cst_279 : f32 to vector<8x32xf32>
    %706 = arith.maximumf %704, %705 : vector<8x32xf32>
    %c216_280 = arith.constant 216 : index
    %c0_281 = arith.constant 0 : index
    %707 = vector.load %arg3[%c216_280, %c0_281] : memref<384x128xf32, #tpu.memory_space<vmem>>, vector<32x128xf32>
    %cst_282 = arith.constant dense<0.000000e+00> : vector<8x128xf32>
    %708 = tpu.matmul %706, %707, %cst_282 {dimension_numbers = #tpu.dot_dimension_numbers<[1], [0], [0], [1], [0, 0, 1, 1], [], []>} : vector<8x32xf32>, vector<32x128xf32>, vector<8x128xf32> -> vector<8x128xf32>
    %709 = vector.extract_strided_slice %708 {offsets = [0, 96], sizes = [8, 32], strides = [1, 1]} : vector<8x128xf32> to vector<8x32xf32>
    %710 = arith.addf %709, %638 : vector<8x32xf32>
    %711 = arith.addf %710, %23 : vector<8x32xf32>
    %cst_283 = arith.constant 0.000000e+00 : f32
    %712 = vector.broadcast %cst_283 : f32 to vector<8x32xf32>
    %713 = arith.maximumf %711, %712 : vector<8x32xf32>
    %c248_284 = arith.constant 248 : index
    %c0_285 = arith.constant 0 : index
    %714 = vector.load %arg3[%c248_284, %c0_285] : memref<384x128xf32, #tpu.memory_space<vmem>>, vector<32x32xf32>
    %cst_286 = arith.constant dense<0.000000e+00> : vector<8x32xf32>
    %715 = tpu.matmul %713, %714, %cst_286 {dimension_numbers = #tpu.dot_dimension_numbers<[1], [0], [0], [1], [0, 0, 1, 1], [], []>} : vector<8x32xf32>, vector<32x32xf32>, vector<8x32xf32> -> vector<8x32xf32>
    %716 = arith.addf %715, %26 : vector<8x32xf32>
    %cst_287 = arith.constant 0.000000e+00 : f32
    %717 = vector.broadcast %cst_287 : f32 to vector<8x32xf32>
    %718 = arith.maximumf %716, %717 : vector<8x32xf32>
    %c280_288 = arith.constant 280 : index
    %c0_289 = arith.constant 0 : index
    %719 = vector.load %arg3[%c280_288, %c0_289] : memref<384x128xf32, #tpu.memory_space<vmem>>, vector<32x32xf32>
    %cst_290 = arith.constant dense<0.000000e+00> : vector<8x32xf32>
    %720 = tpu.matmul %718, %719, %cst_290 {dimension_numbers = #tpu.dot_dimension_numbers<[1], [0], [0], [1], [0, 0, 1, 1], [], []>} : vector<8x32xf32>, vector<32x32xf32>, vector<8x32xf32> -> vector<8x32xf32>
    %721 = arith.addf %720, %29 : vector<8x32xf32>
    %cst_291 = arith.constant 5.000000e-01 : f32
    %722 = vector.broadcast %cst_291 : f32 to vector<8x32xf32>
    %723 = arith.mulf %722, %721 : vector<8x32xf32>
    %724 = math.tanh %723 : vector<8x32xf32>
    %cst_292 = arith.constant 1.000000e+00 : f32
    %725 = vector.broadcast %cst_292 : f32 to vector<8x32xf32>
    %726 = arith.addf %724, %725 : vector<8x32xf32>
    %cst_293 = arith.constant 5.000000e-01 : f32
    %727 = vector.broadcast %cst_293 : f32 to vector<8x32xf32>
    %728 = arith.mulf %727, %726 : vector<8x32xf32>
    %cst_294 = arith.constant 2.000000e+01 : f32
    %729 = vector.broadcast %cst_294 : f32 to vector<8x32xf32>
    %730 = arith.cmpf ogt, %721, %729 : vector<8x32xf32>
    %cst_295 = arith.constant 2.000000e+01 : f32
    %731 = vector.broadcast %cst_295 : f32 to vector<8x32xf32>
    %732 = arith.minimumf %721, %731 : vector<8x32xf32>
    %733 = math.exp %732 : vector<8x32xf32>
    %cst_296 = arith.constant 1.000000e+00 : f32
    %734 = vector.broadcast %cst_296 : f32 to vector<8x32xf32>
    %735 = arith.addf %734, %733 : vector<8x32xf32>
    %736 = math.log %735 : vector<8x32xf32>
    %737 = arith.select %730, %721, %736 : vector<8x32xi1>, vector<8x32xf32>
    %738 = arith.select %35, %728, %737 : vector<8x32xi1>, vector<8x32xf32>
    %739 = vector.extract_strided_slice %721 {offsets = [0, 0], sizes = [8, 16], strides = [1, 1]} : vector<8x32xf32> to vector<8x16xf32>
    %740 = vector.extract_strided_slice %632 {offsets = [0, 0], sizes = [8, 96], strides = [1, 1]} : vector<8x128xf32> to vector<8x96xf32>
    %741 = vector.extract_strided_slice %708 {offsets = [0, 0], sizes = [8, 96], strides = [1, 1]} : vector<8x128xf32> to vector<8x96xf32>
    %742 = arith.addf %740, %741 : vector<8x96xf32>
    %c312_297 = arith.constant 312 : index
    %c0_298 = arith.constant 0 : index
    %743 = vector.load %arg3[%c312_297, %c0_298] : memref<384x128xf32, #tpu.memory_space<vmem>>, vector<32x96xf32>
    %cst_299 = arith.constant dense<0.000000e+00> : vector<8x96xf32>
    %744 = tpu.matmul %577, %743, %cst_299 {dimension_numbers = #tpu.dot_dimension_numbers<[1], [0], [0], [1], [0, 0, 1, 1], [], []>} : vector<8x32xf32>, vector<32x96xf32>, vector<8x96xf32> -> vector<8x96xf32>
    %745 = vector.extract_strided_slice %742 {offsets = [0, 0], sizes = [8, 64], strides = [1, 1]} : vector<8x96xf32> to vector<8x64xf32>
    %746 = vector.extract_strided_slice %744 {offsets = [0, 0], sizes = [8, 64], strides = [1, 1]} : vector<8x96xf32> to vector<8x64xf32>
    %747 = arith.addf %745, %746 : vector<8x64xf32>
    %cst_300 = arith.constant 5.000000e-01 : f32
    %748 = vector.broadcast %cst_300 : f32 to vector<8x64xf32>
    %749 = arith.mulf %748, %747 : vector<8x64xf32>
    %750 = math.tanh %749 : vector<8x64xf32>
    %cst_301 = arith.constant 1.000000e+00 : f32
    %751 = vector.broadcast %cst_301 : f32 to vector<8x64xf32>
    %752 = arith.addf %750, %751 : vector<8x64xf32>
    %cst_302 = arith.constant 5.000000e-01 : f32
    %753 = vector.broadcast %cst_302 : f32 to vector<8x64xf32>
    %754 = arith.mulf %753, %752 : vector<8x64xf32>
    %755 = vector.extract_strided_slice %754 {offsets = [0, 0], sizes = [8, 32], strides = [1, 1]} : vector<8x64xf32> to vector<8x32xf32>
    %756 = vector.extract_strided_slice %754 {offsets = [0, 32], sizes = [8, 32], strides = [1, 1]} : vector<8x64xf32> to vector<8x32xf32>
    %757 = vector.extract_strided_slice %742 {offsets = [0, 64], sizes = [8, 32], strides = [1, 1]} : vector<8x96xf32> to vector<8x32xf32>
    %758 = vector.extract_strided_slice %744 {offsets = [0, 64], sizes = [8, 32], strides = [1, 1]} : vector<8x96xf32> to vector<8x32xf32>
    %759 = arith.mulf %755, %758 : vector<8x32xf32>
    %760 = arith.addf %757, %759 : vector<8x32xf32>
    %761 = math.tanh %760 : vector<8x32xf32>
    %cst_303 = arith.constant 1.000000e+00 : f32
    %762 = vector.broadcast %cst_303 : f32 to vector<8x32xf32>
    %763 = arith.subf %762, %756 : vector<8x32xf32>
    %764 = arith.mulf %763, %761 : vector<8x32xf32>
    %765 = arith.mulf %756, %577 : vector<8x32xf32>
    %766 = arith.addf %764, %765 : vector<8x32xf32>
    %c344_304 = arith.constant 344 : index
    %c0_305 = arith.constant 0 : index
    %767 = vector.load %arg3[%c344_304, %c0_305] : memref<384x128xf32, #tpu.memory_space<vmem>>, vector<32x96xf32>
    %cst_306 = arith.constant dense<0.000000e+00> : vector<8x96xf32>
    %768 = tpu.matmul %766, %767, %cst_306 {dimension_numbers = #tpu.dot_dimension_numbers<[1], [0], [0], [1], [0, 0, 1, 1], [], []>} : vector<8x32xf32>, vector<32x96xf32>, vector<8x96xf32> -> vector<8x96xf32>
    %769 = vector.extract_strided_slice %768 {offsets = [0, 0], sizes = [8, 64], strides = [1, 1]} : vector<8x96xf32> to vector<8x64xf32>
    %770 = vector.extract_strided_slice %635 {offsets = [0, 0], sizes = [8, 64], strides = [1, 1]} : vector<8x96xf32> to vector<8x64xf32>
    %771 = arith.addf %769, %770 : vector<8x64xf32>
    %cst_307 = arith.constant 5.000000e-01 : f32
    %772 = vector.broadcast %cst_307 : f32 to vector<8x64xf32>
    %773 = arith.mulf %772, %771 : vector<8x64xf32>
    %774 = math.tanh %773 : vector<8x64xf32>
    %cst_308 = arith.constant 1.000000e+00 : f32
    %775 = vector.broadcast %cst_308 : f32 to vector<8x64xf32>
    %776 = arith.addf %774, %775 : vector<8x64xf32>
    %cst_309 = arith.constant 5.000000e-01 : f32
    %777 = vector.broadcast %cst_309 : f32 to vector<8x64xf32>
    %778 = arith.mulf %777, %776 : vector<8x64xf32>
    %779 = vector.extract_strided_slice %778 {offsets = [0, 0], sizes = [8, 32], strides = [1, 1]} : vector<8x64xf32> to vector<8x32xf32>
    %780 = vector.extract_strided_slice %778 {offsets = [0, 32], sizes = [8, 32], strides = [1, 1]} : vector<8x64xf32> to vector<8x32xf32>
    %781 = vector.extract_strided_slice %768 {offsets = [0, 64], sizes = [8, 32], strides = [1, 1]} : vector<8x96xf32> to vector<8x32xf32>
    %782 = vector.extract_strided_slice %635 {offsets = [0, 64], sizes = [8, 32], strides = [1, 1]} : vector<8x96xf32> to vector<8x32xf32>
    %783 = arith.mulf %779, %782 : vector<8x32xf32>
    %784 = arith.addf %781, %783 : vector<8x32xf32>
    %785 = math.tanh %784 : vector<8x32xf32>
    %cst_310 = arith.constant 1.000000e+00 : f32
    %786 = vector.broadcast %cst_310 : f32 to vector<8x32xf32>
    %787 = arith.subf %786, %780 : vector<8x32xf32>
    %788 = arith.mulf %787, %785 : vector<8x32xf32>
    %789 = arith.mulf %780, %601 : vector<8x32xf32>
    %790 = arith.addf %788, %789 : vector<8x32xf32>
    %791 = arith.divf %694, %670 : vector<8x8xf32>
    %792 = math.log %791 : vector<8x8xf32>
    %cst_311 = arith.constant 2.000000e+00 : f32
    %793 = vector.broadcast %cst_311 : f32 to vector<8x8xf32>
    %794 = arith.mulf %793, %792 : vector<8x8xf32>
    %795 = arith.mulf %670, %670 : vector<8x8xf32>
    %796 = arith.subf %669, %684 : vector<8x8xf32>
    %797 = arith.mulf %796, %796 : vector<8x8xf32>
    %798 = arith.addf %795, %797 : vector<8x8xf32>
    %799 = arith.mulf %694, %694 : vector<8x8xf32>
    %800 = arith.divf %798, %799 : vector<8x8xf32>
    %801 = arith.addf %794, %800 : vector<8x8xf32>
    %cst_312 = arith.constant 1.000000e+00 : f32
    %802 = vector.broadcast %cst_312 : f32 to vector<8x8xf32>
    %803 = arith.subf %801, %802 : vector<8x8xf32>
    %804 = arith.addf %615, %803 : vector<8x8xf32>
    %cst_313 = arith.constant 0.000000e+00 : f32
    %805 = vector.broadcast %cst_313 : f32 to vector<8x16xf32>
    %806 = arith.maximumf %739, %805 : vector<8x16xf32>
    %807 = arith.mulf %631, %739 : vector<8x16xf32>
    %808 = arith.subf %806, %807 : vector<8x16xf32>
    %809 = math.absf %739 : vector<8x16xf32>
    %cst_314 = arith.constant 0.000000e+00 : f32
    %810 = vector.broadcast %cst_314 : f32 to vector<8x16xf32>
    %811 = arith.subf %810, %809 : vector<8x16xf32>
    %812 = math.exp %811 : vector<8x16xf32>
    %cst_315 = arith.constant 1.000000e+00 : f32
    %813 = vector.broadcast %cst_315 : f32 to vector<8x16xf32>
    %814 = arith.addf %813, %812 : vector<8x16xf32>
    %815 = math.log %814 : vector<8x16xf32>
    %816 = arith.addf %808, %815 : vector<8x16xf32>
    %817 = arith.addf %628, %816 : vector<8x16xf32>
    %818 = tpu.concatenate %668, %738, %41 in 1 : vector<8x16xf32>, vector<8x32xf32>, vector<8x80xf32> -> vector<8x128xf32>
    %c24_316 = arith.constant 24 : index
    %c0_317 = arith.constant 0 : index
    %819 = vector.load %arg6[%c24_316, %c0_317] : memref<64x128xf32, #tpu.memory_space<vmem>>, vector<8x128xf32>
    tpu.vector_store %arg6[%c24_316, %c0_317], %818 {strides = array<i32>} : memref<64x128xf32, #tpu.memory_space<vmem>>, vector<8x128xf32>,
    %c32 = arith.constant 32 : index
    %c0_318 = arith.constant 0 : index
    %820 = vector.load %arg1[%c32, %c0_318] : memref<64x16xf32, #tpu.memory_space<vmem>>, vector<8x16xf32>
    %821 = vector.extract_strided_slice %58 {offsets = [32, 0], sizes = [8, 128], strides = [1, 1]} : vector<64x128xf32> to vector<8x128xf32>
    %c32_319 = arith.constant 32 : index
    %c0_320 = arith.constant 0 : index
    %822 = vector.load %arg2[%c32_319, %c0_320] : memref<64x8xf32, #tpu.memory_space<vmem>>, vector<8x8xf32>
    %cst_321 = arith.constant dense<0.000000e+00> : vector<8x256xf32>
    %823 = tpu.matmul %790, %59, %cst_321 {dimension_numbers = #tpu.dot_dimension_numbers<[1], [0], [0], [1], [0, 0, 1, 1], [], []>} : vector<8x32xf32>, vector<32x256xf32>, vector<8x256xf32> -> vector<8x256xf32>
    %824 = vector.extract_strided_slice %823 {offsets = [0, 0], sizes = [8, 96], strides = [1, 1]} : vector<8x256xf32> to vector<8x96xf32>
    %825 = vector.extract_strided_slice %823 {offsets = [0, 96], sizes = [8, 32], strides = [1, 1]} : vector<8x256xf32> to vector<8x32xf32>
    %826 = vector.extract_strided_slice %823 {offsets = [0, 128], sizes = [8, 32], strides = [1, 1]} : vector<8x256xf32> to vector<8x32xf32>
    %827 = vector.extract_strided_slice %823 {offsets = [0, 160], sizes = [8, 32], strides = [1, 1]} : vector<8x256xf32> to vector<8x32xf32>
    %828 = vector.extract_strided_slice %821 {offsets = [0, 96], sizes = [8, 32], strides = [1, 1]} : vector<8x128xf32> to vector<8x32xf32>
    %829 = arith.addf %828, %825 : vector<8x32xf32>
    %830 = arith.addf %829, %2 : vector<8x32xf32>
    %cst_322 = arith.constant 0.000000e+00 : f32
    %831 = vector.broadcast %cst_322 : f32 to vector<8x32xf32>
    %832 = arith.maximumf %830, %831 : vector<8x32xf32>
    %c80_323 = arith.constant 80 : index
    %c0_324 = arith.constant 0 : index
    %833 = vector.load %arg3[%c80_323, %c0_324] : memref<384x128xf32, #tpu.memory_space<vmem>>, vector<32x32xf32>
    %cst_325 = arith.constant dense<0.000000e+00> : vector<8x32xf32>
    %834 = tpu.matmul %832, %833, %cst_325 {dimension_numbers = #tpu.dot_dimension_numbers<[1], [0], [0], [1], [0, 0, 1, 1], [], []>} : vector<8x32xf32>, vector<32x32xf32>, vector<8x32xf32> -> vector<8x32xf32>
    %835 = arith.addf %834, %5 : vector<8x32xf32>
    %cst_326 = arith.constant 0.000000e+00 : f32
    %836 = vector.broadcast %cst_326 : f32 to vector<8x32xf32>
    %837 = arith.maximumf %835, %836 : vector<8x32xf32>
    %c112_327 = arith.constant 112 : index
    %c0_328 = arith.constant 0 : index
    %838 = vector.load %arg3[%c112_327, %c0_328] : memref<384x128xf32, #tpu.memory_space<vmem>>, vector<32x16xf32>
    %cst_329 = arith.constant dense<0.000000e+00> : vector<8x16xf32>
    %839 = tpu.matmul %837, %838, %cst_329 {dimension_numbers = #tpu.dot_dimension_numbers<[1], [0], [0], [1], [0, 0, 1, 1], [], []>} : vector<8x32xf32>, vector<32x16xf32>, vector<8x16xf32> -> vector<8x16xf32>
    %840 = arith.addf %839, %8 : vector<8x16xf32>
    %cst_330 = arith.constant 5.000000e-01 : f32
    %841 = vector.broadcast %cst_330 : f32 to vector<8x16xf32>
    %842 = arith.mulf %841, %840 : vector<8x16xf32>
    %843 = math.tanh %842 : vector<8x16xf32>
    %cst_331 = arith.constant 1.000000e+00 : f32
    %844 = vector.broadcast %cst_331 : f32 to vector<8x16xf32>
    %845 = arith.addf %843, %844 : vector<8x16xf32>
    %cst_332 = arith.constant 5.000000e-01 : f32
    %846 = vector.broadcast %cst_332 : f32 to vector<8x16xf32>
    %847 = arith.mulf %846, %845 : vector<8x16xf32>
    %cst_333 = arith.constant 2.000000e+01 : f32
    %848 = vector.broadcast %cst_333 : f32 to vector<8x16xf32>
    %849 = arith.cmpf ogt, %840, %848 : vector<8x16xf32>
    %cst_334 = arith.constant 2.000000e+01 : f32
    %850 = vector.broadcast %cst_334 : f32 to vector<8x16xf32>
    %851 = arith.minimumf %840, %850 : vector<8x16xf32>
    %852 = math.exp %851 : vector<8x16xf32>
    %cst_335 = arith.constant 1.000000e+00 : f32
    %853 = vector.broadcast %cst_335 : f32 to vector<8x16xf32>
    %854 = arith.addf %853, %852 : vector<8x16xf32>
    %855 = math.log %854 : vector<8x16xf32>
    %856 = arith.select %849, %840, %855 : vector<8x16xi1>, vector<8x16xf32>
    %857 = arith.select %32, %847, %856 : vector<8x16xi1>, vector<8x16xf32>
    %858 = vector.extract_strided_slice %857 {offsets = [0, 0], sizes = [8, 8], strides = [1, 1]} : vector<8x16xf32> to vector<8x8xf32>
    %859 = vector.extract_strided_slice %857 {offsets = [0, 8], sizes = [8, 8], strides = [1, 1]} : vector<8x16xf32> to vector<8x8xf32>
    %860 = arith.addf %826, %11 : vector<8x32xf32>
    %cst_336 = arith.constant 0.000000e+00 : f32
    %861 = vector.broadcast %cst_336 : f32 to vector<8x32xf32>
    %862 = arith.maximumf %860, %861 : vector<8x32xf32>
    %c144_337 = arith.constant 144 : index
    %c0_338 = arith.constant 0 : index
    %863 = vector.load %arg3[%c144_337, %c0_338] : memref<384x128xf32, #tpu.memory_space<vmem>>, vector<32x16xf32>
    %cst_339 = arith.constant dense<0.000000e+00> : vector<8x16xf32>
    %864 = tpu.matmul %862, %863, %cst_339 {dimension_numbers = #tpu.dot_dimension_numbers<[1], [0], [0], [1], [0, 0, 1, 1], [], []>} : vector<8x32xf32>, vector<32x16xf32>, vector<8x16xf32> -> vector<8x16xf32>
    %865 = arith.addf %864, %14 : vector<8x16xf32>
    %866 = vector.extract_strided_slice %865 {offsets = [0, 0], sizes = [8, 8], strides = [1, 1]} : vector<8x16xf32> to vector<8x8xf32>
    %cst_340 = arith.constant 5.000000e-01 : f32
    %867 = vector.broadcast %cst_340 : f32 to vector<8x8xf32>
    %868 = arith.mulf %867, %866 : vector<8x8xf32>
    %869 = math.tanh %868 : vector<8x8xf32>
    %cst_341 = arith.constant 1.000000e+00 : f32
    %870 = vector.broadcast %cst_341 : f32 to vector<8x8xf32>
    %871 = arith.addf %869, %870 : vector<8x8xf32>
    %cst_342 = arith.constant 5.000000e-01 : f32
    %872 = vector.broadcast %cst_342 : f32 to vector<8x8xf32>
    %873 = arith.mulf %872, %871 : vector<8x8xf32>
    %874 = vector.extract_strided_slice %865 {offsets = [0, 8], sizes = [8, 8], strides = [1, 1]} : vector<8x16xf32> to vector<8x8xf32>
    %cst_343 = arith.constant 2.000000e+01 : f32
    %875 = vector.broadcast %cst_343 : f32 to vector<8x8xf32>
    %876 = arith.cmpf ogt, %874, %875 : vector<8x8xf32>
    %cst_344 = arith.constant 2.000000e+01 : f32
    %877 = vector.broadcast %cst_344 : f32 to vector<8x8xf32>
    %878 = arith.minimumf %874, %877 : vector<8x8xf32>
    %879 = math.exp %878 : vector<8x8xf32>
    %cst_345 = arith.constant 1.000000e+00 : f32
    %880 = vector.broadcast %cst_345 : f32 to vector<8x8xf32>
    %881 = arith.addf %880, %879 : vector<8x8xf32>
    %882 = math.log %881 : vector<8x8xf32>
    %883 = arith.select %876, %874, %882 : vector<8x8xi1>, vector<8x8xf32>
    %884 = arith.mulf %822, %859 : vector<8x8xf32>
    %885 = arith.addf %884, %858 : vector<8x8xf32>
    %c176_346 = arith.constant 176 : index
    %c0_347 = arith.constant 0 : index
    %886 = vector.load %arg3[%c176_346, %c0_347] : memref<384x128xf32, #tpu.memory_space<vmem>>, vector<8x32xf32>
    %cst_348 = arith.constant dense<0.000000e+00> : vector<8x32xf32>
    %887 = tpu.matmul %885, %886, %cst_348 {dimension_numbers = #tpu.dot_dimension_numbers<[1], [0], [0], [1], [0, 0, 1, 1], [], []>} : vector<8x8xf32>, vector<8x32xf32>, vector<8x32xf32> -> vector<8x32xf32>
    %888 = arith.addf %887, %17 : vector<8x32xf32>
    %cst_349 = arith.constant 0.000000e+00 : f32
    %889 = vector.broadcast %cst_349 : f32 to vector<8x32xf32>
    %890 = arith.maximumf %888, %889 : vector<8x32xf32>
    %c184_350 = arith.constant 184 : index
    %c0_351 = arith.constant 0 : index
    %891 = vector.load %arg3[%c184_350, %c0_351] : memref<384x128xf32, #tpu.memory_space<vmem>>, vector<32x32xf32>
    %cst_352 = arith.constant dense<0.000000e+00> : vector<8x32xf32>
    %892 = tpu.matmul %890, %891, %cst_352 {dimension_numbers = #tpu.dot_dimension_numbers<[1], [0], [0], [1], [0, 0, 1, 1], [], []>} : vector<8x32xf32>, vector<32x32xf32>, vector<8x32xf32> -> vector<8x32xf32>
    %893 = arith.addf %892, %20 : vector<8x32xf32>
    %cst_353 = arith.constant 0.000000e+00 : f32
    %894 = vector.broadcast %cst_353 : f32 to vector<8x32xf32>
    %895 = arith.maximumf %893, %894 : vector<8x32xf32>
    %c216_354 = arith.constant 216 : index
    %c0_355 = arith.constant 0 : index
    %896 = vector.load %arg3[%c216_354, %c0_355] : memref<384x128xf32, #tpu.memory_space<vmem>>, vector<32x128xf32>
    %cst_356 = arith.constant dense<0.000000e+00> : vector<8x128xf32>
    %897 = tpu.matmul %895, %896, %cst_356 {dimension_numbers = #tpu.dot_dimension_numbers<[1], [0], [0], [1], [0, 0, 1, 1], [], []>} : vector<8x32xf32>, vector<32x128xf32>, vector<8x128xf32> -> vector<8x128xf32>
    %898 = vector.extract_strided_slice %897 {offsets = [0, 96], sizes = [8, 32], strides = [1, 1]} : vector<8x128xf32> to vector<8x32xf32>
    %899 = arith.addf %898, %827 : vector<8x32xf32>
    %900 = arith.addf %899, %23 : vector<8x32xf32>
    %cst_357 = arith.constant 0.000000e+00 : f32
    %901 = vector.broadcast %cst_357 : f32 to vector<8x32xf32>
    %902 = arith.maximumf %900, %901 : vector<8x32xf32>
    %c248_358 = arith.constant 248 : index
    %c0_359 = arith.constant 0 : index
    %903 = vector.load %arg3[%c248_358, %c0_359] : memref<384x128xf32, #tpu.memory_space<vmem>>, vector<32x32xf32>
    %cst_360 = arith.constant dense<0.000000e+00> : vector<8x32xf32>
    %904 = tpu.matmul %902, %903, %cst_360 {dimension_numbers = #tpu.dot_dimension_numbers<[1], [0], [0], [1], [0, 0, 1, 1], [], []>} : vector<8x32xf32>, vector<32x32xf32>, vector<8x32xf32> -> vector<8x32xf32>
    %905 = arith.addf %904, %26 : vector<8x32xf32>
    %cst_361 = arith.constant 0.000000e+00 : f32
    %906 = vector.broadcast %cst_361 : f32 to vector<8x32xf32>
    %907 = arith.maximumf %905, %906 : vector<8x32xf32>
    %c280_362 = arith.constant 280 : index
    %c0_363 = arith.constant 0 : index
    %908 = vector.load %arg3[%c280_362, %c0_363] : memref<384x128xf32, #tpu.memory_space<vmem>>, vector<32x32xf32>
    %cst_364 = arith.constant dense<0.000000e+00> : vector<8x32xf32>
    %909 = tpu.matmul %907, %908, %cst_364 {dimension_numbers = #tpu.dot_dimension_numbers<[1], [0], [0], [1], [0, 0, 1, 1], [], []>} : vector<8x32xf32>, vector<32x32xf32>, vector<8x32xf32> -> vector<8x32xf32>
    %910 = arith.addf %909, %29 : vector<8x32xf32>
    %cst_365 = arith.constant 5.000000e-01 : f32
    %911 = vector.broadcast %cst_365 : f32 to vector<8x32xf32>
    %912 = arith.mulf %911, %910 : vector<8x32xf32>
    %913 = math.tanh %912 : vector<8x32xf32>
    %cst_366 = arith.constant 1.000000e+00 : f32
    %914 = vector.broadcast %cst_366 : f32 to vector<8x32xf32>
    %915 = arith.addf %913, %914 : vector<8x32xf32>
    %cst_367 = arith.constant 5.000000e-01 : f32
    %916 = vector.broadcast %cst_367 : f32 to vector<8x32xf32>
    %917 = arith.mulf %916, %915 : vector<8x32xf32>
    %cst_368 = arith.constant 2.000000e+01 : f32
    %918 = vector.broadcast %cst_368 : f32 to vector<8x32xf32>
    %919 = arith.cmpf ogt, %910, %918 : vector<8x32xf32>
    %cst_369 = arith.constant 2.000000e+01 : f32
    %920 = vector.broadcast %cst_369 : f32 to vector<8x32xf32>
    %921 = arith.minimumf %910, %920 : vector<8x32xf32>
    %922 = math.exp %921 : vector<8x32xf32>
    %cst_370 = arith.constant 1.000000e+00 : f32
    %923 = vector.broadcast %cst_370 : f32 to vector<8x32xf32>
    %924 = arith.addf %923, %922 : vector<8x32xf32>
    %925 = math.log %924 : vector<8x32xf32>
    %926 = arith.select %919, %910, %925 : vector<8x32xi1>, vector<8x32xf32>
    %927 = arith.select %35, %917, %926 : vector<8x32xi1>, vector<8x32xf32>
    %928 = vector.extract_strided_slice %910 {offsets = [0, 0], sizes = [8, 16], strides = [1, 1]} : vector<8x32xf32> to vector<8x16xf32>
    %929 = vector.extract_strided_slice %821 {offsets = [0, 0], sizes = [8, 96], strides = [1, 1]} : vector<8x128xf32> to vector<8x96xf32>
    %930 = vector.extract_strided_slice %897 {offsets = [0, 0], sizes = [8, 96], strides = [1, 1]} : vector<8x128xf32> to vector<8x96xf32>
    %931 = arith.addf %929, %930 : vector<8x96xf32>
    %c312_371 = arith.constant 312 : index
    %c0_372 = arith.constant 0 : index
    %932 = vector.load %arg3[%c312_371, %c0_372] : memref<384x128xf32, #tpu.memory_space<vmem>>, vector<32x96xf32>
    %cst_373 = arith.constant dense<0.000000e+00> : vector<8x96xf32>
    %933 = tpu.matmul %766, %932, %cst_373 {dimension_numbers = #tpu.dot_dimension_numbers<[1], [0], [0], [1], [0, 0, 1, 1], [], []>} : vector<8x32xf32>, vector<32x96xf32>, vector<8x96xf32> -> vector<8x96xf32>
    %934 = vector.extract_strided_slice %931 {offsets = [0, 0], sizes = [8, 64], strides = [1, 1]} : vector<8x96xf32> to vector<8x64xf32>
    %935 = vector.extract_strided_slice %933 {offsets = [0, 0], sizes = [8, 64], strides = [1, 1]} : vector<8x96xf32> to vector<8x64xf32>
    %936 = arith.addf %934, %935 : vector<8x64xf32>
    %cst_374 = arith.constant 5.000000e-01 : f32
    %937 = vector.broadcast %cst_374 : f32 to vector<8x64xf32>
    %938 = arith.mulf %937, %936 : vector<8x64xf32>
    %939 = math.tanh %938 : vector<8x64xf32>
    %cst_375 = arith.constant 1.000000e+00 : f32
    %940 = vector.broadcast %cst_375 : f32 to vector<8x64xf32>
    %941 = arith.addf %939, %940 : vector<8x64xf32>
    %cst_376 = arith.constant 5.000000e-01 : f32
    %942 = vector.broadcast %cst_376 : f32 to vector<8x64xf32>
    %943 = arith.mulf %942, %941 : vector<8x64xf32>
    %944 = vector.extract_strided_slice %943 {offsets = [0, 0], sizes = [8, 32], strides = [1, 1]} : vector<8x64xf32> to vector<8x32xf32>
    %945 = vector.extract_strided_slice %943 {offsets = [0, 32], sizes = [8, 32], strides = [1, 1]} : vector<8x64xf32> to vector<8x32xf32>
    %946 = vector.extract_strided_slice %931 {offsets = [0, 64], sizes = [8, 32], strides = [1, 1]} : vector<8x96xf32> to vector<8x32xf32>
    %947 = vector.extract_strided_slice %933 {offsets = [0, 64], sizes = [8, 32], strides = [1, 1]} : vector<8x96xf32> to vector<8x32xf32>
    %948 = arith.mulf %944, %947 : vector<8x32xf32>
    %949 = arith.addf %946, %948 : vector<8x32xf32>
    %950 = math.tanh %949 : vector<8x32xf32>
    %cst_377 = arith.constant 1.000000e+00 : f32
    %951 = vector.broadcast %cst_377 : f32 to vector<8x32xf32>
    %952 = arith.subf %951, %945 : vector<8x32xf32>
    %953 = arith.mulf %952, %950 : vector<8x32xf32>
    %954 = arith.mulf %945, %766 : vector<8x32xf32>
    %955 = arith.addf %953, %954 : vector<8x32xf32>
    %c344_378 = arith.constant 344 : index
    %c0_379 = arith.constant 0 : index
    %956 = vector.load %arg3[%c344_378, %c0_379] : memref<384x128xf32, #tpu.memory_space<vmem>>, vector<32x96xf32>
    %cst_380 = arith.constant dense<0.000000e+00> : vector<8x96xf32>
    %957 = tpu.matmul %955, %956, %cst_380 {dimension_numbers = #tpu.dot_dimension_numbers<[1], [0], [0], [1], [0, 0, 1, 1], [], []>} : vector<8x32xf32>, vector<32x96xf32>, vector<8x96xf32> -> vector<8x96xf32>
    %958 = vector.extract_strided_slice %957 {offsets = [0, 0], sizes = [8, 64], strides = [1, 1]} : vector<8x96xf32> to vector<8x64xf32>
    %959 = vector.extract_strided_slice %824 {offsets = [0, 0], sizes = [8, 64], strides = [1, 1]} : vector<8x96xf32> to vector<8x64xf32>
    %960 = arith.addf %958, %959 : vector<8x64xf32>
    %cst_381 = arith.constant 5.000000e-01 : f32
    %961 = vector.broadcast %cst_381 : f32 to vector<8x64xf32>
    %962 = arith.mulf %961, %960 : vector<8x64xf32>
    %963 = math.tanh %962 : vector<8x64xf32>
    %cst_382 = arith.constant 1.000000e+00 : f32
    %964 = vector.broadcast %cst_382 : f32 to vector<8x64xf32>
    %965 = arith.addf %963, %964 : vector<8x64xf32>
    %cst_383 = arith.constant 5.000000e-01 : f32
    %966 = vector.broadcast %cst_383 : f32 to vector<8x64xf32>
    %967 = arith.mulf %966, %965 : vector<8x64xf32>
    %968 = vector.extract_strided_slice %967 {offsets = [0, 0], sizes = [8, 32], strides = [1, 1]} : vector<8x64xf32> to vector<8x32xf32>
    %969 = vector.extract_strided_slice %967 {offsets = [0, 32], sizes = [8, 32], strides = [1, 1]} : vector<8x64xf32> to vector<8x32xf32>
    %970 = vector.extract_strided_slice %957 {offsets = [0, 64], sizes = [8, 32], strides = [1, 1]} : vector<8x96xf32> to vector<8x32xf32>
    %971 = vector.extract_strided_slice %824 {offsets = [0, 64], sizes = [8, 32], strides = [1, 1]} : vector<8x96xf32> to vector<8x32xf32>
    %972 = arith.mulf %968, %971 : vector<8x32xf32>
    %973 = arith.addf %970, %972 : vector<8x32xf32>
    %974 = math.tanh %973 : vector<8x32xf32>
    %cst_384 = arith.constant 1.000000e+00 : f32
    %975 = vector.broadcast %cst_384 : f32 to vector<8x32xf32>
    %976 = arith.subf %975, %969 : vector<8x32xf32>
    %977 = arith.mulf %976, %974 : vector<8x32xf32>
    %978 = arith.mulf %969, %790 : vector<8x32xf32>
    %979 = arith.addf %977, %978 : vector<8x32xf32>
    %980 = arith.divf %883, %859 : vector<8x8xf32>
    %981 = math.log %980 : vector<8x8xf32>
    %cst_385 = arith.constant 2.000000e+00 : f32
    %982 = vector.broadcast %cst_385 : f32 to vector<8x8xf32>
    %983 = arith.mulf %982, %981 : vector<8x8xf32>
    %984 = arith.mulf %859, %859 : vector<8x8xf32>
    %985 = arith.subf %858, %873 : vector<8x8xf32>
    %986 = arith.mulf %985, %985 : vector<8x8xf32>
    %987 = arith.addf %984, %986 : vector<8x8xf32>
    %988 = arith.mulf %883, %883 : vector<8x8xf32>
    %989 = arith.divf %987, %988 : vector<8x8xf32>
    %990 = arith.addf %983, %989 : vector<8x8xf32>
    %cst_386 = arith.constant 1.000000e+00 : f32
    %991 = vector.broadcast %cst_386 : f32 to vector<8x8xf32>
    %992 = arith.subf %990, %991 : vector<8x8xf32>
    %993 = arith.addf %804, %992 : vector<8x8xf32>
    %cst_387 = arith.constant 0.000000e+00 : f32
    %994 = vector.broadcast %cst_387 : f32 to vector<8x16xf32>
    %995 = arith.maximumf %928, %994 : vector<8x16xf32>
    %996 = arith.mulf %820, %928 : vector<8x16xf32>
    %997 = arith.subf %995, %996 : vector<8x16xf32>
    %998 = math.absf %928 : vector<8x16xf32>
    %cst_388 = arith.constant 0.000000e+00 : f32
    %999 = vector.broadcast %cst_388 : f32 to vector<8x16xf32>
    %1000 = arith.subf %999, %998 : vector<8x16xf32>
    %1001 = math.exp %1000 : vector<8x16xf32>
    %cst_389 = arith.constant 1.000000e+00 : f32
    %1002 = vector.broadcast %cst_389 : f32 to vector<8x16xf32>
    %1003 = arith.addf %1002, %1001 : vector<8x16xf32>
    %1004 = math.log %1003 : vector<8x16xf32>
    %1005 = arith.addf %997, %1004 : vector<8x16xf32>
    %1006 = arith.addf %817, %1005 : vector<8x16xf32>
    %1007 = tpu.concatenate %857, %927, %41 in 1 : vector<8x16xf32>, vector<8x32xf32>, vector<8x80xf32> -> vector<8x128xf32>
    %c32_390 = arith.constant 32 : index
    %c0_391 = arith.constant 0 : index
    %1008 = vector.load %arg6[%c32_390, %c0_391] : memref<64x128xf32, #tpu.memory_space<vmem>>, vector<8x128xf32>
    tpu.vector_store %arg6[%c32_390, %c0_391], %1007 {strides = array<i32>} : memref<64x128xf32, #tpu.memory_space<vmem>>, vector<8x128xf32>,
    %c40 = arith.constant 40 : index
    %c0_392 = arith.constant 0 : index
    %1009 = vector.load %arg1[%c40, %c0_392] : memref<64x16xf32, #tpu.memory_space<vmem>>, vector<8x16xf32>
    %1010 = vector.extract_strided_slice %58 {offsets = [40, 0], sizes = [8, 128], strides = [1, 1]} : vector<64x128xf32> to vector<8x128xf32>
    %c40_393 = arith.constant 40 : index
    %c0_394 = arith.constant 0 : index
    %1011 = vector.load %arg2[%c40_393, %c0_394] : memref<64x8xf32, #tpu.memory_space<vmem>>, vector<8x8xf32>
    %cst_395 = arith.constant dense<0.000000e+00> : vector<8x256xf32>
    %1012 = tpu.matmul %979, %59, %cst_395 {dimension_numbers = #tpu.dot_dimension_numbers<[1], [0], [0], [1], [0, 0, 1, 1], [], []>} : vector<8x32xf32>, vector<32x256xf32>, vector<8x256xf32> -> vector<8x256xf32>
    %1013 = vector.extract_strided_slice %1012 {offsets = [0, 0], sizes = [8, 96], strides = [1, 1]} : vector<8x256xf32> to vector<8x96xf32>
    %1014 = vector.extract_strided_slice %1012 {offsets = [0, 96], sizes = [8, 32], strides = [1, 1]} : vector<8x256xf32> to vector<8x32xf32>
    %1015 = vector.extract_strided_slice %1012 {offsets = [0, 128], sizes = [8, 32], strides = [1, 1]} : vector<8x256xf32> to vector<8x32xf32>
    %1016 = vector.extract_strided_slice %1012 {offsets = [0, 160], sizes = [8, 32], strides = [1, 1]} : vector<8x256xf32> to vector<8x32xf32>
    %1017 = vector.extract_strided_slice %1010 {offsets = [0, 96], sizes = [8, 32], strides = [1, 1]} : vector<8x128xf32> to vector<8x32xf32>
    %1018 = arith.addf %1017, %1014 : vector<8x32xf32>
    %1019 = arith.addf %1018, %2 : vector<8x32xf32>
    %cst_396 = arith.constant 0.000000e+00 : f32
    %1020 = vector.broadcast %cst_396 : f32 to vector<8x32xf32>
    %1021 = arith.maximumf %1019, %1020 : vector<8x32xf32>
    %c80_397 = arith.constant 80 : index
    %c0_398 = arith.constant 0 : index
    %1022 = vector.load %arg3[%c80_397, %c0_398] : memref<384x128xf32, #tpu.memory_space<vmem>>, vector<32x32xf32>
    %cst_399 = arith.constant dense<0.000000e+00> : vector<8x32xf32>
    %1023 = tpu.matmul %1021, %1022, %cst_399 {dimension_numbers = #tpu.dot_dimension_numbers<[1], [0], [0], [1], [0, 0, 1, 1], [], []>} : vector<8x32xf32>, vector<32x32xf32>, vector<8x32xf32> -> vector<8x32xf32>
    %1024 = arith.addf %1023, %5 : vector<8x32xf32>
    %cst_400 = arith.constant 0.000000e+00 : f32
    %1025 = vector.broadcast %cst_400 : f32 to vector<8x32xf32>
    %1026 = arith.maximumf %1024, %1025 : vector<8x32xf32>
    %c112_401 = arith.constant 112 : index
    %c0_402 = arith.constant 0 : index
    %1027 = vector.load %arg3[%c112_401, %c0_402] : memref<384x128xf32, #tpu.memory_space<vmem>>, vector<32x16xf32>
    %cst_403 = arith.constant dense<0.000000e+00> : vector<8x16xf32>
    %1028 = tpu.matmul %1026, %1027, %cst_403 {dimension_numbers = #tpu.dot_dimension_numbers<[1], [0], [0], [1], [0, 0, 1, 1], [], []>} : vector<8x32xf32>, vector<32x16xf32>, vector<8x16xf32> -> vector<8x16xf32>
    %1029 = arith.addf %1028, %8 : vector<8x16xf32>
    %cst_404 = arith.constant 5.000000e-01 : f32
    %1030 = vector.broadcast %cst_404 : f32 to vector<8x16xf32>
    %1031 = arith.mulf %1030, %1029 : vector<8x16xf32>
    %1032 = math.tanh %1031 : vector<8x16xf32>
    %cst_405 = arith.constant 1.000000e+00 : f32
    %1033 = vector.broadcast %cst_405 : f32 to vector<8x16xf32>
    %1034 = arith.addf %1032, %1033 : vector<8x16xf32>
    %cst_406 = arith.constant 5.000000e-01 : f32
    %1035 = vector.broadcast %cst_406 : f32 to vector<8x16xf32>
    %1036 = arith.mulf %1035, %1034 : vector<8x16xf32>
    %cst_407 = arith.constant 2.000000e+01 : f32
    %1037 = vector.broadcast %cst_407 : f32 to vector<8x16xf32>
    %1038 = arith.cmpf ogt, %1029, %1037 : vector<8x16xf32>
    %cst_408 = arith.constant 2.000000e+01 : f32
    %1039 = vector.broadcast %cst_408 : f32 to vector<8x16xf32>
    %1040 = arith.minimumf %1029, %1039 : vector<8x16xf32>
    %1041 = math.exp %1040 : vector<8x16xf32>
    %cst_409 = arith.constant 1.000000e+00 : f32
    %1042 = vector.broadcast %cst_409 : f32 to vector<8x16xf32>
    %1043 = arith.addf %1042, %1041 : vector<8x16xf32>
    %1044 = math.log %1043 : vector<8x16xf32>
    %1045 = arith.select %1038, %1029, %1044 : vector<8x16xi1>, vector<8x16xf32>
    %1046 = arith.select %32, %1036, %1045 : vector<8x16xi1>, vector<8x16xf32>
    %1047 = vector.extract_strided_slice %1046 {offsets = [0, 0], sizes = [8, 8], strides = [1, 1]} : vector<8x16xf32> to vector<8x8xf32>
    %1048 = vector.extract_strided_slice %1046 {offsets = [0, 8], sizes = [8, 8], strides = [1, 1]} : vector<8x16xf32> to vector<8x8xf32>
    %1049 = arith.addf %1015, %11 : vector<8x32xf32>
    %cst_410 = arith.constant 0.000000e+00 : f32
    %1050 = vector.broadcast %cst_410 : f32 to vector<8x32xf32>
    %1051 = arith.maximumf %1049, %1050 : vector<8x32xf32>
    %c144_411 = arith.constant 144 : index
    %c0_412 = arith.constant 0 : index
    %1052 = vector.load %arg3[%c144_411, %c0_412] : memref<384x128xf32, #tpu.memory_space<vmem>>, vector<32x16xf32>
    %cst_413 = arith.constant dense<0.000000e+00> : vector<8x16xf32>
    %1053 = tpu.matmul %1051, %1052, %cst_413 {dimension_numbers = #tpu.dot_dimension_numbers<[1], [0], [0], [1], [0, 0, 1, 1], [], []>} : vector<8x32xf32>, vector<32x16xf32>, vector<8x16xf32> -> vector<8x16xf32>
    %1054 = arith.addf %1053, %14 : vector<8x16xf32>
    %1055 = vector.extract_strided_slice %1054 {offsets = [0, 0], sizes = [8, 8], strides = [1, 1]} : vector<8x16xf32> to vector<8x8xf32>
    %cst_414 = arith.constant 5.000000e-01 : f32
    %1056 = vector.broadcast %cst_414 : f32 to vector<8x8xf32>
    %1057 = arith.mulf %1056, %1055 : vector<8x8xf32>
    %1058 = math.tanh %1057 : vector<8x8xf32>
    %cst_415 = arith.constant 1.000000e+00 : f32
    %1059 = vector.broadcast %cst_415 : f32 to vector<8x8xf32>
    %1060 = arith.addf %1058, %1059 : vector<8x8xf32>
    %cst_416 = arith.constant 5.000000e-01 : f32
    %1061 = vector.broadcast %cst_416 : f32 to vector<8x8xf32>
    %1062 = arith.mulf %1061, %1060 : vector<8x8xf32>
    %1063 = vector.extract_strided_slice %1054 {offsets = [0, 8], sizes = [8, 8], strides = [1, 1]} : vector<8x16xf32> to vector<8x8xf32>
    %cst_417 = arith.constant 2.000000e+01 : f32
    %1064 = vector.broadcast %cst_417 : f32 to vector<8x8xf32>
    %1065 = arith.cmpf ogt, %1063, %1064 : vector<8x8xf32>
    %cst_418 = arith.constant 2.000000e+01 : f32
    %1066 = vector.broadcast %cst_418 : f32 to vector<8x8xf32>
    %1067 = arith.minimumf %1063, %1066 : vector<8x8xf32>
    %1068 = math.exp %1067 : vector<8x8xf32>
    %cst_419 = arith.constant 1.000000e+00 : f32
    %1069 = vector.broadcast %cst_419 : f32 to vector<8x8xf32>
    %1070 = arith.addf %1069, %1068 : vector<8x8xf32>
    %1071 = math.log %1070 : vector<8x8xf32>
    %1072 = arith.select %1065, %1063, %1071 : vector<8x8xi1>, vector<8x8xf32>
    %1073 = arith.mulf %1011, %1048 : vector<8x8xf32>
    %1074 = arith.addf %1073, %1047 : vector<8x8xf32>
    %c176_420 = arith.constant 176 : index
    %c0_421 = arith.constant 0 : index
    %1075 = vector.load %arg3[%c176_420, %c0_421] : memref<384x128xf32, #tpu.memory_space<vmem>>, vector<8x32xf32>
    %cst_422 = arith.constant dense<0.000000e+00> : vector<8x32xf32>
    %1076 = tpu.matmul %1074, %1075, %cst_422 {dimension_numbers = #tpu.dot_dimension_numbers<[1], [0], [0], [1], [0, 0, 1, 1], [], []>} : vector<8x8xf32>, vector<8x32xf32>, vector<8x32xf32> -> vector<8x32xf32>
    %1077 = arith.addf %1076, %17 : vector<8x32xf32>
    %cst_423 = arith.constant 0.000000e+00 : f32
    %1078 = vector.broadcast %cst_423 : f32 to vector<8x32xf32>
    %1079 = arith.maximumf %1077, %1078 : vector<8x32xf32>
    %c184_424 = arith.constant 184 : index
    %c0_425 = arith.constant 0 : index
    %1080 = vector.load %arg3[%c184_424, %c0_425] : memref<384x128xf32, #tpu.memory_space<vmem>>, vector<32x32xf32>
    %cst_426 = arith.constant dense<0.000000e+00> : vector<8x32xf32>
    %1081 = tpu.matmul %1079, %1080, %cst_426 {dimension_numbers = #tpu.dot_dimension_numbers<[1], [0], [0], [1], [0, 0, 1, 1], [], []>} : vector<8x32xf32>, vector<32x32xf32>, vector<8x32xf32> -> vector<8x32xf32>
    %1082 = arith.addf %1081, %20 : vector<8x32xf32>
    %cst_427 = arith.constant 0.000000e+00 : f32
    %1083 = vector.broadcast %cst_427 : f32 to vector<8x32xf32>
    %1084 = arith.maximumf %1082, %1083 : vector<8x32xf32>
    %c216_428 = arith.constant 216 : index
    %c0_429 = arith.constant 0 : index
    %1085 = vector.load %arg3[%c216_428, %c0_429] : memref<384x128xf32, #tpu.memory_space<vmem>>, vector<32x128xf32>
    %cst_430 = arith.constant dense<0.000000e+00> : vector<8x128xf32>
    %1086 = tpu.matmul %1084, %1085, %cst_430 {dimension_numbers = #tpu.dot_dimension_numbers<[1], [0], [0], [1], [0, 0, 1, 1], [], []>} : vector<8x32xf32>, vector<32x128xf32>, vector<8x128xf32> -> vector<8x128xf32>
    %1087 = vector.extract_strided_slice %1086 {offsets = [0, 96], sizes = [8, 32], strides = [1, 1]} : vector<8x128xf32> to vector<8x32xf32>
    %1088 = arith.addf %1087, %1016 : vector<8x32xf32>
    %1089 = arith.addf %1088, %23 : vector<8x32xf32>
    %cst_431 = arith.constant 0.000000e+00 : f32
    %1090 = vector.broadcast %cst_431 : f32 to vector<8x32xf32>
    %1091 = arith.maximumf %1089, %1090 : vector<8x32xf32>
    %c248_432 = arith.constant 248 : index
    %c0_433 = arith.constant 0 : index
    %1092 = vector.load %arg3[%c248_432, %c0_433] : memref<384x128xf32, #tpu.memory_space<vmem>>, vector<32x32xf32>
    %cst_434 = arith.constant dense<0.000000e+00> : vector<8x32xf32>
    %1093 = tpu.matmul %1091, %1092, %cst_434 {dimension_numbers = #tpu.dot_dimension_numbers<[1], [0], [0], [1], [0, 0, 1, 1], [], []>} : vector<8x32xf32>, vector<32x32xf32>, vector<8x32xf32> -> vector<8x32xf32>
    %1094 = arith.addf %1093, %26 : vector<8x32xf32>
    %cst_435 = arith.constant 0.000000e+00 : f32
    %1095 = vector.broadcast %cst_435 : f32 to vector<8x32xf32>
    %1096 = arith.maximumf %1094, %1095 : vector<8x32xf32>
    %c280_436 = arith.constant 280 : index
    %c0_437 = arith.constant 0 : index
    %1097 = vector.load %arg3[%c280_436, %c0_437] : memref<384x128xf32, #tpu.memory_space<vmem>>, vector<32x32xf32>
    %cst_438 = arith.constant dense<0.000000e+00> : vector<8x32xf32>
    %1098 = tpu.matmul %1096, %1097, %cst_438 {dimension_numbers = #tpu.dot_dimension_numbers<[1], [0], [0], [1], [0, 0, 1, 1], [], []>} : vector<8x32xf32>, vector<32x32xf32>, vector<8x32xf32> -> vector<8x32xf32>
    %1099 = arith.addf %1098, %29 : vector<8x32xf32>
    %cst_439 = arith.constant 5.000000e-01 : f32
    %1100 = vector.broadcast %cst_439 : f32 to vector<8x32xf32>
    %1101 = arith.mulf %1100, %1099 : vector<8x32xf32>
    %1102 = math.tanh %1101 : vector<8x32xf32>
    %cst_440 = arith.constant 1.000000e+00 : f32
    %1103 = vector.broadcast %cst_440 : f32 to vector<8x32xf32>
    %1104 = arith.addf %1102, %1103 : vector<8x32xf32>
    %cst_441 = arith.constant 5.000000e-01 : f32
    %1105 = vector.broadcast %cst_441 : f32 to vector<8x32xf32>
    %1106 = arith.mulf %1105, %1104 : vector<8x32xf32>
    %cst_442 = arith.constant 2.000000e+01 : f32
    %1107 = vector.broadcast %cst_442 : f32 to vector<8x32xf32>
    %1108 = arith.cmpf ogt, %1099, %1107 : vector<8x32xf32>
    %cst_443 = arith.constant 2.000000e+01 : f32
    %1109 = vector.broadcast %cst_443 : f32 to vector<8x32xf32>
    %1110 = arith.minimumf %1099, %1109 : vector<8x32xf32>
    %1111 = math.exp %1110 : vector<8x32xf32>
    %cst_444 = arith.constant 1.000000e+00 : f32
    %1112 = vector.broadcast %cst_444 : f32 to vector<8x32xf32>
    %1113 = arith.addf %1112, %1111 : vector<8x32xf32>
    %1114 = math.log %1113 : vector<8x32xf32>
    %1115 = arith.select %1108, %1099, %1114 : vector<8x32xi1>, vector<8x32xf32>
    %1116 = arith.select %35, %1106, %1115 : vector<8x32xi1>, vector<8x32xf32>
    %1117 = vector.extract_strided_slice %1099 {offsets = [0, 0], sizes = [8, 16], strides = [1, 1]} : vector<8x32xf32> to vector<8x16xf32>
    %1118 = vector.extract_strided_slice %1010 {offsets = [0, 0], sizes = [8, 96], strides = [1, 1]} : vector<8x128xf32> to vector<8x96xf32>
    %1119 = vector.extract_strided_slice %1086 {offsets = [0, 0], sizes = [8, 96], strides = [1, 1]} : vector<8x128xf32> to vector<8x96xf32>
    %1120 = arith.addf %1118, %1119 : vector<8x96xf32>
    %c312_445 = arith.constant 312 : index
    %c0_446 = arith.constant 0 : index
    %1121 = vector.load %arg3[%c312_445, %c0_446] : memref<384x128xf32, #tpu.memory_space<vmem>>, vector<32x96xf32>
    %cst_447 = arith.constant dense<0.000000e+00> : vector<8x96xf32>
    %1122 = tpu.matmul %955, %1121, %cst_447 {dimension_numbers = #tpu.dot_dimension_numbers<[1], [0], [0], [1], [0, 0, 1, 1], [], []>} : vector<8x32xf32>, vector<32x96xf32>, vector<8x96xf32> -> vector<8x96xf32>
    %1123 = vector.extract_strided_slice %1120 {offsets = [0, 0], sizes = [8, 64], strides = [1, 1]} : vector<8x96xf32> to vector<8x64xf32>
    %1124 = vector.extract_strided_slice %1122 {offsets = [0, 0], sizes = [8, 64], strides = [1, 1]} : vector<8x96xf32> to vector<8x64xf32>
    %1125 = arith.addf %1123, %1124 : vector<8x64xf32>
    %cst_448 = arith.constant 5.000000e-01 : f32
    %1126 = vector.broadcast %cst_448 : f32 to vector<8x64xf32>
    %1127 = arith.mulf %1126, %1125 : vector<8x64xf32>
    %1128 = math.tanh %1127 : vector<8x64xf32>
    %cst_449 = arith.constant 1.000000e+00 : f32
    %1129 = vector.broadcast %cst_449 : f32 to vector<8x64xf32>
    %1130 = arith.addf %1128, %1129 : vector<8x64xf32>
    %cst_450 = arith.constant 5.000000e-01 : f32
    %1131 = vector.broadcast %cst_450 : f32 to vector<8x64xf32>
    %1132 = arith.mulf %1131, %1130 : vector<8x64xf32>
    %1133 = vector.extract_strided_slice %1132 {offsets = [0, 0], sizes = [8, 32], strides = [1, 1]} : vector<8x64xf32> to vector<8x32xf32>
    %1134 = vector.extract_strided_slice %1132 {offsets = [0, 32], sizes = [8, 32], strides = [1, 1]} : vector<8x64xf32> to vector<8x32xf32>
    %1135 = vector.extract_strided_slice %1120 {offsets = [0, 64], sizes = [8, 32], strides = [1, 1]} : vector<8x96xf32> to vector<8x32xf32>
    %1136 = vector.extract_strided_slice %1122 {offsets = [0, 64], sizes = [8, 32], strides = [1, 1]} : vector<8x96xf32> to vector<8x32xf32>
    %1137 = arith.mulf %1133, %1136 : vector<8x32xf32>
    %1138 = arith.addf %1135, %1137 : vector<8x32xf32>
    %1139 = math.tanh %1138 : vector<8x32xf32>
    %cst_451 = arith.constant 1.000000e+00 : f32
    %1140 = vector.broadcast %cst_451 : f32 to vector<8x32xf32>
    %1141 = arith.subf %1140, %1134 : vector<8x32xf32>
    %1142 = arith.mulf %1141, %1139 : vector<8x32xf32>
    %1143 = arith.mulf %1134, %955 : vector<8x32xf32>
    %1144 = arith.addf %1142, %1143 : vector<8x32xf32>
    %c344_452 = arith.constant 344 : index
    %c0_453 = arith.constant 0 : index
    %1145 = vector.load %arg3[%c344_452, %c0_453] : memref<384x128xf32, #tpu.memory_space<vmem>>, vector<32x96xf32>
    %cst_454 = arith.constant dense<0.000000e+00> : vector<8x96xf32>
    %1146 = tpu.matmul %1144, %1145, %cst_454 {dimension_numbers = #tpu.dot_dimension_numbers<[1], [0], [0], [1], [0, 0, 1, 1], [], []>} : vector<8x32xf32>, vector<32x96xf32>, vector<8x96xf32> -> vector<8x96xf32>
    %1147 = vector.extract_strided_slice %1146 {offsets = [0, 0], sizes = [8, 64], strides = [1, 1]} : vector<8x96xf32> to vector<8x64xf32>
    %1148 = vector.extract_strided_slice %1013 {offsets = [0, 0], sizes = [8, 64], strides = [1, 1]} : vector<8x96xf32> to vector<8x64xf32>
    %1149 = arith.addf %1147, %1148 : vector<8x64xf32>
    %cst_455 = arith.constant 5.000000e-01 : f32
    %1150 = vector.broadcast %cst_455 : f32 to vector<8x64xf32>
    %1151 = arith.mulf %1150, %1149 : vector<8x64xf32>
    %1152 = math.tanh %1151 : vector<8x64xf32>
    %cst_456 = arith.constant 1.000000e+00 : f32
    %1153 = vector.broadcast %cst_456 : f32 to vector<8x64xf32>
    %1154 = arith.addf %1152, %1153 : vector<8x64xf32>
    %cst_457 = arith.constant 5.000000e-01 : f32
    %1155 = vector.broadcast %cst_457 : f32 to vector<8x64xf32>
    %1156 = arith.mulf %1155, %1154 : vector<8x64xf32>
    %1157 = vector.extract_strided_slice %1156 {offsets = [0, 0], sizes = [8, 32], strides = [1, 1]} : vector<8x64xf32> to vector<8x32xf32>
    %1158 = vector.extract_strided_slice %1156 {offsets = [0, 32], sizes = [8, 32], strides = [1, 1]} : vector<8x64xf32> to vector<8x32xf32>
    %1159 = vector.extract_strided_slice %1146 {offsets = [0, 64], sizes = [8, 32], strides = [1, 1]} : vector<8x96xf32> to vector<8x32xf32>
    %1160 = vector.extract_strided_slice %1013 {offsets = [0, 64], sizes = [8, 32], strides = [1, 1]} : vector<8x96xf32> to vector<8x32xf32>
    %1161 = arith.mulf %1157, %1160 : vector<8x32xf32>
    %1162 = arith.addf %1159, %1161 : vector<8x32xf32>
    %1163 = math.tanh %1162 : vector<8x32xf32>
    %cst_458 = arith.constant 1.000000e+00 : f32
    %1164 = vector.broadcast %cst_458 : f32 to vector<8x32xf32>
    %1165 = arith.subf %1164, %1158 : vector<8x32xf32>
    %1166 = arith.mulf %1165, %1163 : vector<8x32xf32>
    %1167 = arith.mulf %1158, %979 : vector<8x32xf32>
    %1168 = arith.addf %1166, %1167 : vector<8x32xf32>
    %1169 = arith.divf %1072, %1048 : vector<8x8xf32>
    %1170 = math.log %1169 : vector<8x8xf32>
    %cst_459 = arith.constant 2.000000e+00 : f32
    %1171 = vector.broadcast %cst_459 : f32 to vector<8x8xf32>
    %1172 = arith.mulf %1171, %1170 : vector<8x8xf32>
    %1173 = arith.mulf %1048, %1048 : vector<8x8xf32>
    %1174 = arith.subf %1047, %1062 : vector<8x8xf32>
    %1175 = arith.mulf %1174, %1174 : vector<8x8xf32>
    %1176 = arith.addf %1173, %1175 : vector<8x8xf32>
    %1177 = arith.mulf %1072, %1072 : vector<8x8xf32>
    %1178 = arith.divf %1176, %1177 : vector<8x8xf32>
    %1179 = arith.addf %1172, %1178 : vector<8x8xf32>
    %cst_460 = arith.constant 1.000000e+00 : f32
    %1180 = vector.broadcast %cst_460 : f32 to vector<8x8xf32>
    %1181 = arith.subf %1179, %1180 : vector<8x8xf32>
    %1182 = arith.addf %993, %1181 : vector<8x8xf32>
    %cst_461 = arith.constant 0.000000e+00 : f32
    %1183 = vector.broadcast %cst_461 : f32 to vector<8x16xf32>
    %1184 = arith.maximumf %1117, %1183 : vector<8x16xf32>
    %1185 = arith.mulf %1009, %1117 : vector<8x16xf32>
    %1186 = arith.subf %1184, %1185 : vector<8x16xf32>
    %1187 = math.absf %1117 : vector<8x16xf32>
    %cst_462 = arith.constant 0.000000e+00 : f32
    %1188 = vector.broadcast %cst_462 : f32 to vector<8x16xf32>
    %1189 = arith.subf %1188, %1187 : vector<8x16xf32>
    %1190 = math.exp %1189 : vector<8x16xf32>
    %cst_463 = arith.constant 1.000000e+00 : f32
    %1191 = vector.broadcast %cst_463 : f32 to vector<8x16xf32>
    %1192 = arith.addf %1191, %1190 : vector<8x16xf32>
    %1193 = math.log %1192 : vector<8x16xf32>
    %1194 = arith.addf %1186, %1193 : vector<8x16xf32>
    %1195 = arith.addf %1006, %1194 : vector<8x16xf32>
    %1196 = tpu.concatenate %1046, %1116, %41 in 1 : vector<8x16xf32>, vector<8x32xf32>, vector<8x80xf32> -> vector<8x128xf32>
    %c40_464 = arith.constant 40 : index
    %c0_465 = arith.constant 0 : index
    %1197 = vector.load %arg6[%c40_464, %c0_465] : memref<64x128xf32, #tpu.memory_space<vmem>>, vector<8x128xf32>
    tpu.vector_store %arg6[%c40_464, %c0_465], %1196 {strides = array<i32>} : memref<64x128xf32, #tpu.memory_space<vmem>>, vector<8x128xf32>,
    %c48_466 = arith.constant 48 : index
    %c0_467 = arith.constant 0 : index
    %1198 = vector.load %arg1[%c48_466, %c0_467] : memref<64x16xf32, #tpu.memory_space<vmem>>, vector<8x16xf32>
    %1199 = vector.extract_strided_slice %58 {offsets = [48, 0], sizes = [8, 128], strides = [1, 1]} : vector<64x128xf32> to vector<8x128xf32>
    %c48_468 = arith.constant 48 : index
    %c0_469 = arith.constant 0 : index
    %1200 = vector.load %arg2[%c48_468, %c0_469] : memref<64x8xf32, #tpu.memory_space<vmem>>, vector<8x8xf32>
    %cst_470 = arith.constant dense<0.000000e+00> : vector<8x256xf32>
    %1201 = tpu.matmul %1168, %59, %cst_470 {dimension_numbers = #tpu.dot_dimension_numbers<[1], [0], [0], [1], [0, 0, 1, 1], [], []>} : vector<8x32xf32>, vector<32x256xf32>, vector<8x256xf32> -> vector<8x256xf32>
    %1202 = vector.extract_strided_slice %1201 {offsets = [0, 0], sizes = [8, 96], strides = [1, 1]} : vector<8x256xf32> to vector<8x96xf32>
    %1203 = vector.extract_strided_slice %1201 {offsets = [0, 96], sizes = [8, 32], strides = [1, 1]} : vector<8x256xf32> to vector<8x32xf32>
    %1204 = vector.extract_strided_slice %1201 {offsets = [0, 128], sizes = [8, 32], strides = [1, 1]} : vector<8x256xf32> to vector<8x32xf32>
    %1205 = vector.extract_strided_slice %1201 {offsets = [0, 160], sizes = [8, 32], strides = [1, 1]} : vector<8x256xf32> to vector<8x32xf32>
    %1206 = vector.extract_strided_slice %1199 {offsets = [0, 96], sizes = [8, 32], strides = [1, 1]} : vector<8x128xf32> to vector<8x32xf32>
    %1207 = arith.addf %1206, %1203 : vector<8x32xf32>
    %1208 = arith.addf %1207, %2 : vector<8x32xf32>
    %cst_471 = arith.constant 0.000000e+00 : f32
    %1209 = vector.broadcast %cst_471 : f32 to vector<8x32xf32>
    %1210 = arith.maximumf %1208, %1209 : vector<8x32xf32>
    %c80_472 = arith.constant 80 : index
    %c0_473 = arith.constant 0 : index
    %1211 = vector.load %arg3[%c80_472, %c0_473] : memref<384x128xf32, #tpu.memory_space<vmem>>, vector<32x32xf32>
    %cst_474 = arith.constant dense<0.000000e+00> : vector<8x32xf32>
    %1212 = tpu.matmul %1210, %1211, %cst_474 {dimension_numbers = #tpu.dot_dimension_numbers<[1], [0], [0], [1], [0, 0, 1, 1], [], []>} : vector<8x32xf32>, vector<32x32xf32>, vector<8x32xf32> -> vector<8x32xf32>
    %1213 = arith.addf %1212, %5 : vector<8x32xf32>
    %cst_475 = arith.constant 0.000000e+00 : f32
    %1214 = vector.broadcast %cst_475 : f32 to vector<8x32xf32>
    %1215 = arith.maximumf %1213, %1214 : vector<8x32xf32>
    %c112_476 = arith.constant 112 : index
    %c0_477 = arith.constant 0 : index
    %1216 = vector.load %arg3[%c112_476, %c0_477] : memref<384x128xf32, #tpu.memory_space<vmem>>, vector<32x16xf32>
    %cst_478 = arith.constant dense<0.000000e+00> : vector<8x16xf32>
    %1217 = tpu.matmul %1215, %1216, %cst_478 {dimension_numbers = #tpu.dot_dimension_numbers<[1], [0], [0], [1], [0, 0, 1, 1], [], []>} : vector<8x32xf32>, vector<32x16xf32>, vector<8x16xf32> -> vector<8x16xf32>
    %1218 = arith.addf %1217, %8 : vector<8x16xf32>
    %cst_479 = arith.constant 5.000000e-01 : f32
    %1219 = vector.broadcast %cst_479 : f32 to vector<8x16xf32>
    %1220 = arith.mulf %1219, %1218 : vector<8x16xf32>
    %1221 = math.tanh %1220 : vector<8x16xf32>
    %cst_480 = arith.constant 1.000000e+00 : f32
    %1222 = vector.broadcast %cst_480 : f32 to vector<8x16xf32>
    %1223 = arith.addf %1221, %1222 : vector<8x16xf32>
    %cst_481 = arith.constant 5.000000e-01 : f32
    %1224 = vector.broadcast %cst_481 : f32 to vector<8x16xf32>
    %1225 = arith.mulf %1224, %1223 : vector<8x16xf32>
    %cst_482 = arith.constant 2.000000e+01 : f32
    %1226 = vector.broadcast %cst_482 : f32 to vector<8x16xf32>
    %1227 = arith.cmpf ogt, %1218, %1226 : vector<8x16xf32>
    %cst_483 = arith.constant 2.000000e+01 : f32
    %1228 = vector.broadcast %cst_483 : f32 to vector<8x16xf32>
    %1229 = arith.minimumf %1218, %1228 : vector<8x16xf32>
    %1230 = math.exp %1229 : vector<8x16xf32>
    %cst_484 = arith.constant 1.000000e+00 : f32
    %1231 = vector.broadcast %cst_484 : f32 to vector<8x16xf32>
    %1232 = arith.addf %1231, %1230 : vector<8x16xf32>
    %1233 = math.log %1232 : vector<8x16xf32>
    %1234 = arith.select %1227, %1218, %1233 : vector<8x16xi1>, vector<8x16xf32>
    %1235 = arith.select %32, %1225, %1234 : vector<8x16xi1>, vector<8x16xf32>
    %1236 = vector.extract_strided_slice %1235 {offsets = [0, 0], sizes = [8, 8], strides = [1, 1]} : vector<8x16xf32> to vector<8x8xf32>
    %1237 = vector.extract_strided_slice %1235 {offsets = [0, 8], sizes = [8, 8], strides = [1, 1]} : vector<8x16xf32> to vector<8x8xf32>
    %1238 = arith.addf %1204, %11 : vector<8x32xf32>
    %cst_485 = arith.constant 0.000000e+00 : f32
    %1239 = vector.broadcast %cst_485 : f32 to vector<8x32xf32>
    %1240 = arith.maximumf %1238, %1239 : vector<8x32xf32>
    %c144_486 = arith.constant 144 : index
    %c0_487 = arith.constant 0 : index
    %1241 = vector.load %arg3[%c144_486, %c0_487] : memref<384x128xf32, #tpu.memory_space<vmem>>, vector<32x16xf32>
    %cst_488 = arith.constant dense<0.000000e+00> : vector<8x16xf32>
    %1242 = tpu.matmul %1240, %1241, %cst_488 {dimension_numbers = #tpu.dot_dimension_numbers<[1], [0], [0], [1], [0, 0, 1, 1], [], []>} : vector<8x32xf32>, vector<32x16xf32>, vector<8x16xf32> -> vector<8x16xf32>
    %1243 = arith.addf %1242, %14 : vector<8x16xf32>
    %1244 = vector.extract_strided_slice %1243 {offsets = [0, 0], sizes = [8, 8], strides = [1, 1]} : vector<8x16xf32> to vector<8x8xf32>
    %cst_489 = arith.constant 5.000000e-01 : f32
    %1245 = vector.broadcast %cst_489 : f32 to vector<8x8xf32>
    %1246 = arith.mulf %1245, %1244 : vector<8x8xf32>
    %1247 = math.tanh %1246 : vector<8x8xf32>
    %cst_490 = arith.constant 1.000000e+00 : f32
    %1248 = vector.broadcast %cst_490 : f32 to vector<8x8xf32>
    %1249 = arith.addf %1247, %1248 : vector<8x8xf32>
    %cst_491 = arith.constant 5.000000e-01 : f32
    %1250 = vector.broadcast %cst_491 : f32 to vector<8x8xf32>
    %1251 = arith.mulf %1250, %1249 : vector<8x8xf32>
    %1252 = vector.extract_strided_slice %1243 {offsets = [0, 8], sizes = [8, 8], strides = [1, 1]} : vector<8x16xf32> to vector<8x8xf32>
    %cst_492 = arith.constant 2.000000e+01 : f32
    %1253 = vector.broadcast %cst_492 : f32 to vector<8x8xf32>
    %1254 = arith.cmpf ogt, %1252, %1253 : vector<8x8xf32>
    %cst_493 = arith.constant 2.000000e+01 : f32
    %1255 = vector.broadcast %cst_493 : f32 to vector<8x8xf32>
    %1256 = arith.minimumf %1252, %1255 : vector<8x8xf32>
    %1257 = math.exp %1256 : vector<8x8xf32>
    %cst_494 = arith.constant 1.000000e+00 : f32
    %1258 = vector.broadcast %cst_494 : f32 to vector<8x8xf32>
    %1259 = arith.addf %1258, %1257 : vector<8x8xf32>
    %1260 = math.log %1259 : vector<8x8xf32>
    %1261 = arith.select %1254, %1252, %1260 : vector<8x8xi1>, vector<8x8xf32>
    %1262 = arith.mulf %1200, %1237 : vector<8x8xf32>
    %1263 = arith.addf %1262, %1236 : vector<8x8xf32>
    %c176_495 = arith.constant 176 : index
    %c0_496 = arith.constant 0 : index
    %1264 = vector.load %arg3[%c176_495, %c0_496] : memref<384x128xf32, #tpu.memory_space<vmem>>, vector<8x32xf32>
    %cst_497 = arith.constant dense<0.000000e+00> : vector<8x32xf32>
    %1265 = tpu.matmul %1263, %1264, %cst_497 {dimension_numbers = #tpu.dot_dimension_numbers<[1], [0], [0], [1], [0, 0, 1, 1], [], []>} : vector<8x8xf32>, vector<8x32xf32>, vector<8x32xf32> -> vector<8x32xf32>
    %1266 = arith.addf %1265, %17 : vector<8x32xf32>
    %cst_498 = arith.constant 0.000000e+00 : f32
    %1267 = vector.broadcast %cst_498 : f32 to vector<8x32xf32>
    %1268 = arith.maximumf %1266, %1267 : vector<8x32xf32>
    %c184_499 = arith.constant 184 : index
    %c0_500 = arith.constant 0 : index
    %1269 = vector.load %arg3[%c184_499, %c0_500] : memref<384x128xf32, #tpu.memory_space<vmem>>, vector<32x32xf32>
    %cst_501 = arith.constant dense<0.000000e+00> : vector<8x32xf32>
    %1270 = tpu.matmul %1268, %1269, %cst_501 {dimension_numbers = #tpu.dot_dimension_numbers<[1], [0], [0], [1], [0, 0, 1, 1], [], []>} : vector<8x32xf32>, vector<32x32xf32>, vector<8x32xf32> -> vector<8x32xf32>
    %1271 = arith.addf %1270, %20 : vector<8x32xf32>
    %cst_502 = arith.constant 0.000000e+00 : f32
    %1272 = vector.broadcast %cst_502 : f32 to vector<8x32xf32>
    %1273 = arith.maximumf %1271, %1272 : vector<8x32xf32>
    %c216_503 = arith.constant 216 : index
    %c0_504 = arith.constant 0 : index
    %1274 = vector.load %arg3[%c216_503, %c0_504] : memref<384x128xf32, #tpu.memory_space<vmem>>, vector<32x128xf32>
    %cst_505 = arith.constant dense<0.000000e+00> : vector<8x128xf32>
    %1275 = tpu.matmul %1273, %1274, %cst_505 {dimension_numbers = #tpu.dot_dimension_numbers<[1], [0], [0], [1], [0, 0, 1, 1], [], []>} : vector<8x32xf32>, vector<32x128xf32>, vector<8x128xf32> -> vector<8x128xf32>
    %1276 = vector.extract_strided_slice %1275 {offsets = [0, 96], sizes = [8, 32], strides = [1, 1]} : vector<8x128xf32> to vector<8x32xf32>
    %1277 = arith.addf %1276, %1205 : vector<8x32xf32>
    %1278 = arith.addf %1277, %23 : vector<8x32xf32>
    %cst_506 = arith.constant 0.000000e+00 : f32
    %1279 = vector.broadcast %cst_506 : f32 to vector<8x32xf32>
    %1280 = arith.maximumf %1278, %1279 : vector<8x32xf32>
    %c248_507 = arith.constant 248 : index
    %c0_508 = arith.constant 0 : index
    %1281 = vector.load %arg3[%c248_507, %c0_508] : memref<384x128xf32, #tpu.memory_space<vmem>>, vector<32x32xf32>
    %cst_509 = arith.constant dense<0.000000e+00> : vector<8x32xf32>
    %1282 = tpu.matmul %1280, %1281, %cst_509 {dimension_numbers = #tpu.dot_dimension_numbers<[1], [0], [0], [1], [0, 0, 1, 1], [], []>} : vector<8x32xf32>, vector<32x32xf32>, vector<8x32xf32> -> vector<8x32xf32>
    %1283 = arith.addf %1282, %26 : vector<8x32xf32>
    %cst_510 = arith.constant 0.000000e+00 : f32
    %1284 = vector.broadcast %cst_510 : f32 to vector<8x32xf32>
    %1285 = arith.maximumf %1283, %1284 : vector<8x32xf32>
    %c280_511 = arith.constant 280 : index
    %c0_512 = arith.constant 0 : index
    %1286 = vector.load %arg3[%c280_511, %c0_512] : memref<384x128xf32, #tpu.memory_space<vmem>>, vector<32x32xf32>
    %cst_513 = arith.constant dense<0.000000e+00> : vector<8x32xf32>
    %1287 = tpu.matmul %1285, %1286, %cst_513 {dimension_numbers = #tpu.dot_dimension_numbers<[1], [0], [0], [1], [0, 0, 1, 1], [], []>} : vector<8x32xf32>, vector<32x32xf32>, vector<8x32xf32> -> vector<8x32xf32>
    %1288 = arith.addf %1287, %29 : vector<8x32xf32>
    %cst_514 = arith.constant 5.000000e-01 : f32
    %1289 = vector.broadcast %cst_514 : f32 to vector<8x32xf32>
    %1290 = arith.mulf %1289, %1288 : vector<8x32xf32>
    %1291 = math.tanh %1290 : vector<8x32xf32>
    %cst_515 = arith.constant 1.000000e+00 : f32
    %1292 = vector.broadcast %cst_515 : f32 to vector<8x32xf32>
    %1293 = arith.addf %1291, %1292 : vector<8x32xf32>
    %cst_516 = arith.constant 5.000000e-01 : f32
    %1294 = vector.broadcast %cst_516 : f32 to vector<8x32xf32>
    %1295 = arith.mulf %1294, %1293 : vector<8x32xf32>
    %cst_517 = arith.constant 2.000000e+01 : f32
    %1296 = vector.broadcast %cst_517 : f32 to vector<8x32xf32>
    %1297 = arith.cmpf ogt, %1288, %1296 : vector<8x32xf32>
    %cst_518 = arith.constant 2.000000e+01 : f32
    %1298 = vector.broadcast %cst_518 : f32 to vector<8x32xf32>
    %1299 = arith.minimumf %1288, %1298 : vector<8x32xf32>
    %1300 = math.exp %1299 : vector<8x32xf32>
    %cst_519 = arith.constant 1.000000e+00 : f32
    %1301 = vector.broadcast %cst_519 : f32 to vector<8x32xf32>
    %1302 = arith.addf %1301, %1300 : vector<8x32xf32>
    %1303 = math.log %1302 : vector<8x32xf32>
    %1304 = arith.select %1297, %1288, %1303 : vector<8x32xi1>, vector<8x32xf32>
    %1305 = arith.select %35, %1295, %1304 : vector<8x32xi1>, vector<8x32xf32>
    %1306 = vector.extract_strided_slice %1288 {offsets = [0, 0], sizes = [8, 16], strides = [1, 1]} : vector<8x32xf32> to vector<8x16xf32>
    %1307 = vector.extract_strided_slice %1199 {offsets = [0, 0], sizes = [8, 96], strides = [1, 1]} : vector<8x128xf32> to vector<8x96xf32>
    %1308 = vector.extract_strided_slice %1275 {offsets = [0, 0], sizes = [8, 96], strides = [1, 1]} : vector<8x128xf32> to vector<8x96xf32>
    %1309 = arith.addf %1307, %1308 : vector<8x96xf32>
    %c312_520 = arith.constant 312 : index
    %c0_521 = arith.constant 0 : index
    %1310 = vector.load %arg3[%c312_520, %c0_521] : memref<384x128xf32, #tpu.memory_space<vmem>>, vector<32x96xf32>
    %cst_522 = arith.constant dense<0.000000e+00> : vector<8x96xf32>
    %1311 = tpu.matmul %1144, %1310, %cst_522 {dimension_numbers = #tpu.dot_dimension_numbers<[1], [0], [0], [1], [0, 0, 1, 1], [], []>} : vector<8x32xf32>, vector<32x96xf32>, vector<8x96xf32> -> vector<8x96xf32>
    %1312 = vector.extract_strided_slice %1309 {offsets = [0, 0], sizes = [8, 64], strides = [1, 1]} : vector<8x96xf32> to vector<8x64xf32>
    %1313 = vector.extract_strided_slice %1311 {offsets = [0, 0], sizes = [8, 64], strides = [1, 1]} : vector<8x96xf32> to vector<8x64xf32>
    %1314 = arith.addf %1312, %1313 : vector<8x64xf32>
    %cst_523 = arith.constant 5.000000e-01 : f32
    %1315 = vector.broadcast %cst_523 : f32 to vector<8x64xf32>
    %1316 = arith.mulf %1315, %1314 : vector<8x64xf32>
    %1317 = math.tanh %1316 : vector<8x64xf32>
    %cst_524 = arith.constant 1.000000e+00 : f32
    %1318 = vector.broadcast %cst_524 : f32 to vector<8x64xf32>
    %1319 = arith.addf %1317, %1318 : vector<8x64xf32>
    %cst_525 = arith.constant 5.000000e-01 : f32
    %1320 = vector.broadcast %cst_525 : f32 to vector<8x64xf32>
    %1321 = arith.mulf %1320, %1319 : vector<8x64xf32>
    %1322 = vector.extract_strided_slice %1321 {offsets = [0, 0], sizes = [8, 32], strides = [1, 1]} : vector<8x64xf32> to vector<8x32xf32>
    %1323 = vector.extract_strided_slice %1321 {offsets = [0, 32], sizes = [8, 32], strides = [1, 1]} : vector<8x64xf32> to vector<8x32xf32>
    %1324 = vector.extract_strided_slice %1309 {offsets = [0, 64], sizes = [8, 32], strides = [1, 1]} : vector<8x96xf32> to vector<8x32xf32>
    %1325 = vector.extract_strided_slice %1311 {offsets = [0, 64], sizes = [8, 32], strides = [1, 1]} : vector<8x96xf32> to vector<8x32xf32>
    %1326 = arith.mulf %1322, %1325 : vector<8x32xf32>
    %1327 = arith.addf %1324, %1326 : vector<8x32xf32>
    %1328 = math.tanh %1327 : vector<8x32xf32>
    %cst_526 = arith.constant 1.000000e+00 : f32
    %1329 = vector.broadcast %cst_526 : f32 to vector<8x32xf32>
    %1330 = arith.subf %1329, %1323 : vector<8x32xf32>
    %1331 = arith.mulf %1330, %1328 : vector<8x32xf32>
    %1332 = arith.mulf %1323, %1144 : vector<8x32xf32>
    %1333 = arith.addf %1331, %1332 : vector<8x32xf32>
    %c344_527 = arith.constant 344 : index
    %c0_528 = arith.constant 0 : index
    %1334 = vector.load %arg3[%c344_527, %c0_528] : memref<384x128xf32, #tpu.memory_space<vmem>>, vector<32x96xf32>
    %cst_529 = arith.constant dense<0.000000e+00> : vector<8x96xf32>
    %1335 = tpu.matmul %1333, %1334, %cst_529 {dimension_numbers = #tpu.dot_dimension_numbers<[1], [0], [0], [1], [0, 0, 1, 1], [], []>} : vector<8x32xf32>, vector<32x96xf32>, vector<8x96xf32> -> vector<8x96xf32>
    %1336 = vector.extract_strided_slice %1335 {offsets = [0, 0], sizes = [8, 64], strides = [1, 1]} : vector<8x96xf32> to vector<8x64xf32>
    %1337 = vector.extract_strided_slice %1202 {offsets = [0, 0], sizes = [8, 64], strides = [1, 1]} : vector<8x96xf32> to vector<8x64xf32>
    %1338 = arith.addf %1336, %1337 : vector<8x64xf32>
    %cst_530 = arith.constant 5.000000e-01 : f32
    %1339 = vector.broadcast %cst_530 : f32 to vector<8x64xf32>
    %1340 = arith.mulf %1339, %1338 : vector<8x64xf32>
    %1341 = math.tanh %1340 : vector<8x64xf32>
    %cst_531 = arith.constant 1.000000e+00 : f32
    %1342 = vector.broadcast %cst_531 : f32 to vector<8x64xf32>
    %1343 = arith.addf %1341, %1342 : vector<8x64xf32>
    %cst_532 = arith.constant 5.000000e-01 : f32
    %1344 = vector.broadcast %cst_532 : f32 to vector<8x64xf32>
    %1345 = arith.mulf %1344, %1343 : vector<8x64xf32>
    %1346 = vector.extract_strided_slice %1345 {offsets = [0, 0], sizes = [8, 32], strides = [1, 1]} : vector<8x64xf32> to vector<8x32xf32>
    %1347 = vector.extract_strided_slice %1345 {offsets = [0, 32], sizes = [8, 32], strides = [1, 1]} : vector<8x64xf32> to vector<8x32xf32>
    %1348 = vector.extract_strided_slice %1335 {offsets = [0, 64], sizes = [8, 32], strides = [1, 1]} : vector<8x96xf32> to vector<8x32xf32>
    %1349 = vector.extract_strided_slice %1202 {offsets = [0, 64], sizes = [8, 32], strides = [1, 1]} : vector<8x96xf32> to vector<8x32xf32>
    %1350 = arith.mulf %1346, %1349 : vector<8x32xf32>
    %1351 = arith.addf %1348, %1350 : vector<8x32xf32>
    %1352 = math.tanh %1351 : vector<8x32xf32>
    %cst_533 = arith.constant 1.000000e+00 : f32
    %1353 = vector.broadcast %cst_533 : f32 to vector<8x32xf32>
    %1354 = arith.subf %1353, %1347 : vector<8x32xf32>
    %1355 = arith.mulf %1354, %1352 : vector<8x32xf32>
    %1356 = arith.mulf %1347, %1168 : vector<8x32xf32>
    %1357 = arith.addf %1355, %1356 : vector<8x32xf32>
    %1358 = arith.divf %1261, %1237 : vector<8x8xf32>
    %1359 = math.log %1358 : vector<8x8xf32>
    %cst_534 = arith.constant 2.000000e+00 : f32
    %1360 = vector.broadcast %cst_534 : f32 to vector<8x8xf32>
    %1361 = arith.mulf %1360, %1359 : vector<8x8xf32>
    %1362 = arith.mulf %1237, %1237 : vector<8x8xf32>
    %1363 = arith.subf %1236, %1251 : vector<8x8xf32>
    %1364 = arith.mulf %1363, %1363 : vector<8x8xf32>
    %1365 = arith.addf %1362, %1364 : vector<8x8xf32>
    %1366 = arith.mulf %1261, %1261 : vector<8x8xf32>
    %1367 = arith.divf %1365, %1366 : vector<8x8xf32>
    %1368 = arith.addf %1361, %1367 : vector<8x8xf32>
    %cst_535 = arith.constant 1.000000e+00 : f32
    %1369 = vector.broadcast %cst_535 : f32 to vector<8x8xf32>
    %1370 = arith.subf %1368, %1369 : vector<8x8xf32>
    %1371 = arith.addf %1182, %1370 : vector<8x8xf32>
    %cst_536 = arith.constant 0.000000e+00 : f32
    %1372 = vector.broadcast %cst_536 : f32 to vector<8x16xf32>
    %1373 = arith.maximumf %1306, %1372 : vector<8x16xf32>
    %1374 = arith.mulf %1198, %1306 : vector<8x16xf32>
    %1375 = arith.subf %1373, %1374 : vector<8x16xf32>
    %1376 = math.absf %1306 : vector<8x16xf32>
    %cst_537 = arith.constant 0.000000e+00 : f32
    %1377 = vector.broadcast %cst_537 : f32 to vector<8x16xf32>
    %1378 = arith.subf %1377, %1376 : vector<8x16xf32>
    %1379 = math.exp %1378 : vector<8x16xf32>
    %cst_538 = arith.constant 1.000000e+00 : f32
    %1380 = vector.broadcast %cst_538 : f32 to vector<8x16xf32>
    %1381 = arith.addf %1380, %1379 : vector<8x16xf32>
    %1382 = math.log %1381 : vector<8x16xf32>
    %1383 = arith.addf %1375, %1382 : vector<8x16xf32>
    %1384 = arith.addf %1195, %1383 : vector<8x16xf32>
    %1385 = tpu.concatenate %1235, %1305, %41 in 1 : vector<8x16xf32>, vector<8x32xf32>, vector<8x80xf32> -> vector<8x128xf32>
    %c48_539 = arith.constant 48 : index
    %c0_540 = arith.constant 0 : index
    %1386 = vector.load %arg6[%c48_539, %c0_540] : memref<64x128xf32, #tpu.memory_space<vmem>>, vector<8x128xf32>
    tpu.vector_store %arg6[%c48_539, %c0_540], %1385 {strides = array<i32>} : memref<64x128xf32, #tpu.memory_space<vmem>>, vector<8x128xf32>,
    %c56 = arith.constant 56 : index
    %c0_541 = arith.constant 0 : index
    %1387 = vector.load %arg1[%c56, %c0_541] : memref<64x16xf32, #tpu.memory_space<vmem>>, vector<8x16xf32>
    %1388 = vector.extract_strided_slice %58 {offsets = [56, 0], sizes = [8, 128], strides = [1, 1]} : vector<64x128xf32> to vector<8x128xf32>
    %c56_542 = arith.constant 56 : index
    %c0_543 = arith.constant 0 : index
    %1389 = vector.load %arg2[%c56_542, %c0_543] : memref<64x8xf32, #tpu.memory_space<vmem>>, vector<8x8xf32>
    %cst_544 = arith.constant dense<0.000000e+00> : vector<8x256xf32>
    %1390 = tpu.matmul %1357, %59, %cst_544 {dimension_numbers = #tpu.dot_dimension_numbers<[1], [0], [0], [1], [0, 0, 1, 1], [], []>} : vector<8x32xf32>, vector<32x256xf32>, vector<8x256xf32> -> vector<8x256xf32>
    %1391 = vector.extract_strided_slice %1390 {offsets = [0, 96], sizes = [8, 32], strides = [1, 1]} : vector<8x256xf32> to vector<8x32xf32>
    %1392 = vector.extract_strided_slice %1390 {offsets = [0, 128], sizes = [8, 32], strides = [1, 1]} : vector<8x256xf32> to vector<8x32xf32>
    %1393 = vector.extract_strided_slice %1390 {offsets = [0, 160], sizes = [8, 32], strides = [1, 1]} : vector<8x256xf32> to vector<8x32xf32>
    %1394 = vector.extract_strided_slice %1388 {offsets = [0, 96], sizes = [8, 32], strides = [1, 1]} : vector<8x128xf32> to vector<8x32xf32>
    %1395 = arith.addf %1394, %1391 : vector<8x32xf32>
    %1396 = arith.addf %1395, %2 : vector<8x32xf32>
    %cst_545 = arith.constant 0.000000e+00 : f32
    %1397 = vector.broadcast %cst_545 : f32 to vector<8x32xf32>
    %1398 = arith.maximumf %1396, %1397 : vector<8x32xf32>
    %c80_546 = arith.constant 80 : index
    %c0_547 = arith.constant 0 : index
    %1399 = vector.load %arg3[%c80_546, %c0_547] : memref<384x128xf32, #tpu.memory_space<vmem>>, vector<32x32xf32>
    %cst_548 = arith.constant dense<0.000000e+00> : vector<8x32xf32>
    %1400 = tpu.matmul %1398, %1399, %cst_548 {dimension_numbers = #tpu.dot_dimension_numbers<[1], [0], [0], [1], [0, 0, 1, 1], [], []>} : vector<8x32xf32>, vector<32x32xf32>, vector<8x32xf32> -> vector<8x32xf32>
    %1401 = arith.addf %1400, %5 : vector<8x32xf32>
    %cst_549 = arith.constant 0.000000e+00 : f32
    %1402 = vector.broadcast %cst_549 : f32 to vector<8x32xf32>
    %1403 = arith.maximumf %1401, %1402 : vector<8x32xf32>
    %c112_550 = arith.constant 112 : index
    %c0_551 = arith.constant 0 : index
    %1404 = vector.load %arg3[%c112_550, %c0_551] : memref<384x128xf32, #tpu.memory_space<vmem>>, vector<32x16xf32>
    %cst_552 = arith.constant dense<0.000000e+00> : vector<8x16xf32>
    %1405 = tpu.matmul %1403, %1404, %cst_552 {dimension_numbers = #tpu.dot_dimension_numbers<[1], [0], [0], [1], [0, 0, 1, 1], [], []>} : vector<8x32xf32>, vector<32x16xf32>, vector<8x16xf32> -> vector<8x16xf32>
    %1406 = arith.addf %1405, %8 : vector<8x16xf32>
    %cst_553 = arith.constant 5.000000e-01 : f32
    %1407 = vector.broadcast %cst_553 : f32 to vector<8x16xf32>
    %1408 = arith.mulf %1407, %1406 : vector<8x16xf32>
    %1409 = math.tanh %1408 : vector<8x16xf32>
    %cst_554 = arith.constant 1.000000e+00 : f32
    %1410 = vector.broadcast %cst_554 : f32 to vector<8x16xf32>
    %1411 = arith.addf %1409, %1410 : vector<8x16xf32>
    %cst_555 = arith.constant 5.000000e-01 : f32
    %1412 = vector.broadcast %cst_555 : f32 to vector<8x16xf32>
    %1413 = arith.mulf %1412, %1411 : vector<8x16xf32>
    %cst_556 = arith.constant 2.000000e+01 : f32
    %1414 = vector.broadcast %cst_556 : f32 to vector<8x16xf32>
    %1415 = arith.cmpf ogt, %1406, %1414 : vector<8x16xf32>
    %cst_557 = arith.constant 2.000000e+01 : f32
    %1416 = vector.broadcast %cst_557 : f32 to vector<8x16xf32>
    %1417 = arith.minimumf %1406, %1416 : vector<8x16xf32>
    %1418 = math.exp %1417 : vector<8x16xf32>
    %cst_558 = arith.constant 1.000000e+00 : f32
    %1419 = vector.broadcast %cst_558 : f32 to vector<8x16xf32>
    %1420 = arith.addf %1419, %1418 : vector<8x16xf32>
    %1421 = math.log %1420 : vector<8x16xf32>
    %1422 = arith.select %1415, %1406, %1421 : vector<8x16xi1>, vector<8x16xf32>
    %1423 = arith.select %32, %1413, %1422 : vector<8x16xi1>, vector<8x16xf32>
    %1424 = vector.extract_strided_slice %1423 {offsets = [0, 0], sizes = [8, 8], strides = [1, 1]} : vector<8x16xf32> to vector<8x8xf32>
    %1425 = vector.extract_strided_slice %1423 {offsets = [0, 8], sizes = [8, 8], strides = [1, 1]} : vector<8x16xf32> to vector<8x8xf32>
    %1426 = arith.addf %1392, %11 : vector<8x32xf32>
    %cst_559 = arith.constant 0.000000e+00 : f32
    %1427 = vector.broadcast %cst_559 : f32 to vector<8x32xf32>
    %1428 = arith.maximumf %1426, %1427 : vector<8x32xf32>
    %c144_560 = arith.constant 144 : index
    %c0_561 = arith.constant 0 : index
    %1429 = vector.load %arg3[%c144_560, %c0_561] : memref<384x128xf32, #tpu.memory_space<vmem>>, vector<32x16xf32>
    %cst_562 = arith.constant dense<0.000000e+00> : vector<8x16xf32>
    %1430 = tpu.matmul %1428, %1429, %cst_562 {dimension_numbers = #tpu.dot_dimension_numbers<[1], [0], [0], [1], [0, 0, 1, 1], [], []>} : vector<8x32xf32>, vector<32x16xf32>, vector<8x16xf32> -> vector<8x16xf32>
    %1431 = arith.addf %1430, %14 : vector<8x16xf32>
    %1432 = vector.extract_strided_slice %1431 {offsets = [0, 0], sizes = [8, 8], strides = [1, 1]} : vector<8x16xf32> to vector<8x8xf32>
    %cst_563 = arith.constant 5.000000e-01 : f32
    %1433 = vector.broadcast %cst_563 : f32 to vector<8x8xf32>
    %1434 = arith.mulf %1433, %1432 : vector<8x8xf32>
    %1435 = math.tanh %1434 : vector<8x8xf32>
    %cst_564 = arith.constant 1.000000e+00 : f32
    %1436 = vector.broadcast %cst_564 : f32 to vector<8x8xf32>
    %1437 = arith.addf %1435, %1436 : vector<8x8xf32>
    %cst_565 = arith.constant 5.000000e-01 : f32
    %1438 = vector.broadcast %cst_565 : f32 to vector<8x8xf32>
    %1439 = arith.mulf %1438, %1437 : vector<8x8xf32>
    %1440 = vector.extract_strided_slice %1431 {offsets = [0, 8], sizes = [8, 8], strides = [1, 1]} : vector<8x16xf32> to vector<8x8xf32>
    %cst_566 = arith.constant 2.000000e+01 : f32
    %1441 = vector.broadcast %cst_566 : f32 to vector<8x8xf32>
    %1442 = arith.cmpf ogt, %1440, %1441 : vector<8x8xf32>
    %cst_567 = arith.constant 2.000000e+01 : f32
    %1443 = vector.broadcast %cst_567 : f32 to vector<8x8xf32>
    %1444 = arith.minimumf %1440, %1443 : vector<8x8xf32>
    %1445 = math.exp %1444 : vector<8x8xf32>
    %cst_568 = arith.constant 1.000000e+00 : f32
    %1446 = vector.broadcast %cst_568 : f32 to vector<8x8xf32>
    %1447 = arith.addf %1446, %1445 : vector<8x8xf32>
    %1448 = math.log %1447 : vector<8x8xf32>
    %1449 = arith.select %1442, %1440, %1448 : vector<8x8xi1>, vector<8x8xf32>
    %1450 = arith.mulf %1389, %1425 : vector<8x8xf32>
    %1451 = arith.addf %1450, %1424 : vector<8x8xf32>
    %c176_569 = arith.constant 176 : index
    %c0_570 = arith.constant 0 : index
    %1452 = vector.load %arg3[%c176_569, %c0_570] : memref<384x128xf32, #tpu.memory_space<vmem>>, vector<8x32xf32>
    %cst_571 = arith.constant dense<0.000000e+00> : vector<8x32xf32>
    %1453 = tpu.matmul %1451, %1452, %cst_571 {dimension_numbers = #tpu.dot_dimension_numbers<[1], [0], [0], [1], [0, 0, 1, 1], [], []>} : vector<8x8xf32>, vector<8x32xf32>, vector<8x32xf32> -> vector<8x32xf32>
    %1454 = arith.addf %1453, %17 : vector<8x32xf32>
    %cst_572 = arith.constant 0.000000e+00 : f32
    %1455 = vector.broadcast %cst_572 : f32 to vector<8x32xf32>
    %1456 = arith.maximumf %1454, %1455 : vector<8x32xf32>
    %c184_573 = arith.constant 184 : index
    %c0_574 = arith.constant 0 : index
    %1457 = vector.load %arg3[%c184_573, %c0_574] : memref<384x128xf32, #tpu.memory_space<vmem>>, vector<32x32xf32>
    %cst_575 = arith.constant dense<0.000000e+00> : vector<8x32xf32>
    %1458 = tpu.matmul %1456, %1457, %cst_575 {dimension_numbers = #tpu.dot_dimension_numbers<[1], [0], [0], [1], [0, 0, 1, 1], [], []>} : vector<8x32xf32>, vector<32x32xf32>, vector<8x32xf32> -> vector<8x32xf32>
    %1459 = arith.addf %1458, %20 : vector<8x32xf32>
    %cst_576 = arith.constant 0.000000e+00 : f32
    %1460 = vector.broadcast %cst_576 : f32 to vector<8x32xf32>
    %1461 = arith.maximumf %1459, %1460 : vector<8x32xf32>
    %c216_577 = arith.constant 216 : index
    %c0_578 = arith.constant 0 : index
    %1462 = vector.load %arg3[%c216_577, %c0_578] : memref<384x128xf32, #tpu.memory_space<vmem>>, vector<32x128xf32>
    %cst_579 = arith.constant dense<0.000000e+00> : vector<8x128xf32>
    %1463 = tpu.matmul %1461, %1462, %cst_579 {dimension_numbers = #tpu.dot_dimension_numbers<[1], [0], [0], [1], [0, 0, 1, 1], [], []>} : vector<8x32xf32>, vector<32x128xf32>, vector<8x128xf32> -> vector<8x128xf32>
    %1464 = vector.extract_strided_slice %1463 {offsets = [0, 96], sizes = [8, 32], strides = [1, 1]} : vector<8x128xf32> to vector<8x32xf32>
    %1465 = arith.addf %1464, %1393 : vector<8x32xf32>
    %1466 = arith.addf %1465, %23 : vector<8x32xf32>
    %cst_580 = arith.constant 0.000000e+00 : f32
    %1467 = vector.broadcast %cst_580 : f32 to vector<8x32xf32>
    %1468 = arith.maximumf %1466, %1467 : vector<8x32xf32>
    %c248_581 = arith.constant 248 : index
    %c0_582 = arith.constant 0 : index
    %1469 = vector.load %arg3[%c248_581, %c0_582] : memref<384x128xf32, #tpu.memory_space<vmem>>, vector<32x32xf32>
    %cst_583 = arith.constant dense<0.000000e+00> : vector<8x32xf32>
    %1470 = tpu.matmul %1468, %1469, %cst_583 {dimension_numbers = #tpu.dot_dimension_numbers<[1], [0], [0], [1], [0, 0, 1, 1], [], []>} : vector<8x32xf32>, vector<32x32xf32>, vector<8x32xf32> -> vector<8x32xf32>
    %1471 = arith.addf %1470, %26 : vector<8x32xf32>
    %cst_584 = arith.constant 0.000000e+00 : f32
    %1472 = vector.broadcast %cst_584 : f32 to vector<8x32xf32>
    %1473 = arith.maximumf %1471, %1472 : vector<8x32xf32>
    %c280_585 = arith.constant 280 : index
    %c0_586 = arith.constant 0 : index
    %1474 = vector.load %arg3[%c280_585, %c0_586] : memref<384x128xf32, #tpu.memory_space<vmem>>, vector<32x32xf32>
    %cst_587 = arith.constant dense<0.000000e+00> : vector<8x32xf32>
    %1475 = tpu.matmul %1473, %1474, %cst_587 {dimension_numbers = #tpu.dot_dimension_numbers<[1], [0], [0], [1], [0, 0, 1, 1], [], []>} : vector<8x32xf32>, vector<32x32xf32>, vector<8x32xf32> -> vector<8x32xf32>
    %1476 = arith.addf %1475, %29 : vector<8x32xf32>
    %cst_588 = arith.constant 5.000000e-01 : f32
    %1477 = vector.broadcast %cst_588 : f32 to vector<8x32xf32>
    %1478 = arith.mulf %1477, %1476 : vector<8x32xf32>
    %1479 = math.tanh %1478 : vector<8x32xf32>
    %cst_589 = arith.constant 1.000000e+00 : f32
    %1480 = vector.broadcast %cst_589 : f32 to vector<8x32xf32>
    %1481 = arith.addf %1479, %1480 : vector<8x32xf32>
    %cst_590 = arith.constant 5.000000e-01 : f32
    %1482 = vector.broadcast %cst_590 : f32 to vector<8x32xf32>
    %1483 = arith.mulf %1482, %1481 : vector<8x32xf32>
    %cst_591 = arith.constant 2.000000e+01 : f32
    %1484 = vector.broadcast %cst_591 : f32 to vector<8x32xf32>
    %1485 = arith.cmpf ogt, %1476, %1484 : vector<8x32xf32>
    %cst_592 = arith.constant 2.000000e+01 : f32
    %1486 = vector.broadcast %cst_592 : f32 to vector<8x32xf32>
    %1487 = arith.minimumf %1476, %1486 : vector<8x32xf32>
    %1488 = math.exp %1487 : vector<8x32xf32>
    %cst_593 = arith.constant 1.000000e+00 : f32
    %1489 = vector.broadcast %cst_593 : f32 to vector<8x32xf32>
    %1490 = arith.addf %1489, %1488 : vector<8x32xf32>
    %1491 = math.log %1490 : vector<8x32xf32>
    %1492 = arith.select %1485, %1476, %1491 : vector<8x32xi1>, vector<8x32xf32>
    %1493 = arith.select %35, %1483, %1492 : vector<8x32xi1>, vector<8x32xf32>
    %1494 = vector.extract_strided_slice %1476 {offsets = [0, 0], sizes = [8, 16], strides = [1, 1]} : vector<8x32xf32> to vector<8x16xf32>
    %1495 = arith.divf %1449, %1425 : vector<8x8xf32>
    %1496 = math.log %1495 : vector<8x8xf32>
    %cst_594 = arith.constant 2.000000e+00 : f32
    %1497 = vector.broadcast %cst_594 : f32 to vector<8x8xf32>
    %1498 = arith.mulf %1497, %1496 : vector<8x8xf32>
    %1499 = arith.mulf %1425, %1425 : vector<8x8xf32>
    %1500 = arith.subf %1424, %1439 : vector<8x8xf32>
    %1501 = arith.mulf %1500, %1500 : vector<8x8xf32>
    %1502 = arith.addf %1499, %1501 : vector<8x8xf32>
    %1503 = arith.mulf %1449, %1449 : vector<8x8xf32>
    %1504 = arith.divf %1502, %1503 : vector<8x8xf32>
    %1505 = arith.addf %1498, %1504 : vector<8x8xf32>
    %cst_595 = arith.constant 1.000000e+00 : f32
    %1506 = vector.broadcast %cst_595 : f32 to vector<8x8xf32>
    %1507 = arith.subf %1505, %1506 : vector<8x8xf32>
    %1508 = arith.addf %1371, %1507 : vector<8x8xf32>
    %cst_596 = arith.constant 0.000000e+00 : f32
    %1509 = vector.broadcast %cst_596 : f32 to vector<8x16xf32>
    %1510 = arith.maximumf %1494, %1509 : vector<8x16xf32>
    %1511 = arith.mulf %1387, %1494 : vector<8x16xf32>
    %1512 = arith.subf %1510, %1511 : vector<8x16xf32>
    %1513 = math.absf %1494 : vector<8x16xf32>
    %cst_597 = arith.constant 0.000000e+00 : f32
    %1514 = vector.broadcast %cst_597 : f32 to vector<8x16xf32>
    %1515 = arith.subf %1514, %1513 : vector<8x16xf32>
    %1516 = math.exp %1515 : vector<8x16xf32>
    %cst_598 = arith.constant 1.000000e+00 : f32
    %1517 = vector.broadcast %cst_598 : f32 to vector<8x16xf32>
    %1518 = arith.addf %1517, %1516 : vector<8x16xf32>
    %1519 = math.log %1518 : vector<8x16xf32>
    %1520 = arith.addf %1512, %1519 : vector<8x16xf32>
    %1521 = arith.addf %1384, %1520 : vector<8x16xf32>
    %1522 = tpu.concatenate %1423, %1493, %41 in 1 : vector<8x16xf32>, vector<8x32xf32>, vector<8x80xf32> -> vector<8x128xf32>
    %c56_599 = arith.constant 56 : index
    %c0_600 = arith.constant 0 : index
    %1523 = vector.load %arg6[%c56_599, %c0_600] : memref<64x128xf32, #tpu.memory_space<vmem>>, vector<8x128xf32>
    tpu.vector_store %arg6[%c56_599, %c0_600], %1522 {strides = array<i32>} : memref<64x128xf32, #tpu.memory_space<vmem>>, vector<8x128xf32>,
    %1524 = vector.broadcast %40 : vector<8x1xf32> to vector<8x8xf32>
    %1525 = arith.mulf %1524, %1508 : vector<8x8xf32>
    %1526 = vector.shape_cast %1525 : vector<8x8xf32> to vector<1x8x8xf32>
    %cst_601 = arith.constant dense<0.000000e+00> : vector<1xf32>
    %1527 = vector.multi_reduction <add>, %1526, %cst_601 [1, 2] : vector<1x8x8xf32> to vector<1xf32>
    %1528 = vector.shape_cast %1527 : vector<1xf32> to vector<1x1x1xf32>
    %1529 = vector.extract %1528[0, 0, 0] : f32 from vector<1x1x1xf32>
    %1530 = vector.broadcast %1529 : f32 to vector<1x1xf32>
    %cst_602 = arith.constant 5.000000e-01 : f32
    %1531 = vector.broadcast %cst_602 : f32 to vector<1x1xf32>
    %1532 = arith.mulf %1531, %1530 : vector<1x1xf32>
    %c0_603 = arith.constant 0 : index
    %c0_604 = arith.constant 0 : index
    %1533 = vector.load %arg7[%c0_603, %c0_604] : memref<1x1xf32, #tpu.memory_space<vmem>>, vector<1x1xf32>
    tpu.vector_store %arg7[%c0_603, %c0_604], %1532 {strides = array<i32>} : memref<1x1xf32, #tpu.memory_space<vmem>>, vector<1x1xf32>,
    %1534 = vector.broadcast %40 : vector<8x1xf32> to vector<8x16xf32>
    %1535 = arith.mulf %1534, %1521 : vector<8x16xf32>
    %1536 = vector.shape_cast %1535 : vector<8x16xf32> to vector<1x8x16xf32>
    %cst_605 = arith.constant dense<0.000000e+00> : vector<1xf32>
    %1537 = vector.multi_reduction <add>, %1536, %cst_605 [1, 2] : vector<1x8x16xf32> to vector<1xf32>
    %1538 = vector.shape_cast %1537 : vector<1xf32> to vector<1x1x1xf32>
    %1539 = vector.extract %1538[0, 0, 0] : f32 from vector<1x1x1xf32>
    %1540 = vector.broadcast %1539 : f32 to vector<1x1xf32>
    %c0_606 = arith.constant 0 : index
    %c0_607 = arith.constant 0 : index
    %1541 = vector.load %arg8[%c0_606, %c0_607] : memref<1x1xf32, #tpu.memory_space<vmem>>, vector<1x1xf32>
    tpu.vector_store %arg8[%c0_606, %c0_607], %1540 {strides = array<i32>} : memref<1x1xf32, #tpu.memory_space<vmem>>, vector<1x1xf32>,
    return
  }
  func.func @transform_0(%arg0: i32) -> (i32, i32) {
    %c0_i32 = arith.constant 0 : i32
    %c0_i32_0 = arith.constant 0 : i32
    %c0_i32_1 = arith.constant 0 : i32
    return %c0_i32, %c0_i32_0 : i32, i32
  }
  func.func @transform_1(%arg0: i32) -> (i32, i32) {
    %c0_i32 = arith.constant 0 : i32
    %c0_i32_0 = arith.constant 0 : i32
    %c0_i32_1 = arith.constant 0 : i32
    return %c0_i32, %c0_i32_0 : i32, i32
  }
  func.func @transform_2(%arg0: i32) -> (i32, i32) {
    %c0_i32 = arith.constant 0 : i32
    %c0_i32_0 = arith.constant 0 : i32
    %c0_i32_1 = arith.constant 0 : i32
    return %c0_i32, %c0_i32_0 : i32, i32
  }
  func.func @transform_3(%arg0: i32) -> (i32, i32) {
    %c0_i32 = arith.constant 0 : i32
    %c0_i32_0 = arith.constant 0 : i32
    %c0_i32_1 = arith.constant 0 : i32
    return %c0_i32, %c0_i32_0 : i32, i32
  }
  func.func @transform_4(%arg0: i32) -> (i32, i32) {
    %c0_i32 = arith.constant 0 : i32
    %c0_i32_0 = arith.constant 0 : i32
    %c0_i32_1 = arith.constant 0 : i32
    return %c0_i32, %c0_i32_0 : i32, i32
  }
  func.func @transform_5(%arg0: i32) -> (i32, i32) {
    %c0_i32 = arith.constant 0 : i32
    %c0_i32_0 = arith.constant 0 : i32
    %c0_i32_1 = arith.constant 0 : i32
    return %c0_i32, %c0_i32_0 : i32, i32
  }
  func.func @transform_6(%arg0: i32) -> (i32, i32) {
    %c0_i32 = arith.constant 0 : i32
    %c0_i32_0 = arith.constant 0 : i32
    %c0_i32_1 = arith.constant 0 : i32
    return %c0_i32, %c0_i32_0 : i32, i32
  }
  func.func @transform_7(%arg0: i32) -> (i32, i32) {
    %c0_i32 = arith.constant 0 : i32
    %c0_i32_0 = arith.constant 0 : i32
    %c0_i32_1 = arith.constant 0 : i32
    return %c0_i32, %c0_i32_0 : i32, i32
  }
}

</mosaic_0001>

<bundles_post_ra>
// kernel: tpu_custom_call.1
= control target key start
LH: loop header
LB: loop body
LE: loop exit
PB: predicated region body
PF: predicated region fallthrough
CT: control target
= control target key end

     0   :  { %13 = vsyncpa [#allocation3], 0  ;;  %s6764_s0 = inlined_call_operand.vmem [shape: f32[64,16], index: 0, kind: input, shape index: {}]   ;;  %s6765_s1 = inlined_call_operand.vmem [shape: f32[64,8], index: 1, kind: input, shape index: {}]   ;;  %s6766_s2 = inlined_call_operand.hbm [shape: f32[384,128], index: 2, kind: input, shape index: {}]   ;;  %s6767_s3 = inlined_call_operand.vmem [shape: f32[32,256], index: 3, kind: input, shape index: {}]   ;;  %s6768_s4 = inlined_call_operand.vmem [shape: f32[16,128], index: 4, kind: input, shape index: {}]   ;;  %s6769_s5 = inlined_call_operand.hbm [shape: f32[64,128], index: 5, kind: output, shape index: {0}]   ;;  %s6770_s6 = inlined_call_operand.hbm [shape: f32[1,1], index: 6, kind: output, shape index: {1}]   ;;  %s6771_s7 = inlined_call_operand.hbm [shape: f32[1,1], index: 7, kind: output, shape index: {2}]  }
   0x1   :  { %14 = vsyncpa [#allocation4], 0 }
   0x2   :  { %15 = vsyncpa [#allocation7], 0  ;;  %s24_s26 = sshll.u32 %s6766_s2, 4  ;;  %s4786_s27 = smov [#allocation2]   ;;  %s25_s26 = int_to_ptr.hbm [resolvable:$true] %s24_s26 }
   0x3   :  { %s26_s28 = sshll.u32 %s4786_s27, 4  ;;  %s4787_s29 = smov 128   ;;  %s27_s28 = int_to_ptr.vmem [resolvable:$true] %s26_s28 }
   0x4   :  { %s4788_s30 = smov 8  }
   0x5   :  { %32 = dma.hbm_to_vmem [thread:$0]  %s25_s26, 6144, %s27_s28, [#allocation3], %s4787_s29, %s4787_s29, %s4788_s30  }
   0x6   :  { %4780 = dma.done.wait [#allocation3], 6144  }
   0x7   :  { %4781 = vsyncadd [#allocation3], 4294961152  ;;  %v79_v0 = vld [vmem:[#allocation2 + $0x8] sm:$0xff]  ;;  %v78_v1 = vld [vmem:[#allocation2] sm:$0xff]  ;;  %vm82_vm0 = vcmask 130048   ;;  %vm162_vm1 = vcmask 261120  }
   0x8   :  { %121 = vmatpush.msra.mxu0 %v79_v0  ;;  %v70_v2 = vld [vmem:[%s6764_s0] sm:$0xff]  ;;  %v159_v3 = vld [vmem:[#allocation2 + $0x28] sm:$0xff]  ;;  %v157_v5 = vld [vmem:[#allocation2 + $0x18] sm:$0xff]  ;;  %v6772_v19 = vmov 0.0   ;;  %s4790_s23 = smov 96   ;;  %s4791_s25 = smov 32  }
   0x9   :  { %199 = vmatpush.msra.mxu1 %v159_v3  ;;  %v158_v4 = vld [vmem:[#allocation2 + $0x20] sm:$0xff]  ;;  %v156_v6 = vld [vmem:[#allocation2 + $0x10] sm:$0xff]  ;;  %v239_v7 = vld [vmem:[#allocation2 + $0x48] sm:$0xff]  ;;  %s4792_s10 = smov 120   ;;  %s4793_s11 = smov 64   ;;  %vm483_vm4 = vcmask 64512  }
   0xa   :  { %122 = vmatpush.msra.mxu0 %v78_v1  ;;  %v4851_v8 = vld [vmem:[%s6767_s3 + $0x30] sm:$0xff]  ;;  %276 = vmatpush.msra.mxu2 %v239_v7  ;;  %v4857_v9 = vld [vmem:[%s6768_s4] ss:$0 sm:$0xff]  ;;  %v237_v15 = vld [vmem:[#allocation2 + $0x38] sm:$0xff]  ;;  %s4191_s27 = sshll.u32 %s6770_s6, 4  ;;  %s4796_s28 = smov [#allocation5]   ;;  %s4192_s27 = int_to_ptr.hbm [resolvable:$true] %s4191_s27 }
   0xb   :  { %4222 = vmatmul.msk.f32.vlgmr.msra.gmra.mxu0 %vm82_vm0, %v70_v2  ;;  %200 = vmatpush.msra.mxu1 %v158_v4  ;;  %v238_v13 = vld [vmem:[#allocation2 + $0x40] sm:$0xff]  ;;  %v4870_v16 = vld [vmem:[%s6767_s3 + $0x10] sm:$0xff]  ;;  %v71_v21 = vld [vmem:[%s6764_s0 + $0x8] sm:$0xff]  ;;  %s4175_s8 = sshll.u32 %s4796_s28, 4  ;;  %s4177_s12 = sshll.u32 %s6769_s5, 4  ;;  %s4176_s8 = int_to_ptr.vmem [resolvable:$true] %s4175_s8  ;;  %s4178_s12 = int_to_ptr.hbm [resolvable:$true] %s4177_s12 }
   0xc   :  { %330 = vmatpush.msra.mxu3 %v4851_v8  ;;  %v4864_v14 = vld [vmem:[%s6767_s3 + $0x20] sm:$0xff]  ;;  %277 = vmatpush.msra.mxu2 %v238_v13  ;;  %v236_v17 = vld [vmem:[#allocation2 + $0x30] sm:$0xff]  ;;  %v73_v23 = vld [vmem:[%s6764_s0 + $0x18] sm:$0xff]  ;;  %s4797_s6 = smov [#allocation8]   ;;  %s4202_s15 = sshll.u32 %s6771_s7, 4  ;;  %s4203_s15 = int_to_ptr.hbm [resolvable:$true] %s4202_s15 }
   0xd   :  { %201 = vmatpush.msra.mxu1 %v157_v5  ;;  %v4876_v18 = vld [vmem:[%s6767_s3] sm:$0xff]  ;;  %v72_v22 = vld [vmem:[%s6764_s0 + $0x10] sm:$0xff]  ;;  %v75_v29 = vld [vmem:[%s6764_s0 + $0x28] sm:$0xff]  ;;  %s4200_s13 = sshll.u32 %s4797_s6, 4  ;;  %s4201_s13 = int_to_ptr.vmem [resolvable:$true] %s4200_s13 }
   0xe   :  { %331 = vmatpush.msra.mxu3 %v4864_v14  ;;  %278 = vmatpush.msra.mxu2 %v237_v15  ;;  %v4363_v20 = vld [vmem:[%s6768_s4 + $0x2] ss:$0 sm:$0xff]  ;;  %v4902_v25 = vld [vmem:[%s6768_s4 + $0x1] ss:$0 sm:$0xff]  ;;  %v4915_v32 = vld [vmem:[%s6767_s3 + $0x38] sm:$0xff] }
   0xf   :  { %202 = vmatpush.msra.mxu1 %v156_v6  ;;  %360 = vrot.lane.b32.xlu0 %v4363_v20, %s4790_s23  ;;  %v74_v24 = vld [vmem:[%s6764_s0 + $0x20] sm:$0xff]  ;;  %v4920_v33 = vld [vmem:[%s6767_s3 + $0x28] sm:$0xff]  ;;  %v4926_v35 = vld [vmem:[%s6767_s3 + $0x18] sm:$0xff] }
  0x10   :  { %332 = vmatpush.msra.mxu3 %v4870_v16  ;;  %279 = vmatpush.msra.mxu2 %v236_v17  ;;  %v4933_v36 = vld [vmem:[%s6767_s3 + $0x8] sm:$0xff]  ;;  %v76_v37 = vld [vmem:[%s6764_s0 + $0x30] sm:$0xff]  ;;  %v4945_v41 = vld [vmem:[#allocation2 + $0x60] sm:$0xff] }
  0x11   :  { %v4939_v38 = vld [vmem:[#allocation2 + $0x68] sm:$0xff]  ;;  %v4948_v43 = vld [vmem:[#allocation2 + $0x58] sm:$0xff]  ;;  %v4952_v44 = vld [vmem:[#allocation2 + $0x50] sm:$0xff] }
  0x12   :  { %333 = vmatpush.msra.mxu3 %v4876_v18  ;;  %v77_v45 = vld [vmem:[%s6764_s0 + $0x38] sm:$0xff]  ;;  %v4973_v57 = vld [vmem:[#allocation2 + $0x88] sm:$0xff]  ;;  %v4976_v59 = vld [vmem:[#allocation2 + $0x80] sm:$0xff] }
  0x13   :  { %334 = vmatmul.f32.vlgmr.msra.gmra.mxu3 %v6772_v19  ;;  %4223 = vmatmul.msk.f32.gmra.mxu0 %vm82_vm0, %v71_v21  ;;  %v4993_v21 = vld [vmem:[#allocation2 + $0x78] sm:$0xff] }
  0x14   :  { %350 = vmatpush.msrb.mxu3 %v4915_v32 }
  0x16   :  { %351 = vmatpush.msrb.mxu3 %v4920_v33 }
  0x18   :  { %352 = vmatpush.msrb.mxu3 %v4926_v35 }
  0x1a   :  { %353 = vmatpush.msrb.mxu3 %v4933_v36 }
  0x1b   :  { %4224 = vmatmul.msk.f32.gmra.mxu0 %vm82_vm0, %v72_v22  ;;  %354 = vmatmul.f32.vlgmr.msrb.gmra.mxu3 %v6772_v19 }
  0x1c   :  { %386 = vmatpush.msra.mxu3 %v4939_v38 }
  0x1e   :  { %387 = vmatpush.msra.mxu3 %v4945_v41 }
  0x20   :  { %388 = vmatpush.msra.mxu3 %v4948_v43 }
  0x22   :  { %389 = vmatpush.msra.mxu3 %v4952_v44 }
  0x23   :  { %4225 = vmatmul.msk.f32.gmra.mxu0 %vm82_vm0, %v73_v23  ;;  %v4997_v23 = vld [vmem:[#allocation2 + $0x70] sm:$0xff] }
  0x24   :  { %414 = vmatpush.msrb.mxu3 %v4973_v57 }
  0x26   :  { %415 = vmatpush.msrb.mxu3 %v4976_v59 }
  0x28   :  { %416 = vmatpush.msrb.mxu3 %v4993_v21 }
  0x2a   :  { %417 = vmatpush.msrb.mxu3 %v4997_v23 }
  0x2b   :  { %4226 = vmatmul.msk.f32.gmra.mxu0 %vm82_vm0, %v74_v24 }
  0x33   :  { %4227 = vmatmul.msk.f32.gmra.mxu0 %vm82_vm0, %v75_v29  ;;  %v5009_v29 = vld [vmem:[#allocation2 + $0x90] sm:$0xff] }
  0x34   :  { %6811 = vst [vmem:[#allocation14_spill] sm:$0xff] %v5009_v29 }
  0x3b   :  { %4228 = vmatmul.msk.f32.gmra.mxu0 %vm82_vm0, %v76_v37  ;;  %v5014_v37 = vld [vmem:[#allocation2 + $0x150] sm:$0xff] }
  0x3c   :  { %661 = vmatpush.msrb.mxu2 %v5014_v37 }
  0x43   :  { %4229 = vmatmul.msk.f32.gmra.mxu0 %vm82_vm0, %v77_v45 }
  0x81   :  { %v4966_v51 = vpop.permute.xlu0 %360 }
  0x88   :  { %v124_v10 = vpop.f32.mrf.mxu0 }
  0x89   :  { %v125_v11 = vadd.f32 %v4857_v9, %v124_v10 }
  0x8b   :  { %v148_v12 = vmax.f32 %v125_v11, 0.0 }
  0x8d   :  { %4230 = vmatmul.msk.f32.vlgmr.msra.gmra.mxu1 %vm162_vm1, %v148_v12 }
  0x90   :  { %v127_v30 = vpop.f32.mrf.mxu0 }
  0x91   :  { %v128_v31 = vadd.f32 %v4857_v9, %v127_v30 }
  0x93   :  { %v149_v34 = vmax.f32 %v128_v31, 0.0 }
  0x95   :  { %4231 = vmatmul.msk.f32.gmra.mxu1 %vm162_vm1, %v149_v34 }
  0x96   :  { %v4962_v49 = vpop.f32.mrf.mxu3 }
  0x98   :  { %v130_v39 = vpop.f32.mrf.mxu0 }
  0x99   :  { %v131_v40 = vadd.f32 %v4857_v9, %v130_v39  ;;  %v5016_v39 = vld [vmem:[#allocation2 + $0x148] sm:$0xff] }
  0x9a   :  { %662 = vmatpush.msrb.mxu2 %v5016_v39 }
  0x9b   :  { %v150_v42 = vmax.f32 %v131_v40, 0.0  ;;  %v5020_v40 = vld [vmem:[#allocation2 + $0x140] sm:$0xff] }
  0x9c   :  { %663 = vmatpush.msrb.mxu2 %v5020_v40 }
  0x9d   :  { %4232 = vmatmul.msk.f32.gmra.mxu1 %vm162_vm1, %v150_v42  ;;  %v5023_v42 = vld [vmem:[#allocation2 + $0x138] sm:$0xff] }
  0x9e   :  { %664 = vmatpush.msrb.mxu2 %v5023_v42 }
  0xa0   :  { %v133_v46 = vpop.f32.mrf.mxu0 }
  0xa1   :  { %v134_v47 = vadd.f32 %v4857_v9, %v133_v46 }
  0xa3   :  { %v151_v48 = vmax.f32 %v134_v47, 0.0 }
  0xa5   :  { %4233 = vmatmul.msk.f32.gmra.mxu1 %vm162_vm1, %v151_v48  ;;  %v5029_v48 = vpop.f32.mrf.mxu3 }
  0xa8   :  { %v136_v55 = vpop.f32.mrf.mxu0 }
  0xa9   :  { %v137_v56 = vadd.f32 %v4857_v9, %v136_v55 }
  0xab   :  { %v152_v58 = vmax.f32 %v137_v56, 0.0 }
  0xad   :  { %4234 = vmatmul.msk.f32.gmra.mxu1 %vm162_vm1, %v152_v58 }
  0xb0   :  { %v139_v60 = vpop.f32.mrf.mxu0 }
  0xb1   :  { %v140_v61 = vadd.f32 %v4857_v9, %v139_v60  ;;  %v5046_v60 = vld [vmem:[%s6768_s4 + $0x5] ss:$0 sm:$0xff] }
  0xb3   :  { %v153_v62 = vmax.f32 %v140_v61, 0.0 }
  0xb5   :  { %4235 = vmatmul.msk.f32.gmra.mxu1 %vm162_vm1, %v153_v62 }
  0xb8   :  { %v142_v2 = vpop.f32.mrf.mxu0 }
  0xb9   :  { %v143_v3 = vadd.f32 %v4857_v9, %v142_v2 }
  0xbb   :  { %v154_v4 = vmax.f32 %v143_v3, 0.0  ;;  %v5064_v3 = vld [vmem:[%s6768_s4 + $0x4] ss:$0 sm:$0xff] }
  0xbd   :  { %4236 = vmatmul.msk.f32.gmra.mxu1 %vm162_vm1, %v154_v4 }
  0xc0   :  { %v145_v10 = vpop.f32.mrf.mxu0 }
  0xc1   :  { %v146_v11 = vadd.f32 %v4857_v9, %v145_v10 }
  0xc3   :  { %v155_v12 = vmax.f32 %v146_v11, 0.0 }
  0xc5   :  { %4237 = vmatmul.msk.f32.gmra.mxu1 %vm162_vm1, %v155_v12  ;;  %v5069_v12 = vld [vmem:[#allocation2 + $0xb0] sm:$0xff] }
 0x10a   :  { %v204_v26 = vpop.f32.mrf.mxu1 }
 0x10b   :  { %v205_v27 = vadd.f32 %v4902_v25, %v204_v26  ;;  %v5000_v26 = vld [vmem:[#allocation2 + $0xa8] sm:$0xff] }
 0x10d   :  { %v228_v28 = vmax.f32 %v205_v27, 0.0  ;;  %v5002_v27 = vld [vmem:[#allocation2 + $0xa0] sm:$0xff] }
 0x10e   :  { %6809 = vst [vmem:[#allocation12_spill] sm:$0xff] %v5002_v27 }
 0x10f   :  { %4238 = vmatmul.msk.f32.vlgmr.msra.gmra.mxu2 %vm162_vm1, %v228_v28  ;;  %v5006_v28 = vld [vmem:[#allocation2 + $0x98] sm:$0xff] }
 0x110   :  { %6810 = vst [vmem:[#allocation13_spill] sm:$0xff] %v5006_v28  ;;  %882 = vmatpush.msra.mxu2 %v4939_v38 }
 0x112   :  { %v207_v63 = vpop.f32.mrf.mxu1  ;;  %883 = vmatpush.msra.mxu2 %v4945_v41 }
 0x113   :  { %v208_v0 = vadd.f32 %v4902_v25, %v207_v63 }
 0x114   :  { %884 = vmatpush.msra.mxu2 %v4948_v43 }
 0x115   :  { %v229_v1 = vmax.f32 %v208_v0, 0.0 }
 0x116   :  { %885 = vmatpush.msra.mxu2 %v4952_v44 }
 0x117   :  { %4239 = vmatmul.msk.f32.gmra.mxu2 %vm162_vm1, %v229_v1 }
 0x11a   :  { %v210_v5 = vpop.f32.mrf.mxu1 }
 0x11b   :  { %v211_v6 = vadd.f32 %v4902_v25, %v210_v5 }
 0x11d   :  { %v230_v7 = vmax.f32 %v211_v6, 0.0 }
 0x11f   :  { %4240 = vmatmul.msk.f32.gmra.mxu2 %vm162_vm1, %v230_v7 }
 0x122   :  { %v213_v15 = vpop.f32.mrf.mxu1 }
 0x123   :  { %v214_v17 = vadd.f32 %v4902_v25, %v213_v15 }
 0x125   :  { %v231_v20 = vmax.f32 %v214_v17, 0.0 }
 0x127   :  { %4241 = vmatmul.msk.f32.gmra.mxu2 %vm162_vm1, %v231_v20  ;;  %v6773_v20 = vlaneseq }
 0x12a   :  { %v216_v22 = vpop.f32.mrf.mxu1 }
 0x12b   :  { %v217_v9 = vadd.f32 %v4902_v25, %v216_v22 }
 0x12d   :  { %v232_v24 = vmax.f32 %v217_v9, 0.0  ;;  %v5075_v9 = vand.u32 127, %v6773_v20 }
 0x12f   :  { %4242 = vmatmul.msk.f32.gmra.mxu2 %vm162_vm1, %v232_v24  ;;  %vm63_vm2 = vcmp.lt.s32.totalorder %v5075_v9, 8 }
 0x132   :  { %v219_v30 = vpop.f32.mrf.mxu1 }
 0x133   :  { %v220_v31 = vadd.f32 %v4902_v25, %v219_v30 }
 0x135   :  { %v233_v34 = vmax.f32 %v220_v31, 0.0 }
 0x137   :  { %4243 = vmatmul.msk.f32.gmra.mxu2 %vm162_vm1, %v233_v34 }
 0x13a   :  { %v222_v45 = vpop.f32.mrf.mxu1 }
 0x13b   :  { %v223_v46 = vadd.f32 %v4902_v25, %v222_v45 }
 0x13d   :  { %v234_v47 = vmax.f32 %v223_v46, 0.0 }
 0x13f   :  { %4244 = vmatmul.msk.f32.gmra.mxu2 %vm162_vm1, %v234_v47 }
 0x192   :  { %v4964_v50 = vpop.f32.mrf.mxu2 }
 0x193   :  { %v358_v52 = vadd.f32 %v4962_v49, %v4964_v50 }
 0x195   :  { %v363_v53 = vadd.f32 %v4966_v51, %v358_v52  ;;  %v225_v52 = vpop.f32.mrf.mxu1 }
 0x197   :  { %v364_v54 = vmax.f32 %v363_v53, 0.0  ;;  %v226_v53 = vadd.f32 %v4902_v25, %v225_v52  ;;  %v435_v25 = vadd.f32 %v5046_v60, %v5029_v48 }
 0x199   :  { %370 = vrot.lane.b32.xlu0 %v364_v54, %s4791_s25  ;;  %v5039_v54 = vld [vmem:[%s6768_s4 + $0x3] ss:$0 sm:$0xff]  ;;  %v235_v55 = vmax.f32 %v226_v53, 0.0  ;;  %v436_v62 = vmax.f32 %v435_v25, 0.0  ;;  %v5089_v53 = vld [vmem:[#allocation2 + $0xd0] sm:$0xff] }
 0x19a   :  { %v5053_v63 = vpop.f32.mrf.mxu2 }
 0x19b   :  { %4245 = vmatmul.msk.f32.gmra.mxu2 %vm162_vm1, %v235_v55  ;;  %v5091_v55 = vld [vmem:[#allocation2 + $0xc8] sm:$0xff] }
 0x1a2   :  { %v5055_v0 = vpop.f32.mrf.mxu2 }
 0x1a3   :  { %665 = vmatmul.f32.vlgmr.msrb.gmra.mxu2 %v6772_v19  ;;  %6812 = vst [vmem:[#allocation15_spill] sm:$0xff] %v5055_v0 }
 0x1a4   :  { %1022 = vmatpush.msrb.mxu2 %v5089_v53 }
 0x1a6   :  { %1023 = vmatpush.msrb.mxu2 %v5091_v55 }
 0x1aa   :  { %v5057_v1 = vpop.f32.mrf.mxu2 }
 0x1ab   :  { %6813 = vst [vmem:[#allocation16_spill] sm:$0xff] %v5057_v1 }
 0x1b2   :  { %v5059_v2 = vpop.f32.mrf.mxu2 }
 0x1b3   :  { %6814 = vst [vmem:[#allocation17_spill] sm:$0xff] %v5059_v2 }
 0x1ba   :  { %v5067_v6 = vpop.f32.mrf.mxu2 }
 0x1bb   :  { %6815 = vst [vmem:[#allocation18_spill] sm:$0xff] %v5067_v6 }
 0x20b   :  { %v371_v13 = vpop.permute.xlu0 %370 }
 0x20c   :  { %4246 = vmatmul.msk.f32.vlgmr.msra.gmra.mxu3 %vm162_vm1, %v371_v13  ;;  %v5071_v13 = vpop.f32.mrf.mxu2 }
 0x20d   :  { %456 = vmatpush.msra.mxu3 %v5000_v26  ;;  %6816 = vst [vmem:[#allocation19_spill] sm:$0xff] %v5071_v13 }
 0x20f   :  { %457 = vmatpush.msra.mxu3 %v5002_v27 }
 0x211   :  { %458 = vmatpush.msra.mxu3 %v5006_v28 }
 0x213   :  { %459 = vmatpush.msra.mxu3 %v5009_v29 }
 0x21e   :  { %v5077_v31 = vpop.f32.mrf.mxu2 }
 0x21f   :  { %6817 = vst [vmem:[#allocation20_spill] sm:$0xff] %v5077_v31 }
 0x226   :  { %v666_v52 = vpop.f32.mrf.mxu2 }
 0x28f   :  { %v391_v56 = vpop.f32.mrf.mxu3 }
 0x290   :  { %v392_v58 = vadd.f32 %v5039_v54, %v391_v56  ;;  %v314_v56 = vld [vmem:[%s6765_s1] sm:$0xff] }
 0x292   :  { %v394_v61 = vmax.f32 %v392_v58, 0.0 }
 0x294   :  { %4247 = vmatmul.msk.f32.vlgmr.msrb.gmra.mxu3 %vm162_vm1, %v394_v61 }
 0x295   :  { %502 = vmatpush.msrb.mxu3 %v5069_v12 }
 0x29c   :  { %4248 = vmatmul.msk.f32.vlgmr.msra.gmra.mxu3 %vm162_vm1, %v436_v62  ;;  %v5102_v62 = vld [vmem:[#allocation2 + $0xc0] sm:$0xff] }
 0x29d   :  { %527 = vmatpush.msra.mxu3 %v5089_v53  ;;  %1024 = vmatpush.msrb.mxu2 %v5102_v62 }
 0x29f   :  { %528 = vmatpush.msra.mxu3 %v5091_v55 }
 0x2a1   :  { %529 = vmatpush.msra.mxu3 %v5102_v62 }
 0x317   :  { %v419_v4 = vpop.f32.mrf.mxu3 }
 0x318   :  { %v420_v5 = vadd.f32 %v5064_v3, %v419_v4  ;;  %v5106_v4 = vld [vmem:[#allocation2 + $0xb8] sm:$0xff] }
 0x319   :  { %530 = vmatpush.msra.mxu3 %v5106_v4  ;;  %1025 = vmatpush.msrb.mxu2 %v5106_v4 }
 0x31a   :  { %v427_v7 = vmin.f32 %v420_v5, 20.0  ;;  %v422_v11 = vmul.f32 0.5, %v420_v5  ;;  %vm426_vm3 = vcmp.gt.f32.partialorder %v420_v5, 20.0 }
 0x31c   :  { %v428_v10 = vmul.f32 1.442695, %v427_v7  ;;  %v5112_v7 = vld [vmem:[#allocation2 + $0xe8] sm:$0xff] }
 0x31e   :  { %4373 = vpow2.f32 %v428_v10 }
 0x31f   :  { %4375 = vtanh.f32 %v422_v11  ;;  %v5116_v10 = vpop.f32.mrf.mxu3  ;;  %v5121_v11 = vld [vmem:[%s6768_s4 + $0x7] ss:$0 sm:$0xff] }
 0x320   :  { %6819 = vst [vmem:[#allocation22_spill] sm:$0xff] %v5116_v10 }
 0x324   :  { %v4374_v15 = vpop.eup %4373 }
 0x325   :  { %v430_v17 = vadd.f32 1.0, %v4374_v15  ;;  %v4376_v22 = vpop.eup %4375 }
 0x326   :  { %v424_v24 = vadd.f32 1.0, %v4376_v22 }
 0x327   :  { %4377 = vlog2.f32 %v430_v17 }
 0x328   :  { %v425_v45 = vmul.f32 0.5, %v424_v24  ;;  %v5125_v24 = vld [vmem:[#allocation2 + $0xe0] sm:$0xff] }
 0x32d   :  { %v4378_v30 = vpop.eup %4377 }
 0x32e   :  { %v432_v34 = vmul.f32 0.6931472, %v4378_v30  ;;  %v5128_v30 = vld [vmem:[#allocation2 + $0xd8] sm:$0xff] }
 0x330   :  { %v433_v46 = vsel %vm426_vm3, %v420_v5, %v432_v34  ;;  %v5110_v5 = vld [vmem:[#allocation2 + $0xf0] sm:$0xff]  ;;  %v5134_v34 = vld [vmem:[%s6768_s4 + $0x8] ss:$0 sm:$0xff] }
 0x331   :  { %v5082_v47 = vsel %vm63_vm2, %v425_v45, %v433_v46 }
 0x332   :  { %6818 = vst [vmem:[#allocation21_spill] sm:$0xff] %v5082_v47  ;;  %477 = vrot.lane.b32.xlu1 %v5082_v47, %s4792_s10 }
 0x33a   :  { %675 = vrot.lane.b32.xlu1 %v666_v52, %s4793_s11 }
 0x342   :  { %728 = vrot.lane.b32.xlu1 %v4962_v49, %s4793_s11 }
 0x3a4   :  { %v478_v58 = vpop.permute.xlu1 %477 }
 0x3a5   :  { %v480_v61 = vmul.f32 %v478_v58, %v314_v56 }
 0x3a7   :  { %v481_v25 = vadd.f32 %v480_v61, %v5082_v47 }
 0x3a9   :  { %4249 = vmatmul.msk.f32.vlgmr.msrb.gmra.mxu3 %vm483_vm4, %v481_v25 }
 0x3aa   :  { %555 = vmatpush.msrb.mxu3 %v5110_v5 }
 0x3ac   :  { %556 = vmatpush.msrb.mxu3 %v5112_v7  ;;  %v676_v20 = vpop.permute.xlu1 %675 }
 0x3ae   :  { %557 = vmatpush.msrb.mxu3 %v5125_v24 }
 0x3b0   :  { %558 = vmatpush.msrb.mxu3 %v5128_v30 }
 0x42c   :  { %v504_v15 = vpop.f32.mrf.mxu3 }
 0x42d   :  { %v505_v17 = vadd.f32 %v5121_v11, %v504_v15 }
 0x42f   :  { %v507_v22 = vmax.f32 %v505_v17, 0.0 }
 0x431   :  { %4250 = vmatmul.msk.f32.vlgmr.msra.gmra.mxu3 %vm162_vm1, %v507_v22 }
 0x4b4   :  { %v532_v45 = vpop.f32.mrf.mxu3 }
 0x4b5   :  { %v533_v46 = vadd.f32 %v5134_v34, %v532_v45 }
 0x4b7   :  { %v535_v56 = vmax.f32 %v533_v46, 0.0  ;;  %v5146_v46 = vld [vmem:[#allocation2 + $0x168] sm:$0xff] }
 0x4b8   :  { %6821 = vst [vmem:[#allocation24_spill] sm:$0xff] %v5146_v46 }
 0x4b9   :  { %4251 = vmatmul.msk.f32.vlgmr.msrb.gmra.mxu3 %vm162_vm1, %v535_v56 }
 0x53c   :  { %v560_v58 = vpop.f32.mrf.mxu3 }
 0x53d   :  { %v644_v61 = vadd.f32 %v560_v58, %v4964_v50  ;;  %v4370_v50 = vld [vmem:[%s6768_s4 + $0x9] ss:$0 sm:$0xff] }
 0x53e   :  { %569 = vrot.lane.b32.xlu1 %v4370_v50, %s4790_s23 }
 0x53f   :  { %v669_v25 = vadd.f32 %v666_v52, %v644_v61  ;;  %v5144_v52 = vld [vmem:[#allocation2 + $0x170] sm:$0xff] }
 0x540   :  { %6820 = vst [vmem:[#allocation23_spill] sm:$0xff] %v5144_v52  ;;  %714 = vmatpush.msra.mxu3 %v5144_v52 }
 0x541   :  { %v670_v15 = vmul.f32 0.5, %v669_v25 }
 0x542   :  { %715 = vmatpush.msra.mxu3 %v5146_v46 }
 0x543   :  { %4379 = vtanh.f32 %v670_v15  ;;  %v5167_v15 = vld [vmem:[#allocation2 + $0x110] sm:$0xff] }
 0x544   :  { %595 = vmatpush.msrb.mxu0 %v5167_v15 }
 0x549   :  { %v4380_v17 = vpop.eup %4379 }
 0x54a   :  { %v672_v22 = vadd.f32 1.0, %v4380_v17  ;;  %v5169_v17 = vld [vmem:[#allocation2 + $0x108] sm:$0xff] }
 0x54b   :  { %596 = vmatpush.msrb.mxu0 %v5169_v17 }
 0x54c   :  { %v673_v19 = vmul.f32 0.5, %v672_v22  ;;  %v5172_v22 = vld [vmem:[#allocation2 + $0x100] sm:$0xff] }
 0x54d   :  { %597 = vmatpush.msrb.mxu0 %v5172_v22 }
 0x54e   :  { %v678_v47 = vmul.f32 %v676_v20, %v673_v19  ;;  %v5150_v20 = vld [vmem:[#allocation2 + $0x160] sm:$0xff]  ;;  %v691_v56 = vmul.f32 0.0, %v673_v19 }
 0x54f   :  { %6822 = vst [vmem:[#allocation25_spill] sm:$0xff] %v5150_v20  ;;  %716 = vmatpush.msra.mxu3 %v5150_v20 }
 0x550   :  { %680 = vrot.lane.b32.xlu2 %v678_v47, %s4793_s11  ;;  %v685_v47 = vsub.f32 1.0, %v673_v19  ;;  %v5175_v19 = vld [vmem:[#allocation2 + $0xf8] sm:$0xff] }
 0x551   :  { %598 = vmatpush.msrb.mxu0 %v5175_v19 }
 0x553   :  { %830 = vmatpush.msra.mxu0 %v4851_v8 }
 0x555   :  { %831 = vmatpush.msra.mxu0 %v4864_v14 }
 0x557   :  { %832 = vmatpush.msra.mxu0 %v4870_v16 }
 0x559   :  { %833 = vmatpush.msra.mxu0 %v4876_v18 }
 0x5aa   :  { %v681_v10 = vpop.permute.xlu2 %680 }
 0x5ab   :  { %v683_v31 = vadd.f32 %v681_v10, %v644_v61 }
 0x5ad   :  { %4381 = vtanh.f32 %v683_v31  ;;  %v5153_v31 = vld [vmem:[#allocation2 + $0x158] sm:$0xff] }
 0x5ae   :  { %6823 = vst [vmem:[#allocation26_spill] sm:$0xff] %v5153_v31  ;;  %717 = vmatpush.msra.mxu3 %v5153_v31 }
 0x5b0   :  { %910 = vmatpush.msrb.mxu3 %v4973_v57 }
 0x5b2   :  { %911 = vmatpush.msrb.mxu3 %v4976_v59 }
 0x5b3   :  { %v4382_v45 = vpop.eup %4381 }
 0x5b4   :  { %687 = vrot.lane.b32.xlu2 %v4382_v45, %s4790_s23  ;;  %912 = vmatpush.msrb.mxu3 %v4993_v21 }
 0x5b6   :  { %913 = vmatpush.msrb.mxu3 %v4997_v23 }
 0x60e   :  { %v688_v10 = vpop.permute.xlu2 %687 }
 0x60f   :  { %v690_v61 = vmul.f32 %v688_v10, %v685_v47 }
 0x611   :  { %v5161_v25 = vadd.f32 %v691_v56, %v690_v61 }
 0x613   :  { %698 = vrot.lane.b32.xlu0 %v5161_v25, %s4790_s23 }
 0x61b   :  { %564 = vrot.lane.b32.xlu0 %v5029_v48, %s4793_s11  ;;  %v729_v48 = vpop.permute.xlu1 %728 }
 0x623   :  { %v5190_v47 = vpop.permute.xlu1 %569 }
 0x685   :  { %v5183_v45 = vpop.permute.xlu0 %698 }
 0x686   :  { %4254 = vmatmul.msk.f32.vlgmr.msra.gmra.mxu3 %vm162_vm1, %v5183_v45 }
 0x687   :  { %1050 = vmatpush.msra.mxu3 %v5110_v5 }
 0x689   :  { %1051 = vmatpush.msra.mxu3 %v5112_v7 }
 0x68b   :  { %1052 = vmatpush.msra.mxu3 %v5125_v24 }
 0x68d   :  { %v565_v50 = vpop.permute.xlu0 %564  ;;  %1053 = vmatpush.msra.mxu3 %v5128_v30 }
 0x68e   :  { %v567_v10 = vadd.f32 %v565_v50, %v560_v58 }
 0x690   :  { %v572_v56 = vadd.f32 %v5190_v47, %v567_v10 }
 0x692   :  { %v573_v61 = vmax.f32 %v572_v56, 0.0 }
 0x694   :  { %579 = vrot.lane.b32.xlu0 %v573_v61, %s4791_s25  ;;  %v5205_v61 = vld [vmem:[#allocation2 + $0x128] sm:$0xff] }
 0x706   :  { %v580_v13 = vpop.permute.xlu0 %579 }
 0x707   :  { %4252 = vmatmul.msk.f32.vlgmr.msrb.gmra.mxu0 %vm162_vm1, %v580_v13  ;;  %v5202_v13 = vld [vmem:[#allocation2 + $0x130] sm:$0xff] }
 0x708   :  { %952 = vmatpush.msrb.mxu0 %v5000_v26  ;;  %623 = vmatpush.msrb.mxu1 %v5202_v13 }
 0x709   :  { %v719_v6 = vpop.f32.mrf.mxu3 }
 0x70a   :  { %v722_v2 = vadd.f32 %v719_v6, %v4962_v49  ;;  %953 = vmatpush.msrb.mxu0 %v5002_v27  ;;  %624 = vmatpush.msrb.mxu1 %v5205_v61  ;;  %v5208_v49 = vld [vmem:[#allocation2 + $0x120] sm:$0xff] }
 0x70c   :  { %v723_v1 = vmul.f32 0.5, %v722_v2  ;;  %954 = vmatpush.msrb.mxu0 %v5006_v28  ;;  %625 = vmatpush.msrb.mxu1 %v5208_v49 }
 0x70e   :  { %4383 = vtanh.f32 %v723_v1  ;;  %955 = vmatpush.msrb.mxu0 %v5009_v29  ;;  %v5211_v1 = vld [vmem:[#allocation2 + $0x118] sm:$0xff] }
 0x70f   :  { %626 = vmatpush.msrb.mxu1 %v5211_v1 }
 0x711   :  { %850 = vmatpush.msra.mxu1 %v4915_v32 }
 0x713   :  { %851 = vmatpush.msra.mxu1 %v4920_v33 }
 0x714   :  { %v4384_v58 = vpop.eup %4383 }
 0x715   :  { %v725_v50 = vadd.f32 1.0, %v4384_v58  ;;  %852 = vmatpush.msra.mxu1 %v4926_v35 }
 0x717   :  { %v726_v10 = vmul.f32 0.5, %v725_v50  ;;  %853 = vmatpush.msra.mxu1 %v4933_v36  ;;  %v5222_v50 = vld [vmem:[%s6768_s4 + $0xa] ss:$0 sm:$0xff] }
 0x719   :  { %v731_v56 = vmul.f32 %v729_v48, %v726_v10  ;;  %v738_v28 = vsub.f32 1.0, %v726_v10 }
 0x71b   :  { %733 = vrot.lane.b32.xlu2 %v731_v56, %s4793_s11 }
 0x775   :  { %v734_v2 = vpop.permute.xlu2 %733 }
 0x776   :  { %v736_v48 = vadd.f32 %v734_v2, %v719_v6  ;;  %v744_v6 = vmul.f32 0.0, %v726_v10 }
 0x778   :  { %4385 = vtanh.f32 %v736_v48 }
 0x77e   :  { %v4386_v58 = vpop.eup %4385 }
 0x77f   :  { %740 = vrot.lane.b32.xlu2 %v4386_v58, %s4790_s23 }
 0x784   :  { %v600_v56 = vpop.f32.mrf.mxu0 }
 0x785   :  { %v601_v0 = vadd.f32 %v5222_v50, %v600_v56 }
 0x787   :  { %v603_v29 = vmax.f32 %v601_v0, 0.0 }
 0x789   :  { %4253 = vmatmul.msk.f32.vlgmr.msrb.gmra.mxu1 %vm162_vm1, %v603_v29 }
 0x78a   :  { %997 = vmatpush.msrb.mxu1 %v5069_v12 }
 0x7d9   :  { %v741_v27 = vpop.permute.xlu2 %740 }
 0x7da   :  { %v743_v2 = vmul.f32 %v741_v27, %v738_v28 }
 0x7dc   :  { %v5227_v48 = vadd.f32 %v744_v6, %v743_v2 }
 0x7de   :  { %814 = vrot.lane.b32.xlu1 %v5227_v48, %s4790_s23 }
 0x806   :  { %v5241_v27 = vpop.f32.mrf.mxu1 }
 0x850   :  { %v815_v58 = vpop.permute.xlu1 %814 }
 0x851   :  { %4256 = vmatmul.msk.f32.vlgmr.msra.gmra.mxu0 %vm162_vm1, %v815_v58  ;;  %4257 = vmatmul.msk.f32.vlgmr.msra.gmra.mxu1 %vm162_vm1, %v815_v58 }
 0x852   :  { %1086 = vmatpush.msra.mxu0 %v5167_v15  ;;  %1114 = vmatpush.msra.mxu1 %v5202_v13 }
 0x854   :  { %1087 = vmatpush.msra.mxu0 %v5169_v17  ;;  %1115 = vmatpush.msra.mxu1 %v5205_v61 }
 0x856   :  { %1088 = vmatpush.msra.mxu0 %v5172_v22  ;;  %1116 = vmatpush.msra.mxu1 %v5208_v49 }
 0x858   :  { %1089 = vmatpush.msra.mxu0 %v5175_v19  ;;  %1117 = vmatpush.msra.mxu1 %v5211_v1 }
 0x8ce   :  { %v5243_v28 = vpop.f32.mrf.mxu0  ;;  %v5245_v29 = vpop.f32.mrf.mxu1 }
 0x8cf   :  { %v858_v0 = vadd.f32 %v5243_v28, %v5053_v63  ;;  %v931_v10 = vadd.f32 %v5046_v60, %v5245_v29 }
 0x8d1   :  { %v932_v56 = vmax.f32 %v931_v10, 0.0  ;;  %v859_v6 = vadd.f32 %v858_v0, %v4966_v51 }
 0x8d3   :  { %4260 = vmatmul.msk.f32.vlgmr.msrb.gmra.mxu0 %vm162_vm1, %v932_v56  ;;  %v860_v2 = vmax.f32 %v859_v6, 0.0 }
 0x8d4   :  { %1320 = vmatpush.msrb.mxu0 %v4851_v8 }
 0x8d5   :  { %866 = vrot.lane.b32.xlu2 %v860_v2, %s4791_s25 }
 0x8d6   :  { %1321 = vmatpush.msrb.mxu0 %v4864_v14 }
 0x8d8   :  { %1322 = vmatpush.msrb.mxu0 %v4870_v16 }
 0x8da   :  { %1323 = vmatpush.msrb.mxu0 %v4876_v18 }
 0x92f   :  { %v867_v58 = vpop.permute.xlu2 %866 }
 0x930   :  { %4258 = vmatmul.msk.f32.vlgmr.msra.gmra.mxu2 %vm162_vm1, %v867_v58 }
 0x931   :  { %1152 = vmatpush.msra.mxu2 %v5014_v37 }
 0x933   :  { %1153 = vmatpush.msra.mxu2 %v5016_v39 }
 0x935   :  { %1154 = vmatpush.msra.mxu2 %v5020_v40 }
 0x937   :  { %1155 = vmatpush.msra.mxu2 %v5023_v42 }
 0x9b3   :  { %v887_v8 = vpop.f32.mrf.mxu2 }
 0x9b4   :  { %v888_v0 = vadd.f32 %v5039_v54, %v887_v8 }
 0x9b6   :  { %v890_v10 = vmax.f32 %v888_v0, 0.0 }
 0x9b8   :  { %4259 = vmatmul.msk.f32.vlgmr.msrb.gmra.mxu3 %vm162_vm1, %v890_v10 }
 0x9b9   :  { %1205 = vmatpush.msrb.mxu3 %v5144_v52 }
 0x9bb   :  { %1206 = vmatpush.msrb.mxu3 %v5146_v46 }
 0x9bd   :  { %1207 = vmatpush.msrb.mxu3 %v5150_v20 }
 0x9bf   :  { %1208 = vmatpush.msrb.mxu3 %v5153_v31 }
 0xa3b   :  { %v915_v14 = vpop.f32.mrf.mxu3 }
 0xa3c   :  { %v916_v16 = vadd.f32 %v5064_v3, %v915_v14  ;;  %v812_v14 = vld [vmem:[%s6765_s1 + $0x8] sm:$0xff] }
 0xa3e   :  { %v923_v18 = vmin.f32 %v916_v16, 20.0  ;;  %v918_v6 = vmul.f32 0.5, %v916_v16  ;;  %vm922_vm5 = vcmp.gt.f32.partialorder %v916_v16, 20.0 }
 0xa40   :  { %v924_v56 = vmul.f32 1.442695, %v923_v18 }
 0xa42   :  { %4387 = vpow2.f32 %v924_v56 }
 0xa43   :  { %4389 = vtanh.f32 %v918_v6 }
 0xa48   :  { %v4388_v2 = vpop.eup %4387 }
 0xa49   :  { %v926_v58 = vadd.f32 1.0, %v4388_v2  ;;  %v4390_v8 = vpop.eup %4389 }
 0xa4a   :  { %v920_v0 = vadd.f32 1.0, %v4390_v8 }
 0xa4b   :  { %4391 = vlog2.f32 %v926_v58 }
 0xa4c   :  { %v921_v46 = vmul.f32 0.5, %v920_v0 }
 0xa51   :  { %v4392_v10 = vpop.eup %4391 }
 0xa52   :  { %v928_v52 = vmul.f32 0.6931472, %v4392_v10 }
 0xa54   :  { %v929_v20 = vsel %vm922_vm5, %v916_v16, %v928_v52 }
 0xa55   :  { %v5272_v31 = vsel %vm63_vm2, %v921_v46, %v929_v20 }
 0xa56   :  { %6824 = vst [vmem:[#allocation27_spill] sm:$0xff] %v5272_v31  ;;  %973 = vrot.lane.b32.xlu0 %v5272_v31, %s4792_s10 }
 0xac8   :  { %v974_v18 = vpop.permute.xlu0 %973 }
 0xac9   :  { %v976_v56 = vmul.f32 %v974_v18, %v812_v14 }
 0xacb   :  { %v977_v6 = vadd.f32 %v976_v56, %v5272_v31 }
 0xacd   :  { %4261 = vmatmul.msk.f32.vlgmr.msrb.gmra.mxu1 %vm483_vm4, %v977_v6 }
 0xace   :  { %1340 = vmatpush.msrb.mxu1 %v4915_v32 }
 0xad0   :  { %1341 = vmatpush.msrb.mxu1 %v4920_v33 }
 0xad2   :  { %1342 = vmatpush.msrb.mxu1 %v4926_v35 }
 0xad4   :  { %1343 = vmatpush.msrb.mxu1 %v4933_v36 }
 0xb4a   :  { %v999_v52 = vpop.f32.mrf.mxu1 }
 0xb4b   :  { %v1000_v46 = vadd.f32 %v5121_v11, %v999_v52 }
 0xb4d   :  { %v1002_v20 = vmax.f32 %v1000_v46, 0.0 }
 0xb4f   :  { %4262 = vmatmul.msk.f32.vlgmr.msrb.gmra.mxu2 %vm162_vm1, %v1002_v20 }
 0xb50   :  { %1372 = vmatpush.msrb.mxu2 %v4939_v38 }
 0xb52   :  { %1373 = vmatpush.msrb.mxu2 %v4945_v41 }
 0xb54   :  { %1374 = vmatpush.msrb.mxu2 %v4948_v43 }
 0xb56   :  { %1375 = vmatpush.msrb.mxu2 %v4952_v44 }
 0xb57   :  { %4266 = vmatmul.msk.f32.vlgmr.msra.gmra.mxu2 %vm162_vm1, %v5183_v45 }
 0xb58   :  { %1512 = vmatpush.msra.mxu2 %v5089_v53 }
 0xb5a   :  { %1513 = vmatpush.msra.mxu2 %v5091_v55 }
 0xb5c   :  { %1514 = vmatpush.msra.mxu2 %v5102_v62 }
 0xb5e   :  { %1515 = vmatpush.msra.mxu2 %v5106_v4 }
 0xbd2   :  { %v1027_v32 = vpop.f32.mrf.mxu2 }
 0xbd3   :  { %v1028_v33 = vadd.f32 %v5134_v34, %v1027_v32  ;;  %v6825_v32 = vld [vmem:[#allocation12_spill] sm:$0xff] }
 0xbd5   :  { %v1030_v35 = vmax.f32 %v1028_v33, 0.0  ;;  %v6826_v33 = vld [vmem:[#allocation13_spill] sm:$0xff] }
 0xbd7   :  { %4263 = vmatmul.msk.f32.vlgmr.msra.gmra.mxu3 %vm162_vm1, %v1030_v35  ;;  %v6827_v35 = vld [vmem:[#allocation14_spill] sm:$0xff] }
 0xbd8   :  { %1400 = vmatpush.msra.mxu3 %v4973_v57 }
 0xbda   :  { %v1157_v36 = vpop.f32.mrf.mxu2  ;;  %1401 = vmatpush.msra.mxu3 %v4976_v59 }
 0xbdb   :  { %1166 = vrot.lane.b32.xlu1 %v1157_v36, %s4793_s11 }
 0xbdc   :  { %1402 = vmatpush.msra.mxu3 %v4993_v21 }
 0xbde   :  { %1403 = vmatpush.msra.mxu3 %v4997_v23 }
 0xc4d   :  { %v1167_v4 = vpop.permute.xlu1 %1166 }
 0xc5a   :  { %v1055_v38 = vpop.f32.mrf.mxu3 }
 0xc5b   :  { %v1135_v41 = vadd.f32 %v1055_v38, %v5053_v63 }
 0xc5d   :  { %v1160_v43 = vadd.f32 %v1157_v36, %v1135_v41 }
 0xc5f   :  { %v1161_v44 = vmul.f32 0.5, %v1160_v43 }
 0xc61   :  { %4393 = vtanh.f32 %v1161_v44 }
 0xc67   :  { %v4394_v53 = vpop.eup %4393 }
 0xc68   :  { %v1163_v55 = vadd.f32 1.0, %v4394_v53  ;;  %v5339_v53 = vpop.f32.mrf.mxu0 }
 0xc69   :  { %6828 = vst [vmem:[#allocation12_spill] sm:$0xff] %v5339_v53 }
 0xc6a   :  { %v1164_v62 = vmul.f32 0.5, %v1163_v55 }
 0xc6c   :  { %v1169_v57 = vmul.f32 %v1167_v4, %v1164_v62  ;;  %v1176_v63 = vsub.f32 1.0, %v1164_v62  ;;  %v1182_v16 = vmul.f32 %v1164_v62, %v5161_v25 }
 0xc6e   :  { %1171 = vrot.lane.b32.xlu2 %v1169_v57, %s4793_s11 }
 0xc76   :  { %1219 = vrot.lane.b32.xlu2 %v5243_v28, %s4793_s11 }
 0xcc8   :  { %v1172_v59 = vpop.permute.xlu2 %1171 }
 0xcc9   :  { %v1174_v21 = vadd.f32 %v1172_v59, %v1135_v41 }
 0xccb   :  { %4395 = vtanh.f32 %v1174_v21 }
 0xcd0   :  { %v1220_v6 = vpop.permute.xlu2 %1219 }
 0xcd1   :  { %v4396_v23 = vpop.eup %4395 }
 0xcd2   :  { %1178 = vrot.lane.b32.xlu0 %v4396_v23, %s4790_s23  ;;  %v313_v23 = vld [vmem:[%s6764_s0] sm:$0xff] }
 0xd44   :  { %v1179_v45 = vpop.permute.xlu0 %1178 }
 0xd45   :  { %v1181_v2 = vmul.f32 %v1179_v45, %v1176_v63  ;;  %v811_v63 = vld [vmem:[%s6764_s0 + $0x8] sm:$0xff] }
 0xd47   :  { %v5310_v58 = vadd.f32 %v1182_v16, %v1181_v2 }
 0xd49   :  { %1189 = vrot.lane.b32.xlu1 %v5310_v58, %s4790_s23 }
 0xd51   :  { %1059 = vrot.lane.b32.xlu1 %v5245_v29, %s4793_s11 }
 0xdbb   :  { %v5316_v8 = vpop.permute.xlu1 %1189 }
 0xdbc   :  { %4267 = vmatmul.msk.f32.vlgmr.msrb.gmra.mxu3 %vm162_vm1, %v5316_v8 }
 0xdbd   :  { %1540 = vmatpush.msrb.mxu3 %v5110_v5 }
 0xdbf   :  { %1541 = vmatpush.msrb.mxu3 %v5112_v7 }
 0xdc1   :  { %1542 = vmatpush.msrb.mxu3 %v5125_v24 }
 0xdc3   :  { %1543 = vmatpush.msrb.mxu3 %v5128_v30  ;;  %v1060_v18 = vpop.permute.xlu1 %1059 }
 0xdc4   :  { %v1062_v52 = vadd.f32 %v1060_v18, %v1055_v38 }
 0xdc6   :  { %v1063_v5 = vadd.f32 %v1062_v52, %v5190_v47 }
 0xdc8   :  { %v1064_v7 = vmax.f32 %v1063_v5, 0.0 }
 0xe3f   :  { %v1210_v25 = vpop.f32.mrf.mxu3 }
 0xe40   :  { %v1213_v0 = vadd.f32 %v1210_v25, %v5243_v28 }
 0xe42   :  { %v1214_v10 = vmul.f32 0.5, %v1213_v0 }
 0xe44   :  { %4397 = vtanh.f32 %v1214_v10 }
 0xe4a   :  { %v4398_v14 = vpop.eup %4397 }
 0xe4b   :  { %v1216_v29 = vadd.f32 1.0, %v4398_v14 }
 0xe4d   :  { %v1217_v56 = vmul.f32 0.5, %v1216_v29 }
 0xe4f   :  { %v1222_v46 = vmul.f32 %v1220_v6, %v1217_v56  ;;  %v1229_v36 = vsub.f32 1.0, %v1217_v56  ;;  %v1235_v41 = vmul.f32 %v1217_v56, %v5227_v48 }
 0xe51   :  { %1224 = vrot.lane.b32.xlu0 %v1222_v46, %s4793_s11 }
 0xe59   :  { %1070 = vrot.lane.b32.xlu0 %v1064_v7, %s4791_s25 }
 0xec3   :  { %v1225_v24 = vpop.permute.xlu0 %1224 }
 0xec4   :  { %v1227_v30 = vadd.f32 %v1225_v24, %v1210_v25  ;;  %v6831_v24 = vld [vmem:[#allocation15_spill] sm:$0xff] }
 0xec6   :  { %4399 = vtanh.f32 %v1227_v30 }
 0xecb   :  { %v1071_v28 = vpop.permute.xlu0 %1070 }
 0xecc   :  { %v4400_v20 = vpop.eup %4399  ;;  %4264 = vmatmul.msk.f32.vlgmr.msra.gmra.mxu0 %vm162_vm1, %v1071_v28 }
 0xecd   :  { %1231 = vrot.lane.b32.xlu2 %v4400_v20, %s4790_s23  ;;  %1442 = vmatpush.msra.mxu0 %v5000_v26 }
 0xecf   :  { %1443 = vmatpush.msra.mxu0 %v6825_v32 }
 0xed1   :  { %1444 = vmatpush.msra.mxu0 %v6826_v33 }
 0xed3   :  { %1445 = vmatpush.msra.mxu0 %v6827_v35  ;;  %v5393_v35 = vld [vmem:[%s6767_s3 + $0x30] sm:$0xff] }
 0xf27   :  { %v1232_v38 = vpop.permute.xlu2 %1231 }
 0xf28   :  { %v1234_v43 = vmul.f32 %v1232_v38, %v1229_v36  ;;  %v5400_v36 = vld [vmem:[%s6767_s3 + $0x20] sm:$0xff] }
 0xf29   :  { %v5412_v38 = vld [vmem:[%s6767_s3] sm:$0xff] }
 0xf2a   :  { %v5335_v44 = vadd.f32 %v1235_v41, %v1234_v43 }
 0xf2c   :  { %1304 = vrot.lane.b32.xlu1 %v5335_v44, %s4790_s23 }
 0xf49   :  { %v1091_v55 = vpop.f32.mrf.mxu0 }
 0xf4a   :  { %v1092_v26 = vadd.f32 %v5222_v50, %v1091_v55 }
 0xf4c   :  { %v1094_v62 = vmax.f32 %v1092_v26, 0.0 }
 0xf4e   :  { %4265 = vmatmul.msk.f32.vlgmr.msra.gmra.mxu1 %vm162_vm1, %v1094_v62  ;;  %v6832_v62 = vld [vmem:[#allocation23_spill] sm:$0xff] }
 0xf4f   :  { %1487 = vmatpush.msra.mxu1 %v5069_v12  ;;  %v5357_v12 = vld [vmem:[%s6768_s4 + $0xb] ss:$0 sm:$0xff] }
 0xf9e   :  { %v1305_v4 = vpop.permute.xlu1 %1304 }
 0xf9f   :  { %4269 = vmatmul.msk.f32.vlgmr.msrb.gmra.mxu0 %vm162_vm1, %v1305_v4  ;;  %4270 = vmatmul.msk.f32.vlgmr.msrb.gmra.mxu1 %vm162_vm1, %v1305_v4  ;;  %v6833_v4 = vld [vmem:[#allocation24_spill] sm:$0xff] }
 0xfa0   :  { %1576 = vmatpush.msrb.mxu0 %v5167_v15  ;;  %1604 = vmatpush.msrb.mxu1 %v5202_v13  ;;  %v5361_v15 = vadd.f32 %v5357_v12, %v5241_v27 }
 0xfa2   :  { %1577 = vmatpush.msrb.mxu0 %v5169_v17  ;;  %1605 = vmatpush.msrb.mxu1 %v5205_v61  ;;  %6829 = vst [vmem:[#allocation13_spill] sm:$0xff] %v5361_v15  ;;  %v794_v17 = vand.u32 2147483647, %v5361_v15  ;;  %v791_v16 = vmax.f32 %v5361_v15, 0.0  ;;  %v792_v2 = vmul.f32 %v5361_v15, %v313_v23 }
 0xfa4   :  { %1578 = vmatpush.msrb.mxu0 %v5172_v22  ;;  %1606 = vmatpush.msrb.mxu1 %v5208_v49  ;;  %v795_v13 = vsub.f32 0.0, %v794_v17  ;;  %v793_v29 = vsub.f32 %v791_v16, %v792_v2  ;;  %v6834_v17 = vld [vmem:[#allocation25_spill] sm:$0xff]  ;;  %v5441_v16 = vld [vmem:[%s6767_s3 + $0x38] sm:$0xff] }
 0xfa5   :  { %v5447_v2 = vld [vmem:[%s6767_s3 + $0x28] sm:$0xff] }
 0xfa6   :  { %1579 = vmatpush.msrb.mxu0 %v5175_v19  ;;  %1607 = vmatpush.msrb.mxu1 %v5211_v1  ;;  %v796_v61 = vmul.f32 1.442695, %v795_v13  ;;  %v6835_v13 = vld [vmem:[#allocation26_spill] sm:$0xff] }
 0xfa8   :  { %4401 = vpow2.f32 %v796_v61 }
 0xfae   :  { %v4402_v48 = vpop.eup %4401 }
 0xfaf   :  { %v798_v59 = vadd.f32 1.0, %v4402_v48 }
 0xfcb   :  { %v1119_v22 = vpop.f32.mrf.mxu1 }
 0xfcc   :  { %v5365_v49 = vadd.f32 %v5357_v12, %v1119_v22 }
 0xfce   :  { %6830 = vst [vmem:[#allocation14_spill] sm:$0xff] %v5365_v49  ;;  %v1285_v19 = vand.u32 2147483647, %v5365_v49  ;;  %v1282_v25 = vmax.f32 %v5365_v49, 0.0  ;;  %v1283_v0 = vmul.f32 %v5365_v49, %v811_v63 }
 0xfd0   :  { %v1286_v1 = vsub.f32 0.0, %v1285_v19  ;;  %v1284_v18 = vsub.f32 %v1282_v25, %v1283_v0  ;;  %v5453_v25 = vld [vmem:[%s6767_s3 + $0x18] sm:$0xff]  ;;  %v5459_v0 = vld [vmem:[%s6767_s3 + $0x8] sm:$0xff] }
 0xfd2   :  { %v1287_v57 = vmul.f32 1.442695, %v1286_v1 }
 0xfd4   :  { %4403 = vpow2.f32 %v1287_v57 }
 0xfd5   :  { %4405 = vlog2.f32 %v798_v59 }
 0xfda   :  { %v4404_v21 = vpop.eup %4403 }
 0xfdb   :  { %v1289_v27 = vadd.f32 1.0, %v4404_v21  ;;  %v4406_v45 = vpop.eup %4405 }
 0xfdc   :  { %v800_v10 = vmul.f32 0.6931472, %v4406_v45 }
 0xfdd   :  { %4407 = vlog2.f32 %v1289_v27 }
 0xfde   :  { %v801_v6 = vadd.f32 %v800_v10, %v793_v29 }
 0xfe3   :  { %v4408_v14 = vpop.eup %4407 }
 0xfe4   :  { %v1291_v56 = vmul.f32 0.6931472, %v4408_v14 }
 0xfe6   :  { %v1292_v52 = vadd.f32 %v1291_v56, %v1284_v18 }
 0xfe8   :  { %v5378_v46 = vadd.f32 %v1292_v52, %v801_v6 }
0x101c   :  { %v5380_v5 = vpop.f32.mrf.mxu0  ;;  %v5382_v7 = vpop.f32.mrf.mxu1 }
0x101d   :  { %v1348_v30 = vadd.f32 %v5380_v5, %v6831_v24  ;;  %v1421_v28 = vadd.f32 %v5046_v60, %v5382_v7  ;;  %v5406_v60 = vld [vmem:[%s6767_s3 + $0x10] sm:$0xff] }
0x101f   :  { %v1422_v20 = vmax.f32 %v1421_v28, 0.0  ;;  %v1349_v32 = vadd.f32 %v1348_v30, %v4966_v51 }
0x1021   :  { %4273 = vmatmul.msk.f32.vlgmr.msra.gmra.mxu0 %vm162_vm1, %v1422_v20  ;;  %v1350_v33 = vmax.f32 %v1349_v32, 0.0 }
0x1022   :  { %1810 = vmatpush.msra.mxu0 %v5393_v35 }
0x1023   :  { %1356 = vrot.lane.b32.xlu2 %v1350_v33, %s4791_s25 }
0x1024   :  { %1811 = vmatpush.msra.mxu0 %v5400_v36 }
0x1026   :  { %1812 = vmatpush.msra.mxu0 %v5406_v60 }
0x1028   :  { %1813 = vmatpush.msra.mxu0 %v5412_v38 }
0x107d   :  { %v1357_v41 = vpop.permute.xlu2 %1356 }
0x107e   :  { %4271 = vmatmul.msk.f32.vlgmr.msrb.gmra.mxu2 %vm162_vm1, %v1357_v41 }
0x107f   :  { %1642 = vmatpush.msrb.mxu2 %v5014_v37 }
0x1081   :  { %1643 = vmatpush.msrb.mxu2 %v5016_v39 }
0x1083   :  { %1644 = vmatpush.msrb.mxu2 %v5020_v40 }
0x1085   :  { %1645 = vmatpush.msrb.mxu2 %v5023_v42 }
0x1101   :  { %v1377_v43 = vpop.f32.mrf.mxu2 }
0x1102   :  { %v1378_v55 = vadd.f32 %v5039_v54, %v1377_v43 }
0x1104   :  { %v1380_v26 = vmax.f32 %v1378_v55, 0.0 }
0x1106   :  { %4272 = vmatmul.msk.f32.vlgmr.msra.gmra.mxu3 %vm162_vm1, %v1380_v26 }
0x1107   :  { %1695 = vmatpush.msra.mxu3 %v6832_v62 }
0x1109   :  { %1696 = vmatpush.msra.mxu3 %v6833_v4 }
0x110b   :  { %1697 = vmatpush.msra.mxu3 %v6834_v17 }
0x110d   :  { %1698 = vmatpush.msra.mxu3 %v6835_v13 }
0x1189   :  { %v1405_v37 = vpop.f32.mrf.mxu3 }
0x118a   :  { %v1406_v39 = vadd.f32 %v5064_v3, %v1405_v37  ;;  %v1302_v3 = vld [vmem:[%s6765_s1 + $0x10] sm:$0xff] }
0x118c   :  { %v1413_v40 = vmin.f32 %v1406_v39, 20.0  ;;  %v1408_v42 = vmul.f32 0.5, %v1406_v39  ;;  %vm1412_vm6 = vcmp.gt.f32.partialorder %v1406_v39, 20.0 }
0x118e   :  { %v1414_v61 = vmul.f32 1.442695, %v1413_v40 }
0x1190   :  { %4409 = vpow2.f32 %v1414_v61 }
0x1191   :  { %4411 = vtanh.f32 %v1408_v42 }
0x1196   :  { %v4410_v54 = vpop.eup %4409 }
0x1197   :  { %v1416_v22 = vadd.f32 1.0, %v4410_v54  ;;  %v4412_v19 = vpop.eup %4411 }
0x1198   :  { %v1410_v1 = vadd.f32 1.0, %v4412_v19 }
0x1199   :  { %4413 = vlog2.f32 %v1416_v22 }
0x119a   :  { %v1411_v59 = vmul.f32 0.5, %v1410_v1 }
0x119f   :  { %v4414_v48 = vpop.eup %4413 }
0x11a0   :  { %v1418_v57 = vmul.f32 0.6931472, %v4414_v48 }
0x11a2   :  { %v1419_v21 = vsel %vm1412_vm6, %v1406_v39, %v1418_v57 }
0x11a3   :  { %v5429_v27 = vsel %vm63_vm2, %v1411_v59, %v1419_v21 }
0x11a4   :  { %6836 = vst [vmem:[#allocation15_spill] sm:$0xff] %v5429_v27  ;;  %1463 = vrot.lane.b32.xlu0 %v5429_v27, %s4792_s10 }
0x1216   :  { %v1464_v23 = vpop.permute.xlu0 %1463 }
0x1217   :  { %v1466_v63 = vmul.f32 %v1464_v23, %v1302_v3 }
0x1219   :  { %v1467_v45 = vadd.f32 %v1466_v63, %v5429_v27 }
0x121b   :  { %4274 = vmatmul.msk.f32.vlgmr.msra.gmra.mxu1 %vm483_vm4, %v1467_v45 }
0x121c   :  { %1830 = vmatpush.msra.mxu1 %v5441_v16 }
0x121e   :  { %1831 = vmatpush.msra.mxu1 %v5447_v2 }
0x1220   :  { %1832 = vmatpush.msra.mxu1 %v5453_v25 }
0x1222   :  { %1833 = vmatpush.msra.mxu1 %v5459_v0 }
0x1298   :  { %v1489_v10 = vpop.f32.mrf.mxu1 }
0x1299   :  { %v1490_v14 = vadd.f32 %v5121_v11, %v1489_v10 }
0x129b   :  { %v1492_v29 = vmax.f32 %v1490_v14, 0.0 }
0x129d   :  { %4275 = vmatmul.msk.f32.vlgmr.msra.gmra.mxu2 %vm162_vm1, %v1492_v29  ;;  %v5496_v29 = vpop.f32.mrf.mxu0 }
0x129e   :  { %6837 = vst [vmem:[#allocation23_spill] sm:$0xff] %v5496_v29 }
0x12a5   :  { %4279 = vmatmul.msk.f32.vlgmr.msrb.gmra.mxu2 %vm162_vm1, %v5316_v8 }
0x1320   :  { %v1517_v18 = vpop.f32.mrf.mxu2 }
0x1321   :  { %v1518_v56 = vadd.f32 %v5134_v34, %v1517_v18 }
0x1323   :  { %v1520_v6 = vmax.f32 %v1518_v56, 0.0 }
0x1325   :  { %4276 = vmatmul.msk.f32.vlgmr.msrb.gmra.mxu3 %vm162_vm1, %v1520_v6 }
0x1328   :  { %v1647_v52 = vpop.f32.mrf.mxu2 }
0x1329   :  { %1656 = vrot.lane.b32.xlu1 %v1647_v52, %s4793_s11 }
0x139b   :  { %v1657_v43 = vpop.permute.xlu1 %1656 }
0x13a8   :  { %v1545_v30 = vpop.f32.mrf.mxu3 }
0x13a9   :  { %v1625_v28 = vadd.f32 %v1545_v30, %v6831_v24 }
0x13ab   :  { %v1650_v20 = vadd.f32 %v1647_v52, %v1625_v28 }
0x13ad   :  { %v1651_v11 = vmul.f32 0.5, %v1650_v20 }
0x13af   :  { %4415 = vtanh.f32 %v1651_v11 }
0x13b5   :  { %v4416_v32 = vpop.eup %4415 }
0x13b6   :  { %v1653_v33 = vadd.f32 1.0, %v4416_v32 }
0x13b8   :  { %v1654_v41 = vmul.f32 0.5, %v1653_v33 }
0x13ba   :  { %v1659_v8 = vmul.f32 %v1657_v43, %v1654_v41  ;;  %v1666_v24 = vsub.f32 1.0, %v1654_v41  ;;  %v1672_v4 = vmul.f32 %v1654_v41, %v5310_v58  ;;  %v1301_v41 = vld [vmem:[%s6764_s0 + $0x10] sm:$0xff] }
0x13bc   :  { %1661 = vrot.lane.b32.xlu2 %v1659_v8, %s4793_s11 }
0x13c4   :  { %1709 = vrot.lane.b32.xlu2 %v5380_v5, %s4793_s11 }
0x1416   :  { %v1662_v34 = vpop.permute.xlu2 %1661 }
0x1417   :  { %v1664_v55 = vadd.f32 %v1662_v34, %v1625_v28 }
0x1419   :  { %4417 = vtanh.f32 %v1664_v55 }
0x141e   :  { %v1710_v19 = vpop.permute.xlu2 %1709 }
0x141f   :  { %v4418_v26 = vpop.eup %4417 }
0x1420   :  { %1668 = vrot.lane.b32.xlu0 %v4418_v26, %s4790_s23 }
0x1492   :  { %v1669_v62 = vpop.permute.xlu0 %1668 }
0x1493   :  { %v1671_v17 = vmul.f32 %v1669_v62, %v1666_v24 }
0x1495   :  { %v5475_v13 = vadd.f32 %v1672_v4, %v1671_v17  ;;  %v5517_v4 = vld [vmem:[#allocation2 + $0xa0] sm:$0xff]  ;;  %v5520_v17 = vld [vmem:[#allocation2 + $0x98] sm:$0xff] }
0x1497   :  { %1679 = vrot.lane.b32.xlu1 %v5475_v13, %s4790_s23 }
0x149f   :  { %1549 = vrot.lane.b32.xlu1 %v5382_v7, %s4793_s11 }
0x1509   :  { %v5481_v37 = vpop.permute.xlu1 %1679 }
0x150a   :  { %4280 = vmatmul.msk.f32.vlgmr.msra.gmra.mxu3 %vm162_vm1, %v5481_v37 }
0x1511   :  { %v1550_v54 = vpop.permute.xlu1 %1549 }
0x1512   :  { %v1552_v1 = vadd.f32 %v1550_v54, %v1545_v30 }
0x1514   :  { %v1553_v7 = vadd.f32 %v1552_v1, %v5190_v47  ;;  %v5547_v1 = vld [vmem:[%s6768_s4 + $0x5] ss:$0 sm:$0xff] }
0x1516   :  { %v1554_v57 = vmax.f32 %v1553_v7, 0.0 }
0x158d   :  { %v1700_v39 = vpop.f32.mrf.mxu3 }
0x158e   :  { %v1703_v40 = vadd.f32 %v1700_v39, %v5380_v5 }
0x1590   :  { %v1704_v61 = vmul.f32 0.5, %v1703_v40  ;;  %v5526_v40 = vld [vmem:[#allocation2 + $0x68] sm:$0xff] }
0x1591   :  { %1862 = vmatpush.msra.mxu2 %v5526_v40 }
0x1592   :  { %4419 = vtanh.f32 %v1704_v61  ;;  %v5528_v61 = vld [vmem:[#allocation2 + $0x60] sm:$0xff] }
0x1593   :  { %1863 = vmatpush.msra.mxu2 %v5528_v61 }
0x1598   :  { %v4420_v58 = vpop.eup %4419 }
0x1599   :  { %v1706_v42 = vadd.f32 1.0, %v4420_v58  ;;  %v5534_v58 = vld [vmem:[#allocation2 + $0x50] sm:$0xff] }
0x159b   :  { %v1707_v22 = vmul.f32 0.5, %v1706_v42 }
0x159d   :  { %v1712_v48 = vmul.f32 %v1710_v19, %v1707_v22  ;;  %v1719_v23 = vsub.f32 1.0, %v1707_v22  ;;  %v1725_v45 = vmul.f32 %v1707_v22, %v5335_v44  ;;  %v5502_v44 = vld [vmem:[#allocation2 + $0xa8] sm:$0xff] }
0x159e   :  { %v6839_v22 = vld [vmem:[#allocation16_spill] sm:$0xff] }
0x159f   :  { %1714 = vrot.lane.b32.xlu0 %v1712_v48, %s4793_s11 }
0x15a7   :  { %1560 = vrot.lane.b32.xlu0 %v1554_v57, %s4791_s25 }
0x1611   :  { %v1715_v59 = vpop.permute.xlu0 %1714 }
0x1612   :  { %v1717_v21 = vadd.f32 %v1715_v59, %v1700_v39  ;;  %v5523_v39 = vld [vmem:[#allocation2 + $0x90] sm:$0xff] }
0x1614   :  { %4421 = vtanh.f32 %v1717_v21 }
0x1619   :  { %v1561_v5 = vpop.permute.xlu0 %1560 }
0x161a   :  { %v4422_v3 = vpop.eup %4421  ;;  %4277 = vmatmul.msk.f32.vlgmr.msrb.gmra.mxu0 %vm162_vm1, %v1561_v5  ;;  %v5555_v5 = vld [vmem:[#allocation2 + $0x88] sm:$0xff] }
0x161b   :  { %1721 = vrot.lane.b32.xlu2 %v4422_v3, %s4790_s23  ;;  %1932 = vmatpush.msrb.mxu0 %v5502_v44  ;;  %v5557_v3 = vld [vmem:[#allocation2 + $0x80] sm:$0xff] }
0x161c   :  { %1890 = vmatpush.msrb.mxu3 %v5555_v5 }
0x161d   :  { %1933 = vmatpush.msrb.mxu0 %v5517_v4 }
0x161e   :  { %1891 = vmatpush.msrb.mxu3 %v5557_v3 }
0x161f   :  { %1934 = vmatpush.msrb.mxu0 %v5520_v17 }
0x1621   :  { %1935 = vmatpush.msrb.mxu0 %v5523_v39 }
0x1675   :  { %v1722_v63 = vpop.permute.xlu2 %1721 }
0x1676   :  { %v1724_v10 = vmul.f32 %v1722_v63, %v1719_v23  ;;  %v5561_v23 = vld [vmem:[#allocation2 + $0x78] sm:$0xff]  ;;  %v5564_v63 = vld [vmem:[#allocation2 + $0x70] sm:$0xff] }
0x1677   :  { %1892 = vmatpush.msrb.mxu3 %v5561_v23 }
0x1678   :  { %v5492_v14 = vadd.f32 %v1725_v45, %v1724_v10  ;;  %v5570_v10 = vld [vmem:[%s6768_s4 + $0x3] ss:$0 sm:$0xff] }
0x1679   :  { %1893 = vmatpush.msrb.mxu3 %v5564_v63 }
0x167a   :  { %1794 = vrot.lane.b32.xlu1 %v5492_v14, %s4790_s23 }
0x1697   :  { %v1581_v18 = vpop.f32.mrf.mxu0 }
0x1698   :  { %v1582_v56 = vadd.f32 %v5222_v50, %v1581_v18 }
0x169a   :  { %v1584_v6 = vmax.f32 %v1582_v56, 0.0 }
0x169c   :  { %4278 = vmatmul.msk.f32.vlgmr.msrb.gmra.mxu1 %vm162_vm1, %v1584_v6  ;;  %v5574_v6 = vld [vmem:[#allocation2 + $0xb0] sm:$0xff] }
0x169d   :  { %1977 = vmatpush.msrb.mxu1 %v5574_v6 }
0x16ec   :  { %v1795_v52 = vpop.permute.xlu1 %1794 }
0x16ed   :  { %4282 = vmatmul.msk.f32.vlgmr.msra.gmra.mxu0 %vm162_vm1, %v1795_v52  ;;  %4283 = vmatmul.msk.f32.vlgmr.msra.gmra.mxu1 %vm162_vm1, %v1795_v52 }
0x1719   :  { %v1609_v30 = vpop.f32.mrf.mxu1 }
0x171a   :  { %v5506_v28 = vadd.f32 %v5357_v12, %v1609_v30  ;;  %v5580_v30 = vld [vmem:[%s6768_s4 + $0x4] ss:$0 sm:$0xff] }
0x171c   :  { %6838 = vst [vmem:[#allocation24_spill] sm:$0xff] %v5506_v28  ;;  %v1775_v20 = vand.u32 2147483647, %v5506_v28  ;;  %v1772_v43 = vmax.f32 %v5506_v28, 0.0  ;;  %v1773_v8 = vmul.f32 %v5506_v28, %v1301_v41 }
0x171e   :  { %v1776_v11 = vsub.f32 0.0, %v1775_v20  ;;  %v1774_v55 = vsub.f32 %v1772_v43, %v1773_v8 }
0x1720   :  { %v1777_v50 = vmul.f32 1.442695, %v1776_v11 }
0x1722   :  { %4423 = vpow2.f32 %v1777_v50 }
0x1728   :  { %v4424_v32 = vpop.eup %4423 }
0x1729   :  { %v1779_v33 = vadd.f32 1.0, %v4424_v32 }
0x172b   :  { %4425 = vlog2.f32 %v1779_v33 }
0x1731   :  { %v4426_v34 = vpop.eup %4425 }
0x1732   :  { %v1781_v26 = vmul.f32 0.6931472, %v4426_v34 }
0x1734   :  { %v1782_v24 = vadd.f32 %v1781_v26, %v1774_v55 }
0x1736   :  { %v5515_v62 = vadd.f32 %v1782_v24, %v5378_v46  ;;  %v5531_v46 = vld [vmem:[#allocation2 + $0x58] sm:$0xff] }
0x1737   :  { %1864 = vmatpush.msra.mxu2 %v5531_v46 }
0x1739   :  { %1865 = vmatpush.msra.mxu2 %v5534_v58 }
0x176a   :  { %v5538_v42 = vpop.f32.mrf.mxu0  ;;  %v5540_v54 = vpop.f32.mrf.mxu1 }
0x176b   :  { %v1838_v19 = vadd.f32 %v5538_v42, %v6839_v22  ;;  %v1911_v48 = vadd.f32 %v5547_v1, %v5540_v54 }
0x176d   :  { %v1912_v7 = vmax.f32 %v1911_v48, 0.0  ;;  %v1839_v57 = vadd.f32 %v1838_v19, %v4966_v51  ;;  %v5589_v48 = vld [vmem:[#allocation2 + $0xd0] sm:$0xff] }
0x176e   :  { %2002 = vmatpush.msrb.mxu2 %v5589_v48 }
0x176f   :  { %4286 = vmatmul.msk.f32.vlgmr.msrb.gmra.mxu0 %vm162_vm1, %v1912_v7  ;;  %v1840_v59 = vmax.f32 %v1839_v57, 0.0  ;;  %v5591_v7 = vld [vmem:[#allocation2 + $0xc8] sm:$0xff]  ;;  %v1792_v57 = vld [vmem:[%s6765_s1 + $0x18] sm:$0xff] }
0x1770   :  { %2003 = vmatpush.msrb.mxu2 %v5591_v7 }
0x1771   :  { %1846 = vrot.lane.b32.xlu2 %v1840_v59, %s4791_s25 }
0x17cb   :  { %v1847_v21 = vpop.permute.xlu2 %1846 }
0x17cc   :  { %4284 = vmatmul.msk.f32.vlgmr.msra.gmra.mxu2 %vm162_vm1, %v1847_v21 }
0x184f   :  { %v1867_v45 = vpop.f32.mrf.mxu2 }
0x1850   :  { %v1868_v18 = vadd.f32 %v5570_v10, %v1867_v45 }
0x1852   :  { %v1870_v56 = vmax.f32 %v1868_v18, 0.0  ;;  %v5600_v18 = vld [vmem:[#allocation2 + $0xc0] sm:$0xff] }
0x1853   :  { %2004 = vmatpush.msrb.mxu2 %v5600_v18 }
0x1854   :  { %4285 = vmatmul.msk.f32.vlgmr.msrb.gmra.mxu3 %vm162_vm1, %v1870_v56  ;;  %v5603_v56 = vld [vmem:[#allocation2 + $0xb8] sm:$0xff] }
0x1855   :  { %2005 = vmatpush.msrb.mxu2 %v5603_v56 }
0x18d7   :  { %v1895_v52 = vpop.f32.mrf.mxu3 }
0x18d8   :  { %v1896_v20 = vadd.f32 %v5580_v30, %v1895_v52  ;;  %v5606_v52 = vld [vmem:[#allocation2 + $0x150] sm:$0xff] }
0x18d9   :  { %2132 = vmatpush.msra.mxu2 %v5606_v52 }
0x18da   :  { %v1903_v11 = vmin.f32 %v1896_v20, 20.0  ;;  %v1898_v32 = vmul.f32 0.5, %v1896_v20  ;;  %vm1902_vm7 = vcmp.gt.f32.partialorder %v1896_v20, 20.0 }
0x18dc   :  { %v1904_v50 = vmul.f32 1.442695, %v1903_v11  ;;  %v5611_v11 = vld [vmem:[#allocation2 + $0x140] sm:$0xff] }
0x18de   :  { %4427 = vpow2.f32 %v1904_v50  ;;  %v5614_v50 = vld [vmem:[#allocation2 + $0x138] sm:$0xff] }
0x18df   :  { %4429 = vtanh.f32 %v1898_v32  ;;  %v5618_v32 = vld [vmem:[#allocation2 + $0xf0] sm:$0xff] }
0x18e0   :  { %2030 = vmatpush.msra.mxu3 %v5618_v32 }
0x18e4   :  { %v4428_v33 = vpop.eup %4427 }
0x18e5   :  { %v1906_v41 = vadd.f32 1.0, %v4428_v33  ;;  %v4430_v43 = vpop.eup %4429  ;;  %v5620_v33 = vld [vmem:[#allocation2 + $0xe8] sm:$0xff] }
0x18e6   :  { %v1900_v8 = vadd.f32 1.0, %v4430_v43  ;;  %2031 = vmatpush.msra.mxu3 %v5620_v33  ;;  %v5627_v43 = vld [vmem:[%s6768_s4 + $0x7] ss:$0 sm:$0xff] }
0x18e7   :  { %4431 = vlog2.f32 %v1906_v41 }
0x18e8   :  { %v1901_v26 = vmul.f32 0.5, %v1900_v8 }
0x18ed   :  { %v4432_v34 = vpop.eup %4431 }
0x18ee   :  { %v1908_v55 = vmul.f32 0.6931472, %v4432_v34 }
0x18f0   :  { %v1909_v24 = vsel %vm1902_vm7, %v1896_v20, %v1908_v55  ;;  %v5608_v20 = vld [vmem:[#allocation2 + $0x148] sm:$0xff]  ;;  %v5641_v55 = vld [vmem:[#allocation2 + $0xe0] sm:$0xff] }
0x18f1   :  { %v5585_v19 = vsel %vm63_vm2, %v1901_v26, %v1909_v24  ;;  %2133 = vmatpush.msra.mxu2 %v5608_v20  ;;  %2032 = vmatpush.msra.mxu3 %v5641_v55  ;;  %v5644_v26 = vld [vmem:[#allocation2 + $0xd8] sm:$0xff] }
0x18f2   :  { %6840 = vst [vmem:[#allocation25_spill] sm:$0xff] %v5585_v19  ;;  %1953 = vrot.lane.b32.xlu0 %v5585_v19, %s4792_s10 }
0x18f3   :  { %2134 = vmatpush.msra.mxu2 %v5611_v11  ;;  %6841 = vst [vmem:[#allocation26_spill] sm:$0xff] %v5644_v26  ;;  %2033 = vmatpush.msra.mxu3 %v5644_v26 }
0x18f5   :  { %2135 = vmatpush.msra.mxu2 %v5614_v50 }
0x1964   :  { %v1954_v59 = vpop.permute.xlu0 %1953 }
0x1965   :  { %v1956_v21 = vmul.f32 %v1954_v59, %v1792_v57 }
0x1967   :  { %v1957_v45 = vadd.f32 %v1956_v21, %v5585_v19 }
0x1969   :  { %4287 = vmatmul.msk.f32.vlgmr.msrb.gmra.mxu1 %vm483_vm4, %v1957_v45 }
0x19e6   :  { %v1979_v41 = vpop.f32.mrf.mxu1 }
0x19e7   :  { %v1980_v8 = vadd.f32 %v5627_v43, %v1979_v41 }
0x19e9   :  { %v1982_v34 = vmax.f32 %v1980_v8, 0.0 }
0x19eb   :  { %4288 = vmatmul.msk.f32.vlgmr.msrb.gmra.mxu2 %vm162_vm1, %v1982_v34 }
0x19ec   :  { %2352 = vmatpush.msrb.mxu2 %v5526_v40 }
0x19ee   :  { %2353 = vmatpush.msrb.mxu2 %v5528_v61 }
0x19f0   :  { %2354 = vmatpush.msrb.mxu2 %v5531_v46 }
0x19f2   :  { %2355 = vmatpush.msrb.mxu2 %v5534_v58 }
0x19f3   :  { %4292 = vmatmul.msk.f32.vlgmr.msra.gmra.mxu2 %vm162_vm1, %v5481_v37  ;;  %v5650_v37 = vld [vmem:[%s6768_s4 + $0x8] ss:$0 sm:$0xff] }
0x19f4   :  { %2492 = vmatpush.msra.mxu2 %v5589_v48 }
0x19f6   :  { %2493 = vmatpush.msra.mxu2 %v5591_v7 }
0x19f8   :  { %2494 = vmatpush.msra.mxu2 %v5600_v18 }
0x19fa   :  { %2495 = vmatpush.msra.mxu2 %v5603_v56 }
0x1a6e   :  { %v2007_v24 = vpop.f32.mrf.mxu2 }
0x1a6f   :  { %v2008_v57 = vadd.f32 %v5650_v37, %v2007_v24 }
0x1a71   :  { %v2010_v59 = vmax.f32 %v2008_v57, 0.0 }
0x1a73   :  { %4289 = vmatmul.msk.f32.vlgmr.msra.gmra.mxu3 %vm162_vm1, %v2010_v59 }
0x1a76   :  { %v2137_v21 = vpop.f32.mrf.mxu2 }
0x1a77   :  { %2146 = vrot.lane.b32.xlu1 %v2137_v21, %s4793_s11 }
0x1ae9   :  { %v2147_v27 = vpop.permute.xlu1 %2146 }
0x1af6   :  { %v2035_v45 = vpop.f32.mrf.mxu3 }
0x1af7   :  { %v2115_v41 = vadd.f32 %v2035_v45, %v6839_v22  ;;  %v5660_v22 = vld [vmem:[#allocation2 + $0x170] sm:$0xff] }
0x1af8   :  { %2185 = vmatpush.msrb.mxu3 %v5660_v22 }
0x1af9   :  { %v2140_v8 = vadd.f32 %v2137_v21, %v2115_v41  ;;  %v5662_v21 = vld [vmem:[#allocation2 + $0x168] sm:$0xff] }
0x1afa   :  { %2186 = vmatpush.msrb.mxu3 %v5662_v21 }
0x1afb   :  { %v2141_v34 = vmul.f32 0.5, %v2140_v8 }
0x1afd   :  { %4433 = vtanh.f32 %v2141_v34 }
0x1b03   :  { %v4434_v28 = vpop.eup %4433 }
0x1b04   :  { %v2143_v49 = vadd.f32 1.0, %v4434_v28 }
0x1b06   :  { %v2144_v15 = vmul.f32 0.5, %v2143_v49  ;;  %v5665_v49 = vld [vmem:[#allocation2 + $0x160] sm:$0xff] }
0x1b07   :  { %2187 = vmatpush.msrb.mxu3 %v5665_v49 }
0x1b08   :  { %v2149_v29 = vmul.f32 %v2147_v27, %v2144_v15  ;;  %v5668_v27 = vld [vmem:[#allocation2 + $0x158] sm:$0xff] }
0x1b09   :  { %2188 = vmatpush.msrb.mxu3 %v5668_v27 }
0x1b0a   :  { %2151 = vrot.lane.b32.xlu2 %v2149_v29, %s4793_s11  ;;  %v2156_v29 = vsub.f32 1.0, %v2144_v15 }
0x1b0b   :  { %2380 = vmatpush.msra.mxu3 %v5555_v5 }
0x1b0d   :  { %2381 = vmatpush.msra.mxu3 %v5557_v3 }
0x1b0f   :  { %2382 = vmatpush.msra.mxu3 %v5561_v23 }
0x1b11   :  { %2383 = vmatpush.msra.mxu3 %v5564_v63 }
0x1b12   :  { %2199 = vrot.lane.b32.xlu2 %v5538_v42, %s4793_s11 }
0x1b64   :  { %v2152_v24 = vpop.permute.xlu2 %2151 }
0x1b65   :  { %v2154_v57 = vadd.f32 %v2152_v24, %v2115_v41  ;;  %v2162_v41 = vmul.f32 %v2144_v15, %v5475_v13 }
0x1b67   :  { %4435 = vtanh.f32 %v2154_v57 }
0x1b6d   :  { %v4436_v59 = vpop.eup %4435 }
0x1b6e   :  { %2158 = vrot.lane.b32.xlu0 %v4436_v59, %s4790_s23 }
0x1be0   :  { %v2159_v28 = vpop.permute.xlu0 %2158 }
0x1be1   :  { %v2161_v8 = vmul.f32 %v2159_v28, %v2156_v29 }
0x1be3   :  { %v5677_v34 = vadd.f32 %v2162_v41, %v2161_v8  ;;  %v2200_v41 = vpop.permute.xlu2 %2199 }
0x1be5   :  { %2169 = vrot.lane.b32.xlu1 %v5677_v34, %s4790_s23 }
0x1bed   :  { %2039 = vrot.lane.b32.xlu1 %v5540_v54, %s4793_s11 }
0x1c57   :  { %v5683_v24 = vpop.permute.xlu1 %2169 }
0x1c58   :  { %4293 = vmatmul.msk.f32.vlgmr.msrb.gmra.mxu3 %vm162_vm1, %v5683_v24 }
0x1c59   :  { %2520 = vmatpush.msrb.mxu3 %v5618_v32 }
0x1c5b   :  { %2521 = vmatpush.msrb.mxu3 %v5620_v33 }
0x1c5d   :  { %2522 = vmatpush.msrb.mxu3 %v5641_v55 }
0x1c5f   :  { %2523 = vmatpush.msrb.mxu3 %v5644_v26  ;;  %v2040_v29 = vpop.permute.xlu1 %2039  ;;  %v5695_v26 = vld [vmem:[#allocation2 + $0x110] sm:$0xff] }
0x1c60   :  { %v2042_v8 = vadd.f32 %v2040_v29, %v2035_v45  ;;  %6842 = vst [vmem:[#allocation16_spill] sm:$0xff] %v5695_v26  ;;  %2066 = vmatpush.msra.mxu0 %v5695_v26 }
0x1c62   :  { %v2043_v31 = vadd.f32 %v2042_v8, %v5190_v47  ;;  %v5721_v8 = vld [vmem:[#allocation2 + $0x128] sm:$0xff] }
0x1c63   :  { %6847 = vst [vmem:[#allocation32_spill] sm:$0xff] %v5721_v8 }
0x1c64   :  { %v2044_v53 = vmax.f32 %v2043_v31, 0.0 }
0x1cdb   :  { %v2190_v15 = vpop.f32.mrf.mxu3 }
0x1cdc   :  { %v2193_v13 = vadd.f32 %v2190_v15, %v5538_v42  ;;  %v5698_v42 = vld [vmem:[#allocation2 + $0x108] sm:$0xff] }
0x1cdd   :  { %6843 = vst [vmem:[#allocation28_spill] sm:$0xff] %v5698_v42  ;;  %2067 = vmatpush.msra.mxu0 %v5698_v42 }
0x1cde   :  { %v2194_v57 = vmul.f32 0.5, %v2193_v13  ;;  %v5700_v13 = vld [vmem:[#allocation2 + $0x100] sm:$0xff] }
0x1cdf   :  { %6844 = vst [vmem:[#allocation29_spill] sm:$0xff] %v5700_v13  ;;  %2068 = vmatpush.msra.mxu0 %v5700_v13 }
0x1ce0   :  { %4437 = vtanh.f32 %v2194_v57  ;;  %v5703_v57 = vld [vmem:[#allocation2 + $0xf8] sm:$0xff] }
0x1ce1   :  { %6845 = vst [vmem:[#allocation30_spill] sm:$0xff] %v5703_v57  ;;  %2069 = vmatpush.msra.mxu0 %v5703_v57 }
0x1ce3   :  { %2300 = vmatpush.msrb.mxu0 %v5393_v35 }
0x1ce5   :  { %2301 = vmatpush.msrb.mxu0 %v5400_v36 }
0x1ce6   :  { %v4438_v59 = vpop.eup %4437 }
0x1ce7   :  { %v2196_v54 = vadd.f32 1.0, %v4438_v59  ;;  %2302 = vmatpush.msrb.mxu0 %v5406_v60  ;;  %v5717_v59 = vld [vmem:[#allocation2 + $0x130] sm:$0xff] }
0x1ce8   :  { %6846 = vst [vmem:[#allocation31_spill] sm:$0xff] %v5717_v59  ;;  %2094 = vmatpush.msra.mxu1 %v5717_v59 }
0x1ce9   :  { %v2197_v28 = vmul.f32 0.5, %v2196_v54  ;;  %2303 = vmatpush.msrb.mxu0 %v5412_v38 }
0x1cea   :  { %2095 = vmatpush.msra.mxu1 %v5721_v8 }
0x1ceb   :  { %v2202_v19 = vmul.f32 %v2200_v41, %v2197_v28  ;;  %v2215_v29 = vmul.f32 %v2197_v28, %v5492_v14  ;;  %v5738_v14 = vpop.f32.mrf.mxu0 }
0x1cec   :  { %6850 = vst [vmem:[#allocation35_spill] sm:$0xff] %v5738_v14 }
0x1ced   :  { %2204 = vrot.lane.b32.xlu0 %v2202_v19, %s4793_s11 }
0x1cf5   :  { %2050 = vrot.lane.b32.xlu0 %v2044_v53, %s4791_s25 }
0x1d5f   :  { %v2205_v31 = vpop.permute.xlu0 %2204 }
0x1d60   :  { %v2207_v53 = vadd.f32 %v2205_v31, %v2190_v15  ;;  %v2209_v15 = vsub.f32 1.0, %v2197_v28 }
0x1d62   :  { %4439 = vtanh.f32 %v2207_v53  ;;  %v5726_v53 = vld [vmem:[#allocation2 + $0x120] sm:$0xff] }
0x1d63   :  { %6848 = vst [vmem:[#allocation33_spill] sm:$0xff] %v5726_v53  ;;  %2096 = vmatpush.msra.mxu1 %v5726_v53 }
0x1d67   :  { %v2051_v19 = vpop.permute.xlu0 %2050 }
0x1d68   :  { %v4440_v45 = vpop.eup %4439  ;;  %4290 = vmatmul.msk.f32.vlgmr.msra.gmra.mxu0 %vm162_vm1, %v2051_v19  ;;  %v5731_v19 = vld [vmem:[#allocation2 + $0x118] sm:$0xff] }
0x1d69   :  { %2211 = vrot.lane.b32.xlu2 %v4440_v45, %s4790_s23  ;;  %2422 = vmatpush.msra.mxu0 %v5502_v44  ;;  %6849 = vst [vmem:[#allocation34_spill] sm:$0xff] %v5731_v19  ;;  %v5743_v45 = vld [vmem:[%s6768_s4 + $0xa] ss:$0 sm:$0xff] }
0x1d6a   :  { %2097 = vmatpush.msra.mxu1 %v5731_v19 }
0x1d6b   :  { %2423 = vmatpush.msra.mxu0 %v5517_v4 }
0x1d6c   :  { %2320 = vmatpush.msrb.mxu1 %v5441_v16 }
0x1d6d   :  { %2424 = vmatpush.msra.mxu0 %v5520_v17 }
0x1d6e   :  { %2321 = vmatpush.msrb.mxu1 %v5447_v2 }
0x1d6f   :  { %2425 = vmatpush.msra.mxu0 %v5523_v39 }
0x1d70   :  { %2322 = vmatpush.msrb.mxu1 %v5453_v25 }
0x1d72   :  { %2323 = vmatpush.msrb.mxu1 %v5459_v0 }
0x1dc3   :  { %v2212_v54 = vpop.permute.xlu2 %2211 }
0x1dc4   :  { %v2214_v41 = vmul.f32 %v2212_v54, %v2209_v15 }
0x1dc6   :  { %v5724_v31 = vadd.f32 %v2215_v29, %v2214_v41 }
0x1dc8   :  { %2284 = vrot.lane.b32.xlu1 %v5724_v31, %s4790_s23 }
0x1de5   :  { %v2071_v28 = vpop.f32.mrf.mxu0 }
0x1de6   :  { %v2072_v15 = vadd.f32 %v5743_v45, %v2071_v28 }
0x1de8   :  { %v2074_v54 = vmax.f32 %v2072_v15, 0.0 }
0x1dea   :  { %4291 = vmatmul.msk.f32.vlgmr.msra.gmra.mxu1 %vm162_vm1, %v2074_v54 }
0x1deb   :  { %2467 = vmatpush.msra.mxu1 %v5574_v6 }
0x1e3a   :  { %v2285_v29 = vpop.permute.xlu1 %2284 }
0x1e3b   :  { %4295 = vmatmul.msk.f32.vlgmr.msrb.gmra.mxu0 %vm162_vm1, %v2285_v29  ;;  %4296 = vmatmul.msk.f32.vlgmr.msrb.gmra.mxu1 %vm162_vm1, %v2285_v29 }
0x1e3c   :  { %2556 = vmatpush.msrb.mxu0 %v5695_v26  ;;  %2584 = vmatpush.msrb.mxu1 %v5717_v59 }
0x1e3e   :  { %2557 = vmatpush.msrb.mxu0 %v5698_v42  ;;  %2585 = vmatpush.msrb.mxu1 %v5721_v8 }
0x1e40   :  { %2558 = vmatpush.msrb.mxu0 %v5700_v13  ;;  %2586 = vmatpush.msrb.mxu1 %v5726_v53  ;;  %v1791_v13 = vld [vmem:[%s6764_s0 + $0x18] sm:$0xff] }
0x1e42   :  { %2559 = vmatpush.msrb.mxu0 %v5703_v57  ;;  %2587 = vmatpush.msrb.mxu1 %v5731_v19 }
0x1e67   :  { %v2099_v41 = vpop.f32.mrf.mxu1 }
0x1e68   :  { %v5759_v28 = vadd.f32 %v5357_v12, %v2099_v41 }
0x1e6a   :  { %v2265_v15 = vand.u32 2147483647, %v5759_v28  ;;  %v2262_v57 = vmax.f32 %v5759_v28, 0.0  ;;  %v2263_v19 = vmul.f32 %v5759_v28, %v1791_v13 }
0x1e6c   :  { %v2266_v54 = vsub.f32 0.0, %v2265_v15  ;;  %v2264_v8 = vsub.f32 %v2262_v57, %v2263_v19 }
0x1e6e   :  { %v2267_v29 = vmul.f32 1.442695, %v2266_v54 }
0x1e70   :  { %4441 = vpow2.f32 %v2267_v29 }
0x1e76   :  { %v4442_v14 = vpop.eup %4441 }
0x1e77   :  { %v2269_v42 = vadd.f32 1.0, %v4442_v14  ;;  %v6851_v14 = vld [vmem:[#allocation17_spill] sm:$0xff] }
0x1e79   :  { %4443 = vlog2.f32 %v2269_v42 }
0x1e7f   :  { %v4444_v53 = vpop.eup %4443 }
0x1e80   :  { %v2271_v12 = vmul.f32 0.6931472, %v4444_v53 }
0x1e82   :  { %v2272_v41 = vadd.f32 %v2271_v12, %v2264_v8 }
0x1e84   :  { %v5768_v59 = vadd.f32 %v2272_v41, %v5515_v62 }
0x1eb8   :  { %v5770_v15 = vpop.f32.mrf.mxu0  ;;  %v5772_v54 = vpop.f32.mrf.mxu1 }
0x1eb9   :  { %v2328_v29 = vadd.f32 %v5770_v15, %v6851_v14  ;;  %v2401_v42 = vadd.f32 %v5547_v1, %v5772_v54 }
0x1ebb   :  { %v2402_v26 = vmax.f32 %v2401_v42, 0.0  ;;  %v2329_v13 = vadd.f32 %v2328_v29, %v4966_v51 }
0x1ebd   :  { %4299 = vmatmul.msk.f32.vlgmr.msra.gmra.mxu0 %vm162_vm1, %v2402_v26  ;;  %v2330_v57 = vmax.f32 %v2329_v13, 0.0 }
0x1ebe   :  { %2790 = vmatpush.msra.mxu0 %v5393_v35 }
0x1ebf   :  { %2336 = vrot.lane.b32.xlu2 %v2330_v57, %s4791_s25 }
0x1ec0   :  { %2791 = vmatpush.msra.mxu0 %v5400_v36 }
0x1ec2   :  { %2792 = vmatpush.msra.mxu0 %v5406_v60 }
0x1ec4   :  { %2793 = vmatpush.msra.mxu0 %v5412_v38 }
0x1f19   :  { %v2337_v62 = vpop.permute.xlu2 %2336 }
0x1f1a   :  { %4297 = vmatmul.msk.f32.vlgmr.msrb.gmra.mxu2 %vm162_vm1, %v2337_v62 }
0x1f1b   :  { %2622 = vmatpush.msrb.mxu2 %v5606_v52 }
0x1f1d   :  { %2623 = vmatpush.msrb.mxu2 %v5608_v20 }
0x1f1f   :  { %2624 = vmatpush.msrb.mxu2 %v5611_v11 }
0x1f21   :  { %2625 = vmatpush.msrb.mxu2 %v5614_v50 }
0x1f9d   :  { %v2357_v35 = vpop.f32.mrf.mxu2 }
0x1f9e   :  { %v2358_v26 = vadd.f32 %v5570_v10, %v2357_v35 }
0x1fa0   :  { %v2360_v8 = vmax.f32 %v2358_v26, 0.0 }
0x1fa2   :  { %4298 = vmatmul.msk.f32.vlgmr.msra.gmra.mxu3 %vm162_vm1, %v2360_v8  ;;  %v2282_v8 = vld [vmem:[%s6765_s1 + $0x20] sm:$0xff] }
0x1fa3   :  { %2675 = vmatpush.msra.mxu3 %v5660_v22 }
0x1fa5   :  { %2676 = vmatpush.msra.mxu3 %v5662_v21 }
0x1fa7   :  { %2677 = vmatpush.msra.mxu3 %v5665_v49 }
0x1fa9   :  { %2678 = vmatpush.msra.mxu3 %v5668_v27 }
0x2025   :  { %v2385_v36 = vpop.f32.mrf.mxu3 }
0x2026   :  { %v2386_v60 = vadd.f32 %v5580_v30, %v2385_v36 }
0x2028   :  { %v2393_v38 = vmin.f32 %v2386_v60, 20.0  ;;  %v2388_v19 = vmul.f32 0.5, %v2386_v60  ;;  %vm2392_vm8 = vcmp.gt.f32.partialorder %v2386_v60, 20.0 }
0x202a   :  { %v2394_v53 = vmul.f32 1.442695, %v2393_v38 }
0x202c   :  { %4445 = vpow2.f32 %v2394_v53 }
0x202d   :  { %4447 = vtanh.f32 %v2388_v19 }
0x2032   :  { %v4446_v12 = vpop.eup %4445 }
0x2033   :  { %v2396_v41 = vadd.f32 1.0, %v4446_v12  ;;  %v4448_v29 = vpop.eup %4447 }
0x2034   :  { %v2390_v42 = vadd.f32 1.0, %v4448_v29 }
0x2035   :  { %4449 = vlog2.f32 %v2396_v41 }
0x2036   :  { %v2391_v62 = vmul.f32 0.5, %v2390_v42 }
0x203b   :  { %v4450_v13 = vpop.eup %4449 }
0x203c   :  { %v2398_v57 = vmul.f32 0.6931472, %v4450_v13 }
0x203e   :  { %v2399_v35 = vsel %vm2392_vm8, %v2386_v60, %v2398_v57 }
0x203f   :  { %v5799_v26 = vsel %vm63_vm2, %v2391_v62, %v2399_v35 }
0x2040   :  { %2443 = vrot.lane.b32.xlu0 %v5799_v26, %s4792_s10 }
0x20b2   :  { %v2444_v36 = vpop.permute.xlu0 %2443 }
0x20b3   :  { %v2446_v38 = vmul.f32 %v2444_v36, %v2282_v8 }
0x20b5   :  { %v2447_v53 = vadd.f32 %v2446_v38, %v5799_v26 }
0x20b7   :  { %4300 = vmatmul.msk.f32.vlgmr.msra.gmra.mxu1 %vm483_vm4, %v2447_v53 }
0x20b8   :  { %2810 = vmatpush.msra.mxu1 %v5441_v16 }
0x20ba   :  { %2811 = vmatpush.msra.mxu1 %v5447_v2 }
0x20bc   :  { %2812 = vmatpush.msra.mxu1 %v5453_v25 }
0x20be   :  { %2813 = vmatpush.msra.mxu1 %v5459_v0 }
0x2134   :  { %v2469_v60 = vpop.f32.mrf.mxu1 }
0x2135   :  { %v2470_v19 = vadd.f32 %v5627_v43, %v2469_v60 }
0x2137   :  { %v2472_v12 = vmax.f32 %v2470_v19, 0.0 }
0x2139   :  { %4301 = vmatmul.msk.f32.vlgmr.msra.gmra.mxu2 %vm162_vm1, %v2472_v12 }
0x213a   :  { %2842 = vmatpush.msra.mxu2 %v5526_v40 }
0x213c   :  { %2843 = vmatpush.msra.mxu2 %v5528_v61 }
0x213e   :  { %2844 = vmatpush.msra.mxu2 %v5531_v46 }
0x2140   :  { %2845 = vmatpush.msra.mxu2 %v5534_v58 }
0x2141   :  { %4305 = vmatmul.msk.f32.vlgmr.msrb.gmra.mxu2 %vm162_vm1, %v5683_v24 }
0x2142   :  { %2982 = vmatpush.msrb.mxu2 %v5589_v48 }
0x2144   :  { %2983 = vmatpush.msrb.mxu2 %v5591_v7 }
0x2146   :  { %2984 = vmatpush.msrb.mxu2 %v5600_v18 }
0x2148   :  { %2985 = vmatpush.msrb.mxu2 %v5603_v56 }
0x21bc   :  { %v2497_v16 = vpop.f32.mrf.mxu2 }
0x21bd   :  { %v2498_v2 = vadd.f32 %v5650_v37, %v2497_v16 }
0x21bf   :  { %v2500_v25 = vmax.f32 %v2498_v2, 0.0 }
0x21c1   :  { %4302 = vmatmul.msk.f32.vlgmr.msrb.gmra.mxu3 %vm162_vm1, %v2500_v25 }
0x21c2   :  { %2870 = vmatpush.msrb.mxu3 %v5555_v5 }
0x21c4   :  { %v2627_v0 = vpop.f32.mrf.mxu2  ;;  %2871 = vmatpush.msrb.mxu3 %v5557_v3 }
0x21c5   :  { %2636 = vrot.lane.b32.xlu1 %v2627_v0, %s4793_s11 }
0x21c6   :  { %2872 = vmatpush.msrb.mxu3 %v5561_v23 }
0x21c8   :  { %2873 = vmatpush.msrb.mxu3 %v5564_v63 }
0x2237   :  { %v2637_v56 = vpop.permute.xlu1 %2636 }
0x2244   :  { %v2525_v40 = vpop.f32.mrf.mxu3 }
0x2245   :  { %v2605_v61 = vadd.f32 %v2525_v40, %v6851_v14 }
0x2247   :  { %v2630_v46 = vadd.f32 %v2627_v0, %v2605_v61 }
0x2249   :  { %v2631_v58 = vmul.f32 0.5, %v2630_v46  ;;  %v5866_v46 = vpop.f32.mrf.mxu0 }
0x224b   :  { %4451 = vtanh.f32 %v2631_v58 }
0x2251   :  { %v4452_v48 = vpop.eup %4451 }
0x2252   :  { %v2633_v7 = vadd.f32 1.0, %v4452_v48  ;;  %v6855_v48 = vld [vmem:[#allocation28_spill] sm:$0xff] }
0x2254   :  { %v2634_v18 = vmul.f32 0.5, %v2633_v7  ;;  %v6856_v7 = vld [vmem:[#allocation32_spill] sm:$0xff] }
0x2256   :  { %v2639_v5 = vmul.f32 %v2637_v56, %v2634_v18  ;;  %v2646_v24 = vsub.f32 1.0, %v2634_v18  ;;  %v2652_v41 = vmul.f32 %v2634_v18, %v5677_v34  ;;  %v6852_v34 = vld [vmem:[#allocation26_spill] sm:$0xff]  ;;  %v6857_v18 = vld [vmem:[#allocation29_spill] sm:$0xff] }
0x2257   :  { %v6858_v56 = vld [vmem:[#allocation33_spill] sm:$0xff] }
0x2258   :  { %2641 = vrot.lane.b32.xlu2 %v2639_v5, %s4793_s11  ;;  %v6859_v5 = vld [vmem:[#allocation30_spill] sm:$0xff] }
0x2260   :  { %2689 = vrot.lane.b32.xlu2 %v5770_v15, %s4793_s11 }
0x22b2   :  { %v2642_v3 = vpop.permute.xlu2 %2641 }
0x22b3   :  { %v2644_v23 = vadd.f32 %v2642_v3, %v2605_v61 }
0x22b5   :  { %4453 = vtanh.f32 %v2644_v23  ;;  %v5884_v23 = vld [vmem:[%s6768_s4 + $0xb] ss:$0 sm:$0xff] }
0x22ba   :  { %v2690_v53 = vpop.permute.xlu2 %2689 }
0x22bb   :  { %v4454_v63 = vpop.eup %4453 }
0x22bc   :  { %2648 = vrot.lane.b32.xlu0 %v4454_v63, %s4790_s23 }
0x232e   :  { %v2649_v14 = vpop.permute.xlu0 %2648 }
0x232f   :  { %v2651_v29 = vmul.f32 %v2649_v14, %v2646_v24 }
0x2331   :  { %v5837_v42 = vadd.f32 %v2652_v41, %v2651_v29 }
0x2333   :  { %2659 = vrot.lane.b32.xlu1 %v5837_v42, %s4790_s23 }
0x233b   :  { %2529 = vrot.lane.b32.xlu1 %v5772_v54, %s4793_s11 }
0x23a5   :  { %v5843_v13 = vpop.permute.xlu1 %2659 }
0x23a6   :  { %4306 = vmatmul.msk.f32.vlgmr.msra.gmra.mxu3 %vm162_vm1, %v5843_v13 }
0x23a7   :  { %3010 = vmatpush.msra.mxu3 %v5618_v32 }
0x23a9   :  { %3011 = vmatpush.msra.mxu3 %v5620_v33 }
0x23ab   :  { %3012 = vmatpush.msra.mxu3 %v5641_v55 }
0x23ad   :  { %3013 = vmatpush.msra.mxu3 %v6852_v34  ;;  %v2530_v36 = vpop.permute.xlu1 %2529 }
0x23ae   :  { %v2532_v60 = vadd.f32 %v2530_v36, %v2525_v40 }
0x23b0   :  { %v2533_v32 = vadd.f32 %v2532_v60, %v5190_v47 }
0x23b2   :  { %v2534_v33 = vmax.f32 %v2533_v32, 0.0  ;;  %v6861_v32 = vld [vmem:[#allocation18_spill] sm:$0xff] }
0x2429   :  { %v2680_v57 = vpop.f32.mrf.mxu3 }
0x242a   :  { %v2683_v62 = vadd.f32 %v2680_v57, %v5770_v15 }
0x242c   :  { %v2684_v35 = vmul.f32 0.5, %v2683_v62 }
0x242e   :  { %4455 = vtanh.f32 %v2684_v35 }
0x2434   :  { %v4456_v8 = vpop.eup %4455 }
0x2435   :  { %v2686_v54 = vadd.f32 1.0, %v4456_v8 }
0x2437   :  { %v2687_v38 = vmul.f32 0.5, %v2686_v54 }
0x2439   :  { %v2692_v19 = vmul.f32 %v2690_v53, %v2687_v38  ;;  %v2699_v2 = vsub.f32 1.0, %v2687_v38  ;;  %v2705_v0 = vmul.f32 %v2687_v38, %v5724_v31  ;;  %v6854_v31 = vld [vmem:[#allocation31_spill] sm:$0xff] }
0x243b   :  { %2694 = vrot.lane.b32.xlu0 %v2692_v19, %s4793_s11 }
0x2443   :  { %2540 = vrot.lane.b32.xlu0 %v2534_v33, %s4791_s25 }
0x24ad   :  { %v2695_v55 = vpop.permute.xlu0 %2694 }
0x24ae   :  { %v2697_v12 = vadd.f32 %v2695_v55, %v2680_v57  ;;  %v2281_v57 = vld [vmem:[%s6764_s0 + $0x20] sm:$0xff] }
0x24b0   :  { %4457 = vtanh.f32 %v2697_v12 }
0x24b5   :  { %v2541_v15 = vpop.permute.xlu0 %2540 }
0x24b6   :  { %v4458_v16 = vpop.eup %4457  ;;  %4303 = vmatmul.msk.f32.vlgmr.msrb.gmra.mxu0 %vm162_vm1, %v2541_v15 }
0x24b7   :  { %2701 = vrot.lane.b32.xlu2 %v4458_v16, %s4790_s23  ;;  %2912 = vmatpush.msrb.mxu0 %v5502_v44 }
0x24b9   :  { %2913 = vmatpush.msrb.mxu0 %v5517_v4 }
0x24bb   :  { %2914 = vmatpush.msrb.mxu0 %v5520_v17 }
0x24bd   :  { %2915 = vmatpush.msrb.mxu0 %v5523_v39  ;;  %v6853_v39 = vld [vmem:[#allocation16_spill] sm:$0xff] }
0x2511   :  { %v2702_v25 = vpop.permute.xlu2 %2701 }
0x2512   :  { %v2704_v40 = vmul.f32 %v2702_v25, %v2699_v2  ;;  %v5918_v2 = vld [vmem:[%s6767_s3 + $0x20] sm:$0xff] }
0x2513   :  { %v5930_v25 = vld [vmem:[%s6767_s3] sm:$0xff] }
0x2514   :  { %v5862_v61 = vadd.f32 %v2705_v0, %v2704_v40 }
0x2516   :  { %2774 = vrot.lane.b32.xlu1 %v5862_v61, %s4790_s23 }
0x2533   :  { %v2561_v58 = vpop.f32.mrf.mxu0 }
0x2534   :  { %v2562_v44 = vadd.f32 %v5743_v45, %v2561_v58 }
0x2536   :  { %v2564_v4 = vmax.f32 %v2562_v44, 0.0 }
0x2538   :  { %4304 = vmatmul.msk.f32.vlgmr.msrb.gmra.mxu1 %vm162_vm1, %v2564_v4 }
0x2539   :  { %2957 = vmatpush.msrb.mxu1 %v5574_v6  ;;  %v6860_v6 = vld [vmem:[#allocation34_spill] sm:$0xff] }
0x2588   :  { %v2775_v17 = vpop.permute.xlu1 %2774 }
0x2589   :  { %4308 = vmatmul.msk.f32.vlgmr.msra.gmra.mxu0 %vm162_vm1, %v2775_v17  ;;  %4309 = vmatmul.msk.f32.vlgmr.msra.gmra.mxu1 %vm162_vm1, %v2775_v17 }
0x258a   :  { %3046 = vmatpush.msra.mxu0 %v6853_v39  ;;  %3074 = vmatpush.msra.mxu1 %v6854_v31 }
0x258c   :  { %3047 = vmatpush.msra.mxu0 %v6855_v48  ;;  %3075 = vmatpush.msra.mxu1 %v6856_v7 }
0x258e   :  { %3048 = vmatpush.msra.mxu0 %v6857_v18  ;;  %3076 = vmatpush.msra.mxu1 %v6858_v56 }
0x2590   :  { %3049 = vmatpush.msra.mxu0 %v6859_v5  ;;  %3077 = vmatpush.msra.mxu1 %v6860_v6  ;;  %v5959_v5 = vld [vmem:[%s6767_s3 + $0x38] sm:$0xff]  ;;  %v5965_v6 = vld [vmem:[%s6767_s3 + $0x28] sm:$0xff] }
0x25b5   :  { %v2589_v3 = vpop.f32.mrf.mxu1 }
0x25b6   :  { %v5887_v63 = vadd.f32 %v5884_v23, %v2589_v3  ;;  %v5971_v3 = vld [vmem:[%s6767_s3 + $0x18] sm:$0xff] }
0x25b8   :  { %v2755_v24 = vand.u32 2147483647, %v5887_v63  ;;  %v2752_v62 = vmax.f32 %v5887_v63, 0.0  ;;  %v2753_v35 = vmul.f32 %v5887_v63, %v2281_v57 }
0x25ba   :  { %v2756_v14 = vsub.f32 0.0, %v2755_v24  ;;  %v2754_v54 = vsub.f32 %v2752_v62, %v2753_v35  ;;  %v5977_v24 = vld [vmem:[%s6767_s3 + $0x8] sm:$0xff] }
0x25bc   :  { %v2757_v41 = vmul.f32 1.442695, %v2756_v14 }
0x25be   :  { %4459 = vpow2.f32 %v2757_v41 }
0x25c4   :  { %v4460_v29 = vpop.eup %4459 }
0x25c5   :  { %v2759_v34 = vadd.f32 1.0, %v4460_v29 }
0x25c7   :  { %4461 = vlog2.f32 %v2759_v34 }
0x25cd   :  { %v4462_v8 = vpop.eup %4461 }
0x25ce   :  { %v2761_v36 = vmul.f32 0.6931472, %v4462_v8 }
0x25d0   :  { %v2762_v38 = vadd.f32 %v2761_v36, %v2754_v54 }
0x25d2   :  { %v5896_v53 = vadd.f32 %v2762_v38, %v5768_v59  ;;  %v5911_v59 = vld [vmem:[%s6767_s3 + $0x30] sm:$0xff] }
0x2606   :  { %v5898_v60 = vpop.f32.mrf.mxu0  ;;  %v5900_v19 = vpop.f32.mrf.mxu1 }
0x2607   :  { %v2818_v33 = vadd.f32 %v5898_v60, %v6861_v32  ;;  %v2891_v55 = vadd.f32 %v5547_v1, %v5900_v19  ;;  %v5924_v1 = vld [vmem:[%s6767_s3 + $0x10] sm:$0xff] }
0x2609   :  { %v2892_v12 = vmax.f32 %v2891_v55, 0.0  ;;  %v2819_v15 = vadd.f32 %v2818_v33, %v4966_v51 }
0x260b   :  { %4312 = vmatmul.msk.f32.vlgmr.msrb.gmra.mxu0 %vm162_vm1, %v2892_v12  ;;  %v2820_v16 = vmax.f32 %v2819_v15, 0.0 }
0x260c   :  { %3280 = vmatpush.msrb.mxu0 %v5911_v59 }
0x260d   :  { %2826 = vrot.lane.b32.xlu2 %v2820_v16, %s4791_s25 }
0x260e   :  { %3281 = vmatpush.msrb.mxu0 %v5918_v2 }
0x2610   :  { %3282 = vmatpush.msrb.mxu0 %v5924_v1 }
0x2612   :  { %3283 = vmatpush.msrb.mxu0 %v5930_v25 }
0x2667   :  { %v2827_v0 = vpop.permute.xlu2 %2826 }
0x2668   :  { %4310 = vmatmul.msk.f32.vlgmr.msra.gmra.mxu2 %vm162_vm1, %v2827_v0 }
0x2669   :  { %3112 = vmatpush.msra.mxu2 %v5606_v52 }
0x266b   :  { %3113 = vmatpush.msra.mxu2 %v5608_v20 }
0x266d   :  { %3114 = vmatpush.msra.mxu2 %v5611_v11 }
0x266f   :  { %3115 = vmatpush.msra.mxu2 %v5614_v50 }
0x26eb   :  { %v2847_v40 = vpop.f32.mrf.mxu2 }
0x26ec   :  { %v2848_v58 = vadd.f32 %v5570_v10, %v2847_v40 }
0x26ee   :  { %v2850_v44 = vmax.f32 %v2848_v58, 0.0 }
0x26f0   :  { %4311 = vmatmul.msk.f32.vlgmr.msrb.gmra.mxu3 %vm162_vm1, %v2850_v44 }
0x26f1   :  { %3165 = vmatpush.msrb.mxu3 %v5660_v22 }
0x26f3   :  { %3166 = vmatpush.msrb.mxu3 %v5662_v21 }
0x26f5   :  { %3167 = vmatpush.msrb.mxu3 %v5665_v49 }
0x26f7   :  { %3168 = vmatpush.msrb.mxu3 %v5668_v27 }
0x2773   :  { %v2875_v52 = vpop.f32.mrf.mxu3 }
0x2774   :  { %v2876_v20 = vadd.f32 %v5580_v30, %v2875_v52  ;;  %v2772_v30 = vld [vmem:[%s6765_s1 + $0x28] sm:$0xff] }
0x2776   :  { %v2883_v11 = vmin.f32 %v2876_v20, 20.0  ;;  %v2878_v50 = vmul.f32 0.5, %v2876_v20  ;;  %vm2882_vm9 = vcmp.gt.f32.partialorder %v2876_v20, 20.0 }
0x2778   :  { %v2884_v4 = vmul.f32 1.442695, %v2883_v11 }
0x277a   :  { %4463 = vpow2.f32 %v2884_v4 }
0x277b   :  { %4465 = vtanh.f32 %v2878_v50 }
0x2780   :  { %v4464_v10 = vpop.eup %4463 }
0x2781   :  { %v2886_v17 = vadd.f32 1.0, %v4464_v10  ;;  %v4466_v39 = vpop.eup %4465 }
0x2782   :  { %v2880_v31 = vadd.f32 1.0, %v4466_v39 }
0x2783   :  { %4467 = vlog2.f32 %v2886_v17 }
0x2784   :  { %v2881_v21 = vmul.f32 0.5, %v2880_v31 }
0x2789   :  { %v4468_v22 = vpop.eup %4467 }
0x278a   :  { %v2888_v48 = vmul.f32 0.6931472, %v4468_v22 }
0x278c   :  { %v2889_v49 = vsel %vm2882_vm9, %v2876_v20, %v2888_v48 }
0x278d   :  { %v5947_v27 = vsel %vm63_vm2, %v2881_v21, %v2889_v49 }
0x278e   :  { %2933 = vrot.lane.b32.xlu0 %v5947_v27, %s4792_s10 }
0x2800   :  { %v2934_v7 = vpop.permute.xlu0 %2933 }
0x2801   :  { %v2936_v18 = vmul.f32 %v2934_v7, %v2772_v30 }
0x2803   :  { %v2937_v56 = vadd.f32 %v2936_v18, %v5947_v27 }
0x2805   :  { %4313 = vmatmul.msk.f32.vlgmr.msrb.gmra.mxu1 %vm483_vm4, %v2937_v56 }
0x2806   :  { %3300 = vmatpush.msrb.mxu1 %v5959_v5 }
0x2808   :  { %3301 = vmatpush.msrb.mxu1 %v5965_v6 }
0x280a   :  { %3302 = vmatpush.msrb.mxu1 %v5971_v3 }
0x280c   :  { %3303 = vmatpush.msrb.mxu1 %v5977_v24 }
0x2882   :  { %v2959_v14 = vpop.f32.mrf.mxu1 }
0x2883   :  { %v2960_v41 = vadd.f32 %v5627_v43, %v2959_v14 }
0x2885   :  { %v2962_v29 = vmax.f32 %v2960_v41, 0.0 }
0x2887   :  { %4314 = vmatmul.msk.f32.vlgmr.msrb.gmra.mxu2 %vm162_vm1, %v2962_v29  ;;  %v6014_v29 = vpop.f32.mrf.mxu0 }
0x288f   :  { %4318 = vmatmul.msk.f32.vlgmr.msra.gmra.mxu2 %vm162_vm1, %v5843_v13 }
0x290a   :  { %v2987_v34 = vpop.f32.mrf.mxu2 }
0x290b   :  { %v2988_v57 = vadd.f32 %v5650_v37, %v2987_v34 }
0x290d   :  { %v2990_v62 = vmax.f32 %v2988_v57, 0.0 }
0x290f   :  { %4315 = vmatmul.msk.f32.vlgmr.msra.gmra.mxu3 %vm162_vm1, %v2990_v62 }
0x2912   :  { %v3117_v35 = vpop.f32.mrf.mxu2 }
0x2913   :  { %3126 = vrot.lane.b32.xlu1 %v3117_v35, %s4793_s11 }
0x2985   :  { %v3127_v12 = vpop.permute.xlu1 %3126 }
0x2992   :  { %v3015_v8 = vpop.f32.mrf.mxu3 }
0x2993   :  { %v3095_v54 = vadd.f32 %v3015_v8, %v6861_v32 }
0x2995   :  { %v3120_v36 = vadd.f32 %v3117_v35, %v3095_v54 }
0x2997   :  { %v3121_v43 = vmul.f32 0.5, %v3120_v36 }
0x2999   :  { %4469 = vtanh.f32 %v3121_v43 }
0x299f   :  { %v4470_v38 = vpop.eup %4469 }
0x29a0   :  { %v3123_v33 = vadd.f32 1.0, %v4470_v38 }
0x29a2   :  { %v3124_v55 = vmul.f32 0.5, %v3123_v33 }
0x29a4   :  { %v3129_v13 = vmul.f32 %v3127_v12, %v3124_v55  ;;  %v3136_v32 = vsub.f32 1.0, %v3124_v55  ;;  %v3142_v40 = vmul.f32 %v3124_v55, %v5837_v42  ;;  %v2771_v55 = vld [vmem:[%s6764_s0 + $0x28] sm:$0xff] }
0x29a6   :  { %3131 = vrot.lane.b32.xlu2 %v3129_v13, %s4793_s11 }
0x29ae   :  { %3179 = vrot.lane.b32.xlu2 %v5898_v60, %s4793_s11 }
0x2a00   :  { %v3132_v37 = vpop.permute.xlu2 %3131 }
0x2a01   :  { %v3134_v15 = vadd.f32 %v3132_v37, %v3095_v54 }
0x2a03   :  { %4471 = vtanh.f32 %v3134_v15 }
0x2a08   :  { %v3180_v39 = vpop.permute.xlu2 %3179 }
0x2a09   :  { %v4472_v16 = vpop.eup %4471 }
0x2a0a   :  { %3138 = vrot.lane.b32.xlu0 %v4472_v16, %s4790_s23 }
0x2a7c   :  { %v3139_v0 = vpop.permute.xlu0 %3138 }
0x2a7d   :  { %v3141_v58 = vmul.f32 %v3139_v0, %v3136_v32 }
0x2a7f   :  { %v5993_v44 = vadd.f32 %v3142_v40, %v3141_v58  ;;  %v6035_v40 = vld [vmem:[#allocation2 + $0xa0] sm:$0xff]  ;;  %v6038_v58 = vld [vmem:[#allocation2 + $0x98] sm:$0xff] }
0x2a81   :  { %3149 = vrot.lane.b32.xlu1 %v5993_v44, %s4790_s23 }
0x2a89   :  { %3019 = vrot.lane.b32.xlu1 %v5900_v19, %s4793_s11 }
0x2af3   :  { %v5999_v52 = vpop.permute.xlu1 %3149 }
0x2af4   :  { %4319 = vmatmul.msk.f32.vlgmr.msrb.gmra.mxu3 %vm162_vm1, %v5999_v52 }
0x2afb   :  { %v3020_v10 = vpop.permute.xlu1 %3019 }
0x2afc   :  { %v3022_v31 = vadd.f32 %v3020_v10, %v3015_v8 }
0x2afe   :  { %v3023_v19 = vadd.f32 %v3022_v31, %v5190_v47  ;;  %v6065_v31 = vld [vmem:[%s6768_s4 + $0x5] ss:$0 sm:$0xff] }
0x2b00   :  { %v3024_v48 = vmax.f32 %v3023_v19, 0.0 }
0x2b77   :  { %v3170_v20 = vpop.f32.mrf.mxu3 }
0x2b78   :  { %v3173_v11 = vadd.f32 %v3170_v20, %v5898_v60 }
0x2b7a   :  { %v3174_v4 = vmul.f32 0.5, %v3173_v11  ;;  %v6044_v11 = vld [vmem:[#allocation2 + $0x68] sm:$0xff] }
0x2b7b   :  { %3332 = vmatpush.msrb.mxu2 %v6044_v11 }
0x2b7c   :  { %4473 = vtanh.f32 %v3174_v4  ;;  %v6046_v4 = vld [vmem:[#allocation2 + $0x60] sm:$0xff] }
0x2b7d   :  { %3333 = vmatpush.msrb.mxu2 %v6046_v4 }
0x2b82   :  { %v4474_v42 = vpop.eup %4473 }
0x2b83   :  { %v3176_v50 = vadd.f32 1.0, %v4474_v42  ;;  %v6052_v42 = vld [vmem:[#allocation2 + $0x50] sm:$0xff] }
0x2b85   :  { %v3177_v17 = vmul.f32 0.5, %v3176_v50 }
0x2b87   :  { %v3182_v22 = vmul.f32 %v3180_v39, %v3177_v17  ;;  %v3189_v7 = vsub.f32 1.0, %v3177_v17  ;;  %v3195_v56 = vmul.f32 %v3177_v17, %v5862_v61  ;;  %v6020_v61 = vld [vmem:[#allocation2 + $0xa8] sm:$0xff]  ;;  %v6862_v17 = vld [vmem:[#allocation19_spill] sm:$0xff] }
0x2b89   :  { %3184 = vrot.lane.b32.xlu0 %v3182_v22, %s4793_s11 }
0x2b91   :  { %3030 = vrot.lane.b32.xlu0 %v3024_v48, %s4791_s25 }
0x2bfb   :  { %v3185_v21 = vpop.permute.xlu0 %3184 }
0x2bfc   :  { %v3187_v49 = vadd.f32 %v3185_v21, %v3170_v20  ;;  %v6041_v20 = vld [vmem:[#allocation2 + $0x90] sm:$0xff] }
0x2bfe   :  { %4475 = vtanh.f32 %v3187_v49 }
0x2c03   :  { %v3031_v60 = vpop.permute.xlu0 %3030 }
0x2c04   :  { %v4476_v30 = vpop.eup %4475  ;;  %4316 = vmatmul.msk.f32.vlgmr.msra.gmra.mxu0 %vm162_vm1, %v3031_v60  ;;  %v6073_v60 = vld [vmem:[#allocation2 + $0x88] sm:$0xff] }
0x2c05   :  { %3191 = vrot.lane.b32.xlu2 %v4476_v30, %s4790_s23  ;;  %3402 = vmatpush.msra.mxu0 %v6020_v61  ;;  %v6075_v30 = vld [vmem:[#allocation2 + $0x80] sm:$0xff] }
0x2c06   :  { %3360 = vmatpush.msra.mxu3 %v6073_v60 }
0x2c07   :  { %3403 = vmatpush.msra.mxu0 %v6035_v40 }
0x2c08   :  { %3361 = vmatpush.msra.mxu3 %v6075_v30 }
0x2c09   :  { %3404 = vmatpush.msra.mxu0 %v6038_v58 }
0x2c0b   :  { %3405 = vmatpush.msra.mxu0 %v6041_v20 }
0x2c5f   :  { %v3192_v18 = vpop.permute.xlu2 %3191 }
0x2c60   :  { %v3194_v14 = vmul.f32 %v3192_v18, %v3189_v7  ;;  %v6079_v7 = vld [vmem:[#allocation2 + $0x78] sm:$0xff]  ;;  %v6082_v18 = vld [vmem:[#allocation2 + $0x70] sm:$0xff] }
0x2c61   :  { %3362 = vmatpush.msra.mxu3 %v6079_v7 }
0x2c62   :  { %v6010_v41 = vadd.f32 %v3195_v56, %v3194_v14  ;;  %v6088_v14 = vld [vmem:[%s6768_s4 + $0x3] ss:$0 sm:$0xff] }
0x2c63   :  { %3363 = vmatpush.msra.mxu3 %v6082_v18 }
0x2c64   :  { %3264 = vrot.lane.b32.xlu1 %v6010_v41, %s4790_s23 }
0x2c81   :  { %v3051_v34 = vpop.f32.mrf.mxu0 }
0x2c82   :  { %v3052_v57 = vadd.f32 %v5743_v45, %v3051_v34 }
0x2c84   :  { %v3054_v62 = vmax.f32 %v3052_v57, 0.0 }
0x2c86   :  { %4317 = vmatmul.msk.f32.vlgmr.msra.gmra.mxu1 %vm162_vm1, %v3054_v62  ;;  %v6092_v62 = vld [vmem:[#allocation2 + $0xb0] sm:$0xff] }
0x2c87   :  { %3447 = vmatpush.msra.mxu1 %v6092_v62 }
0x2cd6   :  { %v3265_v35 = vpop.permute.xlu1 %3264 }
0x2cd7   :  { %4321 = vmatmul.msk.f32.vlgmr.msrb.gmra.mxu0 %vm162_vm1, %v3265_v35  ;;  %4322 = vmatmul.msk.f32.vlgmr.msrb.gmra.mxu1 %vm162_vm1, %v3265_v35 }
0x2d03   :  { %v3079_v8 = vpop.f32.mrf.mxu1 }
0x2d04   :  { %v6024_v54 = vadd.f32 %v5884_v23, %v3079_v8  ;;  %v6098_v8 = vld [vmem:[%s6768_s4 + $0x4] ss:$0 sm:$0xff] }
0x2d06   :  { %v3245_v36 = vand.u32 2147483647, %v6024_v54  ;;  %v3242_v12 = vmax.f32 %v6024_v54, 0.0  ;;  %v3243_v13 = vmul.f32 %v6024_v54, %v2771_v55 }
0x2d08   :  { %v3246_v43 = vsub.f32 0.0, %v3245_v36  ;;  %v3244_v15 = vsub.f32 %v3242_v12, %v3243_v13 }
0x2d0a   :  { %v3247_v45 = vmul.f32 1.442695, %v3246_v43 }
0x2d0c   :  { %4477 = vpow2.f32 %v3247_v45 }
0x2d12   :  { %v4478_v38 = vpop.eup %4477 }
0x2d13   :  { %v3249_v33 = vadd.f32 1.0, %v4478_v38 }
0x2d15   :  { %4479 = vlog2.f32 %v3249_v33 }
0x2d1b   :  { %v4480_v37 = vpop.eup %4479 }
0x2d1c   :  { %v3251_v16 = vmul.f32 0.6931472, %v4480_v37 }
0x2d1e   :  { %v3252_v32 = vadd.f32 %v3251_v16, %v3244_v15 }
0x2d20   :  { %v6033_v0 = vadd.f32 %v3252_v32, %v5896_v53  ;;  %v6049_v53 = vld [vmem:[#allocation2 + $0x58] sm:$0xff] }
0x2d21   :  { %3334 = vmatpush.msrb.mxu2 %v6049_v53 }
0x2d23   :  { %3335 = vmatpush.msrb.mxu2 %v6052_v42 }
0x2d54   :  { %v6056_v50 = vpop.f32.mrf.mxu0  ;;  %v6058_v10 = vpop.f32.mrf.mxu1 }
0x2d55   :  { %v3308_v39 = vadd.f32 %v6056_v50, %v6862_v17  ;;  %v3381_v22 = vadd.f32 %v6065_v31, %v6058_v10 }
0x2d57   :  { %v3382_v19 = vmax.f32 %v3381_v22, 0.0  ;;  %v3309_v48 = vadd.f32 %v3308_v39, %v4966_v51  ;;  %v3456_v22 = vld [vmem:[#allocation2 + $0xd0] sm:$0xff] }
0x2d58   :  { %3472 = vmatpush.msra.mxu2 %v3456_v22 }
0x2d59   :  { %4325 = vmatmul.msk.f32.vlgmr.msra.gmra.mxu0 %vm162_vm1, %v3382_v19  ;;  %v3310_v21 = vmax.f32 %v3309_v48, 0.0  ;;  %v3455_v19 = vld [vmem:[#allocation2 + $0xc8] sm:$0xff]  ;;  %v3262_v48 = vld [vmem:[%s6765_s1 + $0x30] sm:$0xff] }
0x2d5a   :  { %3473 = vmatpush.msra.mxu2 %v3455_v19 }
0x2d5b   :  { %3316 = vrot.lane.b32.xlu2 %v3310_v21, %s4791_s25 }
0x2db5   :  { %v3317_v49 = vpop.permute.xlu2 %3316 }
0x2db6   :  { %4323 = vmatmul.msk.f32.vlgmr.msrb.gmra.mxu2 %vm162_vm1, %v3317_v49 }
0x2e39   :  { %v3337_v56 = vpop.f32.mrf.mxu2 }
0x2e3a   :  { %v3338_v34 = vadd.f32 %v6088_v14, %v3337_v56 }
0x2e3c   :  { %v3340_v57 = vmax.f32 %v3338_v34, 0.0  ;;  %v3454_v34 = vld [vmem:[#allocation2 + $0xc0] sm:$0xff] }
0x2e3d   :  { %3474 = vmatpush.msra.mxu2 %v3454_v34 }
0x2e3e   :  { %4324 = vmatmul.msk.f32.vlgmr.msra.gmra.mxu3 %vm162_vm1, %v3340_v57  ;;  %v3453_v57 = vld [vmem:[#allocation2 + $0xb8] sm:$0xff] }
0x2e3f   :  { %3475 = vmatpush.msra.mxu2 %v3453_v57 }
0x2ec1   :  { %v3365_v35 = vpop.f32.mrf.mxu3 }
0x2ec2   :  { %v3366_v36 = vadd.f32 %v6098_v8, %v3365_v35  ;;  %v3589_v35 = vld [vmem:[#allocation2 + $0x150] sm:$0xff] }
0x2ec3   :  { %3602 = vmatpush.msrb.mxu2 %v3589_v35 }
0x2ec4   :  { %v3373_v43 = vmin.f32 %v3366_v36, 20.0  ;;  %v3368_v38 = vmul.f32 0.5, %v3366_v36  ;;  %vm3372_vm10 = vcmp.gt.f32.partialorder %v3366_v36, 20.0 }
0x2ec6   :  { %v3374_v45 = vmul.f32 1.442695, %v3373_v43  ;;  %v3587_v43 = vld [vmem:[#allocation2 + $0x140] sm:$0xff] }
0x2ec8   :  { %4481 = vpow2.f32 %v3374_v45  ;;  %v3586_v45 = vld [vmem:[#allocation2 + $0x138] sm:$0xff] }
0x2ec9   :  { %4483 = vtanh.f32 %v3368_v38  ;;  %v6112_v38 = vld [vmem:[#allocation2 + $0xf0] sm:$0xff] }
0x2eca   :  { %3500 = vmatpush.msrb.mxu3 %v6112_v38 }
0x2ece   :  { %v4482_v33 = vpop.eup %4481 }
0x2ecf   :  { %v3376_v55 = vadd.f32 1.0, %v4482_v33  ;;  %v4484_v12 = vpop.eup %4483  ;;  %v6114_v33 = vld [vmem:[#allocation2 + $0xe8] sm:$0xff] }
0x2ed0   :  { %v3370_v13 = vadd.f32 1.0, %v4484_v12  ;;  %3501 = vmatpush.msrb.mxu3 %v6114_v33  ;;  %v6121_v12 = vld [vmem:[%s6768_s4 + $0x7] ss:$0 sm:$0xff] }
0x2ed1   :  { %4485 = vlog2.f32 %v3376_v55 }
0x2ed2   :  { %v3371_v16 = vmul.f32 0.5, %v3370_v13 }
0x2ed7   :  { %v4486_v37 = vpop.eup %4485 }
0x2ed8   :  { %v3378_v15 = vmul.f32 0.6931472, %v4486_v37 }
0x2eda   :  { %v3379_v32 = vsel %vm3372_vm10, %v3366_v36, %v3378_v15  ;;  %v3588_v36 = vld [vmem:[#allocation2 + $0x148] sm:$0xff]  ;;  %v3482_v15 = vld [vmem:[#allocation2 + $0xe0] sm:$0xff] }
0x2edb   :  { %v6103_v39 = vsel %vm63_vm2, %v3371_v16, %v3379_v32  ;;  %3603 = vmatpush.msrb.mxu2 %v3588_v36  ;;  %3502 = vmatpush.msrb.mxu3 %v3482_v15  ;;  %v3481_v16 = vld [vmem:[#allocation2 + $0xd8] sm:$0xff] }
0x2edc   :  { %3423 = vrot.lane.b32.xlu0 %v6103_v39, %s4792_s10 }
0x2edd   :  { %3604 = vmatpush.msrb.mxu2 %v3587_v43  ;;  %3503 = vmatpush.msrb.mxu3 %v3481_v16 }
0x2edf   :  { %3605 = vmatpush.msrb.mxu2 %v3586_v45  ;;  %v3636_v45 = vld [vmem:[#allocation2 + $0x168] sm:$0xff] }
0x2f4e   :  { %v3424_v21 = vpop.permute.xlu0 %3423 }
0x2f4f   :  { %v3426_v49 = vmul.f32 %v3424_v21, %v3262_v48 }
0x2f51   :  { %v3427_v56 = vadd.f32 %v3426_v49, %v6103_v39 }
0x2f53   :  { %4326 = vmatmul.msk.f32.vlgmr.msra.gmra.mxu1 %vm483_vm4, %v3427_v56 }
0x2fd0   :  { %v3449_v55 = vpop.f32.mrf.mxu1 }
0x2fd1   :  { %v3450_v13 = vadd.f32 %v6121_v12, %v3449_v55  ;;  %v3635_v55 = vld [vmem:[#allocation2 + $0x160] sm:$0xff] }
0x2fd3   :  { %v3452_v37 = vmax.f32 %v3450_v13, 0.0  ;;  %v3634_v13 = vld [vmem:[#allocation2 + $0x158] sm:$0xff] }
0x2fd5   :  { %4327 = vmatmul.msk.f32.vlgmr.msra.gmra.mxu2 %vm162_vm1, %v3452_v37 }
0x2fd6   :  { %3822 = vmatpush.msra.mxu2 %v6044_v11  ;;  %v6134_v11 = vld [vmem:[%s6768_s4 + $0x8] ss:$0 sm:$0xff] }
0x2fd8   :  { %3823 = vmatpush.msra.mxu2 %v6046_v4 }
0x2fda   :  { %3824 = vmatpush.msra.mxu2 %v6049_v53 }
0x2fdc   :  { %3825 = vmatpush.msra.mxu2 %v6052_v42 }
0x2fdd   :  { %4331 = vmatmul.msk.f32.vlgmr.msrb.gmra.mxu2 %vm162_vm1, %v5999_v52 }
0x2fde   :  { %3962 = vmatpush.msrb.mxu2 %v3456_v22 }
0x2fe0   :  { %3963 = vmatpush.msrb.mxu2 %v3455_v19 }
0x2fe2   :  { %3964 = vmatpush.msrb.mxu2 %v3454_v34 }
0x2fe4   :  { %3965 = vmatpush.msrb.mxu2 %v3453_v57 }
0x3058   :  { %v3477_v32 = vpop.f32.mrf.mxu2 }
0x3059   :  { %v3478_v4 = vadd.f32 %v6134_v11, %v3477_v32 }
0x305b   :  { %v3480_v53 = vmax.f32 %v3478_v4, 0.0 }
0x305d   :  { %4328 = vmatmul.msk.f32.vlgmr.msrb.gmra.mxu3 %vm162_vm1, %v3480_v53 }
0x3060   :  { %v3607_v52 = vpop.f32.mrf.mxu2 }
0x3061   :  { %3616 = vrot.lane.b32.xlu1 %v3607_v52, %s4793_s11 }
0x30d3   :  { %v3617_v34 = vpop.permute.xlu1 %3616 }
0x30e0   :  { %v3505_v42 = vpop.f32.mrf.mxu3 }
0x30e1   :  { %v3585_v22 = vadd.f32 %v3505_v42, %v6862_v17  ;;  %v3637_v17 = vld [vmem:[#allocation2 + $0x170] sm:$0xff] }
0x30e2   :  { %3655 = vmatpush.msra.mxu3 %v3637_v17 }
0x30e3   :  { %v3610_v19 = vadd.f32 %v3607_v52, %v3585_v22 }
0x30e4   :  { %3656 = vmatpush.msra.mxu3 %v3636_v45  ;;  %v3546_v45 = vld [vmem:[#allocation2 + $0x120] sm:$0xff] }
0x30e5   :  { %v3611_v48 = vmul.f32 0.5, %v3610_v19 }
0x30e6   :  { %3657 = vmatpush.msra.mxu3 %v3635_v55 }
0x30e7   :  { %4487 = vtanh.f32 %v3611_v48 }
0x30e8   :  { %3658 = vmatpush.msra.mxu3 %v3634_v13 }
0x30ea   :  { %3850 = vmatpush.msrb.mxu3 %v6073_v60 }
0x30ec   :  { %3851 = vmatpush.msrb.mxu3 %v6075_v30 }
0x30ed   :  { %v4488_v21 = vpop.eup %4487 }
0x30ee   :  { %v3613_v49 = vadd.f32 1.0, %v4488_v21  ;;  %3852 = vmatpush.msrb.mxu3 %v6079_v7 }
0x30f0   :  { %v3614_v56 = vmul.f32 0.5, %v3613_v49  ;;  %3853 = vmatpush.msrb.mxu3 %v6082_v18 }
0x30f2   :  { %v3619_v57 = vmul.f32 %v3617_v34, %v3614_v56  ;;  %v3626_v37 = vsub.f32 1.0, %v3614_v56  ;;  %v3632_v4 = vmul.f32 %v3614_v56, %v5993_v44 }
0x30f4   :  { %3621 = vrot.lane.b32.xlu2 %v3619_v57, %s4793_s11 }
0x30fc   :  { %3669 = vrot.lane.b32.xlu2 %v6056_v50, %s4793_s11 }
0x314e   :  { %v3622_v35 = vpop.permute.xlu2 %3621 }
0x314f   :  { %v3624_v36 = vadd.f32 %v3622_v35, %v3585_v22 }
0x3151   :  { %4489 = vtanh.f32 %v3624_v36 }
0x3156   :  { %v3670_v21 = vpop.permute.xlu2 %3669 }
0x3157   :  { %v4490_v43 = vpop.eup %4489 }
0x3158   :  { %3628 = vrot.lane.b32.xlu0 %v4490_v43, %s4790_s23  ;;  %v3547_v43 = vld [vmem:[#allocation2 + $0x128] sm:$0xff] }
0x31ca   :  { %v3629_v32 = vpop.permute.xlu0 %3628 }
0x31cb   :  { %v3631_v53 = vmul.f32 %v3629_v32, %v3626_v37 }
0x31cd   :  { %v3633_v52 = vadd.f32 %v3632_v4, %v3631_v53  ;;  %v3261_v4 = vld [vmem:[%s6764_s0 + $0x30] sm:$0xff] }
0x31cf   :  { %3639 = vrot.lane.b32.xlu1 %v3633_v52, %s4790_s23 }
0x31d7   :  { %3509 = vrot.lane.b32.xlu1 %v6058_v10, %s4793_s11 }
0x3241   :  { %v3640_v22 = vpop.permute.xlu1 %3639 }
0x3242   :  { %4332 = vmatmul.msk.f32.vlgmr.msra.gmra.mxu3 %vm162_vm1, %v3640_v22 }
0x3243   :  { %3990 = vmatpush.msra.mxu3 %v6112_v38 }
0x3245   :  { %3991 = vmatpush.msra.mxu3 %v6114_v33  ;;  %v3518_v33 = vld [vmem:[#allocation2 + $0x110] sm:$0xff] }
0x3246   :  { %3536 = vmatpush.msrb.mxu0 %v3518_v33 }
0x3247   :  { %3992 = vmatpush.msra.mxu3 %v3482_v15  ;;  %v3517_v15 = vld [vmem:[#allocation2 + $0x108] sm:$0xff] }
0x3248   :  { %3537 = vmatpush.msrb.mxu0 %v3517_v15 }
0x3249   :  { %3993 = vmatpush.msra.mxu3 %v3481_v16  ;;  %v3510_v19 = vpop.permute.xlu1 %3509  ;;  %v3515_v16 = vld [vmem:[#allocation2 + $0xf8] sm:$0xff] }
0x324a   :  { %v3512_v10 = vadd.f32 %v3510_v19, %v3505_v42 }
0x324c   :  { %v3513_v38 = vadd.f32 %v3512_v10, %v5190_v47 }
0x324e   :  { %v3514_v56 = vmax.f32 %v3513_v38, 0.0 }
0x32c5   :  { %v3660_v60 = vpop.f32.mrf.mxu3 }
0x32c6   :  { %v3663_v30 = vadd.f32 %v3660_v60, %v6056_v50  ;;  %v3516_v50 = vld [vmem:[#allocation2 + $0x100] sm:$0xff] }
0x32c7   :  { %3538 = vmatpush.msrb.mxu0 %v3516_v50 }
0x32c8   :  { %v3664_v44 = vmul.f32 0.5, %v3663_v30 }
0x32c9   :  { %3539 = vmatpush.msrb.mxu0 %v3515_v16 }
0x32ca   :  { %4491 = vtanh.f32 %v3664_v44 }
0x32cb   :  { %3770 = vmatpush.msra.mxu0 %v5911_v59  ;;  %v3548_v59 = vld [vmem:[#allocation2 + $0x130] sm:$0xff] }
0x32cc   :  { %3564 = vmatpush.msrb.mxu1 %v3548_v59 }
0x32cd   :  { %3771 = vmatpush.msra.mxu0 %v5918_v2 }
0x32ce   :  { %3565 = vmatpush.msrb.mxu1 %v3547_v43 }
0x32cf   :  { %3772 = vmatpush.msra.mxu0 %v5924_v1 }
0x32d0   :  { %v4492_v7 = vpop.eup %4491  ;;  %3566 = vmatpush.msrb.mxu1 %v3546_v45 }
0x32d1   :  { %v3666_v18 = vadd.f32 1.0, %v4492_v7  ;;  %3773 = vmatpush.msra.mxu0 %v5930_v25  ;;  %v6199_v7 = vld [vmem:[%s6768_s4 + $0x6] ss:$0 sm:$0xff] }
0x32d3   :  { %v3667_v48 = vmul.f32 0.5, %v3666_v18  ;;  %v6863_v18 = vld [vmem:[#allocation12_spill] sm:$0xff] }
0x32d4   :  { %v6203_v19 = vadd.f32 %v6199_v7, %v6863_v18 }
0x32d5   :  { %v3672_v49 = vmul.f32 %v3670_v21, %v3667_v48  ;;  %v3679_v2 = vsub.f32 1.0, %v3667_v48  ;;  %v3685_v25 = vmul.f32 %v3667_v48, %v6010_v41  ;;  %v6208_v21 = vadd.f32 %v6199_v7, %v5866_v46 }
0x32d6   :  { %v960_v48 = vmul.f32 0.5, %v6203_v19  ;;  %vm964_vm12 = vcmp.gt.f32.partialorder %v6203_v19, 20.0 }
0x32d7   :  { %3674 = vrot.lane.b32.xlu0 %v3672_v49, %s4793_s11  ;;  %v2430_v10 = vmul.f32 0.5, %v6208_v21 }
0x32df   :  { %3520 = vrot.lane.b32.xlu0 %v3514_v56, %s4791_s25 }
0x3349   :  { %v3675_v42 = vpop.permute.xlu0 %3674 }
0x334a   :  { %v3677_v34 = vadd.f32 %v3675_v42, %v3660_v60 }
0x334c   :  { %4493 = vtanh.f32 %v3677_v34 }
0x3351   :  { %v3521_v57 = vpop.permute.xlu0 %3520 }
0x3352   :  { %v4494_v35 = vpop.eup %4493  ;;  %4329 = vmatmul.msk.f32.vlgmr.msrb.gmra.mxu0 %vm162_vm1, %v3521_v57  ;;  %v6865_v57 = vld [vmem:[#allocation27_spill] sm:$0xff] }
0x3353   :  { %3681 = vrot.lane.b32.xlu2 %v4494_v35, %s4790_s23  ;;  %3892 = vmatpush.msrb.mxu0 %v6020_v61  ;;  %v3545_v61 = vld [vmem:[#allocation2 + $0x118] sm:$0xff]  ;;  %vm1242_vm15 = vweird.f32 %v6865_v57 }
0x3354   :  { %3567 = vmatpush.msrb.mxu1 %v3545_v61 }
0x3355   :  { %3893 = vmatpush.msrb.mxu0 %v6035_v40  ;;  %v6175_v40 = vpop.f32.mrf.mxu0 }
0x3356   :  { %3790 = vmatpush.msra.mxu1 %v5959_v5 }
0x3357   :  { %3894 = vmatpush.msrb.mxu0 %v6038_v58  ;;  %v4681_v58 = vld [vmem:[%s6768_s4 + $0xa] ss:$0 sm:$0xff] }
0x3358   :  { %3791 = vmatpush.msra.mxu1 %v5965_v6 }
0x3359   :  { %3895 = vmatpush.msrb.mxu0 %v6041_v20 }
0x335a   :  { %3792 = vmatpush.msra.mxu1 %v5971_v3 }
0x335c   :  { %3793 = vmatpush.msra.mxu1 %v5977_v24 }
0x33ad   :  { %v3682_v1 = vpop.permute.xlu2 %3681 }
0x33ae   :  { %v3684_v36 = vmul.f32 %v3682_v1, %v3679_v2 }
0x33b0   :  { %v3686_v17 = vadd.f32 %v3685_v25, %v3684_v36 }
0x33b2   :  { %3754 = vrot.lane.b32.xlu1 %v3686_v17, %s4790_s23 }
0x33cf   :  { %v3541_v41 = vpop.f32.mrf.mxu0 }
0x33d0   :  { %v3542_v20 = vadd.f32 %v4681_v58, %v3541_v41 }
0x33d2   :  { %v3544_v55 = vmax.f32 %v3542_v20, 0.0 }
0x33d4   :  { %4330 = vmatmul.msk.f32.vlgmr.msrb.gmra.mxu1 %vm162_vm1, %v3544_v55 }
0x33d5   :  { %3937 = vmatpush.msrb.mxu1 %v6092_v62 }
0x3424   :  { %v3755_v5 = vpop.permute.xlu1 %3754 }
0x3425   :  { %4334 = vmatmul.msk.f32.vlgmr.msra.gmra.mxu0 %vm162_vm1, %v3755_v5  ;;  %4335 = vmatmul.msk.f32.vlgmr.msra.gmra.mxu1 %vm162_vm1, %v3755_v5 }
0x3426   :  { %4026 = vmatpush.msra.mxu0 %v3518_v33  ;;  %v6864_v33 = vld [vmem:[#allocation20_spill] sm:$0xff] }
0x3428   :  { %4027 = vmatpush.msra.mxu0 %v3517_v15 }
0x342a   :  { %4028 = vmatpush.msra.mxu0 %v3516_v50 }
0x342c   :  { %4029 = vmatpush.msra.mxu0 %v3515_v16 }
0x3451   :  { %v3569_v6 = vpop.f32.mrf.mxu1 }
0x3452   :  { %v6185_v3 = vadd.f32 %v5884_v23, %v3569_v6  ;;  %v6866_v6 = vld [vmem:[#allocation22_spill] sm:$0xff] }
0x3454   :  { %v3735_v24 = vand.u32 2147483647, %v6185_v3  ;;  %v3732_v53 = vmax.f32 %v6185_v3, 0.0  ;;  %v3733_v52 = vmul.f32 %v6185_v3, %v3261_v4 }
0x3456   :  { %v3736_v13 = vsub.f32 0.0, %v3735_v24  ;;  %v3734_v60 = vsub.f32 %v3732_v53, %v3733_v52  ;;  %v6230_v24 = vadd.f32 %v6199_v7, %v6866_v6 }
0x3458   :  { %v3737_v37 = vmul.f32 1.442695, %v3736_v13  ;;  %vm468_vm13 = vcmp.gt.f32.partialorder %v6230_v24, 20.0 }
0x345a   :  { %4495 = vpow2.f32 %v3737_v37  ;;  %v464_v37 = vmul.f32 0.5, %v6230_v24 }
0x3460   :  { %v4496_v32 = vpop.eup %4495 }
0x3461   :  { %v3739_v62 = vadd.f32 1.0, %v4496_v32 }
0x3463   :  { %4497 = vlog2.f32 %v3739_v62  ;;  %v6867_v62 = vld [vmem:[#allocation35_spill] sm:$0xff] }
0x3464   :  { %4499 = vtanh.f32 %v960_v48  ;;  %v6241_v48 = vadd.f32 %v6199_v7, %v6175_v40 }
0x3465   :  { %4501 = vtanh.f32 %v2430_v10 }
0x3469   :  { %v4498_v22 = vpop.eup %4497 }
0x346a   :  { %v3741_v23 = vmul.f32 0.6931472, %v4498_v22 }
0x346c   :  { %v3742_v30 = vadd.f32 %v3741_v23, %v3734_v60 }
0x346e   :  { %v6194_v44 = vadd.f32 %v3742_v30, %v6033_v0  ;;  %v4500_v0 = vpop.eup %4499 }
0x346f   :  { %v962_v49 = vadd.f32 1.0, %v4500_v0  ;;  %v4502_v42 = vpop.eup %4501 }
0x3470   :  { %v2432_v2 = vadd.f32 1.0, %v4502_v42 }
0x3471   :  { %v963_v16 = vmul.f32 0.5, %v962_v49 }
0x3472   :  { %v2433_v25 = vmul.f32 0.5, %v2432_v2 }
0x3473   :  { %v1256_v35 = vsub.f32 %v6865_v57, %v963_v16 }
0x3475   :  { %v1257_v1 = vmul.f32 %v1256_v35, %v1256_v35 }
0x34a2   :  { %v3775_v38 = vpop.f32.mrf.mxu0  ;;  %v3795_v56 = vpop.f32.mrf.mxu1 }
0x34a3   :  { %v3798_v15 = vadd.f32 %v3775_v38, %v6864_v33  ;;  %v3871_v50 = vadd.f32 %v6065_v31, %v3795_v56  ;;  %3999 = vrot.lane.b32.xlu1 %v3795_v56, %s4793_s11  ;;  %v2726_v31 = vsub.f32 %v5799_v26, %v2433_v25  ;;  %v6869_v25 = vld [vmem:[#allocation25_spill] sm:$0xff] }
0x34a5   :  { %v3799_v34 = vadd.f32 %v3798_v15, %v4966_v51  ;;  %v3872_v46 = vmax.f32 %v3871_v50, 0.0  ;;  %v2727_v36 = vmul.f32 %v2726_v31, %v2726_v31  ;;  %v3410_v15 = vmul.f32 0.5, %v6241_v48 }
0x34a7   :  { %v3800_v59 = vmax.f32 %v3799_v34, 0.0  ;;  %4338 = vmatmul.msk.f32.vlgmr.msrb.gmra.mxu0 %vm162_vm1, %v3872_v46  ;;  %v6868_v34 = vld [vmem:[#allocation21_spill] sm:$0xff] }
0x34a8   :  { %vm751_vm5 = vweird.f32 %v6868_v34 }
0x34a9   :  { %3806 = vrot.lane.b32.xlu2 %v3800_v59, %s4791_s25 }
0x34ab   :  { %1259 = vrot.lane.b32.xlu1 %v1257_v1, %s4788_s30 }
0x34b3   :  { %2729 = vrot.lane.b32.xlu1 %v2727_v36, %s4788_s30 }
0x3503   :  { %v3807_v43 = vpop.permute.xlu2 %3806 }
0x3504   :  { %4336 = vmatmul.msk.f32.vlgmr.msra.gmra.mxu2 %vm162_vm1, %v3807_v43 }
0x3524   :  { %v3897_v41 = vpop.f32.mrf.mxu0 }
0x3525   :  { %v6226_v55 = vadd.f32 %v6199_v7, %v3897_v41  ;;  %v469_v41 = vmin.f32 %v6230_v24, 20.0 }
0x3587   :  { %v3827_v51 = vpop.f32.mrf.mxu2 }
0x3588   :  { %v3828_v17 = vadd.f32 %v6088_v14, %v3827_v51  ;;  %v3900_v14 = vmul.f32 0.5, %v6226_v55 }
0x358a   :  { %v3830_v45 = vmax.f32 %v3828_v17, 0.0 }
0x358c   :  { %4337 = vmatmul.msk.f32.vlgmr.msrb.gmra.mxu3 %vm162_vm1, %v3830_v45 }
0x360f   :  { %v3855_v61 = vpop.f32.mrf.mxu3 }
0x3610   :  { %v3856_v58 = vadd.f32 %v6098_v8, %v3855_v61  ;;  %v6236_v8 = vadd.f32 %v6199_v7, %v6867_v62  ;;  %v965_v61 = vmin.f32 %v6203_v19, 20.0 }
0x3612   :  { %v3863_v20 = vmin.f32 %v3856_v58, 20.0  ;;  %v3858_v13 = vmul.f32 0.5, %v3856_v58  ;;  %v1940_v22 = vmul.f32 0.5, %v6236_v8  ;;  %vm3862_vm11 = vcmp.gt.f32.partialorder %v3856_v58, 20.0 }
0x3614   :  { %v3864_v5 = vmul.f32 1.442695, %v3863_v20  ;;  %v470_v20 = vmul.f32 1.442695, %v469_v41 }
0x3616   :  { %4503 = vpow2.f32 %v3864_v5 }
0x3617   :  { %4505 = vtanh.f32 %v3858_v13 }
0x3618   :  { %4507 = vtanh.f32 %v3900_v14 }
0x3619   :  { %4509 = vtanh.f32 %v464_v37 }
0x361c   :  { %v4504_v32 = vpop.eup %4503 }
0x361d   :  { %v3866_v4 = vadd.f32 1.0, %v4504_v32  ;;  %v4506_v53 = vpop.eup %4505 }
0x361e   :  { %v4508_v52 = vpop.eup %4507  ;;  %v3860_v23 = vadd.f32 1.0, %v4506_v53 }
0x361f   :  { %4511 = vlog2.f32 %v3866_v4  ;;  %v4510_v60 = vpop.eup %4509  ;;  %v3902_v30 = vadd.f32 1.0, %v4508_v52 }
0x3620   :  { %4513 = vtanh.f32 %v1940_v22  ;;  %v466_v0 = vadd.f32 1.0, %v4510_v60  ;;  %v3861_v49 = vmul.f32 0.5, %v3860_v23 }
0x3621   :  { %v3903_v56 = vmul.f32 0.5, %v3902_v30  ;;  %4515 = vtanh.f32 %v3410_v15 }
0x3622   :  { %v467_v40 = vmul.f32 0.5, %v466_v0 }
0x3624   :  { %v765_v46 = vsub.f32 %v6868_v34, %v467_v40  ;;  %v1246_v40 = vand.u32 2147483647, %v6865_v57 }
0x3625   :  { %v4512_v18 = vpop.eup %4511 }
0x3626   :  { %v3868_v10 = vmul.f32 0.6931472, %v4512_v18  ;;  %v4514_v16 = vpop.eup %4513  ;;  %v766_v59 = vmul.f32 %v765_v46, %v765_v46  ;;  %v755_v46 = vand.u32 2147483647, %v6868_v34  ;;  %vm1247_vm7 = vcmp.eq.f32.partialorder %v1246_v40, 8.507059e+37 }
0x3627   :  { %v1942_v35 = vadd.f32 1.0, %v4514_v16  ;;  %v4516_v1 = vpop.eup %4515 }
0x3628   :  { %v3869_v38 = vsel %vm3862_vm11, %v3856_v58, %v3868_v10  ;;  %v3412_v36 = vadd.f32 1.0, %v4516_v1  ;;  %v966_v58 = vmul.f32 1.442695, %v965_v61  ;;  %vm756_vm8 = vcmp.eq.f32.partialorder %v755_v46, 8.507059e+37 }
0x3629   :  { %v6245_v33 = vsel %vm63_vm2, %v3861_v49, %v3869_v38  ;;  %v1943_v2 = vmul.f32 0.5, %v1942_v35 }
0x362a   :  { %3913 = vrot.lane.b32.xlu0 %v6245_v33, %s4792_s10  ;;  %v4094_v50 = vsub.f32 %v6245_v33, %v3903_v56  ;;  %v3413_v51 = vmul.f32 0.5, %v3412_v36  ;;  %4517 = vpow2.f32 %v966_v58 }
0x362b   :  { %v2236_v31 = vsub.f32 %v6869_v25, %v1943_v2  ;;  %4519 = vpow2.f32 %v470_v20 }
0x362c   :  { %v4095_v42 = vmul.f32 %v4094_v50, %v4094_v50  ;;  %v3706_v17 = vsub.f32 %v6103_v39, %v3413_v51 }
0x362d   :  { %v2237_v43 = vmul.f32 %v2236_v31, %v2236_v31 }
0x362e   :  { %4097 = vrot.lane.b32.xlu1 %v4095_v42, %s4788_s30  ;;  %v3707_v45 = vmul.f32 %v3706_v17, %v3706_v17 }
0x3630   :  { %v4518_v5 = vpop.eup %4517 }
0x3631   :  { %v968_v6 = vadd.f32 1.0, %v4518_v5  ;;  %v4520_v13 = vpop.eup %4519  ;;  %v3752_v5 = vld [vmem:[%s6765_s1 + $0x38] sm:$0xff]  ;;  %s4794_s1 = smov 16  }
0x3632   :  { %768 = vrot.lane.b32.xlu0 %v766_v59, %s4788_s30  ;;  %v472_v14 = vadd.f32 1.0, %v4520_v13 }
0x3633   :  { %4521 = vlog2.f32 %v968_v6 }
0x3634   :  { %4523 = vrcp.f32 %v6865_v57 }
0x3635   :  { %4525 = vlog2.f32 %v472_v14 }
0x3636   :  { %4527 = vrcp.f32 %v6868_v34 }
0x3639   :  { %v4522_v37 = vpop.eup %4521 }
0x363a   :  { %2239 = vrot.lane.b32.xlu0 %v2237_v43, %s4788_s30  ;;  %v4524_v32 = vpop.eup %4523  ;;  %v970_v62 = vmul.f32 0.6931472, %v4522_v37  ;;  %v6277_v43 = vpop.permute.xlu1 %3999 }
0x363b   :  { %v4526_v4 = vpop.eup %4525  ;;  %v1238_v52 = vmul.f32 %v4524_v32, %v6865_v57  ;;  %vm1243_vm14 = vweird.f32 %v4524_v32 }
0x363c   :  { %v4528_v53 = vpop.eup %4527  ;;  %v474_v22 = vmul.f32 0.6931472, %v4526_v4  ;;  %v971_v60 = vsel %vm964_vm12, %v6203_v19, %v970_v62  ;;  %v1248_v19 = vand.u32 2147483648, %v6865_v57  ;;  %vm1244_vm3 = vmor %vm1242_vm15, %vm1243_vm14  ;;  %v1255_v4 = vmul.f32 %v6865_v57, %v6865_v57 }
0x363d   :  { %v747_v23 = vmul.f32 %v4528_v53, %v6868_v34  ;;  %v1263_v30 = vmul.f32 %v971_v60, %v971_v60  ;;  %v1239_v18 = vsub.f32 1.0, %v1238_v52  ;;  %vm752_vm2 = vweird.f32 %v4528_v53 }
0x363e   :  { %v475_v10 = vsel %vm468_vm13, %v6230_v24, %v474_v22  ;;  %v757_v24 = vand.u32 2147483648, %v6868_v34  ;;  %v1249_v59 = vor.u32 1.1754944e-38, %v1248_v19  ;;  %vm753_vm6 = vmor %vm751_vm5, %vm752_vm2  ;;  %vm1944_vm5 = vcmp.gt.f32.partialorder %v6236_v8, 20.0 }
0x363f   :  { %v748_v0 = vsub.f32 1.0, %v747_v23  ;;  %v6268_v49 = vmul.f32 %v475_v10, %v475_v10  ;;  %4529 = vrcp.f32 %v1263_v30  ;;  %v1240_v38 = vmul.f32 %v4524_v32, %v1239_v18 }
0x3640   :  { %v758_v36 = vor.u32 1.1754944e-38, %v757_v24  ;;  %v1275_v14 = vand.u32 2147483648, %v1263_v30  ;;  %vm1269_vm10 = vweird.f32 %v1263_v30  ;;  %v1273_v62 = vand.u32 2147483647, %v1263_v30 }
0x3641   :  { %v749_v56 = vmul.f32 %v4528_v53, %v748_v0  ;;  %4531 = vrcp.f32 %v6268_v49  ;;  %v1241_v15 = vadd.f32 %v4524_v32, %v1240_v38  ;;  %v784_v38 = vand.u32 2147483648, %v6268_v49 }
0x3642   :  { %3709 = vrot.lane.b32.xlu0 %v3707_v45, %s4788_s30  ;;  %v1260_v37 = vpop.permute.xlu1 %1259  ;;  %v1276_v0 = vor.u32 1.1754944e-38, %v1275_v14  ;;  %vm1274_vm13 = vcmp.eq.f32.partialorder %v1273_v62, 8.507059e+37  ;;  %vm778_vm14 = vweird.f32 %v6268_v49 }
0x3643   :  { %v750_v16 = vadd.f32 %v4528_v53, %v749_v56  ;;  %v1245_v42 = vsel %vm1244_vm3, %v4524_v32, %v1241_v15  ;;  %v785_v24 = vor.u32 1.1754944e-38, %v784_v38 }
0x3644   :  { %v1250_v31 = vsel %vm1247_vm7, %v1249_v59, %v1245_v42 }
0x3645   :  { %v4530_v50 = vpop.eup %4529  ;;  %v754_v1 = vsel %vm753_vm6, %v4528_v53, %v750_v16  ;;  %v1251_v61 = vmul.f32 %v1250_v31, %v971_v60  ;;  %v1262_v60 = vadd.f32 %v1260_v37, %v1255_v4  ;;  %v764_v16 = vmul.f32 %v6868_v34, %v6868_v34 }
0x3646   :  { %v1265_v35 = vmul.f32 %v4530_v50, %v1263_v30  ;;  %v759_v45 = vsel %vm756_vm8, %v758_v36, %v754_v1  ;;  %vm1270_vm9 = vweird.f32 %v4530_v50  ;;  %v782_v30 = vand.u32 2147483647, %v6268_v49 }
0x3647   :  { %v4532_v2 = vpop.eup %4531  ;;  %v760_v41 = vmul.f32 %v759_v45, %v475_v10  ;;  %4533 = vlog2.f32 %v1251_v61  ;;  %vm1271_vm11 = vmor %vm1269_vm10, %vm1270_vm9  ;;  %v6302_v37 = vadd.f32 %v6199_v7, %v6014_v29  ;;  %vm2434_vm10 = vcmp.gt.f32.partialorder %v6208_v21, 20.0 }
0x3648   :  { %v1266_v51 = vsub.f32 1.0, %v1265_v35  ;;  %v774_v17 = vmul.f32 %v4532_v2, %v6268_v49  ;;  %vm779_vm12 = vweird.f32 %v4532_v2  ;;  %vm783_vm2 = vcmp.eq.f32.partialorder %v782_v30, 8.507059e+37 }
0x3649   :  { %4535 = vlog2.f32 %v760_v41  ;;  %vm780_vm15 = vmor %vm778_vm14, %vm779_vm12  ;;  %vm2222_vm14 = vweird.f32 %v6869_v25 }
0x364a   :  { %v1267_v58 = vmul.f32 %v4530_v50, %v1266_v51  ;;  %v775_v20 = vsub.f32 1.0, %v774_v17 }
0x364c   :  { %v1268_v6 = vadd.f32 %v4530_v50, %v1267_v58  ;;  %v776_v13 = vmul.f32 %v4532_v2, %v775_v20 }
0x364d   :  { %v4534_v52 = vpop.eup %4533 }
0x364e   :  { %v1272_v22 = vsel %vm1271_vm11, %v4530_v50, %v1268_v6  ;;  %v777_v18 = vadd.f32 %v4532_v2, %v776_v13  ;;  %v1253_v56 = vmul.f32 0.6931472, %v4534_v52  ;;  %v6870_v6 = vld [vmem:[#allocation23_spill] sm:$0xff] }
0x364f   :  { %v4536_v10 = vpop.eup %4535  ;;  %v1277_v15 = vsel %vm1274_vm13, %v1276_v0, %v1272_v22  ;;  %v1448_v13 = vadd.f32 %v6199_v7, %v6870_v6  ;;  %vm2924_vm13 = vcmp.gt.f32.partialorder %v6302_v37, 20.0 }
0x3650   :  { %v1278_v19 = vmul.f32 %v1277_v15, %v1262_v60  ;;  %v781_v50 = vsel %vm780_vm15, %v4532_v2, %v777_v18  ;;  %v762_v40 = vmul.f32 0.6931472, %v4536_v10  ;;  %v1254_v46 = vmul.f32 2.0, %v1253_v56 }
0x3651   :  { %v786_v59 = vsel %vm783_vm2, %v785_v24, %v781_v50  ;;  %v1450_v14 = vmul.f32 0.5, %v1448_v13  ;;  %v1455_v29 = vmin.f32 %v1448_v13, 20.0  ;;  %v2435_v50 = vmin.f32 %v6208_v21, 20.0 }
0x3652   :  { %v1279_v1 = vadd.f32 %v1278_v19, %v1254_v46  ;;  %v763_v31 = vmul.f32 2.0, %v762_v40  ;;  %v2925_v46 = vmin.f32 %v6302_v37, 20.0  ;;  %vm1454_vm3 = vcmp.gt.f32.partialorder %v1448_v13, 20.0 }
0x3653   :  { %4537 = vtanh.f32 %v1450_v14  ;;  %v1456_v0 = vmul.f32 1.442695, %v1455_v29 }
0x3654   :  { %v4268_v17 = vadd.f32 -1.0, %v1279_v1  ;;  %v2926_v1 = vmul.f32 1.442695, %v2925_v46 }
0x369c   :  { %v3914_v32 = vpop.permute.xlu0 %3913 }
0x369d   :  { %v3916_v53 = vmul.f32 %v3914_v32, %v3752_v5  ;;  %v4538_v32 = vpop.eup %4537 }
0x369f   :  { %v3917_v23 = vadd.f32 %v3916_v53, %v6245_v33  ;;  %v1452_v53 = vadd.f32 1.0, %v4538_v32 }
0x36a1   :  { %4339 = vmatmul.msk.f32.vlgmr.msrb.gmra.mxu1 %vm483_vm4, %v3917_v23  ;;  %v1453_v22 = vmul.f32 0.5, %v1452_v53  ;;  %v6871_v23 = vld [vmem:[#allocation15_spill] sm:$0xff] }
0x36a2   :  { %vm1732_vm7 = vweird.f32 %v6871_v23 }
0x36a3   :  { %v1746_v18 = vsub.f32 %v6871_v23, %v1453_v22 }
0x36a4   :  { %v769_v42 = vpop.permute.xlu0 %768 }
0x36a5   :  { %v771_v35 = vadd.f32 %v769_v42, %v764_v16  ;;  %v1747_v10 = vmul.f32 %v1746_v18, %v1746_v18  ;;  %v2436_v16 = vmul.f32 1.442695, %v2435_v50  ;;  %v6872_v18 = vld [vmem:[#allocation13_spill] sm:$0xff] }
0x36a6   :  { %v636_v29 = vmin.f32 %v6872_v18, 20.0 }
0x36a7   :  { %v787_v36 = vmul.f32 %v786_v59, %v771_v35 }
0x36a9   :  { %v788_v51 = vadd.f32 %v787_v36, %v763_v31  ;;  %v3415_v31 = vmin.f32 %v6241_v48, 20.0 }
0x36ab   :  { %v4255_v49 = vadd.f32 -1.0, %v788_v51 }
0x36ad   :  { %v6292_v45 = vadd.f32 %v4268_v17, %v4255_v49  ;;  %v3905_v17 = vmin.f32 %v6226_v55, 20.0 }
0x371e   :  { %v3939_v61 = vpop.f32.mrf.mxu1 }
0x371f   :  { %v3940_v2 = vadd.f32 %v6121_v12, %v3939_v61  ;;  %v2920_v12 = vmul.f32 0.5, %v6302_v37  ;;  %v3416_v61 = vmul.f32 1.442695, %v3415_v31 }
0x3721   :  { %v3942_v41 = vmax.f32 %v3940_v2, 0.0  ;;  %4539 = vtanh.f32 %v2920_v12 }
0x3722   :  { %4541 = vpow2.f32 %v1456_v0  ;;  %v1736_v0 = vand.u32 2147483647, %v6871_v23 }
0x3723   :  { %4340 = vmatmul.msk.f32.vlgmr.msrb.gmra.mxu2 %vm162_vm1, %v3942_v41 }
0x3724   :  { %vm1737_vm9 = vcmp.eq.f32.partialorder %v1736_v0, 8.507059e+37 }
0x3727   :  { %v4540_v60 = vpop.eup %4539 }
0x3728   :  { %v2922_v7 = vadd.f32 1.0, %v4540_v60  ;;  %v4542_v30 = vpop.eup %4541 }
0x3729   :  { %v1458_v19 = vadd.f32 1.0, %v4542_v30 }
0x372a   :  { %v2923_v38 = vmul.f32 0.5, %v2922_v7 }
0x37a6   :  { %v3967_v58 = vpop.f32.mrf.mxu2 }
0x37a7   :  { %v3968_v20 = vadd.f32 %v6134_v11, %v3967_v58 }
0x37a9   :  { %v3970_v5 = vmax.f32 %v3968_v20, 0.0  ;;  %v3906_v20 = vmul.f32 1.442695, %v3905_v17 }
0x37ab   :  { %4341 = vmatmul.msk.f32.vlgmr.msra.gmra.mxu3 %vm162_vm1, %v3970_v5 }
0x382e   :  { %v3995_v62 = vpop.f32.mrf.mxu3 }
0x382f   :  { %v4002_v4 = vadd.f32 %v6277_v43, %v3995_v62  ;;  %v3216_v43 = vsub.f32 %v5947_v27, %v2923_v38 }
0x3831   :  { %v4003_v11 = vadd.f32 %v4002_v4, %v5190_v47  ;;  %v1945_v47 = vmin.f32 %v6236_v8, 20.0  ;;  %v3217_v56 = vmul.f32 %v3216_v43, %v3216_v43  ;;  %v6875_v43 = vld [vmem:[#allocation14_spill] sm:$0xff] }
0x3833   :  { %v4004_v52 = vmax.f32 %v4003_v11, 0.0  ;;  %v1946_v15 = vmul.f32 1.442695, %v1945_v47  ;;  %v1127_v47 = vmin.f32 %v6875_v43, 20.0 }
0x3835   :  { %4010 = vrot.lane.b32.xlu2 %v4004_v52, %s4791_s25  ;;  %4543 = vpow2.f32 %v1946_v15  ;;  %v1128_v31 = vmul.f32 1.442695, %v1127_v47 }
0x3836   :  { %4545 = vlog2.f32 %v1458_v19 }
0x3837   :  { %4547 = vrcp.f32 %v6871_v23 }
0x3838   :  { %4549 = vpow2.f32 %v2436_v16 }
0x383b   :  { %v4544_v40 = vpop.eup %4543 }
0x383c   :  { %v4546_v24 = vpop.eup %4545  ;;  %v1948_v42 = vadd.f32 1.0, %v4544_v40 }
0x383d   :  { %1749 = vrot.lane.b32.xlu2 %v1747_v10, %s4788_s30  ;;  %v1460_v35 = vmul.f32 0.6931472, %v4546_v24  ;;  %v4548_v59 = vpop.eup %4547  ;;  %v637_v24 = vmul.f32 1.442695, %v636_v29 }
0x383e   :  { %4551 = vlog2.f32 %v1948_v42  ;;  %v4550_v51 = vpop.eup %4549  ;;  %v1728_v49 = vmul.f32 %v4548_v59, %v6871_v23  ;;  %vm1733_vm6 = vweird.f32 %v4548_v59 }
0x383f   :  { %v6317_v36 = vsel %vm1454_vm3, %v1448_v13, %v1460_v35  ;;  %4553 = vpow2.f32 %v2926_v1  ;;  %v2438_v58 = vadd.f32 1.0, %v4550_v51  ;;  %vm6346_vm8 = vmor %vm1732_vm7, %vm1733_vm6  ;;  %vm3414_vm3 = vcmp.gt.f32.partialorder %v6241_v48, 20.0 }
0x3840   :  { %v6323_v41 = vmul.f32 %v6317_v36, %v6317_v36  ;;  %4555 = vrcp.f32 %v6869_v25  ;;  %v1729_v5 = vsub.f32 1.0, %v1728_v49  ;;  %vm3904_vm7 = vcmp.gt.f32.partialorder %v6226_v55, 20.0 }
0x3841   :  { %4557 = vpow2.f32 %v3416_v61 }
0x3842   :  { %4559 = vrcp.f32 %v6323_v41  ;;  %v1730_v14 = vmul.f32 %v4548_v59, %v1729_v5  ;;  %vm1759_vm11 = vweird.f32 %v6323_v41  ;;  %v1765_v0 = vand.u32 2147483648, %v6323_v41 }
0x3843   :  { %4561 = vlog2.f32 %v2438_v58 }
0x3844   :  { %v4552_v2 = vpop.eup %4551  ;;  %4563 = vpow2.f32 %v3906_v20  ;;  %v1731_v52 = vadd.f32 %v4548_v59, %v1730_v14 }
0x3845   :  { %3219 = vrot.lane.b32.xlu2 %v3217_v56, %s4788_s30  ;;  %v1950_v6 = vmul.f32 0.6931472, %v4552_v2  ;;  %v4554_v13 = vpop.eup %4553  ;;  %4565 = vrcp.f32 %v5799_v26 }
0x3846   :  { %v6331_v32 = vpop.eup %4555  ;;  %v2928_v62 = vadd.f32 1.0, %v4554_v13  ;;  %v1735_v15 = vsel %vm6346_vm8, %v4548_v59, %v1731_v52  ;;  %vm2712_vm8 = vweird.f32 %v5799_v26 }
0x3847   :  { %v6329_v12 = vsel %vm1944_vm5, %v6236_v8, %v1950_v6  ;;  %v4558_v4 = vpop.eup %4557  ;;  %v2218_v60 = vmul.f32 %v6331_v32, %v6869_v25  ;;  %v1738_v8 = vand.u32 2147483648, %v6871_v23  ;;  %vm2223_vm12 = vweird.f32 %v6331_v32 }
0x3848   :  { %v6334_v11 = vpop.eup %4559  ;;  %v6338_v53 = vmul.f32 %v6329_v12, %v6329_v12  ;;  %4567 = vlog2.f32 %v2928_v62  ;;  %v3418_v10 = vadd.f32 1.0, %v4558_v4  ;;  %v2226_v62 = vand.u32 2147483647, %v6869_v25  ;;  %vm6396_vm15 = vmor %vm2222_vm14, %vm2223_vm12 }
0x3849   :  { %v4562_v22 = vpop.eup %4561  ;;  %v1755_v19 = vmul.f32 %v6334_v11, %v6323_v41  ;;  %v2219_v40 = vsub.f32 1.0, %v2218_v60  ;;  %v1739_v16 = vor.u32 1.1754944e-38, %v1738_v8  ;;  %vm1760_vm2 = vweird.f32 %v6334_v11 }
0x384a   :  { %v4564_v7 = vpop.eup %4563  ;;  %4569 = vrcp.f32 %v6338_v53  ;;  %v2440_v30 = vmul.f32 0.6931472, %v4562_v22  ;;  %vm2227_vm6 = vcmp.eq.f32.partialorder %v2226_v62, 8.507059e+37 }
0x384b   :  { %v6351_v56 = vpop.eup %4565  ;;  %v3908_v50 = vadd.f32 1.0, %v4564_v7  ;;  %4571 = vlog2.f32 %v3418_v10  ;;  %v1740_v46 = vsel %vm1737_vm9, %v1739_v16, %v1735_v15  ;;  %v1756_v1 = vsub.f32 1.0, %v1755_v19  ;;  %vm6437_vm9 = vmor %vm1759_vm11, %vm1760_vm2 }
0x384c   :  { %4573 = vrcp.f32 %v5947_v27  ;;  %v2708_v42 = vmul.f32 %v6351_v56, %v5799_v26  ;;  %v6363_v59 = vsel %vm2434_vm10, %v6208_v21, %v2440_v30  ;;  %v2220_v51 = vmul.f32 %v6331_v32, %v2219_v40 }
0x384d   :  { %4575 = vrcp.f32 %v6103_v39  ;;  %v1741_v49 = vmul.f32 %v1740_v46, %v6317_v36  ;;  %v6372_v61 = vmul.f32 %v6363_v59, %v6363_v59  ;;  %v1757_v20 = vmul.f32 %v6334_v11, %v1756_v1 }
0x384e   :  { %v4568_v35 = vpop.eup %4567  ;;  %4577 = vlog2.f32 %v3908_v50  ;;  %v2709_v58 = vsub.f32 1.0, %v2708_v42  ;;  %v2221_v6 = vadd.f32 %v6331_v32, %v2220_v51  ;;  %v2228_v36 = vand.u32 2147483648, %v6869_v25 }
0x384f   :  { %4579 = vpow2.f32 %v637_v24  ;;  %v2930_v2 = vmul.f32 0.6931472, %v4568_v35  ;;  %v1758_v7 = vadd.f32 %v6334_v11, %v1757_v20  ;;  %v1763_v10 = vand.u32 2147483647, %v6323_v41 }
0x3850   :  { %v6367_v17 = vpop.eup %4569  ;;  %4581 = vrcp.f32 %v6245_v33  ;;  %v2710_v60 = vmul.f32 %v6351_v56, %v2709_v58  ;;  %v2229_v47 = vor.u32 1.1754944e-38, %v2228_v36  ;;  %vm2713_vm5 = vweird.f32 %v6351_v56 }
0x3851   :  { %v4572_v21 = vpop.eup %4571  ;;  %4583 = vpow2.f32 %v1128_v31  ;;  %v2245_v13 = vmul.f32 %v6367_v17, %v6338_v53  ;;  %v6391_v52 = vsel %vm2924_vm13, %v6302_v37, %v2930_v2  ;;  %v2225_v37 = vsel %vm6396_vm15, %v6331_v32, %v2221_v6  ;;  %vm6451_vm10 = vmor %vm2712_vm8, %vm2713_vm5 }
0x3852   :  { %v6377_v5 = vpop.eup %4573  ;;  %4585 = vlog2.f32 %v1741_v49  ;;  %v3420_v22 = vmul.f32 0.6931472, %v4572_v21  ;;  %v6415_v50 = vmul.f32 %v6391_v52, %v6391_v52  ;;  %v2711_v32 = vadd.f32 %v6351_v56, %v2710_v60 }
0x3853   :  { %v6384_v14 = vpop.eup %4575  ;;  %4587 = vrcp.f32 %v6372_v61  ;;  %v2246_v30 = vsub.f32 1.0, %v2245_v13  ;;  %v3198_v15 = vmul.f32 %v6377_v5, %v5947_v27  ;;  %v2718_v46 = vand.u32 2147483648, %v5799_v26 }
0x3854   :  { %v4578_v4 = vpop.eup %4577  ;;  %v3688_v16 = vmul.f32 %v6384_v14, %v6103_v39  ;;  %v6421_v24 = vsel %vm3414_vm3, %v6241_v48, %v3420_v22  ;;  %v2230_v1 = vsel %vm2227_vm6, %v2229_v47, %v2225_v37  ;;  %v1766_v31 = vor.u32 1.1754944e-38, %v1765_v0 }
0x3855   :  { %v6394_v8 = vpop.eup %4579  ;;  %v3910_v40 = vmul.f32 0.6931472, %v4578_v4  ;;  %v2716_v48 = vand.u32 2147483647, %v5799_v26  ;;  %v3199_v2 = vsub.f32 1.0, %v3198_v15  ;;  %4589 = vrcp.f32 %v6415_v50 }
0x3856   :  { %v6404_v38 = vpop.eup %4581  ;;  %v6444_v58 = vmul.f32 %v6421_v24, %v6421_v24  ;;  %v3689_v41 = vsub.f32 1.0, %v3688_v16  ;;  %v2715_v6 = vsel %vm6451_vm10, %v6351_v56, %v2711_v32  ;;  %v2247_v36 = vmul.f32 %v6367_v17, %v2246_v30 }
0x3857   :  { %v6411_v19 = vpop.eup %4583  ;;  %v4076_v35 = vmul.f32 %v6404_v38, %v6245_v33  ;;  %v6447_v21 = vsel %vm3904_vm7, %v6226_v55, %v3910_v40  ;;  %v1762_v62 = vsel %vm6437_vm9, %v6334_v11, %v1758_v7  ;;  %v2719_v55 = vor.u32 1.1754944e-38, %v2718_v46 }
0x3858   :  { %v4586_v42 = vpop.eup %4585  ;;  %v2231_v60 = vmul.f32 %v2230_v1, %v6329_v12  ;;  %v6467_v29 = vmul.f32 %v6447_v21, %v6447_v21  ;;  %vm2717_vm11 = vcmp.eq.f32.partialorder %v2716_v48, 8.507059e+37  ;;  %vm1764_vm12 = vcmp.eq.f32.partialorder %v1763_v10, 8.507059e+37 }
0x3859   :  { %v6428_v51 = vpop.eup %4587  ;;  %v1743_v13 = vmul.f32 0.6931472, %v4586_v42  ;;  %v4077_v22 = vsub.f32 1.0, %v4076_v35  ;;  %v3200_v56 = vmul.f32 %v6377_v5, %v3199_v2  ;;  %4591 = vrcp.f32 %v6444_v58 }
0x385a   :  { %v2735_v4 = vmul.f32 %v6428_v51, %v6372_v61  ;;  %v2720_v0 = vsel %vm2717_vm11, %v2719_v55, %v2715_v6  ;;  %v3690_v11 = vmul.f32 %v6384_v14, %v3689_v41  ;;  %v6472_v7 = vsel %vm1764_vm12, %v1766_v31, %v1762_v62 }
0x385b   :  { %v2253_v37 = vand.u32 2147483647, %v6338_v53  ;;  %v2255_v47 = vand.u32 2147483648, %v6338_v53  ;;  %v6476_v12 = vmul.f32 2.0, %v1743_v13  ;;  %v6480_v30 = vmul.f32 %v6871_v23, %v6871_v23  ;;  %v6482_v10 = vpop.eup %4589 }
0x385c   :  { %v2736_v15 = vsub.f32 1.0, %v2735_v4  ;;  %v4078_v40 = vmul.f32 %v6404_v38, %v4077_v22  ;;  %4593 = vlog2.f32 %v2231_v60  ;;  %v6486_v16 = vadd.f32 %v6367_v17, %v2247_v36 }
0x385d   :  { %vm2250_vm13 = vweird.f32 %v6367_v17  ;;  %4595 = vrcp.f32 %v6467_v29  ;;  %v2721_v32 = vmul.f32 %v2720_v0, %v6363_v59  ;;  %v3201_v42 = vadd.f32 %v6377_v5, %v3200_v56 }
0x385e   :  { %vm3203_vm14 = vweird.f32 %v6377_v5  ;;  %v2743_v46 = vand.u32 2147483647, %v6372_v61  ;;  %vm2249_vm15 = vweird.f32 %v6338_v53  ;;  %v3691_v35 = vadd.f32 %v6384_v14, %v3690_v11 }
0x385f   :  { %vm3693_vm2 = vweird.f32 %v6384_v14  ;;  %v3208_v1 = vand.u32 2147483648, %v5947_v27  ;;  %v3698_v31 = vand.u32 2147483648, %v6103_v39  ;;  %vm3202_vm3 = vweird.f32 %v5947_v27  ;;  %v6503_v49 = vpop.eup %4591 }
0x3860   :  { %v3206_v59 = vand.u32 2147483647, %v5947_v27  ;;  %v3225_v48 = vmul.f32 %v6482_v10, %v6415_v50  ;;  %v4079_v2 = vadd.f32 %v6404_v38, %v4078_v40  ;;  %vm4081_vm5 = vweird.f32 %v6404_v38  ;;  %vm6511_vm7 = vmor %vm3202_vm3, %vm3203_vm14 }
0x3861   :  { %vm3692_vm6 = vweird.f32 %v6103_v39  ;;  %v3696_v20 = vand.u32 2147483647, %v6103_v39  ;;  %4597 = vlog2.f32 %v2721_v32  ;;  %v2737_v6 = vmul.f32 %v6428_v51, %v2736_v15 }
0x3862   :  { %v4086_v36 = vand.u32 2147483648, %v6245_v33  ;;  %vm6519_vm8 = vmor %vm3692_vm6, %vm3693_vm2  ;;  %v3205_v62 = vsel %vm6511_vm7, %v6377_v5, %v3201_v42  ;;  %v4594_v55 = vpop.eup %4593  ;;  %vm4080_vm9 = vweird.f32 %v6245_v33  ;;  %v4084_v4 = vand.u32 2147483647, %v6245_v33 }
0x3863   :  { %v3695_v22 = vsel %vm6519_vm8, %v6384_v14, %v3691_v35  ;;  %v3209_v60 = vor.u32 1.1754944e-38, %v3208_v1  ;;  %v6531_v56 = vpop.eup %4595  ;;  %v2745_v0 = vand.u32 2147483648, %v6372_v61  ;;  %vm6536_vm10 = vmor %vm4080_vm9, %vm4081_vm5  ;;  %v3699_v5 = vor.u32 1.1754944e-38, %v3698_v31 }
0x3864   :  { %v3715_v15 = vmul.f32 %v6503_v49, %v6444_v58  ;;  %vm3207_vm11 = vcmp.eq.f32.partialorder %v3206_v59, 8.507059e+37  ;;  %v4083_v14 = vsel %vm6536_vm10, %v6404_v38, %v4079_v2  ;;  %vm3697_vm12 = vcmp.eq.f32.partialorder %v3696_v20, 8.507059e+37  ;;  %vm6558_vm6 = vmor %vm2249_vm15, %vm2250_vm13  ;;  %v2240_v2 = vpop.permute.xlu0 %2239 }
0x3865   :  { %v3210_v40 = vsel %vm3207_vm11, %v3209_v60, %v3205_v62  ;;  %v3226_v32 = vsub.f32 1.0, %v3225_v48  ;;  %v2738_v42 = vadd.f32 %v6428_v51, %v2737_v6  ;;  %vm2740_vm14 = vweird.f32 %v6428_v51 }
0x3866   :  { %v4087_v35 = vor.u32 1.1754944e-38, %v4086_v36  ;;  %v3700_v1 = vsel %vm3697_vm12, %v3699_v5, %v3695_v22  ;;  %vm4085_vm2 = vcmp.eq.f32.partialorder %v4084_v4, 8.507059e+37  ;;  %v4103_v31 = vmul.f32 %v6531_v56, %v6467_v29  ;;  %v2730_v5 = vpop.permute.xlu1 %2729 }
0x3867   :  { %vm6549_vm3 = vcmp.eq.f32.partialorder %v2253_v37, 8.507059e+37  ;;  %v2256_v59 = vor.u32 1.1754944e-38, %v2255_v47  ;;  %v4598_v13 = vpop.eup %4597  ;;  %vm2739_vm5 = vweird.f32 %v6372_v61  ;;  %v3716_v20 = vsub.f32 1.0, %v3715_v15 }
0x3868   :  { %v4088_v38 = vsel %vm4085_vm2, %v4087_v35, %v4083_v14  ;;  %v3211_v37 = vmul.f32 %v3210_v40, %v6391_v52  ;;  %vm6565_vm7 = vmor %vm2739_vm5, %vm2740_vm14  ;;  %v2235_v61 = vmul.f32 %v6869_v25, %v6869_v25  ;;  %v2252_v53 = vsel %vm6558_vm6, %v6367_v17, %v6486_v16 }
0x3869   :  { %v3701_v36 = vmul.f32 %v3700_v1, %v6421_v24  ;;  %v3227_v52 = vmul.f32 %v6482_v10, %v3226_v32  ;;  %v2742_v62 = vsel %vm6565_vm7, %v6428_v51, %v2738_v42  ;;  %vm6581_vm13 = vcmp.eq.f32.partialorder %v2743_v46, 8.507059e+37  ;;  %v6896_v32 = vld [vmem:[#allocation24_spill] sm:$0xff] }
0x386a   :  { %v2746_v22 = vor.u32 1.1754944e-38, %v2745_v0  ;;  %v2233_v60 = vmul.f32 0.6931472, %v4594_v55  ;;  %v2723_v11 = vmul.f32 0.6931472, %v4598_v13  ;;  %v2725_v17 = vmul.f32 %v5799_v26, %v5799_v26 }
0x386b   :  { %v4089_v24 = vmul.f32 %v4088_v38, %v6447_v21  ;;  %v4104_v16 = vsub.f32 1.0, %v4103_v31  ;;  %v3717_v15 = vmul.f32 %v6503_v49, %v3716_v20  ;;  %4599 = vlog2.f32 %v3211_v37 }
0x386c   :  { %v3233_v14 = vand.u32 2147483647, %v6415_v50  ;;  %v3235_v51 = vand.u32 2147483648, %v6415_v50  ;;  %v2242_v46 = vadd.f32 %v2240_v2, %v2235_v61  ;;  %4601 = vlog2.f32 %v3701_v36 }
0x386d   :  { %v6592_v0 = vadd.f32 %v6482_v10, %v3227_v52  ;;  %vm3230_vm15 = vweird.f32 %v6482_v10  ;;  %v2747_v55 = vsel %vm6581_vm13, %v2746_v22, %v2742_v62  ;;  %v2234_v21 = vmul.f32 2.0, %v2233_v60 }
0x386e   :  { %v2257_v40 = vsel %vm6549_vm3, %v2256_v59, %v2252_v53  ;;  %v1617_v42 = vmin.f32 %v6896_v32, 20.0  ;;  %v2732_v35 = vadd.f32 %v2730_v5, %v2725_v17  ;;  %4603 = vlog2.f32 %v4089_v24  ;;  %v3710_v53 = vpop.permute.xlu0 %3709  ;;  %v4098_v60 = vpop.permute.xlu1 %4097 }
0x386f   :  { %v4105_v1 = vmul.f32 %v6531_v56, %v4104_v16  ;;  %vm3229_vm8 = vweird.f32 %v6415_v50  ;;  %v2724_v31 = vmul.f32 2.0, %v2723_v11  ;;  %v3718_v13 = vadd.f32 %v6503_v49, %v3717_v15 }
0x3870   :  { %vm3720_vm9 = vweird.f32 %v6503_v49  ;;  %vm6604_vm10 = vmor %vm3229_vm8, %vm3230_vm15  ;;  %v3236_v41 = vor.u32 1.1754944e-38, %v3235_v51  ;;  %v2258_v59 = vmul.f32 %v2257_v40, %v2242_v46  ;;  %v3215_v20 = vmul.f32 %v5947_v27, %v5947_v27 }
0x3871   :  { %v3232_v50 = vsel %vm6604_vm10, %v6482_v10, %v6592_v0  ;;  %vm6615_vm11 = vcmp.eq.f32.partialorder %v3233_v14, 8.507059e+37  ;;  %v4600_v37 = vpop.eup %4599  ;;  %v3705_v47 = vmul.f32 %v6103_v39, %v6103_v39  ;;  %vm3719_vm12 = vweird.f32 %v6444_v58 }
0x3872   :  { %v3725_v61 = vand.u32 2147483648, %v6444_v58  ;;  %v4602_v36 = vpop.eup %4601  ;;  %v2748_v52 = vmul.f32 %v2747_v55, %v2732_v35  ;;  %v4106_v62 = vadd.f32 %v6531_v56, %v4105_v1  ;;  %vm4108_vm14 = vweird.f32 %v6531_v56  ;;  %vm6628_vm2 = vmor %vm3719_vm12, %vm3720_vm9 }
0x3873   :  { %vm4107_vm3 = vweird.f32 %v6467_v29  ;;  %v4111_v22 = vand.u32 2147483647, %v6467_v29  ;;  %v3722_v11 = vsel %vm6628_vm2, %v6503_v49, %v3718_v13  ;;  %v4093_v24 = vmul.f32 %v6245_v33, %v6245_v33 }
0x3874   :  { %v4604_v17 = vpop.eup %4603  ;;  %v2259_v16 = vadd.f32 %v2258_v59, %v2234_v21  ;;  %v3712_v5 = vadd.f32 %v3710_v53, %v3705_v47  ;;  %vm6642_vm5 = vmor %vm4107_vm3, %vm4108_vm14  ;;  %v3703_v14 = vmul.f32 0.6931472, %v4602_v36  ;;  %v3213_v51 = vmul.f32 0.6931472, %v4600_v37 }
0x3875   :  { %v2749_v46 = vadd.f32 %v2748_v52, %v2724_v31  ;;  %v4110_v49 = vsel %vm6642_vm5, %v6531_v56, %v4106_v62  ;;  %v4100_v0 = vadd.f32 %v4098_v60, %v4093_v24  ;;  %v4091_v40 = vmul.f32 0.6931472, %v4604_v17 }
0x3876   :  { %vm4112_vm7 = vcmp.eq.f32.partialorder %v4111_v22, 8.507059e+37  ;;  %v4294_v1 = vadd.f32 -1.0, %v2259_v16  ;;  %v3214_v37 = vmul.f32 2.0, %v3213_v51  ;;  %v3237_v31 = vsel %vm6615_vm11, %v3236_v41, %v3232_v50 }
0x3877   :  { %v4307_v47 = vadd.f32 -1.0, %v2749_v46  ;;  %v4092_v53 = vmul.f32 2.0, %v4091_v40  ;;  %v631_v36 = vmul.f32 0.5, %v6872_v18  ;;  %v639_v52 = vadd.f32 1.0, %v6394_v8 }
0x3878   :  { %v2107_v8 = vmin.f32 %v5759_v28, 20.0  ;;  %v6906_v17 = vmov 0.0   ;;  %v1130_v16 = vadd.f32 1.0, %v6411_v19  ;;  %vm635_vm15 = vcmp.gt.f32.partialorder %v6872_v18, 20.0 }
0x3879   :  { %4605 = vlog2.f32 %v639_v52  ;;  %vm64_vm8 = vcmp.lt.s32.totalorder %v5075_v9, 16  ;;  %v1612_v40 = vmul.f32 0.5, %v6896_v32  ;;  %vm1126_vm9 = vcmp.gt.f32.partialorder %v6875_v43, 20.0 }
0x387a   :  { %4607 = vtanh.f32 %v631_v36  ;;  %vm1616_vm10 = vcmp.gt.f32.partialorder %v6896_v32, 20.0  ;;  %vm2106_vm11 = vcmp.gt.f32.partialorder %v5759_v28, 20.0  ;;  %vm2596_vm12 = vcmp.gt.f32.partialorder %v5887_v63, 20.0 }
0x387b   :  { %vm3086_vm14 = vcmp.gt.f32.partialorder %v6024_v54, 20.0  ;;  %vm808_vm2 = vcmask 392192  }
0x388f   :  { %v4011_v6 = vpop.permute.xlu2 %4010 }
0x3890   :  { %4342 = vmatmul.msk.f32.vlgmr.msra.gmra.mxu0 %vm162_vm1, %v4011_v6  ;;  %v1618_v6 = vmul.f32 1.442695, %v1617_v42 }
0x3892   :  { %4609 = vpow2.f32 %v1618_v6 }
0x3893   :  { %4611 = vlog2.f32 %v1130_v16 }
0x3897   :  { %v1750_v38 = vpop.permute.xlu2 %1749 }
0x3898   :  { %v1752_v2 = vadd.f32 %v1750_v38, %v6480_v30  ;;  %v3723_v30 = vand.u32 2147483647, %v6444_v58  ;;  %v4113_v58 = vand.u32 2147483648, %v6467_v29  ;;  %v3726_v29 = vor.u32 1.1754944e-38, %v3725_v61 }
0x389a   :  { %v1768_v4 = vmul.f32 %v6472_v7, %v1752_v2  ;;  %vm3724_vm6 = vcmp.eq.f32.partialorder %v3723_v30, 8.507059e+37  ;;  %v4114_v21 = vor.u32 1.1754944e-38, %v4113_v58  ;;  %v3704_v2 = vmul.f32 2.0, %v3703_v14  ;;  %v4606_v7 = vpop.eup %4605 }
0x389b   :  { %v3727_v35 = vsel %vm3724_vm6, %v3726_v29, %v3722_v11  ;;  %v4608_v42 = vpop.eup %4607  ;;  %v2108_v29 = vmul.f32 1.442695, %v2107_v8  ;;  %v641_v46 = vmul.f32 0.6931472, %v4606_v7  ;;  %v3082_v8 = vmul.f32 0.5, %v6024_v54 }
0x389c   :  { %v1769_v15 = vadd.f32 %v1768_v4, %v6476_v12  ;;  %v3728_v13 = vmul.f32 %v3727_v35, %v3712_v5  ;;  %v4115_v59 = vsel %vm4112_vm7, %v4114_v21, %v4110_v49  ;;  %v4610_v51 = vpop.eup %4609  ;;  %v633_v49 = vadd.f32 1.0, %v4608_v42 }
0x389d   :  { %v4116_v56 = vmul.f32 %v4115_v59, %v4100_v0  ;;  %v2597_v0 = vmin.f32 %v5887_v63, 20.0  ;;  %v1620_v19 = vadd.f32 1.0, %v4610_v51  ;;  %v4612_v21 = vpop.eup %4611 }
0x389e   :  { %v4281_v55 = vadd.f32 -1.0, %v1769_v15  ;;  %v3729_v62 = vadd.f32 %v3728_v13, %v3704_v2  ;;  %v1122_v15 = vmul.f32 0.5, %v6875_v43  ;;  %v634_v35 = vmul.f32 0.5, %v633_v49 }
0x389f   :  { %v3220_v12 = vpop.permute.xlu2 %3219  ;;  %v4117_v22 = vadd.f32 %v4116_v56, %v4092_v53 }
0x38a0   :  { %v1771_v38 = vadd.f32 %v4281_v55, %v6292_v45  ;;  %v3222_v48 = vadd.f32 %v3220_v12, %v3215_v20  ;;  %v6905_v45 = vlaneseq  ;;  %v4333_v41 = vadd.f32 -1.0, %v3729_v62  ;;  %v4038_v62 = vld [vmem:[#allocation2 + $0x130] sm:$0xff] }
0x38a1   :  { %v4344_v60 = vadd.f32 -1.0, %v4117_v22  ;;  %4613 = vtanh.f32 %v1122_v15  ;;  %v642_v55 = vsel %vm635_vm15, %v6872_v18, %v641_v46  ;;  %v3087_v18 = vmin.f32 %v6024_v54, 20.0  ;;  %4054 = vmatpush.msra.mxu1 %v4038_v62 }
0x38a2   :  { %v2261_v30 = vadd.f32 %v4294_v1, %v1771_v38  ;;  %v3238_v61 = vmul.f32 %v3237_v31, %v3222_v48  ;;  %v66_v20 = vshrl.u32 %v6905_v45, 7  ;;  %4615 = vpow2.f32 %v2108_v29 }
0x38a3   :  { %v2598_v1 = vmul.f32 1.442695, %v2597_v0  ;;  %v643_v13 = vsel %vm64_vm8, %v634_v35, %v642_v55  ;;  %4617 = vlog2.f32 %v1620_v19  ;;  %v1132_v48 = vmul.f32 0.6931472, %v4612_v21  ;;  %v4036_v21 = vld [vmem:[#allocation2 + $0x120] sm:$0xff]  ;;  %v4035_v35 = vld [vmem:[#allocation2 + $0x118] sm:$0xff] }
0x38a4   :  { %v2751_v10 = vadd.f32 %v4307_v47, %v2261_v30  ;;  %v3239_v4 = vadd.f32 %v3238_v61, %v3214_v37  ;;  %vm67_vm13 = vcmp.lt.s32.totalorder %v66_v20, 4  ;;  %4619 = vtanh.f32 %v1612_v40 }
0x38a5   :  { %v6659_v24 = vsel %vm67_vm13, 1.0, %v6906_v17  ;;  %4621 = vpow2.f32 %v2598_v1  ;;  %v1133_v37 = vsel %vm1126_vm9, %v6875_v43, %v1132_v48  ;;  %v2102_v31 = vmul.f32 0.5, %v5759_v28 }
0x38a6   :  { %v4320_v58 = vadd.f32 -1.0, %v3239_v4  ;;  %v3088_v61 = vmul.f32 1.442695, %v3087_v18  ;;  %v2592_v45 = vmul.f32 0.5, %v5887_v63 }
0x38a7   :  { %v4614_v12 = vpop.eup %4613 }
0x38a8   :  { %v3241_v50 = vadd.f32 %v4320_v58, %v2751_v10  ;;  %v4616_v38 = vpop.eup %4615  ;;  %v1124_v59 = vadd.f32 1.0, %v4614_v12  ;;  %v3577_v12 = vmin.f32 %v6185_v3, 20.0 }
0x38a9   :  { %v2110_v2 = vadd.f32 1.0, %v4616_v38  ;;  %v4618_v47 = vpop.eup %4617 }
0x38aa   :  { %v3731_v11 = vadd.f32 %v4333_v41, %v3241_v50  ;;  %v1125_v56 = vmul.f32 0.5, %v1124_v59  ;;  %v4620_v30 = vpop.eup %4619  ;;  %v1622_v52 = vmul.f32 0.6931472, %v4618_v47  ;;  %v3578_v1 = vmul.f32 1.442695, %v3577_v12 }
0x38ab   :  { %4623 = vlog2.f32 %v2110_v2  ;;  %v4622_v36 = vpop.eup %4621  ;;  %v1614_v10 = vadd.f32 1.0, %v4620_v30  ;;  %v3572_v59 = vmul.f32 0.5, %v6185_v3  ;;  %v4682_v2 = vld [vmem:[%s6768_s4 + $0xa] ss:$0 sm:$0xff] }
0x38ac   :  { %v4119_v5 = vadd.f32 %v4344_v60, %v3731_v11  ;;  %v1134_v53 = vsel %vm64_vm8, %v1125_v56, %v1133_v37  ;;  %4625 = vtanh.f32 %v2102_v31  ;;  %v2600_v43 = vadd.f32 1.0, %v4622_v36 }
0x38ad   :  { %4627 = vpow2.f32 %v3088_v61  ;;  %v1623_v4 = vsel %vm1616_vm10, %v6896_v32, %v1622_v52  ;;  %v1615_v22 = vmul.f32 0.5, %v1614_v10 }
0x38ae   :  { %v4139_v14 = vmul.f32 %v6659_v24, %v4119_v5  ;;  %4629 = vlog2.f32 %v2600_v43 }
0x38af   :  { %v1624_v6 = vsel %vm64_vm8, %v1615_v22, %v1623_v4  ;;  %4631 = vtanh.f32 %v2592_v45 }
0x38b0   :  { %4141 = vrot.lane.b32.xlu2 %v4139_v14, %s4792_s10 }
0x38b1   :  { %v4624_v20 = vpop.eup %4623 }
0x38b2   :  { %v4626_v58 = vpop.eup %4625  ;;  %v2112_v50 = vmul.f32 0.6931472, %v4624_v20 }
0x38b3   :  { %v4628_v41 = vpop.eup %4627  ;;  %v2104_v60 = vadd.f32 1.0, %v4626_v58 }
0x38b4   :  { %v3090_v11 = vadd.f32 1.0, %v4628_v41  ;;  %v2113_v32 = vsel %vm2106_vm11, %v5759_v28, %v2112_v50  ;;  %v4630_v17 = vpop.eup %4629 }
0x38b5   :  { %v2105_v16 = vmul.f32 0.5, %v2104_v60  ;;  %v4632_v5 = vpop.eup %4631  ;;  %v2602_v7 = vmul.f32 0.6931472, %v4630_v17 }
0x38b6   :  { %4633 = vlog2.f32 %v3090_v11  ;;  %v2594_v42 = vadd.f32 1.0, %v4632_v5 }
0x38b7   :  { %v2114_v15 = vsel %vm64_vm8, %v2105_v16, %v2113_v32  ;;  %4635 = vtanh.f32 %v3082_v8  ;;  %v2603_v14 = vsel %vm2596_vm12, %v5887_v63, %v2602_v7  ;;  %v4037_v63 = vld [vmem:[#allocation2 + $0x128] sm:$0xff] }
0x38b8   :  { %804 = vrot.lane.b32.xlu2 %v643_v13, %s4794_s1  ;;  %v2595_v28 = vmul.f32 0.5, %v2594_v42  ;;  %4055 = vmatpush.msra.mxu1 %v4037_v63  ;;  %4637 = vpow2.f32 %v3578_v1 }
0x38ba   :  { %v2604_v46 = vsel %vm64_vm8, %v2595_v28, %v2603_v14  ;;  %4056 = vmatpush.msra.mxu1 %v4036_v21 }
0x38bc   :  { %v4634_v29 = vpop.eup %4633  ;;  %4057 = vmatpush.msra.mxu1 %v4035_v35 }
0x38bd   :  { %v4636_v51 = vpop.eup %4635  ;;  %v3092_v49 = vmul.f32 0.6931472, %v4634_v29 }
0x38be   :  { %v3084_v0 = vadd.f32 1.0, %v4636_v51  ;;  %v4638_v13 = vpop.eup %4637 }
0x38bf   :  { %v3093_v19 = vsel %vm3086_vm14, %v6024_v54, %v3092_v49  ;;  %v3580_v48 = vadd.f32 1.0, %v4638_v13 }
0x38c0   :  { %1295 = vrot.lane.b32.xlu2 %v1134_v53, %s4794_s1  ;;  %v3085_v55 = vmul.f32 0.5, %v3084_v0 }
0x38c1   :  { %4639 = vlog2.f32 %v3580_v48 }
0x38c2   :  { %v3094_v40 = vsel %vm64_vm8, %v3085_v55, %v3093_v19  ;;  %4641 = vtanh.f32 %v3572_v59  ;;  %v3751_v55 = vld [vmem:[%s6764_s0 + $0x38] sm:$0xff] }
0x38c7   :  { %v4640_v61 = vpop.eup %4639 }
0x38c8   :  { %1785 = vrot.lane.b32.xlu2 %v1624_v6, %s4794_s1  ;;  %v4642_v53 = vpop.eup %4641  ;;  %v3582_v36 = vmul.f32 0.6931472, %v4640_v61 }
0x38c9   :  { %v3574_v52 = vadd.f32 1.0, %v4642_v53 }
0x38cb   :  { %v3575_v45 = vmul.f32 0.5, %v3574_v52 }
0x38d0   :  { %2275 = vrot.lane.b32.xlu2 %v2114_v15, %s4794_s1 }
0x38d8   :  { %2765 = vrot.lane.b32.xlu2 %v2604_v46, %s4794_s1 }
0x38e0   :  { %3255 = vrot.lane.b32.xlu2 %v3094_v40, %s4794_s1 }
0x390a   :  { %v4142_v38 = vpop.permute.xlu2 %4141 }
0x390b   :  { %v4144_v54 = vsel %vm483_vm4, %v4142_v38, 0.0  ;;  %vm3576_vm4 = vcmp.gt.f32.partialorder %v6185_v3, 20.0 }
0x390c   :  { %4145 = vadd.xlane.f32.xlu0 %v4144_v54  ;;  %v3583_v4 = vsel %vm3576_vm4, %v6185_v3, %v3582_v36 }
0x390d   :  { %v4031_v18 = vpop.f32.mrf.mxu0 }
0x390e   :  { %v4032_v37 = vadd.f32 %v4682_v2, %v4031_v18 }
0x3910   :  { %v4034_v31 = vmax.f32 %v4032_v37, 0.0 }
0x3912   :  { %4343 = vmatmul.msk.f32.vlgmr.msra.gmra.mxu1 %vm162_vm1, %v4034_v31  ;;  %v805_v47 = vpop.permute.xlu2 %804  ;;  %vm4156_vm1 = vcmask 0  }
0x3913   :  { %v807_v56 = vsel %vm82_vm0, %v6868_v34, %v805_v47  ;;  %v3584_v34 = vsel %vm64_vm8, %v3575_v45, %v3583_v4 }
0x3914   :  { %v809_v30 = vsel %vm808_vm2, %v807_v56, 0.0 }
0x3915   :  { %810 = vst [vmem:[#allocation5] sm:$0xff] %v809_v30 }
0x391a   :  { %v1296_v62 = vpop.permute.xlu2 %1295 }
0x391b   :  { %v1298_v10 = vsel %vm82_vm0, %v6865_v57, %v1296_v62 }
0x391c   :  { %v1299_v43 = vsel %vm808_vm2, %v1298_v10, 0.0 }
0x391d   :  { %1300 = vst [vmem:[#allocation5 + $0x8] sm:$0xff] %v1299_v43 }
0x3920   :  { %3745 = vrot.lane.b32.xlu0 %v3584_v34, %s4794_s1 }
0x3922   :  { %v1786_v20 = vpop.permute.xlu2 %1785 }
0x3923   :  { %v1788_v22 = vsel %vm82_vm0, %v6871_v23, %v1786_v20 }
0x3924   :  { %v1789_v58 = vsel %vm808_vm2, %v1788_v22, 0.0 }
0x3925   :  { %1790 = vst [vmem:[#allocation5 + $0x10] sm:$0xff] %v1789_v58 }
0x392a   :  { %v2276_v57 = vpop.permute.xlu2 %2275 }
0x392b   :  { %v2278_v6 = vsel %vm82_vm0, %v6869_v25, %v2276_v57 }
0x392c   :  { %v2279_v3 = vsel %vm808_vm2, %v2278_v6, 0.0 }
0x392d   :  { %2280 = vst [vmem:[#allocation5 + $0x18] sm:$0xff] %v2279_v3 }
0x3932   :  { %v2766_v41 = vpop.permute.xlu2 %2765 }
0x3933   :  { %v2768_v50 = vsel %vm82_vm0, %v5799_v26, %v2766_v41  ;;  %v4683_v26 = vld [vmem:[%s6768_s4 + $0xb] ss:$0 sm:$0xff]  ;;  %s4795_s4 = smov [#allocation6]  }
0x3934   :  { %v2769_v60 = vsel %vm808_vm2, %v2768_v50, 0.0  ;;  %s4189_s22 = sshll.u32 %s4795_s4, 4  ;;  %s4190_s22 = int_to_ptr.vmem [resolvable:$true] %s4189_s22 }
0x3935   :  { %2770 = vst [vmem:[#allocation5 + $0x20] sm:$0xff] %v2769_v60 }
0x393a   :  { %v3256_v11 = vpop.permute.xlu2 %3255 }
0x393b   :  { %v3258_v23 = vsel %vm82_vm0, %v5947_v27, %v3256_v11 }
0x393c   :  { %v3259_v32 = vsel %vm808_vm2, %v3258_v23, 0.0 }
0x393d   :  { %3260 = vst [vmem:[#allocation5 + $0x28] sm:$0xff] %v3259_v32 }
0x397f   :  { %v4146_v8 = vpop.xlane.xlu0 %4145 }
0x3980   :  { %v4147_v17 = vrot.slane %v4146_v8, 4 }
0x3982   :  { %v4148_v25 = vadd.f32 %v4147_v17, %v4146_v8 }
0x3984   :  { %v4149_v16 = vrot.slane %v4148_v25, 2 }
0x3986   :  { %v4150_v5 = vadd.f32 %v4149_v16, %v4148_v25 }
0x3988   :  { %v4151_v15 = vrot.slane %v4150_v5, 1 }
0x398a   :  { %v4152_v7 = vadd.f32 %v4151_v15, %v4150_v5 }
0x398c   :  { %4345 = vpush %v4152_v7 }
0x398f   :  { %v4059_v42 = vpop.f32.mrf.mxu1 }
0x3990   :  { %v4060_v14 = vadd.f32 %v4683_v26, %v4059_v42 }
0x3992   :  { %v3746_v29 = vpop.permute.xlu0 %3745  ;;  %v4123_v28 = vand.u32 2147483647, %v4060_v14  ;;  %v4120_v40 = vmax.f32 %v4060_v14, 0.0  ;;  %v4121_v63 = vmul.f32 %v4060_v14, %v3751_v55  ;;  %v4067_v21 = vmin.f32 %v4060_v14, 20.0 }
0x3993   :  { %v3748_v27 = vsel %vm82_vm0, %v6103_v39, %v3746_v29  ;;  %v4062_v2 = vmul.f32 0.5, %v4060_v14  ;;  %vm4066_vm3 = vcmp.gt.f32.partialorder %v4060_v14, 20.0 }
0x3994   :  { %v3749_v51 = vsel %vm808_vm2, %v3748_v27, 0.0  ;;  %v4124_v46 = vsub.f32 0.0, %v4123_v28  ;;  %v4122_v12 = vsub.f32 %v4120_v40, %v4121_v63  ;;  %v4068_v39 = vmul.f32 1.442695, %v4067_v21 }
0x3995   :  { %3750 = vst [vmem:[#allocation5 + $0x30] sm:$0xff] %v3749_v51 }
0x3996   :  { %v4125_v49 = vmul.f32 1.442695, %v4124_v46 }
0x3998   :  { %4643 = vpow2.f32 %v4125_v49 }
0x399e   :  { %v4644_v0 = vpop.eup %4643 }
0x399f   :  { %v4127_v19 = vadd.f32 1.0, %v4644_v0 }
0x39a1   :  { %4645 = vlog2.f32 %v4127_v19 }
0x39a2   :  { %4647 = vpow2.f32 %v4068_v39 }
0x39a7   :  { %v4646_v35 = vpop.eup %4645 }
0x39a8   :  { %v4129_v1 = vmul.f32 0.6931472, %v4646_v35  ;;  %v4648_v59 = vpop.eup %4647 }
0x39a9   :  { %v4070_v18 = vadd.f32 1.0, %v4648_v59 }
0x39aa   :  { %v4130_v13 = vadd.f32 %v4129_v1, %v4122_v12 }
0x39ab   :  { %4649 = vlog2.f32 %v4070_v18 }
0x39ac   :  { %v4131_v38 = vadd.f32 %v4130_v13, %v6194_v44  ;;  %4651 = vtanh.f32 %v4062_v2 }
0x39ae   :  { %v4158_v54 = vmul.f32 %v6659_v24, %v4131_v38 }
0x39b0   :  { %v4159_v48 = vsel %vm82_vm0, %v4158_v54, 0.0 }
0x39b1   :  { %4160 = vadd.xlane.f32.xlu1 %v4159_v48  ;;  %v4650_v31 = vpop.eup %4649 }
0x39b2   :  { %v4652_v56 = vpop.eup %4651  ;;  %v4072_v44 = vmul.f32 0.6931472, %v4650_v31 }
0x39b3   :  { %v4064_v30 = vadd.f32 1.0, %v4652_v56 }
0x39b4   :  { %v4073_v24 = vsel %vm4066_vm3, %v4060_v14, %v4072_v44 }
0x39b5   :  { %v4065_v61 = vmul.f32 0.5, %v4064_v30 }
0x39b7   :  { %v4074_v53 = vsel %vm64_vm8, %v4065_v61, %v4073_v24 }
0x39bd   :  { %s4346_s0 = spop %4345 }
0x39be   :  { %v4154_v37 = vstv %s4346_s0 }
0x39bf   :  { %v4155_v47 = vmul.f32 0.5, %v4154_v37 }
0x39c1   :  { %4157 = vst.msk [vmem:[#allocation6] sm:$0x1] %vm4156_vm1, %v4155_v47 }
0x39c2   :  { %4194 = dma.vmem_to_hbm [thread:$0]  %s4190_s22, 16, %s4192_s27, [#allocation7]  }
0x39ca   :  { %4133 = vrot.lane.b32.xlu1 %v4074_v53, %s4794_s1 }
0x3a24   :  { %v4161_v36 = vpop.xlane.xlu1 %4160 }
0x3a25   :  { %v4162_v52 = vrot.slane %v4161_v36, 4 }
0x3a27   :  { %v4163_v62 = vadd.f32 %v4162_v52, %v4161_v36 }
0x3a29   :  { %v4164_v10 = vrot.slane %v4163_v62, 2 }
0x3a2b   :  { %v4165_v43 = vadd.f32 %v4164_v10, %v4163_v62 }
0x3a2d   :  { %v4166_v4 = vrot.slane %v4165_v43, 1 }
0x3a2f   :  { %v4167_v45 = vadd.f32 %v4166_v4, %v4165_v43 }
0x3a31   :  { %4347 = vpush %v4167_v45 }
0x3a3c   :  { %v4134_v9 = vpop.permute.xlu1 %4133 }
0x3a3d   :  { %v4136_v34 = vsel %vm82_vm0, %v6245_v33, %v4134_v9 }
0x3a3e   :  { %v4137_v20 = vsel %vm808_vm2, %v4136_v34, 0.0 }
0x3a3f   :  { %4138 = vst [vmem:[#allocation5 + $0x38] sm:$0xff] %v4137_v20 }
0x3a40   :  { %4183 = dma.vmem_to_hbm [thread:$0]  %s4176_s8, 1024, %s4178_s12, [#allocation4], %s4787_s29, %s4787_s29, %s4788_s30  }
0x3a62   :  { %s4348_s5 = spop %4347 }
0x3a63   :  { %v4169_v22 = vstv %s4348_s5 }
0x3a64   :  { %4170 = vst.msk [vmem:[#allocation8] sm:$0x1] %vm4156_vm1, %v4169_v22 }
0x3a65   :  { %4205 = dma.vmem_to_hbm [thread:$0]  %s4201_s13, 16, %s4203_s15, [#allocation7]  }
0x3a66   :  { %4782 = dma.done.wait [#allocation4], 1024  }
0x3a67   :  { %4783 = vsyncadd [#allocation4], 4294966272 }
0x3a68   :  { %4784 = dma.done.wait [#allocation7], 32  }
0x3a69   :  { %4785 = vsyncadd [#allocation7], 4294967264 }
0x3a6a   :  { %4218 = vsyncpa [#allocation3], 1 }
0x3a6b   :  { %4219 = vsyncpa [#allocation4], 1 }
0x3a6c   :  { %4220 = vsyncpa [#allocation7], 1 }

</bundles_post_ra>
